<compile_context>
chip_gen: v6e
topology: v6e:2x2x1
jax: 0.10.0
libtpu: 0.0.40
codegen_flags: <defaults>
</compile_context>

<pallas_src>
import functools

import jax
import jax.numpy as jnp
from jax import lax
from jax.experimental import pallas as pl
from jax.experimental.pallas import tpu as pltpu


# ----------------------------------------------------------------------------
# Tiling helper
# ----------------------------------------------------------------------------
def _pick_tm(M, target=512):
    """Row-tile size: biggest divisor of M among {target,256,...,8}, else M."""
    if M <= target:
        return M
    for t in (target, 256, 128, 64, 32, 16, 8):
        if M % t == 0:
            return t
    # TODO(synk): mask partial tiles instead of falling back to a single block.
    return M


def _leaky(x):
    return jnp.where(x > 0, x, 0.01 * x)        # PyTorch default slope = 0.01


def _elu(x):
    return jnp.where(x > 0, x, jnp.exp(x) - 1.0)


# ----------------------------------------------------------------------------
# Fused CNN_denoise: leaky(leaky(x @ W0 + b0) @ W1 + b1), BN pre-folded
# ----------------------------------------------------------------------------
def _denoise_kernel(x_ref, w0_ref, b0_ref, w1_ref, b1_ref, o_ref):
    h0 = jnp.dot(x_ref[...], w0_ref[...],
                 preferred_element_type=jnp.float32) + b0_ref[...]
    h0 = _leaky(h0)
    h1 = jnp.dot(h0.astype(jnp.bfloat16), w1_ref[...],
                 preferred_element_type=jnp.float32) + b1_ref[...]
    o_ref[...] = _leaky(h1).astype(o_ref.dtype)


def denoise_fused(x, W0, b0, W1, b1, *, tm_target=512):
    M, c = x.shape
    C = W0.shape[1]
    tm = _pick_tm(M, tm_target)
    return pl.pallas_call(
        _denoise_kernel,
        grid=(M // tm,),
        in_specs=[pl.BlockSpec((tm, c), lambda i: (i, 0)),
                  pl.BlockSpec((c, C), lambda i: (0, 0)),
                  pl.BlockSpec((1, C), lambda i: (0, 0)),
                  pl.BlockSpec((C, C), lambda i: (0, 0)),
                  pl.BlockSpec((1, C), lambda i: (0, 0))],
        out_specs=pl.BlockSpec((tm, C), lambda i: (i, 0)),
        out_shape=jax.ShapeDtypeStruct((M, C), jnp.bfloat16),
        compiler_params=pltpu.CompilerParams(dimension_semantics=("parallel",)),
    )(x.astype(jnp.bfloat16), W0.astype(jnp.bfloat16),
      b0.astype(jnp.float32).reshape(1, C),
      W1.astype(jnp.bfloat16), b1.astype(jnp.float32).reshape(1, C))


# ----------------------------------------------------------------------------
# Fused tiled reduction over HW (single read of `clean`):
#   H_sp    = norm_col_Q^T @ clean                      (superpixel aggregation)
#   attn_T  = softmax(rowmax(E) - E, axis=-1)^T,  E = clean^T clean  (CAM 1)
# ----------------------------------------------------------------------------
def _spagg_energy_kernel(q_ref, x_ref, hsp_ref, attnt_ref, hacc_ref, eacc_ref):
    @pl.when(pl.program_id(0) == 0)
    def _():
        hacc_ref[...] = jnp.zeros_like(hacc_ref)
        eacc_ref[...] = jnp.zeros_like(eacc_ref)

    x = x_ref[...]                                           # (tm, C) bf16
    # contract the row (HW) axis of both operands -> no transposes on the MXU.
    hacc_ref[...] += lax.dot_general(q_ref[...], x, (((0,), (0,)), ((), ())),
                                     preferred_element_type=jnp.float32)
    eacc_ref[...] += lax.dot_general(x, x, (((0,), (0,)), ((), ())),
                                     preferred_element_type=jnp.float32)

    @pl.when(pl.program_id(0) == pl.num_programs(0) - 1)
    def _():
        hsp_ref[...] = hacc_ref[...]
        energy = eacc_ref[...]
        e_new = jnp.max(energy, axis=-1, keepdims=True) - energy
        e_new = e_new - jnp.max(e_new, axis=-1, keepdims=True)   # stability
        p = jnp.exp(e_new)
        attn = p / jnp.sum(p, axis=-1, keepdims=True)
        attnt_ref[...] = attn.T          # store transposed: apply is x @ attn_T


def spagg_and_cam1(q_norm, clean_bf16, *, tm_target=512):
    M, N = q_norm.shape
    C = clean_bf16.shape[1]
    tm = _pick_tm(M, tm_target)
    return pl.pallas_call(
        _spagg_energy_kernel,
        grid=(M // tm,),
        in_specs=[pl.BlockSpec((tm, N), lambda i: (i, 0)),
                  pl.BlockSpec((tm, C), lambda i: (i, 0))],
        out_specs=[pl.BlockSpec((N, C), lambda i: (0, 0)),
                   pl.BlockSpec((C, C), lambda i: (0, 0))],
        out_shape=(jax.ShapeDtypeStruct((N, C), jnp.float32),
                   jax.ShapeDtypeStruct((C, C), jnp.float32)),
        scratch_shapes=[pltpu.VMEM((N, C), jnp.float32),
                        pltpu.VMEM((C, C), jnp.float32)],
        compiler_params=pltpu.CompilerParams(dimension_semantics=("arbitrary",)),
    )(q_norm.astype(jnp.bfloat16), clean_bf16)


# ----------------------------------------------------------------------------
# CAM energy only (second CAM): accumulate E = x^T x over HW tiles, finalize
# softmax(rowmax(E) - E) and store it transposed.
# ----------------------------------------------------------------------------
def _cam_energy_kernel(x_ref, attnt_ref, acc_ref):
    @pl.when(pl.program_id(0) == 0)
    def _():
        acc_ref[...] = jnp.zeros_like(acc_ref)

    x = x_ref[...]                                           # (tm, C) bf16
    acc_ref[...] += lax.dot_general(x, x, (((0,), (0,)), ((), ())),
                                    preferred_element_type=jnp.float32)

    @pl.when(pl.program_id(0) == pl.num_programs(0) - 1)
    def _():
        energy = acc_ref[...]
        e_new = jnp.max(energy, axis=-1, keepdims=True) - energy
        e_new = e_new - jnp.max(e_new, axis=-1, keepdims=True)
        p = jnp.exp(e_new)
        attn = p / jnp.sum(p, axis=-1, keepdims=True)
        attnt_ref[...] = attn.T


def cam_attention_t(x_bf16, *, tm_target=512):
    M, C = x_bf16.shape
    tm = _pick_tm(M, tm_target)
    return pl.pallas_call(
        _cam_energy_kernel,
        grid=(M // tm,),
        in_specs=[pl.BlockSpec((tm, C), lambda i: (i, 0))],
        out_specs=pl.BlockSpec((C, C), lambda i: (0, 0)),
        out_shape=jax.ShapeDtypeStruct((C, C), jnp.float32),
        scratch_shapes=[pltpu.VMEM((C, C), jnp.float32)],
        compiler_params=pltpu.CompilerParams(dimension_semantics=("arbitrary",)),
    )(x_bf16)


# ----------------------------------------------------------------------------
# CAM apply fused with SSConv pointwise conv:
#   out = leaky( (x + gamma * x @ attn_T) @ Wp + bp ),  tiled over HW
# ----------------------------------------------------------------------------
def _cam_pw_kernel(gamma_ref, x_ref, attnt_ref, wp_ref, bp_ref, o_ref):
    x = x_ref[...]                                           # (tm, C) bf16
    cam = jnp.dot(x, attnt_ref[...],                         # x @ attn^T (plain MXU)
                  preferred_element_type=jnp.float32)
    cam = x.astype(jnp.float32) + gamma_ref[0] * cam
    out = jnp.dot(cam.astype(jnp.bfloat16), wp_ref[...],
                  preferred_element_type=jnp.float32) + bp_ref[...]
    o_ref[...] = _leaky(out).astype(o_ref.dtype)


def cam_apply_pointwise(x_bf16, attn_t, gamma, Wp, bp, *, tm_target=512):
    M, C = x_bf16.shape
    Cout = Wp.shape[1]
    tm = _pick_tm(M, tm_target)
    return pl.pallas_call(
        _cam_pw_kernel,
        grid=(M // tm,),
        in_specs=[pl.BlockSpec(memory_space=pltpu.MemorySpace.SMEM),   # gamma
                  pl.BlockSpec((tm, C), lambda i: (i, 0)),
                  pl.BlockSpec((C, C), lambda i: (0, 0)),
                  pl.BlockSpec((C, Cout), lambda i: (0, 0)),
                  pl.BlockSpec((1, Cout), lambda i: (0, 0))],
        out_specs=pl.BlockSpec((tm, Cout), lambda i: (i, 0)),
        out_shape=jax.ShapeDtypeStruct((M, Cout), jnp.bfloat16),
        compiler_params=pltpu.CompilerParams(dimension_semantics=("parallel",)),
    )(jnp.asarray(gamma, jnp.float32).reshape(1), x_bf16,
      attn_t.astype(jnp.bfloat16), Wp.astype(jnp.bfloat16),
      bp.astype(jnp.float32).reshape(1, Cout))


# ----------------------------------------------------------------------------
# Depthwise k x k conv + LeakyReLU on an (H, W, C) slab (C on the lane axis)
# ----------------------------------------------------------------------------
def _dwconv_kernel(x_ref, w_ref, b_ref, o_ref, *, k, H, W):
    x = x_ref[...].astype(jnp.float32)                  # padded (H+k-1, W+k-1, C)
    wk = w_ref[...]
    acc = jnp.zeros((H, W, x.shape[-1]), jnp.float32)
    for dy in range(k):
        for dx in range(k):
            acc = acc + x[dy:dy + H, dx:dx + W, :] * wk[dy, dx, :]
    acc = _leaky(acc + b_ref[...])
    o_ref[...] = acc.astype(o_ref.dtype)


def dwconv_leaky(x_hwc, w_kkc, b_c, k):
    H, W, C = x_hwc.shape
    p = k // 2
    xp = jnp.pad(x_hwc, ((p, p), (p, p), (0, 0)))
    # TODO(synk): for large H*W, grid over H with a (k-1)-row halo and do the
    # sublane shifts with pltpu.roll instead of unaligned whole-slab slices.
    return pl.pallas_call(
        functools.partial(_dwconv_kernel, k=k, H=H, W=W),
        out_shape=jax.ShapeDtypeStruct((H, W, C), jnp.bfloat16),
    )(xp, w_kkc.astype(jnp.float32), b_c.astype(jnp.float32).reshape(1, 1, C))


# ----------------------------------------------------------------------------
# Fused GAT branch: 4 attention heads + output layer + linear1(+BN1d) weight,
# over the N superpixels (tiny).  Output Hlin = elu(out_att(...)) @ Wl.
# ----------------------------------------------------------------------------
def _gat_kernel(h_ref, w_ref, asrc_ref, adst_ref, adj_ref, wo_ref, ao_ref,
                wl_ref, o_ref, *, nheads, nhid, nout, alpha):
    h = h_ref[...]
    adj = adj_ref[...]
    neg = jnp.float32(-9e15)

    def masked_softmax_rows(e):
        att = jnp.where(adj > 0, e, neg)
        att = att - jnp.max(att, axis=1, keepdims=True)
        p = jnp.exp(att)
        return p / jnp.sum(p, axis=1, keepdims=True)

    wh_all = jnp.dot(h, w_ref[...], preferred_element_type=jnp.float32)  # (N, nheads*nhid)
    asrc = asrc_ref[...]                                                 # (nhid, nheads)
    adst = adst_ref[...]
    wo = wo_ref[...]                                                     # (nheads*nhid, nout)
    ao = ao_ref[...]                                                     # (2*nout, 1)

    who = jnp.zeros((h.shape[0], nout), jnp.float32)
    for hd in range(nheads):
        wh = wh_all[:, hd * nhid:(hd + 1) * nhid]                        # (N, nhid)
        f1 = jnp.dot(wh, asrc[:, hd:hd + 1], preferred_element_type=jnp.float32)
        f2 = jnp.dot(wh, adst[:, hd:hd + 1], preferred_element_type=jnp.float32)
        e = f1 + f2.T
        e = jnp.where(e > 0, e, alpha * e)                               # LeakyReLU(alpha)
        att = masked_softmax_rows(e)
        hp = _elu(jnp.dot(att, wh, preferred_element_type=jnp.float32))  # ELU (concat head)
        # accumulate hcat @ Wo without materializing the concat
        who = who + jnp.dot(hp, wo[hd * nhid:(hd + 1) * nhid, :],
                            preferred_element_type=jnp.float32)

    f1 = jnp.dot(who, ao[:nout, :], preferred_element_type=jnp.float32)
    f2 = jnp.dot(who, ao[nout:, :], preferred_element_type=jnp.float32)
    e = f1 + f2.T
    e = jnp.where(e > 0, e, alpha * e)
    att = masked_softmax_rows(e)
    hout = _elu(jnp.dot(att, who, preferred_element_type=jnp.float32))   # F.elu in GAT.forward
    # Fold the downstream linear1(+BN1d) weight here (tiny N) so the hw-sized
    # head kernel only needs Q @ Hlin.
    o_ref[...] = jnp.dot(hout, wl_ref[...],
                         preferred_element_type=jnp.float32).astype(o_ref.dtype)


def gat_fused(hfeat, Wstack, asrc, adst, adj, Wo, ao, Wl, *, nheads, nhid, alpha):
    N = hfeat.shape[0]
    nout = Wo.shape[1]
    d = Wl.shape[1]
    kern = functools.partial(_gat_kernel, nheads=nheads, nhid=nhid,
                             nout=nout, alpha=alpha)
    return pl.pallas_call(
        kern, out_shape=jax.ShapeDtypeStruct((N, d), jnp.bfloat16),
    )(hfeat.astype(jnp.float32), Wstack.astype(jnp.float32),
      asrc.astype(jnp.float32), adst.astype(jnp.float32),
      adj.astype(jnp.float32), Wo.astype(jnp.float32), ao.astype(jnp.float32),
      Wl.astype(jnp.float32))


# ----------------------------------------------------------------------------
# Fused head:  softmax( (0.05*CNN + 0.95*leaky(Q@Hlin + bl)) @ Wc + bc )
# Classifier output is padded to a lane-dense 128-wide slab; padded logits get
# bias -1e30 so the softmax ignores them; wrapper slices back to n_classes.
# ----------------------------------------------------------------------------
def _head_kernel(q_ref, hlin_ref, cnn_ref, bl_ref, wc_ref, bc_ref, o_ref):
    g = jnp.dot(q_ref[...], hlin_ref[...],
                preferred_element_type=jnp.float32) + bl_ref[...]
    g = _leaky(g)
    y = 0.05 * cnn_ref[...].astype(jnp.float32) + 0.95 * g
    logits = jnp.dot(y.astype(jnp.bfloat16), wc_ref[...],
                     preferred_element_type=jnp.float32) + bc_ref[...]
    logits = logits - jnp.max(logits, axis=-1, keepdims=True)
    p = jnp.exp(logits)
    o_ref[...] = p / jnp.sum(p, axis=-1, keepdims=True)


def head_fused(Q, Hlin, cnn_bf16, bl, Wc, bc, *, tm_target=512):
    M, N = Q.shape
    nsp, d = Hlin.shape
    ncls = Wc.shape[1]
    npad = ((ncls + 127) // 128) * 128
    Wc_pad = jnp.zeros((d, npad), jnp.float32).at[:, :ncls].set(Wc)
    bc_pad = jnp.full((1, npad), -1e30, jnp.float32).at[0, :ncls].set(bc)
    tm = _pick_tm(M, tm_target)
    y_full = pl.pallas_call(
        _head_kernel,
        grid=(M // tm,),
        in_specs=[pl.BlockSpec((tm, N), lambda i: (i, 0)),
                  pl.BlockSpec((nsp, d), lambda i: (0, 0)),
                  pl.BlockSpec((tm, d), lambda i: (i, 0)),
                  pl.BlockSpec((1, d), lambda i: (0, 0)),
                  pl.BlockSpec((d, npad), lambda i: (0, 0)),
                  pl.BlockSpec((1, npad), lambda i: (0, 0))],
        out_specs=pl.BlockSpec((tm, npad), lambda i: (i, 0)),
        out_shape=jax.ShapeDtypeStruct((M, npad), jnp.float32),
        compiler_params=pltpu.CompilerParams(dimension_semantics=("parallel",)),
    )(Q.astype(jnp.bfloat16), Hlin.astype(jnp.bfloat16), cnn_bf16,
      bl.astype(jnp.float32).reshape(1, d),
      Wc_pad.astype(jnp.bfloat16), bc_pad)
    return y_full[:, :ncls]


# ----------------------------------------------------------------------------
# BatchNorm folding glue (parameter preprocessing, outside kernels)
# ----------------------------------------------------------------------------
def fold_bn_then_linear(W, b, bn, eps=1e-5):
    # BN(x) @ W + b  ==  x @ Wf + bf
    scale = bn["g"] / jnp.sqrt(bn["v"] + eps)
    shift = bn["b"] - bn["m"] * scale
    Wf = scale[:, None] * W
    bf = shift @ W
    if b is not None:
        bf = bf + b
    return Wf, bf.reshape(1, -1)


def fold_linear_then_bn(W, b, bn, eps=1e-5):
    # BN(x @ W + b)  ==  x @ Wf + bf
    scale = bn["g"] / jnp.sqrt(bn["v"] + eps)
    Wf = W * scale[None, :]
    bf = (b - bn["m"]) * scale + bn["b"]
    return Wf, bf.reshape(1, -1)


def init_params(c, n_classes, key):
    ks = iter(jax.random.split(key, 64))

    def nrm(shape, scale=0.1):
        return scale * jax.random.normal(next(ks), shape, jnp.float32)

    def bn(n):
        return dict(g=1.0 + nrm((n,)), b=nrm((n,)),
                    m=nrm((n,)), v=1.0 + jnp.abs(nrm((n,))))

    p = {}
    # CNN_denoise: [BN(c), Conv(c,128,1), LeakyReLU] x [BN(128), Conv(128,128,1), LeakyReLU]
    p["den0_bn"] = bn(c);   p["den0_W"] = nrm((c, 128));   p["den0_b"] = nrm((128,))
    p["den1_bn"] = bn(128); p["den1_W"] = nrm((128, 128)); p["den1_b"] = nrm((128,))
    # CAM gammas (torch.zeros(1) in __init__)
    p["cam1_gamma"] = jnp.zeros((1,), jnp.float32)
    p["cam2_gamma"] = jnp.zeros((1,), jnp.float32)
    # SSConv1: BN(128) + point(128->128, no bias) + depthwise 3x3(+bias)
    p["ss1_bn"] = bn(128); p["ss1_pW"] = nrm((128, 128))
    p["ss1_dW"] = nrm((3, 3, 128)); p["ss1_db"] = nrm((128,))
    # SSConv2: BN(128) + point(128->64, no bias) + depthwise 5x5(+bias)
    p["ss2_bn"] = bn(128); p["ss2_pW"] = nrm((128, 64))
    p["ss2_dW"] = nrm((5, 5, 64)); p["ss2_db"] = nrm((64,))
    # GAT: 4 heads 128->30, out layer 120->64
    for i in range(4):
        p[f"gat{i}_W"] = nrm((128, 30)); p[f"gat{i}_a"] = nrm((60, 1))
    p["gato_W"] = nrm((120, 64)); p["gato_a"] = nrm((128, 1))
    # linear1 + BN1d(64), classifier
    p["lin1_W"] = nrm((64, 64)); p["lin1_b"] = nrm((64,)); p["bn1"] = bn(64)
    p["cls_W"] = nrm((64, n_classes)); p["cls_b"] = nrm((n_classes,))
    return p


# ----------------------------------------------------------------------------
# WFCG forward
# ----------------------------------------------------------------------------
def wfcg_forward(x, Q, A, p):
    h, w, c = x.shape
    hw = h * w
    xf = x.reshape(hw, c)

    # --- CNN_denoise (two BN+1x1conv+LeakyReLU fused into one kernel) ---
    W0, b0 = fold_bn_then_linear(p["den0_W"], p["den0_b"], p["den0_bn"])
    W1, b1 = fold_bn_then_linear(p["den1_W"], p["den1_b"], p["den1_bn"])
    clean = denoise_fused(xf, W0, b0, W1, b1)                       # (hw,128) bf16

    # --- superpixel aggregation + CAM 1 attention, fused single pass over clean ---
    col = jnp.maximum(jnp.sum(Q, axis=0, keepdims=True), 1e-12)     # NaN guard
    H_sp, attn1_t = spagg_and_cam1(Q / col, clean)                  # (nsp,128), (128,128)

    # --- CNN branch: CAM -> SSConv(3x3) -> CAM -> SSConv(5x5) ---
    # (CAM's spectral_attention / CAB outputs and the PAM modules are dead code
    #  in the PyTorch forward and are not computed.)
    Wp1, bp1 = fold_bn_then_linear(p["ss1_pW"], None, p["ss1_bn"])
    feat = cam_apply_pointwise(clean, attn1_t, p["cam1_gamma"], Wp1, bp1)   # (hw,128) bf16
    feat = dwconv_leaky(feat.reshape(h, w, 128), p["ss1_dW"], p["ss1_db"], k=3)
    feat = feat.reshape(hw, 128)

    attn2_t = cam_attention_t(feat)
    Wp2, bp2 = fold_bn_then_linear(p["ss2_pW"], None, p["ss2_bn"])
    feat2 = cam_apply_pointwise(feat, attn2_t, p["cam2_gamma"], Wp2, bp2)   # (hw,64) bf16
    cnn_result = dwconv_leaky(feat2.reshape(h, w, 64), p["ss2_dW"], p["ss2_db"], k=5)
    cnn_result = cnn_result.reshape(hw, 64)                         # bf16

    # --- GAT branch (eval mode: dropout = identity), fully fused, linear1+BN1d
    #     weight folded in so the head only does Q @ Hlin ---
    Wstack = jnp.concatenate([p[f"gat{i}_W"] for i in range(4)], axis=1)      # (128,120)
    asrc = jnp.concatenate([p[f"gat{i}_a"][:30] for i in range(4)], axis=1)   # (30,4)
    adst = jnp.concatenate([p[f"gat{i}_a"][30:] for i in range(4)], axis=1)   # (30,4)
    Wl, bl = fold_linear_then_bn(p["lin1_W"], p["lin1_b"], p["bn1"])
    Hlin = gat_fused(H_sp, Wstack, asrc, adst, A, p["gato_W"], p["gato_a"], Wl,
                     nheads=4, nhid=30, alpha=0.2)                  # (nsp,64) bf16

    # --- head: Q@Hlin + bl -> leaky -> 0.05/0.95 mix -> classifier -> softmax ---
    return head_fused(Q, Hlin, cnn_result, bl, p["cls_W"], p["cls_b"])


# ----------------------------------------------------------------------------
if __name__ == "__main__":
    h, w, c = 8, 8, 8          # input HSI patch (h, w, channel)
    n_sp = 16                  # number of superpixels (Q columns / A nodes)
    n_classes = 10

    key = jax.random.PRNGKey(0)
    kx, kq, ka = jax.random.split(key, 3)
    x = jax.random.normal(kx, (h, w, c), jnp.float32)
    # Q: (h*w, n_sp) positive soft assignment; A: (n_sp, n_sp) adjacency w/ self-loops
    Q = jax.nn.softmax(jax.random.normal(kq, (h * w, n_sp), jnp.float32), axis=-1)
    A = (jax.random.uniform(ka, (n_sp, n_sp)) > 0.6).astype(jnp.float32)
    A = jnp.maximum(jnp.maximum(A, A.T), jnp.eye(n_sp, dtype=jnp.float32))

    params = init_params(c, n_classes, jax.random.PRNGKey(42))

    fwd = jax.jit(wfcg_forward)
    y = fwd(x, Q, A, params)
    jax.block_until_ready(y)

    assert y.shape == (h * w, n_classes)
    assert bool(jnp.all(jnp.isfinite(y)))
    print("KERNEL_OK")
</pallas_src>

<mosaic_0001>
module attributes {stable_mosaic.version = 11 : i64} {
  func.func @_cam_pw_kernel(%arg0: i32, %arg1: memref<1xf32, #tpu.memory_space<smem>>, %arg2: memref<64x128xbf16, #tpu.memory_space<vmem>>, %arg3: memref<128x128xbf16, #tpu.memory_space<vmem>>, %arg4: memref<128x128xbf16, #tpu.memory_space<vmem>>, %arg5: memref<1x128xf32, #tpu.memory_space<vmem>>, %arg6: memref<64x128xbf16, #tpu.memory_space<vmem>>) attributes {dimension_semantics = [#tpu.dimension_semantics<parallel>], iteration_bounds = array<i64: 1>, scalar_prefetch = 0 : i64, scratch_operands = 0 : i64, tpu.core_type = #tpu.core_type<tc>, window_params = [{transform_indices = @transform_0, window_bounds = array<i64: 1>}, {transform_indices = @transform_1, window_bounds = array<i64: 64, 128>}, {pipeline_mode = #tpu.pipeline_mode<synchronous>, transform_indices = @transform_2, window_bounds = array<i64: 128, 128>}, {pipeline_mode = #tpu.pipeline_mode<synchronous>, transform_indices = @transform_3, window_bounds = array<i64: 128, 128>}, {pipeline_mode = #tpu.pipeline_mode<synchronous>, transform_indices = @transform_4, window_bounds = array<i64: 1, 128>}, {transform_indices = @transform_5, window_bounds = array<i64: 64, 128>}]} {
    %c0 = arith.constant 0 : index
    %c0_0 = arith.constant 0 : index
    %0 = vector.load %arg2[%c0, %c0_0] : memref<64x128xbf16, #tpu.memory_space<vmem>>, vector<64x128xbf16>
    %c0_1 = arith.constant 0 : index
    %c0_2 = arith.constant 0 : index
    %1 = vector.load %arg3[%c0_1, %c0_2] : memref<128x128xbf16, #tpu.memory_space<vmem>>, vector<128x128xbf16>
    %cst = arith.constant dense<0.000000e+00> : vector<64x128xf32>
    %2 = tpu.matmul %0, %1, %cst {dimension_numbers = #tpu.dot_dimension_numbers<[1], [0], [0], [1], [0, 0, 1, 1], [], []>} : vector<64x128xbf16>, vector<128x128xbf16>, vector<64x128xf32> -> vector<64x128xf32>
    %3 = arith.extf %0 : vector<64x128xbf16> to vector<64x128xf32>
    %c0_3 = arith.constant 0 : index
    %4 = memref.load %arg1[%c0_3] : memref<1xf32, #tpu.memory_space<smem>>
    %5 = vector.broadcast %4 : f32 to vector<64x128xf32>
    %6 = arith.mulf %5, %2 : vector<64x128xf32>
    %7 = arith.addf %3, %6 : vector<64x128xf32>
    %8 = arith.truncf %7 : vector<64x128xf32> to vector<64x128xbf16>
    %c0_4 = arith.constant 0 : index
    %c0_5 = arith.constant 0 : index
    %9 = vector.load %arg4[%c0_4, %c0_5] : memref<128x128xbf16, #tpu.memory_space<vmem>>, vector<128x128xbf16>
    %cst_6 = arith.constant dense<0.000000e+00> : vector<64x128xf32>
    %10 = tpu.matmul %8, %9, %cst_6 {dimension_numbers = #tpu.dot_dimension_numbers<[1], [0], [0], [1], [0, 0, 1, 1], [], []>} : vector<64x128xbf16>, vector<128x128xbf16>, vector<64x128xf32> -> vector<64x128xf32>
    %c0_7 = arith.constant 0 : index
    %c0_8 = arith.constant 0 : index
    %11 = vector.load %arg5[%c0_7, %c0_8] : memref<1x128xf32, #tpu.memory_space<vmem>>, vector<1x128xf32>
    %12 = vector.broadcast %11 : vector<1x128xf32> to vector<64x128xf32>
    %13 = arith.addf %10, %12 : vector<64x128xf32>
    %cst_9 = arith.constant 0.000000e+00 : f32
    %14 = vector.broadcast %cst_9 : f32 to vector<64x128xf32>
    %15 = arith.cmpf ogt, %13, %14 : vector<64x128xf32>
    %cst_10 = arith.constant 0.00999999977 : f32
    %16 = vector.broadcast %cst_10 : f32 to vector<64x128xf32>
    %17 = arith.mulf %16, %13 : vector<64x128xf32>
    %18 = arith.select %15, %13, %17 : vector<64x128xi1>, vector<64x128xf32>
    %19 = arith.truncf %18 : vector<64x128xf32> to vector<64x128xbf16>
    %c0_11 = arith.constant 0 : index
    %c0_12 = arith.constant 0 : index
    %20 = vector.load %arg6[%c0_11, %c0_12] : memref<64x128xbf16, #tpu.memory_space<vmem>>, vector<64x128xbf16>
    tpu.vector_store %arg6[%c0_11, %c0_12], %19 {strides = array<i32>} : memref<64x128xbf16, #tpu.memory_space<vmem>>, vector<64x128xbf16>,
    return
  }
  func.func @transform_0(%arg0: i32) -> i32 {
    %c0_i32 = arith.constant 0 : i32
    %c0_i32_0 = arith.constant 0 : i32
    return %c0_i32 : i32
  }
  func.func @transform_1(%arg0: i32) -> (i32, i32) {
    %c0_i32 = arith.constant 0 : i32
    %c0_i32_0 = arith.constant 0 : i32
    return %arg0, %c0_i32 : i32, i32
  }
  func.func @transform_2(%arg0: i32) -> (i32, i32) {
    %c0_i32 = arith.constant 0 : i32
    %c0_i32_0 = arith.constant 0 : i32
    %c0_i32_1 = arith.constant 0 : i32
    return %c0_i32, %c0_i32_0 : i32, i32
  }
  func.func @transform_3(%arg0: i32) -> (i32, i32) {
    %c0_i32 = arith.constant 0 : i32
    %c0_i32_0 = arith.constant 0 : i32
    %c0_i32_1 = arith.constant 0 : i32
    return %c0_i32, %c0_i32_0 : i32, i32
  }
  func.func @transform_4(%arg0: i32) -> (i32, i32) {
    %c0_i32 = arith.constant 0 : i32
    %c0_i32_0 = arith.constant 0 : i32
    %c0_i32_1 = arith.constant 0 : i32
    return %c0_i32, %c0_i32_0 : i32, i32
  }
  func.func @transform_5(%arg0: i32) -> (i32, i32) {
    %c0_i32 = arith.constant 0 : i32
    %c0_i32_0 = arith.constant 0 : i32
    return %arg0, %c0_i32 : i32, i32
  }
}

module attributes {stable_mosaic.version = 11 : i64} {
  func.func @_denoise_kernel(%arg0: i32, %arg1: memref<64x8xbf16, #tpu.memory_space<vmem>>, %arg2: memref<8x128xbf16, #tpu.memory_space<vmem>>, %arg3: memref<1x128xf32, #tpu.memory_space<vmem>>, %arg4: memref<128x128xbf16, #tpu.memory_space<vmem>>, %arg5: memref<1x128xf32, #tpu.memory_space<vmem>>, %arg6: memref<64x128xbf16, #tpu.memory_space<vmem>>) attributes {dimension_semantics = [#tpu.dimension_semantics<parallel>], iteration_bounds = array<i64: 1>, scalar_prefetch = 0 : i64, scratch_operands = 0 : i64, tpu.core_type = #tpu.core_type<tc>, window_params = [{transform_indices = @transform_0, window_bounds = array<i64: 64, 8>}, {pipeline_mode = #tpu.pipeline_mode<synchronous>, transform_indices = @transform_1, window_bounds = array<i64: 8, 128>}, {pipeline_mode = #tpu.pipeline_mode<synchronous>, transform_indices = @transform_2, window_bounds = array<i64: 1, 128>}, {pipeline_mode = #tpu.pipeline_mode<synchronous>, transform_indices = @transform_3, window_bounds = array<i64: 128, 128>}, {pipeline_mode = #tpu.pipeline_mode<synchronous>, transform_indices = @transform_4, window_bounds = array<i64: 1, 128>}, {transform_indices = @transform_5, window_bounds = array<i64: 64, 128>}]} {
    %c0 = arith.constant 0 : index
    %c0_0 = arith.constant 0 : index
    %0 = vector.load %arg1[%c0, %c0_0] : memref<64x8xbf16, #tpu.memory_space<vmem>>, vector<64x8xbf16>
    %c0_1 = arith.constant 0 : index
    %c0_2 = arith.constant 0 : index
    %1 = vector.load %arg2[%c0_1, %c0_2] : memref<8x128xbf16, #tpu.memory_space<vmem>>, vector<8x128xbf16>
    %cst = arith.constant dense<0.000000e+00> : vector<64x128xf32>
    %2 = tpu.matmul %0, %1, %cst {dimension_numbers = #tpu.dot_dimension_numbers<[1], [0], [0], [1], [0, 0, 1, 1], [], []>} : vector<64x8xbf16>, vector<8x128xbf16>, vector<64x128xf32> -> vector<64x128xf32>
    %c0_3 = arith.constant 0 : index
    %c0_4 = arith.constant 0 : index
    %3 = vector.load %arg3[%c0_3, %c0_4] : memref<1x128xf32, #tpu.memory_space<vmem>>, vector<1x128xf32>
    %4 = vector.broadcast %3 : vector<1x128xf32> to vector<64x128xf32>
    %5 = arith.addf %2, %4 : vector<64x128xf32>
    %cst_5 = arith.constant 0.000000e+00 : f32
    %6 = vector.broadcast %cst_5 : f32 to vector<64x128xf32>
    %7 = arith.cmpf ogt, %5, %6 : vector<64x128xf32>
    %cst_6 = arith.constant 0.00999999977 : f32
    %8 = vector.broadcast %cst_6 : f32 to vector<64x128xf32>
    %9 = arith.mulf %8, %5 : vector<64x128xf32>
    %10 = arith.select %7, %5, %9 : vector<64x128xi1>, vector<64x128xf32>
    %11 = arith.truncf %10 : vector<64x128xf32> to vector<64x128xbf16>
    %c0_7 = arith.constant 0 : index
    %c0_8 = arith.constant 0 : index
    %12 = vector.load %arg4[%c0_7, %c0_8] : memref<128x128xbf16, #tpu.memory_space<vmem>>, vector<128x128xbf16>
    %cst_9 = arith.constant dense<0.000000e+00> : vector<64x128xf32>
    %13 = tpu.matmul %11, %12, %cst_9 {dimension_numbers = #tpu.dot_dimension_numbers<[1], [0], [0], [1], [0, 0, 1, 1], [], []>} : vector<64x128xbf16>, vector<128x128xbf16>, vector<64x128xf32> -> vector<64x128xf32>
    %c0_10 = arith.constant 0 : index
    %c0_11 = arith.constant 0 : index
    %14 = vector.load %arg5[%c0_10, %c0_11] : memref<1x128xf32, #tpu.memory_space<vmem>>, vector<1x128xf32>
    %15 = vector.broadcast %14 : vector<1x128xf32> to vector<64x128xf32>
    %16 = arith.addf %13, %15 : vector<64x128xf32>
    %cst_12 = arith.constant 0.000000e+00 : f32
    %17 = vector.broadcast %cst_12 : f32 to vector<64x128xf32>
    %18 = arith.cmpf ogt, %16, %17 : vector<64x128xf32>
    %cst_13 = arith.constant 0.00999999977 : f32
    %19 = vector.broadcast %cst_13 : f32 to vector<64x128xf32>
    %20 = arith.mulf %19, %16 : vector<64x128xf32>
    %21 = arith.select %18, %16, %20 : vector<64x128xi1>, vector<64x128xf32>
    %22 = arith.truncf %21 : vector<64x128xf32> to vector<64x128xbf16>
    %c0_14 = arith.constant 0 : index
    %c0_15 = arith.constant 0 : index
    %23 = vector.load %arg6[%c0_14, %c0_15] : memref<64x128xbf16, #tpu.memory_space<vmem>>, vector<64x128xbf16>
    tpu.vector_store %arg6[%c0_14, %c0_15], %22 {strides = array<i32>} : memref<64x128xbf16, #tpu.memory_space<vmem>>, vector<64x128xbf16>,
    return
  }
  func.func @transform_0(%arg0: i32) -> (i32, i32) {
    %c0_i32 = arith.constant 0 : i32
    %c0_i32_0 = arith.constant 0 : i32
    return %arg0, %c0_i32 : i32, i32
  }
  func.func @transform_1(%arg0: i32) -> (i32, i32) {
    %c0_i32 = arith.constant 0 : i32
    %c0_i32_0 = arith.constant 0 : i32
    %c0_i32_1 = arith.constant 0 : i32
    return %c0_i32, %c0_i32_0 : i32, i32
  }
  func.func @transform_2(%arg0: i32) -> (i32, i32) {
    %c0_i32 = arith.constant 0 : i32
    %c0_i32_0 = arith.constant 0 : i32
    %c0_i32_1 = arith.constant 0 : i32
    return %c0_i32, %c0_i32_0 : i32, i32
  }
  func.func @transform_3(%arg0: i32) -> (i32, i32) {
    %c0_i32 = arith.constant 0 : i32
    %c0_i32_0 = arith.constant 0 : i32
    %c0_i32_1 = arith.constant 0 : i32
    return %c0_i32, %c0_i32_0 : i32, i32
  }
  func.func @transform_4(%arg0: i32) -> (i32, i32) {
    %c0_i32 = arith.constant 0 : i32
    %c0_i32_0 = arith.constant 0 : i32
    %c0_i32_1 = arith.constant 0 : i32
    return %c0_i32, %c0_i32_0 : i32, i32
  }
  func.func @transform_5(%arg0: i32) -> (i32, i32) {
    %c0_i32 = arith.constant 0 : i32
    %c0_i32_0 = arith.constant 0 : i32
    return %arg0, %c0_i32 : i32, i32
  }
}

module attributes {stable_mosaic.version = 11 : i64} {
  func.func @_spagg_energy_kernel(%arg0: i32, %arg1: memref<64x16xbf16, #tpu.memory_space<vmem>>, %arg2: memref<64x128xbf16, #tpu.memory_space<vmem>>, %arg3: memref<16x128xf32, #tpu.memory_space<vmem>>, %arg4: memref<128x128xf32, #tpu.memory_space<vmem>>, %arg5: memref<16x128xf32, #tpu.memory_space<vmem>>, %arg6: memref<128x128xf32, #tpu.memory_space<vmem>>) attributes {dimension_semantics = [#tpu.dimension_semantics<arbitrary>], iteration_bounds = array<i64: 1>, scalar_prefetch = 0 : i64, scratch_operands = 2 : i64, tpu.core_type = #tpu.core_type<tc>, window_params = [{transform_indices = @transform_0, window_bounds = array<i64: 64, 16>}, {transform_indices = @transform_1, window_bounds = array<i64: 64, 128>}, {pipeline_mode = #tpu.pipeline_mode<synchronous>, transform_indices = @transform_2, window_bounds = array<i64: 16, 128>}, {pipeline_mode = #tpu.pipeline_mode<synchronous>, transform_indices = @transform_3, window_bounds = array<i64: 128, 128>}]} {
    %c0_i32 = arith.constant 0 : i32
    %0 = arith.cmpi eq, %arg0, %c0_i32 : i32
    %1 = arith.extui %0 : i1 to i32
    %c0_i32_0 = arith.constant 0 : i32
    %2 = arith.cmpi ne, %1, %c0_i32_0 : i32
    scf.if %2 {
      %cst_15 = arith.constant 0.000000e+00 : f32
      %16 = vector.broadcast %cst_15 : f32 to vector<16x128xf32>
      %c0_16 = arith.constant 0 : index
      %c0_17 = arith.constant 0 : index
      %17 = vector.load %arg5[%c0_16, %c0_17] : memref<16x128xf32, #tpu.memory_space<vmem>>, vector<16x128xf32>
      tpu.vector_store %arg5[%c0_16, %c0_17], %16 {strides = array<i32>} : memref<16x128xf32, #tpu.memory_space<vmem>>, vector<16x128xf32>,
      %cst_18 = arith.constant 0.000000e+00 : f32
      %18 = vector.broadcast %cst_18 : f32 to vector<128x128xf32>
      %c0_19 = arith.constant 0 : index
      %c0_20 = arith.constant 0 : index
      %19 = vector.load %arg6[%c0_19, %c0_20] : memref<128x128xf32, #tpu.memory_space<vmem>>, vector<128x128xf32>
      tpu.vector_store %arg6[%c0_19, %c0_20], %18 {strides = array<i32>} : memref<128x128xf32, #tpu.memory_space<vmem>>, vector<128x128xf32>,
    } else {
    }
    %c0 = arith.constant 0 : index
    %c0_1 = arith.constant 0 : index
    %3 = vector.load %arg2[%c0, %c0_1] : memref<64x128xbf16, #tpu.memory_space<vmem>>, vector<64x128xbf16>
    %c0_2 = arith.constant 0 : index
    %c0_3 = arith.constant 0 : index
    %4 = vector.load %arg5[%c0_2, %c0_3] : memref<16x128xf32, #tpu.memory_space<vmem>>, vector<16x128xf32>
    %c0_4 = arith.constant 0 : index
    %c0_5 = arith.constant 0 : index
    %5 = vector.load %arg1[%c0_4, %c0_5] : memref<64x16xbf16, #tpu.memory_space<vmem>>, vector<64x16xbf16>
    %cst = arith.constant dense<0.000000e+00> : vector<16x128xf32>
    %6 = tpu.matmul %5, %3, %cst {dimension_numbers = #tpu.dot_dimension_numbers<[0], [0], [1], [1], [0, 1, 1, 1], [], []>} : vector<64x16xbf16>, vector<64x128xbf16>, vector<16x128xf32> -> vector<16x128xf32>
    %7 = arith.addf %4, %6 : vector<16x128xf32>
    %c0_6 = arith.constant 0 : index
    %c0_7 = arith.constant 0 : index
    %8 = vector.load %arg5[%c0_6, %c0_7] : memref<16x128xf32, #tpu.memory_space<vmem>>, vector<16x128xf32>
    tpu.vector_store %arg5[%c0_6, %c0_7], %7 {strides = array<i32>} : memref<16x128xf32, #tpu.memory_space<vmem>>, vector<16x128xf32>,
    %c0_8 = arith.constant 0 : index
    %c0_9 = arith.constant 0 : index
    %9 = vector.load %arg6[%c0_8, %c0_9] : memref<128x128xf32, #tpu.memory_space<vmem>>, vector<128x128xf32>
    %cst_10 = arith.constant dense<0.000000e+00> : vector<128x128xf32>
    %10 = tpu.matmul %3, %3, %cst_10 {dimension_numbers = #tpu.dot_dimension_numbers<[0], [0], [1], [1], [0, 1, 1, 1], [], []>} : vector<64x128xbf16>, vector<64x128xbf16>, vector<128x128xf32> -> vector<128x128xf32>
    %11 = arith.addf %9, %10 : vector<128x128xf32>
    %c0_11 = arith.constant 0 : index
    %c0_12 = arith.constant 0 : index
    %12 = vector.load %arg6[%c0_11, %c0_12] : memref<128x128xf32, #tpu.memory_space<vmem>>, vector<128x128xf32>
    tpu.vector_store %arg6[%c0_11, %c0_12], %11 {strides = array<i32>} : memref<128x128xf32, #tpu.memory_space<vmem>>, vector<128x128xf32>,
    %c0_i32_13 = arith.constant 0 : i32
    %13 = arith.cmpi eq, %arg0, %c0_i32_13 : i32
    %14 = arith.extui %13 : i1 to i32
    %c0_i32_14 = arith.constant 0 : i32
    %15 = arith.cmpi ne, %14, %c0_i32_14 : i32
    scf.if %15 {
      %c0_15 = arith.constant 0 : index
      %c0_16 = arith.constant 0 : index
      %16 = vector.load %arg5[%c0_15, %c0_16] : memref<16x128xf32, #tpu.memory_space<vmem>>, vector<16x128xf32>
      %c0_17 = arith.constant 0 : index
      %c0_18 = arith.constant 0 : index
      %17 = vector.load %arg3[%c0_17, %c0_18] : memref<16x128xf32, #tpu.memory_space<vmem>>, vector<16x128xf32>
      tpu.vector_store %arg3[%c0_17, %c0_18], %16 {strides = array<i32>} : memref<16x128xf32, #tpu.memory_space<vmem>>, vector<16x128xf32>,
      %c0_19 = arith.constant 0 : index
      %c0_20 = arith.constant 0 : index
      %18 = vector.load %arg6[%c0_19, %c0_20] : memref<128x128xf32, #tpu.memory_space<vmem>>, vector<128x128xf32>
      %cst_21 = arith.constant dense<0xFF800000> : vector<128xf32>
      %19 = vector.multi_reduction <maximumf>, %18, %cst_21 [1] : vector<128x128xf32> to vector<128xf32>
      %20 = vector.shape_cast %19 : vector<128xf32> to vector<128x1xf32>
      %21 = vector.broadcast %20 : vector<128x1xf32> to vector<128x128xf32>
      %22 = arith.subf %21, %18 : vector<128x128xf32>
      %cst_22 = arith.constant dense<0xFF800000> : vector<128xf32>
      %23 = vector.multi_reduction <maximumf>, %22, %cst_22 [1] : vector<128x128xf32> to vector<128xf32>
      %24 = vector.shape_cast %23 : vector<128xf32> to vector<128x1xf32>
      %25 = vector.broadcast %24 : vector<128x1xf32> to vector<128x128xf32>
      %26 = arith.subf %22, %25 : vector<128x128xf32>
      %27 = math.exp %26 : vector<128x128xf32>
      %cst_23 = arith.constant dense<0.000000e+00> : vector<128xf32>
      %28 = vector.multi_reduction <add>, %27, %cst_23 [1] : vector<128x128xf32> to vector<128xf32>
      %29 = vector.shape_cast %28 : vector<128xf32> to vector<128x1xf32>
      %30 = vector.broadcast %29 : vector<128x1xf32> to vector<128x128xf32>
      %31 = arith.divf %27, %30 : vector<128x128xf32>
      %32 = tpu.transpose %31, [1, 0] : vector<128x128xf32> -> vector<128x128xf32>
      %c0_24 = arith.constant 0 : index
      %c0_25 = arith.constant 0 : index
      %33 = vector.load %arg4[%c0_24, %c0_25] : memref<128x128xf32, #tpu.memory_space<vmem>>, vector<128x128xf32>
      tpu.vector_store %arg4[%c0_24, %c0_25], %32 {strides = array<i32>} : memref<128x128xf32, #tpu.memory_space<vmem>>, vector<128x128xf32>,
    } else {
    }
    return
  }
  func.func @transform_0(%arg0: i32) -> (i32, i32) {
    %c0_i32 = arith.constant 0 : i32
    %c0_i32_0 = arith.constant 0 : i32
    return %arg0, %c0_i32 : i32, i32
  }
  func.func @transform_1(%arg0: i32) -> (i32, i32) {
    %c0_i32 = arith.constant 0 : i32
    %c0_i32_0 = arith.constant 0 : i32
    return %arg0, %c0_i32 : i32, i32
  }
  func.func @transform_2(%arg0: i32) -> (i32, i32) {
    %c0_i32 = arith.constant 0 : i32
    %c0_i32_0 = arith.constant 0 : i32
    %c0_i32_1 = arith.constant 0 : i32
    return %c0_i32, %c0_i32_0 : i32, i32
  }
  func.func @transform_3(%arg0: i32) -> (i32, i32) {
    %c0_i32 = arith.constant 0 : i32
    %c0_i32_0 = arith.constant 0 : i32
    %c0_i32_1 = arith.constant 0 : i32
    return %c0_i32, %c0_i32_0 : i32, i32
  }
}

module attributes {stable_mosaic.version = 11 : i64} {
  func.func @_dwconv_kernel(%arg0: memref<10x10x128xbf16, #tpu.memory_space<vmem>>, %arg1: memref<3x3x128xf32, #tpu.memory_space<vmem>>, %arg2: memref<1x1x128xf32, #tpu.memory_space<vmem>>, %arg3: memref<8x8x128xbf16, #tpu.memory_space<vmem>>) attributes {dimension_semantics = [], scalar_prefetch = 0 : i64, scratch_operands = 0 : i64, tpu.core_type = #tpu.core_type<tc>} {
    %c0 = arith.constant 0 : index
    %c0_0 = arith.constant 0 : index
    %c0_1 = arith.constant 0 : index
    %0 = vector.load %arg0[%c0, %c0_0, %c0_1] : memref<10x10x128xbf16, #tpu.memory_space<vmem>>, vector<10x10x128xbf16>
    %1 = arith.extf %0 : vector<10x10x128xbf16> to vector<10x10x128xf32>
    %c0_2 = arith.constant 0 : index
    %c0_3 = arith.constant 0 : index
    %c0_4 = arith.constant 0 : index
    %2 = vector.load %arg1[%c0_2, %c0_3, %c0_4] : memref<3x3x128xf32, #tpu.memory_space<vmem>>, vector<3x3x128xf32>
    %cst = arith.constant 0.000000e+00 : f32
    %3 = vector.broadcast %cst : f32 to vector<8x8x128xf32>
    %4 = vector.extract_strided_slice %1 {offsets = [0, 0, 0], sizes = [8, 8, 128], strides = [1, 1, 1]} : vector<10x10x128xf32> to vector<8x8x128xf32>
    %5 = vector.extract_strided_slice %2 {offsets = [0, 0, 0], sizes = [1, 1, 128], strides = [1, 1, 1]} : vector<3x3x128xf32> to vector<1x1x128xf32>
    %6 = vector.shape_cast %5 : vector<1x1x128xf32> to vector<128xf32>
    %7 = vector.shape_cast %6 : vector<128xf32> to vector<1x1x128xf32>
    %8 = vector.broadcast %7 : vector<1x1x128xf32> to vector<8x8x128xf32>
    %9 = arith.mulf %4, %8 : vector<8x8x128xf32>
    %10 = arith.addf %3, %9 : vector<8x8x128xf32>
    %11 = vector.extract_strided_slice %1 {offsets = [0, 1, 0], sizes = [8, 8, 128], strides = [1, 1, 1]} : vector<10x10x128xf32> to vector<8x8x128xf32>
    %12 = vector.extract_strided_slice %2 {offsets = [0, 1, 0], sizes = [1, 1, 128], strides = [1, 1, 1]} : vector<3x3x128xf32> to vector<1x1x128xf32>
    %13 = vector.shape_cast %12 : vector<1x1x128xf32> to vector<128xf32>
    %14 = vector.shape_cast %13 : vector<128xf32> to vector<1x1x128xf32>
    %15 = vector.broadcast %14 : vector<1x1x128xf32> to vector<8x8x128xf32>
    %16 = arith.mulf %11, %15 : vector<8x8x128xf32>
    %17 = arith.addf %10, %16 : vector<8x8x128xf32>
    %18 = vector.extract_strided_slice %1 {offsets = [0, 2, 0], sizes = [8, 8, 128], strides = [1, 1, 1]} : vector<10x10x128xf32> to vector<8x8x128xf32>
    %19 = vector.extract_strided_slice %2 {offsets = [0, 2, 0], sizes = [1, 1, 128], strides = [1, 1, 1]} : vector<3x3x128xf32> to vector<1x1x128xf32>
    %20 = vector.shape_cast %19 : vector<1x1x128xf32> to vector<128xf32>
    %21 = vector.shape_cast %20 : vector<128xf32> to vector<1x1x128xf32>
    %22 = vector.broadcast %21 : vector<1x1x128xf32> to vector<8x8x128xf32>
    %23 = arith.mulf %18, %22 : vector<8x8x128xf32>
    %24 = arith.addf %17, %23 : vector<8x8x128xf32>
    %25 = vector.extract_strided_slice %1 {offsets = [1, 0, 0], sizes = [8, 8, 128], strides = [1, 1, 1]} : vector<10x10x128xf32> to vector<8x8x128xf32>
    %26 = vector.extract_strided_slice %2 {offsets = [1, 0, 0], sizes = [1, 1, 128], strides = [1, 1, 1]} : vector<3x3x128xf32> to vector<1x1x128xf32>
    %27 = vector.shape_cast %26 : vector<1x1x128xf32> to vector<128xf32>
    %28 = vector.shape_cast %27 : vector<128xf32> to vector<1x1x128xf32>
    %29 = vector.broadcast %28 : vector<1x1x128xf32> to vector<8x8x128xf32>
    %30 = arith.mulf %25, %29 : vector<8x8x128xf32>
    %31 = arith.addf %24, %30 : vector<8x8x128xf32>
    %32 = vector.extract_strided_slice %1 {offsets = [1, 1, 0], sizes = [8, 8, 128], strides = [1, 1, 1]} : vector<10x10x128xf32> to vector<8x8x128xf32>
    %33 = vector.extract_strided_slice %2 {offsets = [1, 1, 0], sizes = [1, 1, 128], strides = [1, 1, 1]} : vector<3x3x128xf32> to vector<1x1x128xf32>
    %34 = vector.shape_cast %33 : vector<1x1x128xf32> to vector<128xf32>
    %35 = vector.shape_cast %34 : vector<128xf32> to vector<1x1x128xf32>
    %36 = vector.broadcast %35 : vector<1x1x128xf32> to vector<8x8x128xf32>
    %37 = arith.mulf %32, %36 : vector<8x8x128xf32>
    %38 = arith.addf %31, %37 : vector<8x8x128xf32>
    %39 = vector.extract_strided_slice %1 {offsets = [1, 2, 0], sizes = [8, 8, 128], strides = [1, 1, 1]} : vector<10x10x128xf32> to vector<8x8x128xf32>
    %40 = vector.extract_strided_slice %2 {offsets = [1, 2, 0], sizes = [1, 1, 128], strides = [1, 1, 1]} : vector<3x3x128xf32> to vector<1x1x128xf32>
    %41 = vector.shape_cast %40 : vector<1x1x128xf32> to vector<128xf32>
    %42 = vector.shape_cast %41 : vector<128xf32> to vector<1x1x128xf32>
    %43 = vector.broadcast %42 : vector<1x1x128xf32> to vector<8x8x128xf32>
    %44 = arith.mulf %39, %43 : vector<8x8x128xf32>
    %45 = arith.addf %38, %44 : vector<8x8x128xf32>
    %46 = vector.extract_strided_slice %1 {offsets = [2, 0, 0], sizes = [8, 8, 128], strides = [1, 1, 1]} : vector<10x10x128xf32> to vector<8x8x128xf32>
    %47 = vector.extract_strided_slice %2 {offsets = [2, 0, 0], sizes = [1, 1, 128], strides = [1, 1, 1]} : vector<3x3x128xf32> to vector<1x1x128xf32>
    %48 = vector.shape_cast %47 : vector<1x1x128xf32> to vector<128xf32>
    %49 = vector.shape_cast %48 : vector<128xf32> to vector<1x1x128xf32>
    %50 = vector.broadcast %49 : vector<1x1x128xf32> to vector<8x8x128xf32>
    %51 = arith.mulf %46, %50 : vector<8x8x128xf32>
    %52 = arith.addf %45, %51 : vector<8x8x128xf32>
    %53 = vector.extract_strided_slice %1 {offsets = [2, 1, 0], sizes = [8, 8, 128], strides = [1, 1, 1]} : vector<10x10x128xf32> to vector<8x8x128xf32>
    %54 = vector.extract_strided_slice %2 {offsets = [2, 1, 0], sizes = [1, 1, 128], strides = [1, 1, 1]} : vector<3x3x128xf32> to vector<1x1x128xf32>
    %55 = vector.shape_cast %54 : vector<1x1x128xf32> to vector<128xf32>
    %56 = vector.shape_cast %55 : vector<128xf32> to vector<1x1x128xf32>
    %57 = vector.broadcast %56 : vector<1x1x128xf32> to vector<8x8x128xf32>
    %58 = arith.mulf %53, %57 : vector<8x8x128xf32>
    %59 = arith.addf %52, %58 : vector<8x8x128xf32>
    %60 = vector.extract_strided_slice %1 {offsets = [2, 2, 0], sizes = [8, 8, 128], strides = [1, 1, 1]} : vector<10x10x128xf32> to vector<8x8x128xf32>
    %61 = vector.extract_strided_slice %2 {offsets = [2, 2, 0], sizes = [1, 1, 128], strides = [1, 1, 1]} : vector<3x3x128xf32> to vector<1x1x128xf32>
    %62 = vector.shape_cast %61 : vector<1x1x128xf32> to vector<128xf32>
    %63 = vector.shape_cast %62 : vector<128xf32> to vector<1x1x128xf32>
    %64 = vector.broadcast %63 : vector<1x1x128xf32> to vector<8x8x128xf32>
    %65 = arith.mulf %60, %64 : vector<8x8x128xf32>
    %66 = arith.addf %59, %65 : vector<8x8x128xf32>
    %c0_5 = arith.constant 0 : index
    %c0_6 = arith.constant 0 : index
    %c0_7 = arith.constant 0 : index
    %67 = vector.load %arg2[%c0_5, %c0_6, %c0_7] : memref<1x1x128xf32, #tpu.memory_space<vmem>>, vector<1x1x128xf32>
    %68 = vector.broadcast %67 : vector<1x1x128xf32> to vector<8x8x128xf32>
    %69 = arith.addf %66, %68 : vector<8x8x128xf32>
    %cst_8 = arith.constant 0.000000e+00 : f32
    %70 = vector.broadcast %cst_8 : f32 to vector<8x8x128xf32>
    %71 = arith.cmpf ogt, %69, %70 : vector<8x8x128xf32>
    %cst_9 = arith.constant 0.00999999977 : f32
    %72 = vector.broadcast %cst_9 : f32 to vector<8x8x128xf32>
    %73 = arith.mulf %72, %69 : vector<8x8x128xf32>
    %74 = arith.select %71, %69, %73 : vector<8x8x128xi1>, vector<8x8x128xf32>
    %75 = arith.truncf %74 : vector<8x8x128xf32> to vector<8x8x128xbf16>
    %c0_10 = arith.constant 0 : index
    %c0_11 = arith.constant 0 : index
    %c0_12 = arith.constant 0 : index
    %76 = vector.load %arg3[%c0_10, %c0_11, %c0_12] : memref<8x8x128xbf16, #tpu.memory_space<vmem>>, vector<8x8x128xbf16>
    tpu.vector_store %arg3[%c0_10, %c0_11, %c0_12], %75 {strides = array<i32>} : memref<8x8x128xbf16, #tpu.memory_space<vmem>>, vector<8x8x128xbf16>,
    return
  }
}

module attributes {stable_mosaic.version = 11 : i64} {
  func.func @_cam_energy_kernel(%arg0: i32, %arg1: memref<64x128xbf16, #tpu.memory_space<vmem>>, %arg2: memref<128x128xf32, #tpu.memory_space<vmem>>, %arg3: memref<128x128xf32, #tpu.memory_space<vmem>>) attributes {dimension_semantics = [#tpu.dimension_semantics<arbitrary>], iteration_bounds = array<i64: 1>, scalar_prefetch = 0 : i64, scratch_operands = 1 : i64, tpu.core_type = #tpu.core_type<tc>, window_params = [{transform_indices = @transform_0, window_bounds = array<i64: 64, 128>}, {pipeline_mode = #tpu.pipeline_mode<synchronous>, transform_indices = @transform_1, window_bounds = array<i64: 128, 128>}]} {
    %c0_i32 = arith.constant 0 : i32
    %0 = arith.cmpi eq, %arg0, %c0_i32 : i32
    %1 = arith.extui %0 : i1 to i32
    %c0_i32_0 = arith.constant 0 : i32
    %2 = arith.cmpi ne, %1, %c0_i32_0 : i32
    scf.if %2 {
      %cst_8 = arith.constant 0.000000e+00 : f32
      %11 = vector.broadcast %cst_8 : f32 to vector<128x128xf32>
      %c0_9 = arith.constant 0 : index
      %c0_10 = arith.constant 0 : index
      %12 = vector.load %arg3[%c0_9, %c0_10] : memref<128x128xf32, #tpu.memory_space<vmem>>, vector<128x128xf32>
      tpu.vector_store %arg3[%c0_9, %c0_10], %11 {strides = array<i32>} : memref<128x128xf32, #tpu.memory_space<vmem>>, vector<128x128xf32>,
    } else {
    }
    %c0 = arith.constant 0 : index
    %c0_1 = arith.constant 0 : index
    %3 = vector.load %arg1[%c0, %c0_1] : memref<64x128xbf16, #tpu.memory_space<vmem>>, vector<64x128xbf16>
    %c0_2 = arith.constant 0 : index
    %c0_3 = arith.constant 0 : index
    %4 = vector.load %arg3[%c0_2, %c0_3] : memref<128x128xf32, #tpu.memory_space<vmem>>, vector<128x128xf32>
    %cst = arith.constant dense<0.000000e+00> : vector<128x128xf32>
    %5 = tpu.matmul %3, %3, %cst {dimension_numbers = #tpu.dot_dimension_numbers<[0], [0], [1], [1], [0, 1, 1, 1], [], []>} : vector<64x128xbf16>, vector<64x128xbf16>, vector<128x128xf32> -> vector<128x128xf32>
    %6 = arith.addf %4, %5 : vector<128x128xf32>
    %c0_4 = arith.constant 0 : index
    %c0_5 = arith.constant 0 : index
    %7 = vector.load %arg3[%c0_4, %c0_5] : memref<128x128xf32, #tpu.memory_space<vmem>>, vector<128x128xf32>
    tpu.vector_store %arg3[%c0_4, %c0_5], %6 {strides = array<i32>} : memref<128x128xf32, #tpu.memory_space<vmem>>, vector<128x128xf32>,
    %c0_i32_6 = arith.constant 0 : i32
    %8 = arith.cmpi eq, %arg0, %c0_i32_6 : i32
    %9 = arith.extui %8 : i1 to i32
    %c0_i32_7 = arith.constant 0 : i32
    %10 = arith.cmpi ne, %9, %c0_i32_7 : i32
    scf.if %10 {
      %c0_8 = arith.constant 0 : index
      %c0_9 = arith.constant 0 : index
      %11 = vector.load %arg3[%c0_8, %c0_9] : memref<128x128xf32, #tpu.memory_space<vmem>>, vector<128x128xf32>
      %cst_10 = arith.constant dense<0xFF800000> : vector<128xf32>
      %12 = vector.multi_reduction <maximumf>, %11, %cst_10 [1] : vector<128x128xf32> to vector<128xf32>
      %13 = vector.shape_cast %12 : vector<128xf32> to vector<128x1xf32>
      %14 = vector.broadcast %13 : vector<128x1xf32> to vector<128x128xf32>
      %15 = arith.subf %14, %11 : vector<128x128xf32>
      %cst_11 = arith.constant dense<0xFF800000> : vector<128xf32>
      %16 = vector.multi_reduction <maximumf>, %15, %cst_11 [1] : vector<128x128xf32> to vector<128xf32>
      %17 = vector.shape_cast %16 : vector<128xf32> to vector<128x1xf32>
      %18 = vector.broadcast %17 : vector<128x1xf32> to vector<128x128xf32>
      %19 = arith.subf %15, %18 : vector<128x128xf32>
      %20 = math.exp %19 : vector<128x128xf32>
      %cst_12 = arith.constant dense<0.000000e+00> : vector<128xf32>
      %21 = vector.multi_reduction <add>, %20, %cst_12 [1] : vector<128x128xf32> to vector<128xf32>
      %22 = vector.shape_cast %21 : vector<128xf32> to vector<128x1xf32>
      %23 = vector.broadcast %22 : vector<128x1xf32> to vector<128x128xf32>
      %24 = arith.divf %20, %23 : vector<128x128xf32>
      %25 = tpu.transpose %24, [1, 0] : vector<128x128xf32> -> vector<128x128xf32>
      %c0_13 = arith.constant 0 : index
      %c0_14 = arith.constant 0 : index
      %26 = vector.load %arg2[%c0_13, %c0_14] : memref<128x128xf32, #tpu.memory_space<vmem>>, vector<128x128xf32>
      tpu.vector_store %arg2[%c0_13, %c0_14], %25 {strides = array<i32>} : memref<128x128xf32, #tpu.memory_space<vmem>>, vector<128x128xf32>,
    } else {
    }
    return
  }
  func.func @transform_0(%arg0: i32) -> (i32, i32) {
    %c0_i32 = arith.constant 0 : i32
    %c0_i32_0 = arith.constant 0 : i32
    return %arg0, %c0_i32 : i32, i32
  }
  func.func @transform_1(%arg0: i32) -> (i32, i32) {
    %c0_i32 = arith.constant 0 : i32
    %c0_i32_0 = arith.constant 0 : i32
    %c0_i32_1 = arith.constant 0 : i32
    return %c0_i32, %c0_i32_0 : i32, i32
  }
}

module attributes {stable_mosaic.version = 11 : i64} {
  func.func @_cam_pw_kernel(%arg0: i32, %arg1: memref<1xf32, #tpu.memory_space<smem>>, %arg2: memref<64x128xbf16, #tpu.memory_space<vmem>>, %arg3: memref<128x128xbf16, #tpu.memory_space<vmem>>, %arg4: memref<128x64xbf16, #tpu.memory_space<vmem>>, %arg5: memref<1x64xf32, #tpu.memory_space<vmem>>, %arg6: memref<64x64xbf16, #tpu.memory_space<vmem>>) attributes {dimension_semantics = [#tpu.dimension_semantics<parallel>], iteration_bounds = array<i64: 1>, scalar_prefetch = 0 : i64, scratch_operands = 0 : i64, tpu.core_type = #tpu.core_type<tc>, window_params = [{transform_indices = @transform_0, window_bounds = array<i64: 1>}, {transform_indices = @transform_1, window_bounds = array<i64: 64, 128>}, {pipeline_mode = #tpu.pipeline_mode<synchronous>, transform_indices = @transform_2, window_bounds = array<i64: 128, 128>}, {pipeline_mode = #tpu.pipeline_mode<synchronous>, transform_indices = @transform_3, window_bounds = array<i64: 128, 64>}, {pipeline_mode = #tpu.pipeline_mode<synchronous>, transform_indices = @transform_4, window_bounds = array<i64: 1, 64>}, {transform_indices = @transform_5, window_bounds = array<i64: 64, 64>}]} {
    %c0 = arith.constant 0 : index
    %c0_0 = arith.constant 0 : index
    %0 = vector.load %arg2[%c0, %c0_0] : memref<64x128xbf16, #tpu.memory_space<vmem>>, vector<64x128xbf16>
    %c0_1 = arith.constant 0 : index
    %c0_2 = arith.constant 0 : index
    %1 = vector.load %arg3[%c0_1, %c0_2] : memref<128x128xbf16, #tpu.memory_space<vmem>>, vector<128x128xbf16>
    %cst = arith.constant dense<0.000000e+00> : vector<64x128xf32>
    %2 = tpu.matmul %0, %1, %cst {dimension_numbers = #tpu.dot_dimension_numbers<[1], [0], [0], [1], [0, 0, 1, 1], [], []>} : vector<64x128xbf16>, vector<128x128xbf16>, vector<64x128xf32> -> vector<64x128xf32>
    %3 = arith.extf %0 : vector<64x128xbf16> to vector<64x128xf32>
    %c0_3 = arith.constant 0 : index
    %4 = memref.load %arg1[%c0_3] : memref<1xf32, #tpu.memory_space<smem>>
    %5 = vector.broadcast %4 : f32 to vector<64x128xf32>
    %6 = arith.mulf %5, %2 : vector<64x128xf32>
    %7 = arith.addf %3, %6 : vector<64x128xf32>
    %8 = arith.truncf %7 : vector<64x128xf32> to vector<64x128xbf16>
    %c0_4 = arith.constant 0 : index
    %c0_5 = arith.constant 0 : index
    %9 = vector.load %arg4[%c0_4, %c0_5] : memref<128x64xbf16, #tpu.memory_space<vmem>>, vector<128x64xbf16>
    %cst_6 = arith.constant dense<0.000000e+00> : vector<64x64xf32>
    %10 = tpu.matmul %8, %9, %cst_6 {dimension_numbers = #tpu.dot_dimension_numbers<[1], [0], [0], [1], [0, 0, 1, 1], [], []>} : vector<64x128xbf16>, vector<128x64xbf16>, vector<64x64xf32> -> vector<64x64xf32>
    %c0_7 = arith.constant 0 : index
    %c0_8 = arith.constant 0 : index
    %11 = vector.load %arg5[%c0_7, %c0_8] : memref<1x64xf32, #tpu.memory_space<vmem>>, vector<1x64xf32>
    %12 = vector.broadcast %11 : vector<1x64xf32> to vector<64x64xf32>
    %13 = arith.addf %10, %12 : vector<64x64xf32>
    %cst_9 = arith.constant 0.000000e+00 : f32
    %14 = vector.broadcast %cst_9 : f32 to vector<64x64xf32>
    %15 = arith.cmpf ogt, %13, %14 : vector<64x64xf32>
    %cst_10 = arith.constant 0.00999999977 : f32
    %16 = vector.broadcast %cst_10 : f32 to vector<64x64xf32>
    %17 = arith.mulf %16, %13 : vector<64x64xf32>
    %18 = arith.select %15, %13, %17 : vector<64x64xi1>, vector<64x64xf32>
    %19 = arith.truncf %18 : vector<64x64xf32> to vector<64x64xbf16>
    %c0_11 = arith.constant 0 : index
    %c0_12 = arith.constant 0 : index
    %20 = vector.load %arg6[%c0_11, %c0_12] : memref<64x64xbf16, #tpu.memory_space<vmem>>, vector<64x64xbf16>
    tpu.vector_store %arg6[%c0_11, %c0_12], %19 {strides = array<i32>} : memref<64x64xbf16, #tpu.memory_space<vmem>>, vector<64x64xbf16>,
    return
  }
  func.func @transform_0(%arg0: i32) -> i32 {
    %c0_i32 = arith.constant 0 : i32
    %c0_i32_0 = arith.constant 0 : i32
    return %c0_i32 : i32
  }
  func.func @transform_1(%arg0: i32) -> (i32, i32) {
    %c0_i32 = arith.constant 0 : i32
    %c0_i32_0 = arith.constant 0 : i32
    return %arg0, %c0_i32 : i32, i32
  }
  func.func @transform_2(%arg0: i32) -> (i32, i32) {
    %c0_i32 = arith.constant 0 : i32
    %c0_i32_0 = arith.constant 0 : i32
    %c0_i32_1 = arith.constant 0 : i32
    return %c0_i32, %c0_i32_0 : i32, i32
  }
  func.func @transform_3(%arg0: i32) -> (i32, i32) {
    %c0_i32 = arith.constant 0 : i32
    %c0_i32_0 = arith.constant 0 : i32
    %c0_i32_1 = arith.constant 0 : i32
    return %c0_i32, %c0_i32_0 : i32, i32
  }
  func.func @transform_4(%arg0: i32) -> (i32, i32) {
    %c0_i32 = arith.constant 0 : i32
    %c0_i32_0 = arith.constant 0 : i32
    %c0_i32_1 = arith.constant 0 : i32
    return %c0_i32, %c0_i32_0 : i32, i32
  }
  func.func @transform_5(%arg0: i32) -> (i32, i32) {
    %c0_i32 = arith.constant 0 : i32
    %c0_i32_0 = arith.constant 0 : i32
    return %arg0, %c0_i32 : i32, i32
  }
}

module attributes {stable_mosaic.version = 11 : i64} {
  func.func @_dwconv_kernel(%arg0: memref<12x12x64xbf16, #tpu.memory_space<vmem>>, %arg1: memref<5x5x64xf32, #tpu.memory_space<vmem>>, %arg2: memref<1x1x64xf32, #tpu.memory_space<vmem>>, %arg3: memref<8x8x64xbf16, #tpu.memory_space<vmem>>) attributes {dimension_semantics = [], scalar_prefetch = 0 : i64, scratch_operands = 0 : i64, tpu.core_type = #tpu.core_type<tc>} {
    %c0 = arith.constant 0 : index
    %c0_0 = arith.constant 0 : index
    %c0_1 = arith.constant 0 : index
    %0 = vector.load %arg0[%c0, %c0_0, %c0_1] : memref<12x12x64xbf16, #tpu.memory_space<vmem>>, vector<12x12x64xbf16>
    %1 = arith.extf %0 : vector<12x12x64xbf16> to vector<12x12x64xf32>
    %c0_2 = arith.constant 0 : index
    %c0_3 = arith.constant 0 : index
    %c0_4 = arith.constant 0 : index
    %2 = vector.load %arg1[%c0_2, %c0_3, %c0_4] : memref<5x5x64xf32, #tpu.memory_space<vmem>>, vector<5x5x64xf32>
    %cst = arith.constant 0.000000e+00 : f32
    %3 = vector.broadcast %cst : f32 to vector<8x8x64xf32>
    %4 = vector.extract_strided_slice %1 {offsets = [0, 0, 0], sizes = [8, 8, 64], strides = [1, 1, 1]} : vector<12x12x64xf32> to vector<8x8x64xf32>
    %5 = vector.extract_strided_slice %2 {offsets = [0, 0, 0], sizes = [1, 1, 64], strides = [1, 1, 1]} : vector<5x5x64xf32> to vector<1x1x64xf32>
    %6 = vector.shape_cast %5 : vector<1x1x64xf32> to vector<64xf32>
    %7 = vector.shape_cast %6 : vector<64xf32> to vector<1x1x64xf32>
    %8 = vector.broadcast %7 : vector<1x1x64xf32> to vector<8x8x64xf32>
    %9 = arith.mulf %4, %8 : vector<8x8x64xf32>
    %10 = arith.addf %3, %9 : vector<8x8x64xf32>
    %11 = vector.extract_strided_slice %1 {offsets = [0, 1, 0], sizes = [8, 8, 64], strides = [1, 1, 1]} : vector<12x12x64xf32> to vector<8x8x64xf32>
    %12 = vector.extract_strided_slice %2 {offsets = [0, 1, 0], sizes = [1, 1, 64], strides = [1, 1, 1]} : vector<5x5x64xf32> to vector<1x1x64xf32>
    %13 = vector.shape_cast %12 : vector<1x1x64xf32> to vector<64xf32>
    %14 = vector.shape_cast %13 : vector<64xf32> to vector<1x1x64xf32>
    %15 = vector.broadcast %14 : vector<1x1x64xf32> to vector<8x8x64xf32>
    %16 = arith.mulf %11, %15 : vector<8x8x64xf32>
    %17 = arith.addf %10, %16 : vector<8x8x64xf32>
    %18 = vector.extract_strided_slice %1 {offsets = [0, 2, 0], sizes = [8, 8, 64], strides = [1, 1, 1]} : vector<12x12x64xf32> to vector<8x8x64xf32>
    %19 = vector.extract_strided_slice %2 {offsets = [0, 2, 0], sizes = [1, 1, 64], strides = [1, 1, 1]} : vector<5x5x64xf32> to vector<1x1x64xf32>
    %20 = vector.shape_cast %19 : vector<1x1x64xf32> to vector<64xf32>
    %21 = vector.shape_cast %20 : vector<64xf32> to vector<1x1x64xf32>
    %22 = vector.broadcast %21 : vector<1x1x64xf32> to vector<8x8x64xf32>
    %23 = arith.mulf %18, %22 : vector<8x8x64xf32>
    %24 = arith.addf %17, %23 : vector<8x8x64xf32>
    %25 = vector.extract_strided_slice %1 {offsets = [0, 3, 0], sizes = [8, 8, 64], strides = [1, 1, 1]} : vector<12x12x64xf32> to vector<8x8x64xf32>
    %26 = vector.extract_strided_slice %2 {offsets = [0, 3, 0], sizes = [1, 1, 64], strides = [1, 1, 1]} : vector<5x5x64xf32> to vector<1x1x64xf32>
    %27 = vector.shape_cast %26 : vector<1x1x64xf32> to vector<64xf32>
    %28 = vector.shape_cast %27 : vector<64xf32> to vector<1x1x64xf32>
    %29 = vector.broadcast %28 : vector<1x1x64xf32> to vector<8x8x64xf32>
    %30 = arith.mulf %25, %29 : vector<8x8x64xf32>
    %31 = arith.addf %24, %30 : vector<8x8x64xf32>
    %32 = vector.extract_strided_slice %1 {offsets = [0, 4, 0], sizes = [8, 8, 64], strides = [1, 1, 1]} : vector<12x12x64xf32> to vector<8x8x64xf32>
    %33 = vector.extract_strided_slice %2 {offsets = [0, 4, 0], sizes = [1, 1, 64], strides = [1, 1, 1]} : vector<5x5x64xf32> to vector<1x1x64xf32>
    %34 = vector.shape_cast %33 : vector<1x1x64xf32> to vector<64xf32>
    %35 = vector.shape_cast %34 : vector<64xf32> to vector<1x1x64xf32>
    %36 = vector.broadcast %35 : vector<1x1x64xf32> to vector<8x8x64xf32>
    %37 = arith.mulf %32, %36 : vector<8x8x64xf32>
    %38 = arith.addf %31, %37 : vector<8x8x64xf32>
    %39 = vector.extract_strided_slice %1 {offsets = [1, 0, 0], sizes = [8, 8, 64], strides = [1, 1, 1]} : vector<12x12x64xf32> to vector<8x8x64xf32>
    %40 = vector.extract_strided_slice %2 {offsets = [1, 0, 0], sizes = [1, 1, 64], strides = [1, 1, 1]} : vector<5x5x64xf32> to vector<1x1x64xf32>
    %41 = vector.shape_cast %40 : vector<1x1x64xf32> to vector<64xf32>
    %42 = vector.shape_cast %41 : vector<64xf32> to vector<1x1x64xf32>
    %43 = vector.broadcast %42 : vector<1x1x64xf32> to vector<8x8x64xf32>
    %44 = arith.mulf %39, %43 : vector<8x8x64xf32>
    %45 = arith.addf %38, %44 : vector<8x8x64xf32>
    %46 = vector.extract_strided_slice %1 {offsets = [1, 1, 0], sizes = [8, 8, 64], strides = [1, 1, 1]} : vector<12x12x64xf32> to vector<8x8x64xf32>
    %47 = vector.extract_strided_slice %2 {offsets = [1, 1, 0], sizes = [1, 1, 64], strides = [1, 1, 1]} : vector<5x5x64xf32> to vector<1x1x64xf32>
    %48 = vector.shape_cast %47 : vector<1x1x64xf32> to vector<64xf32>
    %49 = vector.shape_cast %48 : vector<64xf32> to vector<1x1x64xf32>
    %50 = vector.broadcast %49 : vector<1x1x64xf32> to vector<8x8x64xf32>
    %51 = arith.mulf %46, %50 : vector<8x8x64xf32>
    %52 = arith.addf %45, %51 : vector<8x8x64xf32>
    %53 = vector.extract_strided_slice %1 {offsets = [1, 2, 0], sizes = [8, 8, 64], strides = [1, 1, 1]} : vector<12x12x64xf32> to vector<8x8x64xf32>
    %54 = vector.extract_strided_slice %2 {offsets = [1, 2, 0], sizes = [1, 1, 64], strides = [1, 1, 1]} : vector<5x5x64xf32> to vector<1x1x64xf32>
    %55 = vector.shape_cast %54 : vector<1x1x64xf32> to vector<64xf32>
    %56 = vector.shape_cast %55 : vector<64xf32> to vector<1x1x64xf32>
    %57 = vector.broadcast %56 : vector<1x1x64xf32> to vector<8x8x64xf32>
    %58 = arith.mulf %53, %57 : vector<8x8x64xf32>
    %59 = arith.addf %52, %58 : vector<8x8x64xf32>
    %60 = vector.extract_strided_slice %1 {offsets = [1, 3, 0], sizes = [8, 8, 64], strides = [1, 1, 1]} : vector<12x12x64xf32> to vector<8x8x64xf32>
    %61 = vector.extract_strided_slice %2 {offsets = [1, 3, 0], sizes = [1, 1, 64], strides = [1, 1, 1]} : vector<5x5x64xf32> to vector<1x1x64xf32>
    %62 = vector.shape_cast %61 : vector<1x1x64xf32> to vector<64xf32>
    %63 = vector.shape_cast %62 : vector<64xf32> to vector<1x1x64xf32>
    %64 = vector.broadcast %63 : vector<1x1x64xf32> to vector<8x8x64xf32>
    %65 = arith.mulf %60, %64 : vector<8x8x64xf32>
    %66 = arith.addf %59, %65 : vector<8x8x64xf32>
    %67 = vector.extract_strided_slice %1 {offsets = [1, 4, 0], sizes = [8, 8, 64], strides = [1, 1, 1]} : vector<12x12x64xf32> to vector<8x8x64xf32>
    %68 = vector.extract_strided_slice %2 {offsets = [1, 4, 0], sizes = [1, 1, 64], strides = [1, 1, 1]} : vector<5x5x64xf32> to vector<1x1x64xf32>
    %69 = vector.shape_cast %68 : vector<1x1x64xf32> to vector<64xf32>
    %70 = vector.shape_cast %69 : vector<64xf32> to vector<1x1x64xf32>
    %71 = vector.broadcast %70 : vector<1x1x64xf32> to vector<8x8x64xf32>
    %72 = arith.mulf %67, %71 : vector<8x8x64xf32>
    %73 = arith.addf %66, %72 : vector<8x8x64xf32>
    %74 = vector.extract_strided_slice %1 {offsets = [2, 0, 0], sizes = [8, 8, 64], strides = [1, 1, 1]} : vector<12x12x64xf32> to vector<8x8x64xf32>
    %75 = vector.extract_strided_slice %2 {offsets = [2, 0, 0], sizes = [1, 1, 64], strides = [1, 1, 1]} : vector<5x5x64xf32> to vector<1x1x64xf32>
    %76 = vector.shape_cast %75 : vector<1x1x64xf32> to vector<64xf32>
    %77 = vector.shape_cast %76 : vector<64xf32> to vector<1x1x64xf32>
    %78 = vector.broadcast %77 : vector<1x1x64xf32> to vector<8x8x64xf32>
    %79 = arith.mulf %74, %78 : vector<8x8x64xf32>
    %80 = arith.addf %73, %79 : vector<8x8x64xf32>
    %81 = vector.extract_strided_slice %1 {offsets = [2, 1, 0], sizes = [8, 8, 64], strides = [1, 1, 1]} : vector<12x12x64xf32> to vector<8x8x64xf32>
    %82 = vector.extract_strided_slice %2 {offsets = [2, 1, 0], sizes = [1, 1, 64], strides = [1, 1, 1]} : vector<5x5x64xf32> to vector<1x1x64xf32>
    %83 = vector.shape_cast %82 : vector<1x1x64xf32> to vector<64xf32>
    %84 = vector.shape_cast %83 : vector<64xf32> to vector<1x1x64xf32>
    %85 = vector.broadcast %84 : vector<1x1x64xf32> to vector<8x8x64xf32>
    %86 = arith.mulf %81, %85 : vector<8x8x64xf32>
    %87 = arith.addf %80, %86 : vector<8x8x64xf32>
    %88 = vector.extract_strided_slice %1 {offsets = [2, 2, 0], sizes = [8, 8, 64], strides = [1, 1, 1]} : vector<12x12x64xf32> to vector<8x8x64xf32>
    %89 = vector.extract_strided_slice %2 {offsets = [2, 2, 0], sizes = [1, 1, 64], strides = [1, 1, 1]} : vector<5x5x64xf32> to vector<1x1x64xf32>
    %90 = vector.shape_cast %89 : vector<1x1x64xf32> to vector<64xf32>
    %91 = vector.shape_cast %90 : vector<64xf32> to vector<1x1x64xf32>
    %92 = vector.broadcast %91 : vector<1x1x64xf32> to vector<8x8x64xf32>
    %93 = arith.mulf %88, %92 : vector<8x8x64xf32>
    %94 = arith.addf %87, %93 : vector<8x8x64xf32>
    %95 = vector.extract_strided_slice %1 {offsets = [2, 3, 0], sizes = [8, 8, 64], strides = [1, 1, 1]} : vector<12x12x64xf32> to vector<8x8x64xf32>
    %96 = vector.extract_strided_slice %2 {offsets = [2, 3, 0], sizes = [1, 1, 64], strides = [1, 1, 1]} : vector<5x5x64xf32> to vector<1x1x64xf32>
    %97 = vector.shape_cast %96 : vector<1x1x64xf32> to vector<64xf32>
    %98 = vector.shape_cast %97 : vector<64xf32> to vector<1x1x64xf32>
    %99 = vector.broadcast %98 : vector<1x1x64xf32> to vector<8x8x64xf32>
    %100 = arith.mulf %95, %99 : vector<8x8x64xf32>
    %101 = arith.addf %94, %100 : vector<8x8x64xf32>
    %102 = vector.extract_strided_slice %1 {offsets = [2, 4, 0], sizes = [8, 8, 64], strides = [1, 1, 1]} : vector<12x12x64xf32> to vector<8x8x64xf32>
    %103 = vector.extract_strided_slice %2 {offsets = [2, 4, 0], sizes = [1, 1, 64], strides = [1, 1, 1]} : vector<5x5x64xf32> to vector<1x1x64xf32>
    %104 = vector.shape_cast %103 : vector<1x1x64xf32> to vector<64xf32>
    %105 = vector.shape_cast %104 : vector<64xf32> to vector<1x1x64xf32>
    %106 = vector.broadcast %105 : vector<1x1x64xf32> to vector<8x8x64xf32>
    %107 = arith.mulf %102, %106 : vector<8x8x64xf32>
    %108 = arith.addf %101, %107 : vector<8x8x64xf32>
    %109 = vector.extract_strided_slice %1 {offsets = [3, 0, 0], sizes = [8, 8, 64], strides = [1, 1, 1]} : vector<12x12x64xf32> to vector<8x8x64xf32>
    %110 = vector.extract_strided_slice %2 {offsets = [3, 0, 0], sizes = [1, 1, 64], strides = [1, 1, 1]} : vector<5x5x64xf32> to vector<1x1x64xf32>
    %111 = vector.shape_cast %110 : vector<1x1x64xf32> to vector<64xf32>
    %112 = vector.shape_cast %111 : vector<64xf32> to vector<1x1x64xf32>
    %113 = vector.broadcast %112 : vector<1x1x64xf32> to vector<8x8x64xf32>
    %114 = arith.mulf %109, %113 : vector<8x8x64xf32>
    %115 = arith.addf %108, %114 : vector<8x8x64xf32>
    %116 = vector.extract_strided_slice %1 {offsets = [3, 1, 0], sizes = [8, 8, 64], strides = [1, 1, 1]} : vector<12x12x64xf32> to vector<8x8x64xf32>
    %117 = vector.extract_strided_slice %2 {offsets = [3, 1, 0], sizes = [1, 1, 64], strides = [1, 1, 1]} : vector<5x5x64xf32> to vector<1x1x64xf32>
    %118 = vector.shape_cast %117 : vector<1x1x64xf32> to vector<64xf32>
    %119 = vector.shape_cast %118 : vector<64xf32> to vector<1x1x64xf32>
    %120 = vector.broadcast %119 : vector<1x1x64xf32> to vector<8x8x64xf32>
    %121 = arith.mulf %116, %120 : vector<8x8x64xf32>
    %122 = arith.addf %115, %121 : vector<8x8x64xf32>
    %123 = vector.extract_strided_slice %1 {offsets = [3, 2, 0], sizes = [8, 8, 64], strides = [1, 1, 1]} : vector<12x12x64xf32> to vector<8x8x64xf32>
    %124 = vector.extract_strided_slice %2 {offsets = [3, 2, 0], sizes = [1, 1, 64], strides = [1, 1, 1]} : vector<5x5x64xf32> to vector<1x1x64xf32>
    %125 = vector.shape_cast %124 : vector<1x1x64xf32> to vector<64xf32>
    %126 = vector.shape_cast %125 : vector<64xf32> to vector<1x1x64xf32>
    %127 = vector.broadcast %126 : vector<1x1x64xf32> to vector<8x8x64xf32>
    %128 = arith.mulf %123, %127 : vector<8x8x64xf32>
    %129 = arith.addf %122, %128 : vector<8x8x64xf32>
    %130 = vector.extract_strided_slice %1 {offsets = [3, 3, 0], sizes = [8, 8, 64], strides = [1, 1, 1]} : vector<12x12x64xf32> to vector<8x8x64xf32>
    %131 = vector.extract_strided_slice %2 {offsets = [3, 3, 0], sizes = [1, 1, 64], strides = [1, 1, 1]} : vector<5x5x64xf32> to vector<1x1x64xf32>
    %132 = vector.shape_cast %131 : vector<1x1x64xf32> to vector<64xf32>
    %133 = vector.shape_cast %132 : vector<64xf32> to vector<1x1x64xf32>
    %134 = vector.broadcast %133 : vector<1x1x64xf32> to vector<8x8x64xf32>
    %135 = arith.mulf %130, %134 : vector<8x8x64xf32>
    %136 = arith.addf %129, %135 : vector<8x8x64xf32>
    %137 = vector.extract_strided_slice %1 {offsets = [3, 4, 0], sizes = [8, 8, 64], strides = [1, 1, 1]} : vector<12x12x64xf32> to vector<8x8x64xf32>
    %138 = vector.extract_strided_slice %2 {offsets = [3, 4, 0], sizes = [1, 1, 64], strides = [1, 1, 1]} : vector<5x5x64xf32> to vector<1x1x64xf32>
    %139 = vector.shape_cast %138 : vector<1x1x64xf32> to vector<64xf32>
    %140 = vector.shape_cast %139 : vector<64xf32> to vector<1x1x64xf32>
    %141 = vector.broadcast %140 : vector<1x1x64xf32> to vector<8x8x64xf32>
    %142 = arith.mulf %137, %141 : vector<8x8x64xf32>
    %143 = arith.addf %136, %142 : vector<8x8x64xf32>
    %144 = vector.extract_strided_slice %1 {offsets = [4, 0, 0], sizes = [8, 8, 64], strides = [1, 1, 1]} : vector<12x12x64xf32> to vector<8x8x64xf32>
    %145 = vector.extract_strided_slice %2 {offsets = [4, 0, 0], sizes = [1, 1, 64], strides = [1, 1, 1]} : vector<5x5x64xf32> to vector<1x1x64xf32>
    %146 = vector.shape_cast %145 : vector<1x1x64xf32> to vector<64xf32>
    %147 = vector.shape_cast %146 : vector<64xf32> to vector<1x1x64xf32>
    %148 = vector.broadcast %147 : vector<1x1x64xf32> to vector<8x8x64xf32>
    %149 = arith.mulf %144, %148 : vector<8x8x64xf32>
    %150 = arith.addf %143, %149 : vector<8x8x64xf32>
    %151 = vector.extract_strided_slice %1 {offsets = [4, 1, 0], sizes = [8, 8, 64], strides = [1, 1, 1]} : vector<12x12x64xf32> to vector<8x8x64xf32>
    %152 = vector.extract_strided_slice %2 {offsets = [4, 1, 0], sizes = [1, 1, 64], strides = [1, 1, 1]} : vector<5x5x64xf32> to vector<1x1x64xf32>
    %153 = vector.shape_cast %152 : vector<1x1x64xf32> to vector<64xf32>
    %154 = vector.shape_cast %153 : vector<64xf32> to vector<1x1x64xf32>
    %155 = vector.broadcast %154 : vector<1x1x64xf32> to vector<8x8x64xf32>
    %156 = arith.mulf %151, %155 : vector<8x8x64xf32>
    %157 = arith.addf %150, %156 : vector<8x8x64xf32>
    %158 = vector.extract_strided_slice %1 {offsets = [4, 2, 0], sizes = [8, 8, 64], strides = [1, 1, 1]} : vector<12x12x64xf32> to vector<8x8x64xf32>
    %159 = vector.extract_strided_slice %2 {offsets = [4, 2, 0], sizes = [1, 1, 64], strides = [1, 1, 1]} : vector<5x5x64xf32> to vector<1x1x64xf32>
    %160 = vector.shape_cast %159 : vector<1x1x64xf32> to vector<64xf32>
    %161 = vector.shape_cast %160 : vector<64xf32> to vector<1x1x64xf32>
    %162 = vector.broadcast %161 : vector<1x1x64xf32> to vector<8x8x64xf32>
    %163 = arith.mulf %158, %162 : vector<8x8x64xf32>
    %164 = arith.addf %157, %163 : vector<8x8x64xf32>
    %165 = vector.extract_strided_slice %1 {offsets = [4, 3, 0], sizes = [8, 8, 64], strides = [1, 1, 1]} : vector<12x12x64xf32> to vector<8x8x64xf32>
    %166 = vector.extract_strided_slice %2 {offsets = [4, 3, 0], sizes = [1, 1, 64], strides = [1, 1, 1]} : vector<5x5x64xf32> to vector<1x1x64xf32>
    %167 = vector.shape_cast %166 : vector<1x1x64xf32> to vector<64xf32>
    %168 = vector.shape_cast %167 : vector<64xf32> to vector<1x1x64xf32>
    %169 = vector.broadcast %168 : vector<1x1x64xf32> to vector<8x8x64xf32>
    %170 = arith.mulf %165, %169 : vector<8x8x64xf32>
    %171 = arith.addf %164, %170 : vector<8x8x64xf32>
    %172 = vector.extract_strided_slice %1 {offsets = [4, 4, 0], sizes = [8, 8, 64], strides = [1, 1, 1]} : vector<12x12x64xf32> to vector<8x8x64xf32>
    %173 = vector.extract_strided_slice %2 {offsets = [4, 4, 0], sizes = [1, 1, 64], strides = [1, 1, 1]} : vector<5x5x64xf32> to vector<1x1x64xf32>
    %174 = vector.shape_cast %173 : vector<1x1x64xf32> to vector<64xf32>
    %175 = vector.shape_cast %174 : vector<64xf32> to vector<1x1x64xf32>
    %176 = vector.broadcast %175 : vector<1x1x64xf32> to vector<8x8x64xf32>
    %177 = arith.mulf %172, %176 : vector<8x8x64xf32>
    %178 = arith.addf %171, %177 : vector<8x8x64xf32>
    %c0_5 = arith.constant 0 : index
    %c0_6 = arith.constant 0 : index
    %c0_7 = arith.constant 0 : index
    %179 = vector.load %arg2[%c0_5, %c0_6, %c0_7] : memref<1x1x64xf32, #tpu.memory_space<vmem>>, vector<1x1x64xf32>
    %180 = vector.broadcast %179 : vector<1x1x64xf32> to vector<8x8x64xf32>
    %181 = arith.addf %178, %180 : vector<8x8x64xf32>
    %cst_8 = arith.constant 0.000000e+00 : f32
    %182 = vector.broadcast %cst_8 : f32 to vector<8x8x64xf32>
    %183 = arith.cmpf ogt, %181, %182 : vector<8x8x64xf32>
    %cst_9 = arith.constant 0.00999999977 : f32
    %184 = vector.broadcast %cst_9 : f32 to vector<8x8x64xf32>
    %185 = arith.mulf %184, %181 : vector<8x8x64xf32>
    %186 = arith.select %183, %181, %185 : vector<8x8x64xi1>, vector<8x8x64xf32>
    %187 = arith.truncf %186 : vector<8x8x64xf32> to vector<8x8x64xbf16>
    %c0_10 = arith.constant 0 : index
    %c0_11 = arith.constant 0 : index
    %c0_12 = arith.constant 0 : index
    %188 = vector.load %arg3[%c0_10, %c0_11, %c0_12] : memref<8x8x64xbf16, #tpu.memory_space<vmem>>, vector<8x8x64xbf16>
    tpu.vector_store %arg3[%c0_10, %c0_11, %c0_12], %187 {strides = array<i32>} : memref<8x8x64xbf16, #tpu.memory_space<vmem>>, vector<8x8x64xbf16>,
    return
  }
}

module attributes {stable_mosaic.version = 11 : i64} {
  func.func @_gat_kernel(%arg0: memref<16x128xf32, #tpu.memory_space<vmem>>, %arg1: memref<128x120xf32, #tpu.memory_space<vmem>>, %arg2: memref<30x4xf32, #tpu.memory_space<vmem>>, %arg3: memref<30x4xf32, #tpu.memory_space<vmem>>, %arg4: memref<16x16xf32, #tpu.memory_space<vmem>>, %arg5: memref<120x64xf32, #tpu.memory_space<vmem>>, %arg6: memref<128x1xf32, #tpu.memory_space<vmem>>, %arg7: memref<64x64xf32, #tpu.memory_space<vmem>>, %arg8: memref<16x64xbf16, #tpu.memory_space<vmem>>) attributes {dimension_semantics = [], scalar_prefetch = 0 : i64, scratch_operands = 0 : i64, tpu.core_type = #tpu.core_type<tc>} {
    %c0 = arith.constant 0 : index
    %c0_0 = arith.constant 0 : index
    %0 = vector.load %arg0[%c0, %c0_0] : memref<16x128xf32, #tpu.memory_space<vmem>>, vector<16x128xf32>
    %c0_1 = arith.constant 0 : index
    %c0_2 = arith.constant 0 : index
    %1 = vector.load %arg4[%c0_1, %c0_2] : memref<16x16xf32, #tpu.memory_space<vmem>>, vector<16x16xf32>
    %c0_3 = arith.constant 0 : index
    %c0_4 = arith.constant 0 : index
    %2 = vector.load %arg1[%c0_3, %c0_4] : memref<128x120xf32, #tpu.memory_space<vmem>>, vector<128x120xf32>
    %cst = arith.constant dense<0.000000e+00> : vector<16x120xf32>
    %3 = tpu.matmul %0, %2, %cst {dimension_numbers = #tpu.dot_dimension_numbers<[1], [0], [0], [1], [0, 0, 1, 1], [], []>} : vector<16x128xf32>, vector<128x120xf32>, vector<16x120xf32> -> vector<16x120xf32>
    %c0_5 = arith.constant 0 : index
    %c0_6 = arith.constant 0 : index
    %4 = vector.load %arg2[%c0_5, %c0_6] : memref<30x4xf32, #tpu.memory_space<vmem>>, vector<30x4xf32>
    %c0_7 = arith.constant 0 : index
    %c0_8 = arith.constant 0 : index
    %5 = vector.load %arg3[%c0_7, %c0_8] : memref<30x4xf32, #tpu.memory_space<vmem>>, vector<30x4xf32>
    %c0_9 = arith.constant 0 : index
    %c0_10 = arith.constant 0 : index
    %6 = vector.load %arg5[%c0_9, %c0_10] : memref<120x64xf32, #tpu.memory_space<vmem>>, vector<120x64xf32>
    %c0_11 = arith.constant 0 : index
    %c0_12 = arith.constant 0 : index
    %7 = vector.load %arg6[%c0_11, %c0_12] : memref<128x1xf32, #tpu.memory_space<vmem>>, vector<128x1xf32>
    %cst_13 = arith.constant 0.000000e+00 : f32
    %8 = vector.broadcast %cst_13 : f32 to vector<16x64xf32>
    %9 = vector.extract_strided_slice %3 {offsets = [0, 0], sizes = [16, 30], strides = [1, 1]} : vector<16x120xf32> to vector<16x30xf32>
    %10 = vector.extract_strided_slice %4 {offsets = [0, 0], sizes = [30, 1], strides = [1, 1]} : vector<30x4xf32> to vector<30x1xf32>
    %cst_14 = arith.constant dense<0.000000e+00> : vector<16x1xf32>
    %11 = tpu.matmul %9, %10, %cst_14 {dimension_numbers = #tpu.dot_dimension_numbers<[1], [0], [0], [1], [0, 0, 1, 1], [], []>} : vector<16x30xf32>, vector<30x1xf32>, vector<16x1xf32> -> vector<16x1xf32>
    %12 = vector.extract_strided_slice %5 {offsets = [0, 0], sizes = [30, 1], strides = [1, 1]} : vector<30x4xf32> to vector<30x1xf32>
    %cst_15 = arith.constant dense<0.000000e+00> : vector<16x1xf32>
    %13 = tpu.matmul %9, %12, %cst_15 {dimension_numbers = #tpu.dot_dimension_numbers<[1], [0], [0], [1], [0, 0, 1, 1], [], []>} : vector<16x30xf32>, vector<30x1xf32>, vector<16x1xf32> -> vector<16x1xf32>
    %14 = tpu.transpose %13, [1, 0] : vector<16x1xf32> -> vector<1x16xf32>
    %15 = vector.broadcast %11 : vector<16x1xf32> to vector<16x16xf32>
    %16 = vector.broadcast %14 : vector<1x16xf32> to vector<16x16xf32>
    %17 = arith.addf %15, %16 : vector<16x16xf32>
    %cst_16 = arith.constant 0.000000e+00 : f32
    %18 = vector.broadcast %cst_16 : f32 to vector<16x16xf32>
    %19 = arith.cmpf ogt, %17, %18 : vector<16x16xf32>
    %cst_17 = arith.constant 2.000000e-01 : f32
    %20 = vector.broadcast %cst_17 : f32 to vector<16x16xf32>
    %21 = arith.mulf %20, %17 : vector<16x16xf32>
    %22 = arith.select %19, %17, %21 : vector<16x16xi1>, vector<16x16xf32>
    %cst_18 = arith.constant 0.000000e+00 : f32
    %23 = vector.broadcast %cst_18 : f32 to vector<16x16xf32>
    %24 = arith.cmpf ogt, %1, %23 : vector<16x16xf32>
    %cst_19 = arith.constant -9.000000e+15 : f32
    %25 = vector.broadcast %cst_19 : f32 to vector<16x16xf32>
    %26 = arith.select %24, %22, %25 : vector<16x16xi1>, vector<16x16xf32>
    %cst_20 = arith.constant dense<0xFF800000> : vector<16xf32>
    %27 = vector.multi_reduction <maximumf>, %26, %cst_20 [1] : vector<16x16xf32> to vector<16xf32>
    %28 = vector.shape_cast %27 : vector<16xf32> to vector<16x1xf32>
    %29 = vector.broadcast %28 : vector<16x1xf32> to vector<16x16xf32>
    %30 = arith.subf %26, %29 : vector<16x16xf32>
    %31 = math.exp %30 : vector<16x16xf32>
    %cst_21 = arith.constant dense<0.000000e+00> : vector<16xf32>
    %32 = vector.multi_reduction <add>, %31, %cst_21 [1] : vector<16x16xf32> to vector<16xf32>
    %33 = vector.shape_cast %32 : vector<16xf32> to vector<16x1xf32>
    %34 = vector.broadcast %33 : vector<16x1xf32> to vector<16x16xf32>
    %35 = arith.divf %31, %34 : vector<16x16xf32>
    %cst_22 = arith.constant dense<0.000000e+00> : vector<16x30xf32>
    %36 = tpu.matmul %35, %9, %cst_22 {dimension_numbers = #tpu.dot_dimension_numbers<[1], [0], [0], [1], [0, 0, 1, 1], [], []>} : vector<16x16xf32>, vector<16x30xf32>, vector<16x30xf32> -> vector<16x30xf32>
    %cst_23 = arith.constant 0.000000e+00 : f32
    %37 = vector.broadcast %cst_23 : f32 to vector<16x30xf32>
    %38 = arith.cmpf ogt, %36, %37 : vector<16x30xf32>
    %39 = math.exp %36 : vector<16x30xf32>
    %cst_24 = arith.constant 1.000000e+00 : f32
    %40 = vector.broadcast %cst_24 : f32 to vector<16x30xf32>
    %41 = arith.subf %39, %40 : vector<16x30xf32>
    %42 = arith.select %38, %36, %41 : vector<16x30xi1>, vector<16x30xf32>
    %43 = vector.extract_strided_slice %6 {offsets = [0, 0], sizes = [30, 64], strides = [1, 1]} : vector<120x64xf32> to vector<30x64xf32>
    %cst_25 = arith.constant dense<0.000000e+00> : vector<16x64xf32>
    %44 = tpu.matmul %42, %43, %cst_25 {dimension_numbers = #tpu.dot_dimension_numbers<[1], [0], [0], [1], [0, 0, 1, 1], [], []>} : vector<16x30xf32>, vector<30x64xf32>, vector<16x64xf32> -> vector<16x64xf32>
    %45 = arith.addf %8, %44 : vector<16x64xf32>
    %46 = vector.extract_strided_slice %3 {offsets = [0, 30], sizes = [16, 30], strides = [1, 1]} : vector<16x120xf32> to vector<16x30xf32>
    %47 = vector.extract_strided_slice %4 {offsets = [0, 1], sizes = [30, 1], strides = [1, 1]} : vector<30x4xf32> to vector<30x1xf32>
    %cst_26 = arith.constant dense<0.000000e+00> : vector<16x1xf32>
    %48 = tpu.matmul %46, %47, %cst_26 {dimension_numbers = #tpu.dot_dimension_numbers<[1], [0], [0], [1], [0, 0, 1, 1], [], []>} : vector<16x30xf32>, vector<30x1xf32>, vector<16x1xf32> -> vector<16x1xf32>
    %49 = vector.extract_strided_slice %5 {offsets = [0, 1], sizes = [30, 1], strides = [1, 1]} : vector<30x4xf32> to vector<30x1xf32>
    %cst_27 = arith.constant dense<0.000000e+00> : vector<16x1xf32>
    %50 = tpu.matmul %46, %49, %cst_27 {dimension_numbers = #tpu.dot_dimension_numbers<[1], [0], [0], [1], [0, 0, 1, 1], [], []>} : vector<16x30xf32>, vector<30x1xf32>, vector<16x1xf32> -> vector<16x1xf32>
    %51 = tpu.transpose %50, [1, 0] : vector<16x1xf32> -> vector<1x16xf32>
    %52 = vector.broadcast %48 : vector<16x1xf32> to vector<16x16xf32>
    %53 = vector.broadcast %51 : vector<1x16xf32> to vector<16x16xf32>
    %54 = arith.addf %52, %53 : vector<16x16xf32>
    %cst_28 = arith.constant 0.000000e+00 : f32
    %55 = vector.broadcast %cst_28 : f32 to vector<16x16xf32>
    %56 = arith.cmpf ogt, %54, %55 : vector<16x16xf32>
    %cst_29 = arith.constant 2.000000e-01 : f32
    %57 = vector.broadcast %cst_29 : f32 to vector<16x16xf32>
    %58 = arith.mulf %57, %54 : vector<16x16xf32>
    %59 = arith.select %56, %54, %58 : vector<16x16xi1>, vector<16x16xf32>
    %cst_30 = arith.constant 0.000000e+00 : f32
    %60 = vector.broadcast %cst_30 : f32 to vector<16x16xf32>
    %61 = arith.cmpf ogt, %1, %60 : vector<16x16xf32>
    %cst_31 = arith.constant -9.000000e+15 : f32
    %62 = vector.broadcast %cst_31 : f32 to vector<16x16xf32>
    %63 = arith.select %61, %59, %62 : vector<16x16xi1>, vector<16x16xf32>
    %cst_32 = arith.constant dense<0xFF800000> : vector<16xf32>
    %64 = vector.multi_reduction <maximumf>, %63, %cst_32 [1] : vector<16x16xf32> to vector<16xf32>
    %65 = vector.shape_cast %64 : vector<16xf32> to vector<16x1xf32>
    %66 = vector.broadcast %65 : vector<16x1xf32> to vector<16x16xf32>
    %67 = arith.subf %63, %66 : vector<16x16xf32>
    %68 = math.exp %67 : vector<16x16xf32>
    %cst_33 = arith.constant dense<0.000000e+00> : vector<16xf32>
    %69 = vector.multi_reduction <add>, %68, %cst_33 [1] : vector<16x16xf32> to vector<16xf32>
    %70 = vector.shape_cast %69 : vector<16xf32> to vector<16x1xf32>
    %71 = vector.broadcast %70 : vector<16x1xf32> to vector<16x16xf32>
    %72 = arith.divf %68, %71 : vector<16x16xf32>
    %cst_34 = arith.constant dense<0.000000e+00> : vector<16x30xf32>
    %73 = tpu.matmul %72, %46, %cst_34 {dimension_numbers = #tpu.dot_dimension_numbers<[1], [0], [0], [1], [0, 0, 1, 1], [], []>} : vector<16x16xf32>, vector<16x30xf32>, vector<16x30xf32> -> vector<16x30xf32>
    %cst_35 = arith.constant 0.000000e+00 : f32
    %74 = vector.broadcast %cst_35 : f32 to vector<16x30xf32>
    %75 = arith.cmpf ogt, %73, %74 : vector<16x30xf32>
    %76 = math.exp %73 : vector<16x30xf32>
    %cst_36 = arith.constant 1.000000e+00 : f32
    %77 = vector.broadcast %cst_36 : f32 to vector<16x30xf32>
    %78 = arith.subf %76, %77 : vector<16x30xf32>
    %79 = arith.select %75, %73, %78 : vector<16x30xi1>, vector<16x30xf32>
    %80 = vector.extract_strided_slice %6 {offsets = [30, 0], sizes = [30, 64], strides = [1, 1]} : vector<120x64xf32> to vector<30x64xf32>
    %cst_37 = arith.constant dense<0.000000e+00> : vector<16x64xf32>
    %81 = tpu.matmul %79, %80, %cst_37 {dimension_numbers = #tpu.dot_dimension_numbers<[1], [0], [0], [1], [0, 0, 1, 1], [], []>} : vector<16x30xf32>, vector<30x64xf32>, vector<16x64xf32> -> vector<16x64xf32>
    %82 = arith.addf %45, %81 : vector<16x64xf32>
    %83 = vector.extract_strided_slice %3 {offsets = [0, 60], sizes = [16, 30], strides = [1, 1]} : vector<16x120xf32> to vector<16x30xf32>
    %84 = vector.extract_strided_slice %4 {offsets = [0, 2], sizes = [30, 1], strides = [1, 1]} : vector<30x4xf32> to vector<30x1xf32>
    %cst_38 = arith.constant dense<0.000000e+00> : vector<16x1xf32>
    %85 = tpu.matmul %83, %84, %cst_38 {dimension_numbers = #tpu.dot_dimension_numbers<[1], [0], [0], [1], [0, 0, 1, 1], [], []>} : vector<16x30xf32>, vector<30x1xf32>, vector<16x1xf32> -> vector<16x1xf32>
    %86 = vector.extract_strided_slice %5 {offsets = [0, 2], sizes = [30, 1], strides = [1, 1]} : vector<30x4xf32> to vector<30x1xf32>
    %cst_39 = arith.constant dense<0.000000e+00> : vector<16x1xf32>
    %87 = tpu.matmul %83, %86, %cst_39 {dimension_numbers = #tpu.dot_dimension_numbers<[1], [0], [0], [1], [0, 0, 1, 1], [], []>} : vector<16x30xf32>, vector<30x1xf32>, vector<16x1xf32> -> vector<16x1xf32>
    %88 = tpu.transpose %87, [1, 0] : vector<16x1xf32> -> vector<1x16xf32>
    %89 = vector.broadcast %85 : vector<16x1xf32> to vector<16x16xf32>
    %90 = vector.broadcast %88 : vector<1x16xf32> to vector<16x16xf32>
    %91 = arith.addf %89, %90 : vector<16x16xf32>
    %cst_40 = arith.constant 0.000000e+00 : f32
    %92 = vector.broadcast %cst_40 : f32 to vector<16x16xf32>
    %93 = arith.cmpf ogt, %91, %92 : vector<16x16xf32>
    %cst_41 = arith.constant 2.000000e-01 : f32
    %94 = vector.broadcast %cst_41 : f32 to vector<16x16xf32>
    %95 = arith.mulf %94, %91 : vector<16x16xf32>
    %96 = arith.select %93, %91, %95 : vector<16x16xi1>, vector<16x16xf32>
    %cst_42 = arith.constant 0.000000e+00 : f32
    %97 = vector.broadcast %cst_42 : f32 to vector<16x16xf32>
    %98 = arith.cmpf ogt, %1, %97 : vector<16x16xf32>
    %cst_43 = arith.constant -9.000000e+15 : f32
    %99 = vector.broadcast %cst_43 : f32 to vector<16x16xf32>
    %100 = arith.select %98, %96, %99 : vector<16x16xi1>, vector<16x16xf32>
    %cst_44 = arith.constant dense<0xFF800000> : vector<16xf32>
    %101 = vector.multi_reduction <maximumf>, %100, %cst_44 [1] : vector<16x16xf32> to vector<16xf32>
    %102 = vector.shape_cast %101 : vector<16xf32> to vector<16x1xf32>
    %103 = vector.broadcast %102 : vector<16x1xf32> to vector<16x16xf32>
    %104 = arith.subf %100, %103 : vector<16x16xf32>
    %105 = math.exp %104 : vector<16x16xf32>
    %cst_45 = arith.constant dense<0.000000e+00> : vector<16xf32>
    %106 = vector.multi_reduction <add>, %105, %cst_45 [1] : vector<16x16xf32> to vector<16xf32>
    %107 = vector.shape_cast %106 : vector<16xf32> to vector<16x1xf32>
    %108 = vector.broadcast %107 : vector<16x1xf32> to vector<16x16xf32>
    %109 = arith.divf %105, %108 : vector<16x16xf32>
    %cst_46 = arith.constant dense<0.000000e+00> : vector<16x30xf32>
    %110 = tpu.matmul %109, %83, %cst_46 {dimension_numbers = #tpu.dot_dimension_numbers<[1], [0], [0], [1], [0, 0, 1, 1], [], []>} : vector<16x16xf32>, vector<16x30xf32>, vector<16x30xf32> -> vector<16x30xf32>
    %cst_47 = arith.constant 0.000000e+00 : f32
    %111 = vector.broadcast %cst_47 : f32 to vector<16x30xf32>
    %112 = arith.cmpf ogt, %110, %111 : vector<16x30xf32>
    %113 = math.exp %110 : vector<16x30xf32>
    %cst_48 = arith.constant 1.000000e+00 : f32
    %114 = vector.broadcast %cst_48 : f32 to vector<16x30xf32>
    %115 = arith.subf %113, %114 : vector<16x30xf32>
    %116 = arith.select %112, %110, %115 : vector<16x30xi1>, vector<16x30xf32>
    %117 = vector.extract_strided_slice %6 {offsets = [60, 0], sizes = [30, 64], strides = [1, 1]} : vector<120x64xf32> to vector<30x64xf32>
    %cst_49 = arith.constant dense<0.000000e+00> : vector<16x64xf32>
    %118 = tpu.matmul %116, %117, %cst_49 {dimension_numbers = #tpu.dot_dimension_numbers<[1], [0], [0], [1], [0, 0, 1, 1], [], []>} : vector<16x30xf32>, vector<30x64xf32>, vector<16x64xf32> -> vector<16x64xf32>
    %119 = arith.addf %82, %118 : vector<16x64xf32>
    %120 = vector.extract_strided_slice %3 {offsets = [0, 90], sizes = [16, 30], strides = [1, 1]} : vector<16x120xf32> to vector<16x30xf32>
    %121 = vector.extract_strided_slice %4 {offsets = [0, 3], sizes = [30, 1], strides = [1, 1]} : vector<30x4xf32> to vector<30x1xf32>
    %cst_50 = arith.constant dense<0.000000e+00> : vector<16x1xf32>
    %122 = tpu.matmul %120, %121, %cst_50 {dimension_numbers = #tpu.dot_dimension_numbers<[1], [0], [0], [1], [0, 0, 1, 1], [], []>} : vector<16x30xf32>, vector<30x1xf32>, vector<16x1xf32> -> vector<16x1xf32>
    %123 = vector.extract_strided_slice %5 {offsets = [0, 3], sizes = [30, 1], strides = [1, 1]} : vector<30x4xf32> to vector<30x1xf32>
    %cst_51 = arith.constant dense<0.000000e+00> : vector<16x1xf32>
    %124 = tpu.matmul %120, %123, %cst_51 {dimension_numbers = #tpu.dot_dimension_numbers<[1], [0], [0], [1], [0, 0, 1, 1], [], []>} : vector<16x30xf32>, vector<30x1xf32>, vector<16x1xf32> -> vector<16x1xf32>
    %125 = tpu.transpose %124, [1, 0] : vector<16x1xf32> -> vector<1x16xf32>
    %126 = vector.broadcast %122 : vector<16x1xf32> to vector<16x16xf32>
    %127 = vector.broadcast %125 : vector<1x16xf32> to vector<16x16xf32>
    %128 = arith.addf %126, %127 : vector<16x16xf32>
    %cst_52 = arith.constant 0.000000e+00 : f32
    %129 = vector.broadcast %cst_52 : f32 to vector<16x16xf32>
    %130 = arith.cmpf ogt, %128, %129 : vector<16x16xf32>
    %cst_53 = arith.constant 2.000000e-01 : f32
    %131 = vector.broadcast %cst_53 : f32 to vector<16x16xf32>
    %132 = arith.mulf %131, %128 : vector<16x16xf32>
    %133 = arith.select %130, %128, %132 : vector<16x16xi1>, vector<16x16xf32>
    %cst_54 = arith.constant 0.000000e+00 : f32
    %134 = vector.broadcast %cst_54 : f32 to vector<16x16xf32>
    %135 = arith.cmpf ogt, %1, %134 : vector<16x16xf32>
    %cst_55 = arith.constant -9.000000e+15 : f32
    %136 = vector.broadcast %cst_55 : f32 to vector<16x16xf32>
    %137 = arith.select %135, %133, %136 : vector<16x16xi1>, vector<16x16xf32>
    %cst_56 = arith.constant dense<0xFF800000> : vector<16xf32>
    %138 = vector.multi_reduction <maximumf>, %137, %cst_56 [1] : vector<16x16xf32> to vector<16xf32>
    %139 = vector.shape_cast %138 : vector<16xf32> to vector<16x1xf32>
    %140 = vector.broadcast %139 : vector<16x1xf32> to vector<16x16xf32>
    %141 = arith.subf %137, %140 : vector<16x16xf32>
    %142 = math.exp %141 : vector<16x16xf32>
    %cst_57 = arith.constant dense<0.000000e+00> : vector<16xf32>
    %143 = vector.multi_reduction <add>, %142, %cst_57 [1] : vector<16x16xf32> to vector<16xf32>
    %144 = vector.shape_cast %143 : vector<16xf32> to vector<16x1xf32>
    %145 = vector.broadcast %144 : vector<16x1xf32> to vector<16x16xf32>
    %146 = arith.divf %142, %145 : vector<16x16xf32>
    %cst_58 = arith.constant dense<0.000000e+00> : vector<16x30xf32>
    %147 = tpu.matmul %146, %120, %cst_58 {dimension_numbers = #tpu.dot_dimension_numbers<[1], [0], [0], [1], [0, 0, 1, 1], [], []>} : vector<16x16xf32>, vector<16x30xf32>, vector<16x30xf32> -> vector<16x30xf32>
    %cst_59 = arith.constant 0.000000e+00 : f32
    %148 = vector.broadcast %cst_59 : f32 to vector<16x30xf32>
    %149 = arith.cmpf ogt, %147, %148 : vector<16x30xf32>
    %150 = math.exp %147 : vector<16x30xf32>
    %cst_60 = arith.constant 1.000000e+00 : f32
    %151 = vector.broadcast %cst_60 : f32 to vector<16x30xf32>
    %152 = arith.subf %150, %151 : vector<16x30xf32>
    %153 = arith.select %149, %147, %152 : vector<16x30xi1>, vector<16x30xf32>
    %154 = vector.extract_strided_slice %6 {offsets = [90, 0], sizes = [30, 64], strides = [1, 1]} : vector<120x64xf32> to vector<30x64xf32>
    %cst_61 = arith.constant dense<0.000000e+00> : vector<16x64xf32>
    %155 = tpu.matmul %153, %154, %cst_61 {dimension_numbers = #tpu.dot_dimension_numbers<[1], [0], [0], [1], [0, 0, 1, 1], [], []>} : vector<16x30xf32>, vector<30x64xf32>, vector<16x64xf32> -> vector<16x64xf32>
    %156 = arith.addf %119, %155 : vector<16x64xf32>
    %157 = vector.extract_strided_slice %7 {offsets = [0, 0], sizes = [64, 1], strides = [1, 1]} : vector<128x1xf32> to vector<64x1xf32>
    %cst_62 = arith.constant dense<0.000000e+00> : vector<16x1xf32>
    %158 = tpu.matmul %156, %157, %cst_62 {dimension_numbers = #tpu.dot_dimension_numbers<[1], [0], [0], [1], [0, 0, 1, 1], [], []>} : vector<16x64xf32>, vector<64x1xf32>, vector<16x1xf32> -> vector<16x1xf32>
    %159 = vector.extract_strided_slice %7 {offsets = [64, 0], sizes = [64, 1], strides = [1, 1]} : vector<128x1xf32> to vector<64x1xf32>
    %cst_63 = arith.constant dense<0.000000e+00> : vector<16x1xf32>
    %160 = tpu.matmul %156, %159, %cst_63 {dimension_numbers = #tpu.dot_dimension_numbers<[1], [0], [0], [1], [0, 0, 1, 1], [], []>} : vector<16x64xf32>, vector<64x1xf32>, vector<16x1xf32> -> vector<16x1xf32>
    %161 = tpu.transpose %160, [1, 0] : vector<16x1xf32> -> vector<1x16xf32>
    %162 = vector.broadcast %158 : vector<16x1xf32> to vector<16x16xf32>
    %163 = vector.broadcast %161 : vector<1x16xf32> to vector<16x16xf32>
    %164 = arith.addf %162, %163 : vector<16x16xf32>
    %cst_64 = arith.constant 0.000000e+00 : f32
    %165 = vector.broadcast %cst_64 : f32 to vector<16x16xf32>
    %166 = arith.cmpf ogt, %164, %165 : vector<16x16xf32>
    %cst_65 = arith.constant 2.000000e-01 : f32
    %167 = vector.broadcast %cst_65 : f32 to vector<16x16xf32>
    %168 = arith.mulf %167, %164 : vector<16x16xf32>
    %169 = arith.select %166, %164, %168 : vector<16x16xi1>, vector<16x16xf32>
    %cst_66 = arith.constant 0.000000e+00 : f32
    %170 = vector.broadcast %cst_66 : f32 to vector<16x16xf32>
    %171 = arith.cmpf ogt, %1, %170 : vector<16x16xf32>
    %cst_67 = arith.constant -9.000000e+15 : f32
    %172 = vector.broadcast %cst_67 : f32 to vector<16x16xf32>
    %173 = arith.select %171, %169, %172 : vector<16x16xi1>, vector<16x16xf32>
    %cst_68 = arith.constant dense<0xFF800000> : vector<16xf32>
    %174 = vector.multi_reduction <maximumf>, %173, %cst_68 [1] : vector<16x16xf32> to vector<16xf32>
    %175 = vector.shape_cast %174 : vector<16xf32> to vector<16x1xf32>
    %176 = vector.broadcast %175 : vector<16x1xf32> to vector<16x16xf32>
    %177 = arith.subf %173, %176 : vector<16x16xf32>
    %178 = math.exp %177 : vector<16x16xf32>
    %cst_69 = arith.constant dense<0.000000e+00> : vector<16xf32>
    %179 = vector.multi_reduction <add>, %178, %cst_69 [1] : vector<16x16xf32> to vector<16xf32>
    %180 = vector.shape_cast %179 : vector<16xf32> to vector<16x1xf32>
    %181 = vector.broadcast %180 : vector<16x1xf32> to vector<16x16xf32>
    %182 = arith.divf %178, %181 : vector<16x16xf32>
    %cst_70 = arith.constant dense<0.000000e+00> : vector<16x64xf32>
    %183 = tpu.matmul %182, %156, %cst_70 {dimension_numbers = #tpu.dot_dimension_numbers<[1], [0], [0], [1], [0, 0, 1, 1], [], []>} : vector<16x16xf32>, vector<16x64xf32>, vector<16x64xf32> -> vector<16x64xf32>
    %cst_71 = arith.constant 0.000000e+00 : f32
    %184 = vector.broadcast %cst_71 : f32 to vector<16x64xf32>
    %185 = arith.cmpf ogt, %183, %184 : vector<16x64xf32>
    %186 = math.exp %183 : vector<16x64xf32>
    %cst_72 = arith.constant 1.000000e+00 : f32
    %187 = vector.broadcast %cst_72 : f32 to vector<16x64xf32>
    %188 = arith.subf %186, %187 : vector<16x64xf32>
    %189 = arith.select %185, %183, %188 : vector<16x64xi1>, vector<16x64xf32>
    %c0_73 = arith.constant 0 : index
    %c0_74 = arith.constant 0 : index
    %190 = vector.load %arg7[%c0_73, %c0_74] : memref<64x64xf32, #tpu.memory_space<vmem>>, vector<64x64xf32>
    %cst_75 = arith.constant dense<0.000000e+00> : vector<16x64xf32>
    %191 = tpu.matmul %189, %190, %cst_75 {dimension_numbers = #tpu.dot_dimension_numbers<[1], [0], [0], [1], [0, 0, 1, 1], [], []>} : vector<16x64xf32>, vector<64x64xf32>, vector<16x64xf32> -> vector<16x64xf32>
    %192 = arith.truncf %191 : vector<16x64xf32> to vector<16x64xbf16>
    %c0_76 = arith.constant 0 : index
    %c0_77 = arith.constant 0 : index
    %193 = vector.load %arg8[%c0_76, %c0_77] : memref<16x64xbf16, #tpu.memory_space<vmem>>, vector<16x64xbf16>
    tpu.vector_store %arg8[%c0_76, %c0_77], %192 {strides = array<i32>} : memref<16x64xbf16, #tpu.memory_space<vmem>>, vector<16x64xbf16>,
    return
  }
}

module attributes {stable_mosaic.version = 11 : i64} {
  func.func @_head_kernel(%arg0: i32, %arg1: memref<64x16xbf16, #tpu.memory_space<vmem>>, %arg2: memref<16x64xbf16, #tpu.memory_space<vmem>>, %arg3: memref<64x64xbf16, #tpu.memory_space<vmem>>, %arg4: memref<1x64xf32, #tpu.memory_space<vmem>>, %arg5: memref<64x128xbf16, #tpu.memory_space<vmem>>, %arg6: memref<1x128xf32, #tpu.memory_space<vmem>>, %arg7: memref<64x128xf32, #tpu.memory_space<vmem>>) attributes {dimension_semantics = [#tpu.dimension_semantics<parallel>], iteration_bounds = array<i64: 1>, scalar_prefetch = 0 : i64, scratch_operands = 0 : i64, tpu.core_type = #tpu.core_type<tc>, window_params = [{transform_indices = @transform_0, window_bounds = array<i64: 64, 16>}, {pipeline_mode = #tpu.pipeline_mode<synchronous>, transform_indices = @transform_1, window_bounds = array<i64: 16, 64>}, {transform_indices = @transform_2, window_bounds = array<i64: 64, 64>}, {pipeline_mode = #tpu.pipeline_mode<synchronous>, transform_indices = @transform_3, window_bounds = array<i64: 1, 64>}, {pipeline_mode = #tpu.pipeline_mode<synchronous>, transform_indices = @transform_4, window_bounds = array<i64: 64, 128>}, {pipeline_mode = #tpu.pipeline_mode<synchronous>, transform_indices = @transform_5, window_bounds = array<i64: 1, 128>}, {transform_indices = @transform_6, window_bounds = array<i64: 64, 128>}]} {
    %c0 = arith.constant 0 : index
    %c0_0 = arith.constant 0 : index
    %0 = vector.load %arg1[%c0, %c0_0] : memref<64x16xbf16, #tpu.memory_space<vmem>>, vector<64x16xbf16>
    %c0_1 = arith.constant 0 : index
    %c0_2 = arith.constant 0 : index
    %1 = vector.load %arg2[%c0_1, %c0_2] : memref<16x64xbf16, #tpu.memory_space<vmem>>, vector<16x64xbf16>
    %cst = arith.constant dense<0.000000e+00> : vector<64x64xf32>
    %2 = tpu.matmul %0, %1, %cst {dimension_numbers = #tpu.dot_dimension_numbers<[1], [0], [0], [1], [0, 0, 1, 1], [], []>} : vector<64x16xbf16>, vector<16x64xbf16>, vector<64x64xf32> -> vector<64x64xf32>
    %c0_3 = arith.constant 0 : index
    %c0_4 = arith.constant 0 : index
    %3 = vector.load %arg4[%c0_3, %c0_4] : memref<1x64xf32, #tpu.memory_space<vmem>>, vector<1x64xf32>
    %4 = vector.broadcast %3 : vector<1x64xf32> to vector<64x64xf32>
    %5 = arith.addf %2, %4 : vector<64x64xf32>
    %cst_5 = arith.constant 0.000000e+00 : f32
    %6 = vector.broadcast %cst_5 : f32 to vector<64x64xf32>
    %7 = arith.cmpf ogt, %5, %6 : vector<64x64xf32>
    %cst_6 = arith.constant 0.00999999977 : f32
    %8 = vector.broadcast %cst_6 : f32 to vector<64x64xf32>
    %9 = arith.mulf %8, %5 : vector<64x64xf32>
    %10 = arith.select %7, %5, %9 : vector<64x64xi1>, vector<64x64xf32>
    %c0_7 = arith.constant 0 : index
    %c0_8 = arith.constant 0 : index
    %11 = vector.load %arg3[%c0_7, %c0_8] : memref<64x64xbf16, #tpu.memory_space<vmem>>, vector<64x64xbf16>
    %12 = arith.extf %11 : vector<64x64xbf16> to vector<64x64xf32>
    %cst_9 = arith.constant 5.000000e-02 : f32
    %13 = vector.broadcast %cst_9 : f32 to vector<64x64xf32>
    %14 = arith.mulf %13, %12 : vector<64x64xf32>
    %cst_10 = arith.constant 0.949999988 : f32
    %15 = vector.broadcast %cst_10 : f32 to vector<64x64xf32>
    %16 = arith.mulf %15, %10 : vector<64x64xf32>
    %17 = arith.addf %14, %16 : vector<64x64xf32>
    %18 = arith.truncf %17 : vector<64x64xf32> to vector<64x64xbf16>
    %c0_11 = arith.constant 0 : index
    %c0_12 = arith.constant 0 : index
    %19 = vector.load %arg5[%c0_11, %c0_12] : memref<64x128xbf16, #tpu.memory_space<vmem>>, vector<64x128xbf16>
    %cst_13 = arith.constant dense<0.000000e+00> : vector<64x128xf32>
    %20 = tpu.matmul %18, %19, %cst_13 {dimension_numbers = #tpu.dot_dimension_numbers<[1], [0], [0], [1], [0, 0, 1, 1], [], []>} : vector<64x64xbf16>, vector<64x128xbf16>, vector<64x128xf32> -> vector<64x128xf32>
    %c0_14 = arith.constant 0 : index
    %c0_15 = arith.constant 0 : index
    %21 = vector.load %arg6[%c0_14, %c0_15] : memref<1x128xf32, #tpu.memory_space<vmem>>, vector<1x128xf32>
    %22 = vector.broadcast %21 : vector<1x128xf32> to vector<64x128xf32>
    %23 = arith.addf %20, %22 : vector<64x128xf32>
    %cst_16 = arith.constant dense<0xFF800000> : vector<64xf32>
    %24 = vector.multi_reduction <maximumf>, %23, %cst_16 [1] : vector<64x128xf32> to vector<64xf32>
    %25 = vector.shape_cast %24 : vector<64xf32> to vector<64x1xf32>
    %26 = vector.broadcast %25 : vector<64x1xf32> to vector<64x128xf32>
    %27 = arith.subf %23, %26 : vector<64x128xf32>
    %28 = math.exp %27 : vector<64x128xf32>
    %cst_17 = arith.constant dense<0.000000e+00> : vector<64xf32>
    %29 = vector.multi_reduction <add>, %28, %cst_17 [1] : vector<64x128xf32> to vector<64xf32>
    %30 = vector.shape_cast %29 : vector<64xf32> to vector<64x1xf32>
    %31 = vector.broadcast %30 : vector<64x1xf32> to vector<64x128xf32>
    %32 = arith.divf %28, %31 : vector<64x128xf32>
    %c0_18 = arith.constant 0 : index
    %c0_19 = arith.constant 0 : index
    %33 = vector.load %arg7[%c0_18, %c0_19] : memref<64x128xf32, #tpu.memory_space<vmem>>, vector<64x128xf32>
    tpu.vector_store %arg7[%c0_18, %c0_19], %32 {strides = array<i32>} : memref<64x128xf32, #tpu.memory_space<vmem>>, vector<64x128xf32>,
    return
  }
  func.func @transform_0(%arg0: i32) -> (i32, i32) {
    %c0_i32 = arith.constant 0 : i32
    %c0_i32_0 = arith.constant 0 : i32
    return %arg0, %c0_i32 : i32, i32
  }
  func.func @transform_1(%arg0: i32) -> (i32, i32) {
    %c0_i32 = arith.constant 0 : i32
    %c0_i32_0 = arith.constant 0 : i32
    %c0_i32_1 = arith.constant 0 : i32
    return %c0_i32, %c0_i32_0 : i32, i32
  }
  func.func @transform_2(%arg0: i32) -> (i32, i32) {
    %c0_i32 = arith.constant 0 : i32
    %c0_i32_0 = arith.constant 0 : i32
    return %arg0, %c0_i32 : i32, i32
  }
  func.func @transform_3(%arg0: i32) -> (i32, i32) {
    %c0_i32 = arith.constant 0 : i32
    %c0_i32_0 = arith.constant 0 : i32
    %c0_i32_1 = arith.constant 0 : i32
    return %c0_i32, %c0_i32_0 : i32, i32
  }
  func.func @transform_4(%arg0: i32) -> (i32, i32) {
    %c0_i32 = arith.constant 0 : i32
    %c0_i32_0 = arith.constant 0 : i32
    %c0_i32_1 = arith.constant 0 : i32
    return %c0_i32, %c0_i32_0 : i32, i32
  }
  func.func @transform_5(%arg0: i32) -> (i32, i32) {
    %c0_i32 = arith.constant 0 : i32
    %c0_i32_0 = arith.constant 0 : i32
    %c0_i32_1 = arith.constant 0 : i32
    return %c0_i32, %c0_i32_0 : i32, i32
  }
  func.func @transform_6(%arg0: i32) -> (i32, i32) {
    %c0_i32 = arith.constant 0 : i32
    %c0_i32_0 = arith.constant 0 : i32
    return %arg0, %c0_i32 : i32, i32
  }
}

</mosaic_0001>

<bundles_post_ra>
// kernel: wfcg_forward.9
= control target key start
LH: loop header
LB: loop body
LE: loop exit
PB: predicated region body
PF: predicated region fallthrough
CT: control target
= control target key end

     0   :  { %vm70_vm0 = vcmask 1043456   ;;  %vm57_vm1 = vcmask 64512   ;;  %s599_s1 = inlined_call_operand.vmem [shape: bf16[8,128], index: 1, kind: input, shape index: {}]   ;;  %s600_s0 = inlined_call_operand.vmem [shape: bf16[64,8], index: 0, kind: input, shape index: {}]   ;;  %s601_s3 = inlined_call_operand.vmem [shape: bf16[128,128], index: 3, kind: input, shape index: {}]   ;;  %s602_s2 = inlined_call_operand.vmem [shape: f32[1,128], index: 2, kind: input, shape index: {}]   ;;  %s603_s4 = inlined_call_operand.vmem [shape: f32[1,128], index: 4, kind: input, shape index: {}]   ;;  %s604_s5 = inlined_call_operand.vmem [shape: bf16[64,128], index: 5, kind: output, shape index: {}]  }
   0x1   :  { %v29_v0 = vld [vmem:[%s599_s1] sm:$0xf]  ;;  %v497_v3 = vld [vmem:[%s600_s0 + $0x8] sm:$0xff]   ;;  %v498_v4 = vld [vmem:[%s600_s0 + $0x10] sm:$0xff]  }
   0x2   :  { %495 = vmatprep.subr.msk.bf16.mxu0 %vm70_vm0, %v29_v0  ;;  %v72_v1 = vsel %vm70_vm0, %v29_v0, 0  ;;  %v496_v2 = vld [vmem:[%s600_s0] sm:$0xff]   ;;  %v500_v5 = vld [vmem:[%s601_s3 + $0x38] sm:$0xff]   ;;  %v501_v6 = vld [vmem:[%s601_s3 + $0x30] sm:$0xff]  }
   0x3   :  { %446 = vmatpush3.bf16.msra.mxu0 %v72_v1  ;;  %447 = vmatprep.mubr.msk.bf16.mxu0 %vm57_vm1, %v496_v2  ;;  %v499_v7 = vld [vmem:[%s600_s0 + $0x18] sm:$0xff]   ;;  %v502_v8 = vld [vmem:[%s601_s3 + $0x28] sm:$0xff]   ;;  %v503_v9 = vld [vmem:[%s601_s3 + $0x20] sm:$0xff]  }
   0x4   :  { %455 = vmatprep.subr.bf16.mxu0 %v500_v5  ;;  %479 = vmatprep.subr.bf16.mxu1 %v500_v5  ;;  %v504_v10 = vld [vmem:[%s601_s3 + $0x18] sm:$0xff]   ;;  %v505_v11 = vld [vmem:[%s601_s3 + $0x10] sm:$0xff]   ;;  %v506_v12 = vld [vmem:[%s601_s3 + $0x8] sm:$0xff]  }
   0x5   :  { %487 = vmatpush3.bf16.msra.mxu1 %v500_v5  ;;  %v507_v13 = vld [vmem:[%s601_s3] sm:$0xff]  }
   0x6   :  { %448 = vmatmul.mubr.msk.bf16.vlgmr.msra.gmra.mxu0 %vm57_vm1, %v497_v3  ;;  %480 = vmatprep.subr.bf16.mxu1 %v501_v6  ;;  %v371_v15 = vld [vmem:[%s602_s2] ss:$0 sm:$0xff] }
   0x7   :  { %451 = vmatprep.mubr.msk.bf16.mxu0 %vm57_vm1, %v498_v4  ;;  %456 = vmatpush3.bf16.msra.mxu0 %v500_v5  ;;  %v380_v51 = vld [vmem:[%s603_s4] ss:$0 sm:$0xff] }
   0x8   :  { %457 = vmatprep.subr.bf16.mxu0 %v501_v6 }
   0x9   :  { %488 = vmatpush3.bf16.msra.mxu1 %v501_v6 }
   0xa   :  { %481 = vmatprep.subr.bf16.mxu1 %v502_v8 }
   0xb   :  { %458 = vmatpush3.bf16.msra.mxu0 %v501_v6 }
   0xc   :  { %459 = vmatprep.subr.bf16.mxu0 %v502_v8 }
   0xd   :  { %489 = vmatpush3.bf16.msra.mxu1 %v502_v8 }
   0xe   :  { %452 = vmatmul.mubr.msk.bf16.gmra.mxu0 %vm57_vm1, %v499_v7  ;;  %482 = vmatprep.subr.bf16.mxu1 %v503_v9 }
   0xf   :  { %460 = vmatpush3.bf16.msra.mxu0 %v502_v8 }
  0x10   :  { %461 = vmatprep.subr.bf16.mxu0 %v503_v9 }
  0x11   :  { %490 = vmatpush3.bf16.msra.mxu1 %v503_v9 }
  0x12   :  { %483 = vmatprep.subr.bf16.mxu1 %v504_v10 }
  0x13   :  { %462 = vmatpush3.bf16.msra.mxu0 %v503_v9 }
  0x14   :  { %463 = vmatprep.subr.bf16.mxu0 %v504_v10 }
  0x15   :  { %491 = vmatpush3.bf16.msra.mxu1 %v504_v10 }
  0x16   :  { %484 = vmatprep.subr.bf16.mxu1 %v505_v11 }
  0x17   :  { %464 = vmatpush3.bf16.msra.mxu0 %v504_v10 }
  0x18   :  { %465 = vmatprep.subr.bf16.mxu0 %v505_v11 }
  0x19   :  { %492 = vmatpush3.bf16.msra.mxu1 %v505_v11 }
  0x1a   :  { %485 = vmatprep.subr.bf16.mxu1 %v506_v12 }
  0x1b   :  { %466 = vmatpush3.bf16.msra.mxu0 %v505_v11 }
  0x1c   :  { %467 = vmatprep.subr.bf16.mxu0 %v506_v12 }
  0x1d   :  { %493 = vmatpush3.bf16.msra.mxu1 %v506_v12 }
  0x1e   :  { %486 = vmatprep.subr.bf16.mxu1 %v507_v13 }
  0x1f   :  { %468 = vmatpush3.bf16.msra.mxu0 %v506_v12 }
  0x20   :  { %469 = vmatprep.subr.bf16.mxu0 %v507_v13 }
  0x21   :  { %494 = vmatpush3.bf16.msra.mxu1 %v507_v13 }
  0x23   :  { %470 = vmatpush3.bf16.msra.mxu0 %v507_v13 }
  0xc6   :  { %v449_v14 = vpop.f32.mrf.mxu0 }
  0xc7   :  { %v117_v18 = vadd.f32 %v449_v14, %v371_v15 }
  0xc8   :  { %v108_v16 = vpop.f32.mrf.mxu0 }
  0xc9   :  { %v109_v17 = vadd.f32 %v371_v15, %v108_v16  ;;  %v149_v25 = vmul.f32 0.01, %v117_v18  ;;  %vm141_vm4 = vcmp.gt.f32.partialorder %v117_v18, 0.0 }
  0xca   :  { %v450_v19 = vpop.f32.mrf.mxu0 }
  0xcb   :  { %v120_v20 = vadd.f32 %v450_v19, %v371_v15  ;;  %v147_v22 = vmul.f32 0.01, %v109_v17  ;;  %vm139_vm3 = vcmp.gt.f32.partialorder %v109_v17, 0.0  ;;  %v157_v33 = vsel %vm141_vm4, %v117_v18, %v149_v25 }
  0xcc   :  { %v111_v21 = vpop.f32.mrf.mxu0 }
  0xcd   :  { %vm142_vm2 = vcmp.gt.f32.partialorder %v120_v20, 0.0  ;;  %v150_v23 = vmul.f32 0.01, %v120_v20  ;;  %v112_v24 = vadd.f32 %v371_v15, %v111_v21  ;;  %v155_v31 = vsel %vm139_vm3, %v109_v17, %v147_v22 }
  0xce   :  { %v453_v26 = vpop.f32.mrf.mxu0 }
  0xcf   :  { %vm140_vm5 = vcmp.gt.f32.partialorder %v112_v24, 0.0  ;;  %v148_v27 = vmul.f32 0.01, %v112_v24  ;;  %v158_v28 = vsel %vm142_vm2, %v120_v20, %v150_v23  ;;  %v133_v34 = vadd.f32 %v453_v26, %v371_v15 }
  0xd0   :  { %v124_v29 = vpop.f32.mrf.mxu0  ;;  %v164_v37 = vpack.c.bf16 %v158_v28, %v157_v33 }
  0xd1   :  { %v125_v30 = vadd.f32 %v371_v15, %v124_v29  ;;  %v156_v32 = vsel %vm140_vm5, %v112_v24, %v148_v27  ;;  %v153_v43 = vmul.f32 0.01, %v133_v34  ;;  %vm145_vm8 = vcmp.gt.f32.partialorder %v133_v34, 0.0 }
  0xd2   :  { %v454_v35 = vpop.f32.mrf.mxu0  ;;  %v163_v36 = vpack.c.bf16 %v156_v32, %v155_v31 }
  0xd3   :  { %v136_v38 = vadd.f32 %v454_v35, %v371_v15  ;;  %v151_v40 = vmul.f32 0.01, %v125_v30  ;;  %vm143_vm7 = vcmp.gt.f32.partialorder %v125_v30, 0.0  ;;  %v161_v49 = vsel %vm145_vm8, %v133_v34, %v153_v43 }
  0xd4   :  { %v127_v39 = vpop.f32.mrf.mxu0  ;;  %471 = vmatprep.mubr.bf16.mxu0 %v163_v36 }
  0xd5   :  { %vm146_vm6 = vcmp.gt.f32.partialorder %v136_v38, 0.0  ;;  %v154_v41 = vmul.f32 0.01, %v136_v38  ;;  %v128_v42 = vadd.f32 %v371_v15, %v127_v39  ;;  %472 = vmatmul.mubr.bf16.vlgmr.msra.gmra.mxu0 %v164_v37  ;;  %v159_v46 = vsel %vm143_vm7, %v125_v30, %v151_v40 }
  0xd7   :  { %v152_v44 = vmul.f32 0.01, %v128_v42  ;;  %vm144_vm9 = vcmp.gt.f32.partialorder %v128_v42, 0.0  ;;  %v162_v45 = vsel %vm146_vm6, %v136_v38, %v154_v41 }
  0xd8   :  { %v166_v50 = vpack.c.bf16 %v162_v45, %v161_v49 }
  0xd9   :  { %v160_v47 = vsel %vm144_vm9, %v128_v42, %v152_v44 }
  0xda   :  { %v165_v48 = vpack.c.bf16 %v160_v47, %v159_v46 }
  0xdc   :  { %475 = vmatprep.mubr.bf16.mxu1 %v165_v48 }
  0xdd   :  { %476 = vmatmul.mubr.bf16.vlgmr.msra.gmra.mxu1 %v166_v50 }
 0x195   :  { %v473_v52 = vpop.f32.mrf.mxu0 }
 0x196   :  { %v281_v53 = vadd.f32 %v473_v52, %v380_v51 }
 0x197   :  { %v272_v54 = vpop.f32.mrf.mxu0 }
 0x198   :  { %v273_v55 = vadd.f32 %v380_v51, %v272_v54  ;;  %v313_v56 = vmul.f32 0.01, %v281_v53  ;;  %vm305_vm10 = vcmp.gt.f32.partialorder %v281_v53, 0.0 }
 0x199   :  { %v474_v57 = vpop.f32.mrf.mxu0 }
 0x19a   :  { %v284_v58 = vadd.f32 %v474_v57, %v380_v51  ;;  %v311_v60 = vmul.f32 0.01, %v273_v55  ;;  %v321_v63 = vsel %vm305_vm10, %v281_v53, %v313_v56  ;;  %vm303_vm12 = vcmp.gt.f32.partialorder %v273_v55, 0.0 }
 0x19b   :  { %v275_v59 = vpop.f32.mrf.mxu0 }
 0x19c   :  { %vm306_vm11 = vcmp.gt.f32.partialorder %v284_v58, 0.0  ;;  %v314_v61 = vmul.f32 0.01, %v284_v58  ;;  %v276_v62 = vadd.f32 %v380_v51, %v275_v59  ;;  %v319_v6 = vsel %vm303_vm12, %v273_v55, %v311_v60 }
 0x19d   :  { %v477_v0 = vpop.f32.mrf.mxu1 }
 0x19e   :  { %v322_v1 = vsel %vm306_vm11, %v284_v58, %v314_v61  ;;  %vm304_vm13 = vcmp.gt.f32.partialorder %v276_v62, 0.0  ;;  %v312_v2 = vmul.f32 0.01, %v276_v62  ;;  %v297_v3 = vadd.f32 %v477_v0, %v380_v51 }
 0x19f   :  { %v413_v4 = vpack.c.bf16 %v322_v1, %v321_v63  ;;  %v288_v5 = vpop.f32.mrf.mxu1 }
 0x1a0   :  { %v320_v7 = vsel %vm304_vm13, %v276_v62, %v312_v2  ;;  %v289_v8 = vadd.f32 %v380_v51, %v288_v5  ;;  %v317_v11 = vmul.f32 0.01, %v297_v3  ;;  %vm309_vm14 = vcmp.gt.f32.partialorder %v297_v3, 0.0 }
 0x1a1   :  { %425 = vst [vmem:[%s604_s5 + $0x8] sm:$0xff] %v413_v4   ;;  %v408_v9 = vpack.c.bf16 %v320_v7, %v319_v6  ;;  %v478_v10 = vpop.f32.mrf.mxu1 }
 0x1a2   :  { %v300_v12 = vadd.f32 %v478_v10, %v380_v51  ;;  %v315_v14 = vmul.f32 0.01, %v289_v8  ;;  %vm307_vm0 = vcmp.gt.f32.partialorder %v289_v8, 0.0  ;;  %v325_v17 = vsel %vm309_vm14, %v297_v3, %v317_v11 }
 0x1a3   :  { %409 = vst [vmem:[%s604_s5] sm:$0xff] %v408_v9   ;;  %v291_v13 = vpop.f32.mrf.mxu1 }
 0x1a4   :  { %vm310_vm15 = vcmp.gt.f32.partialorder %v300_v12, 0.0  ;;  %v318_v15 = vmul.f32 0.01, %v300_v12  ;;  %v292_v16 = vadd.f32 %v380_v51, %v291_v13  ;;  %v323_v21 = vsel %vm307_vm0, %v289_v8, %v315_v14 }
 0x1a6   :  { %v326_v18 = vsel %vm310_vm15, %v300_v12, %v318_v15  ;;  %vm308_vm1 = vcmp.gt.f32.partialorder %v292_v16, 0.0  ;;  %v316_v19 = vmul.f32 0.01, %v292_v16 }
 0x1a7   :  { %v423_v20 = vpack.c.bf16 %v326_v18, %v325_v17 }
 0x1a8   :  { %v324_v22 = vsel %vm308_vm1, %v292_v16, %v316_v19 }
 0x1a9   :  { %427 = vst [vmem:[%s604_s5 + $0x18] sm:$0xff] %v423_v20   ;;  %v418_v23 = vpack.c.bf16 %v324_v22, %v323_v21 }
 0x1ab   :  { %426 = vst [vmem:[%s604_s5 + $0x10] sm:$0xff] %v418_v23  }

// kernel: wfcg_forward.11
= control target key start
LH: loop header
LB: loop body
LE: loop exit
PB: predicated region body
PF: predicated region fallthrough
CT: control target
= control target key end

     0   :  { %s686_s2 = inlined_call_operand.vmem [shape: bf16[128,128], index: 2, kind: input, shape index: {}]   ;;  %s687_s1 = inlined_call_operand.vmem [shape: bf16[64,128], index: 1, kind: input, shape index: {}]   ;;  %s688_s3 = inlined_call_operand.vmem [shape: bf16[128,128], index: 3, kind: input, shape index: {}]   ;;  %s689_s0 = inlined_call_operand.<no memory space> [shape: f32[1], index: 0, kind: input, shape index: {}]   ;;  %s690_s4 = inlined_call_operand.vmem [shape: f32[1,128], index: 4, kind: input, shape index: {}]   ;;  %s691_s5 = inlined_call_operand.vmem [shape: bf16[64,128], index: 5, kind: output, shape index: {}]  }
   0x1   :  { %v549_v0 = vld [vmem:[%s686_s2 + $0x38] sm:$0xff]   ;;  %v550_v1 = vld [vmem:[%s686_s2 + $0x30] sm:$0xff]   ;;  %v551_v2 = vld [vmem:[%s686_s2 + $0x28] sm:$0xff]   ;;  %v192_v22 = vstv %s689_s0 }
   0x2   :  { %501 = vmatprep.subr.bf16.mxu0 %v549_v0  ;;  %v552_v3 = vld [vmem:[%s686_s2 + $0x20] sm:$0xff]   ;;  %v561_v5 = vld [vmem:[%s688_s3 + $0x38] sm:$0xff]   ;;  %v562_v6 = vld [vmem:[%s688_s3 + $0x30] sm:$0xff]  }
   0x3   :  { %502 = vmatpush3.bf16.msra.mxu0 %v549_v0  ;;  %v618_v4 = vld [vmem:[%s687_s1] sm:$0xff]   ;;  %v553_v7 = vld [vmem:[%s686_s2 + $0x18] sm:$0xff]   ;;  %525 = vmatprep.subr.bf16.mxu1 %v561_v5  ;;  %v563_v8 = vld [vmem:[%s688_s3 + $0x28] sm:$0xff]  }
   0x4   :  { %503 = vmatprep.subr.bf16.mxu0 %v550_v1  ;;  %517 = vmatprep.mubr.bf16.mxu0 %v618_v4  ;;  %v554_v9 = vld [vmem:[%s686_s2 + $0x10] sm:$0xff]   ;;  %v564_v10 = vld [vmem:[%s688_s3 + $0x20] sm:$0xff]   ;;  %v555_v11 = vld [vmem:[%s686_s2 + $0x8] sm:$0xff]   ;;  %v183_v25 = vunpack.c.l.bf16 %v618_v4  ;;  %v184_v26 = vunpack.c.h.bf16 %v618_v4 }
   0x5   :  { %526 = vmatpush3.bf16.msra.mxu1 %v561_v5  ;;  %v565_v12 = vld [vmem:[%s688_s3 + $0x18] sm:$0xff]   ;;  %v556_v13 = vld [vmem:[%s686_s2] sm:$0xff]   ;;  %v24_v14 = vld [vmem:[%s687_s1 + $0x8] sm:$0xff]  }
   0x6   :  { %527 = vmatprep.subr.bf16.mxu1 %v562_v6  ;;  %v26_v15 = vld [vmem:[%s687_s1 + $0x10] sm:$0xff]   ;;  %v28_v16 = vld [vmem:[%s687_s1 + $0x18] sm:$0xff]   ;;  %v567_v18 = vld [vmem:[%s688_s3 + $0x8] sm:$0xff]   ;;  %v186_v24 = vunpack.c.h.bf16 %v24_v14  ;;  %v185_v29 = vunpack.c.l.bf16 %v24_v14 }
   0x7   :  { %504 = vmatpush3.bf16.msra.mxu0 %v550_v1  ;;  %v566_v17 = vld [vmem:[%s688_s3 + $0x10] sm:$0xff]   ;;  %v568_v19 = vld [vmem:[%s688_s3] sm:$0xff]   ;;  %v190_v41 = vunpack.c.h.bf16 %v28_v16  ;;  %v187_v43 = vunpack.c.l.bf16 %v26_v15  ;;  %v188_v46 = vunpack.c.h.bf16 %v26_v15  ;;  %v189_v47 = vunpack.c.l.bf16 %v28_v16 }
   0x8   :  { %505 = vmatprep.subr.bf16.mxu0 %v551_v2  ;;  %v429_v57 = vld [vmem:[%s690_s4] ss:$0 sm:$0xff] }
   0x9   :  { %528 = vmatpush3.bf16.msra.mxu1 %v562_v6 }
   0xa   :  { %529 = vmatprep.subr.bf16.mxu1 %v563_v8 }
   0xb   :  { %506 = vmatpush3.bf16.msra.mxu0 %v551_v2 }
   0xc   :  { %507 = vmatprep.subr.bf16.mxu0 %v552_v3 }
   0xd   :  { %530 = vmatpush3.bf16.msra.mxu1 %v563_v8 }
   0xe   :  { %531 = vmatprep.subr.bf16.mxu1 %v564_v10 }
   0xf   :  { %508 = vmatpush3.bf16.msra.mxu0 %v552_v3 }
  0x10   :  { %509 = vmatprep.subr.bf16.mxu0 %v553_v7 }
  0x11   :  { %532 = vmatpush3.bf16.msra.mxu1 %v564_v10 }
  0x12   :  { %533 = vmatprep.subr.bf16.mxu1 %v565_v12 }
  0x13   :  { %510 = vmatpush3.bf16.msra.mxu0 %v553_v7 }
  0x14   :  { %511 = vmatprep.subr.bf16.mxu0 %v554_v9 }
  0x15   :  { %534 = vmatpush3.bf16.msra.mxu1 %v565_v12 }
  0x16   :  { %535 = vmatprep.subr.bf16.mxu1 %v566_v17 }
  0x17   :  { %512 = vmatpush3.bf16.msra.mxu0 %v554_v9 }
  0x18   :  { %513 = vmatprep.subr.bf16.mxu0 %v555_v11 }
  0x19   :  { %536 = vmatpush3.bf16.msra.mxu1 %v566_v17 }
  0x1a   :  { %537 = vmatprep.subr.bf16.mxu1 %v567_v18 }
  0x1b   :  { %514 = vmatpush3.bf16.msra.mxu0 %v555_v11 }
  0x1c   :  { %515 = vmatprep.subr.bf16.mxu0 %v556_v13 }
  0x1d   :  { %538 = vmatpush3.bf16.msra.mxu1 %v567_v18 }
  0x1e   :  { %539 = vmatprep.subr.bf16.mxu1 %v568_v19 }
  0x1f   :  { %516 = vmatpush3.bf16.msra.mxu0 %v556_v13 }
  0x21   :  { %540 = vmatpush3.bf16.msra.mxu1 %v568_v19 }
  0x22   :  { %518 = vmatmul.mubr.bf16.vlgmr.msra.gmra.mxu0 %v24_v14 }
  0x23   :  { %521 = vmatprep.mubr.bf16.mxu0 %v26_v15 }
  0x2a   :  { %522 = vmatmul.mubr.bf16.gmra.mxu0 %v28_v16 }
  0xe2   :  { %v519_v20 = vpop.f32.mrf.mxu0 }
  0xe3   :  { %v195_v30 = vmul.f32 %v519_v20, %v192_v22 }
  0xe4   :  { %v152_v21 = vpop.f32.mrf.mxu0 }
  0xe5   :  { %v193_v27 = vmul.f32 %v192_v22, %v152_v21  ;;  %v203_v37 = vadd.f32 %v195_v30, %v185_v29 }
  0xe6   :  { %v520_v23 = vpop.f32.mrf.mxu0 }
  0xe7   :  { %v196_v28 = vmul.f32 %v520_v23, %v192_v22  ;;  %v201_v35 = vadd.f32 %v193_v27, %v183_v25 }
  0xe8   :  { %v155_v31 = vpop.f32.mrf.mxu0 }
  0xe9   :  { %v194_v32 = vmul.f32 %v192_v22, %v155_v31  ;;  %v204_v33 = vadd.f32 %v196_v28, %v186_v24 }
  0xea   :  { %v523_v34 = vpop.f32.mrf.mxu0 }
  0xeb   :  { %v202_v36 = vadd.f32 %v194_v32, %v184_v26  ;;  %v210_v42 = vpack.c.bf16 %v204_v33, %v203_v37  ;;  %v199_v48 = vmul.f32 %v523_v34, %v192_v22 }
  0xec   :  { %v168_v38 = vpop.f32.mrf.mxu0 }
  0xed   :  { %v209_v39 = vpack.c.bf16 %v202_v36, %v201_v35  ;;  %v197_v44 = vmul.f32 %v192_v22, %v168_v38  ;;  %v207_v54 = vadd.f32 %v199_v48, %v189_v47 }
  0xee   :  { %v524_v40 = vpop.f32.mrf.mxu0 }
  0xef   :  { %v200_v45 = vmul.f32 %v524_v40, %v192_v22  ;;  %541 = vmatprep.mubr.bf16.mxu1 %v209_v39  ;;  %v205_v52 = vadd.f32 %v197_v44, %v187_v43 }
  0xf0   :  { %v171_v49 = vpop.f32.mrf.mxu0  ;;  %542 = vmatmul.mubr.bf16.vlgmr.msra.gmra.mxu1 %v210_v42 }
  0xf1   :  { %v198_v50 = vmul.f32 %v192_v22, %v171_v49  ;;  %v208_v51 = vadd.f32 %v200_v45, %v190_v41 }
  0xf3   :  { %v206_v53 = vadd.f32 %v198_v50, %v188_v46  ;;  %v212_v56 = vpack.c.bf16 %v208_v51, %v207_v54 }
  0xf5   :  { %v211_v55 = vpack.c.bf16 %v206_v53, %v205_v52 }
  0xf7   :  { %545 = vmatprep.mubr.bf16.mxu1 %v211_v55 }
  0xf8   :  { %546 = vmatmul.mubr.bf16.gmra.mxu1 %v212_v56 }
 0x1b0   :  { %v543_v58 = vpop.f32.mrf.mxu1 }
 0x1b1   :  { %v327_v59 = vadd.f32 %v543_v58, %v429_v57 }
 0x1b2   :  { %v318_v60 = vpop.f32.mrf.mxu1 }
 0x1b3   :  { %v319_v61 = vadd.f32 %v429_v57, %v318_v60  ;;  %v359_v62 = vmul.f32 0.01, %v327_v59  ;;  %vm351_vm0 = vcmp.gt.f32.partialorder %v327_v59, 0.0 }
 0x1b4   :  { %v544_v63 = vpop.f32.mrf.mxu1 }
 0x1b5   :  { %v330_v0 = vadd.f32 %v544_v63, %v429_v57  ;;  %v357_v2 = vmul.f32 0.01, %v319_v61  ;;  %v367_v5 = vsel %vm351_vm0, %v327_v59, %v359_v62  ;;  %vm349_vm2 = vcmp.gt.f32.partialorder %v319_v61, 0.0 }
 0x1b6   :  { %v321_v1 = vpop.f32.mrf.mxu1 }
 0x1b7   :  { %vm352_vm1 = vcmp.gt.f32.partialorder %v330_v0, 0.0  ;;  %v360_v3 = vmul.f32 0.01, %v330_v0  ;;  %v322_v4 = vadd.f32 %v429_v57, %v321_v1  ;;  %v365_v12 = vsel %vm349_vm2, %v319_v61, %v357_v2 }
 0x1b8   :  { %v547_v6 = vpop.f32.mrf.mxu1 }
 0x1b9   :  { %v368_v7 = vsel %vm352_vm1, %v330_v0, %v360_v3  ;;  %vm350_vm3 = vcmp.gt.f32.partialorder %v322_v4, 0.0  ;;  %v358_v8 = vmul.f32 0.01, %v322_v4  ;;  %v343_v9 = vadd.f32 %v547_v6, %v429_v57 }
 0x1ba   :  { %v462_v10 = vpack.c.bf16 %v368_v7, %v367_v5  ;;  %v334_v11 = vpop.f32.mrf.mxu1 }
 0x1bb   :  { %v366_v13 = vsel %vm350_vm3, %v322_v4, %v358_v8  ;;  %v335_v14 = vadd.f32 %v429_v57, %v334_v11  ;;  %v363_v17 = vmul.f32 0.01, %v343_v9  ;;  %vm355_vm4 = vcmp.gt.f32.partialorder %v343_v9, 0.0 }
 0x1bc   :  { %474 = vst [vmem:[%s691_s5 + $0x8] sm:$0xff] %v462_v10   ;;  %v457_v15 = vpack.c.bf16 %v366_v13, %v365_v12  ;;  %v548_v16 = vpop.f32.mrf.mxu1 }
 0x1bd   :  { %v346_v18 = vadd.f32 %v548_v16, %v429_v57  ;;  %v361_v20 = vmul.f32 0.01, %v335_v14  ;;  %vm353_vm6 = vcmp.gt.f32.partialorder %v335_v14, 0.0  ;;  %v371_v23 = vsel %vm355_vm4, %v343_v9, %v363_v17 }
 0x1be   :  { %458 = vst [vmem:[%s691_s5] sm:$0xff] %v457_v15   ;;  %v337_v19 = vpop.f32.mrf.mxu1 }
 0x1bf   :  { %vm356_vm5 = vcmp.gt.f32.partialorder %v346_v18, 0.0  ;;  %v364_v21 = vmul.f32 0.01, %v346_v18  ;;  %v338_v22 = vadd.f32 %v429_v57, %v337_v19  ;;  %v369_v27 = vsel %vm353_vm6, %v335_v14, %v361_v20 }
 0x1c1   :  { %v372_v24 = vsel %vm356_vm5, %v346_v18, %v364_v21  ;;  %vm354_vm7 = vcmp.gt.f32.partialorder %v338_v22, 0.0  ;;  %v362_v25 = vmul.f32 0.01, %v338_v22 }
 0x1c2   :  { %v472_v26 = vpack.c.bf16 %v372_v24, %v371_v23 }
 0x1c3   :  { %v370_v28 = vsel %vm354_vm7, %v338_v22, %v362_v25 }
 0x1c4   :  { %476 = vst [vmem:[%s691_s5 + $0x18] sm:$0xff] %v472_v26   ;;  %v467_v29 = vpack.c.bf16 %v370_v28, %v369_v27 }
 0x1c6   :  { %475 = vst [vmem:[%s691_s5 + $0x10] sm:$0xff] %v467_v29  }

// kernel: wfcg_forward.10
= control target key start
LH: loop header
LB: loop body
LE: loop exit
PB: predicated region body
PF: predicated region fallthrough
CT: control target
= control target key end

     0   :  { %v776_v1 = vmov 0.0   ;;  %vm777_vm0 = vmmov 0   ;;  %vm118_vm1 = vcmask 523264   ;;  %s973_s0 = inlined_call_operand.vmem [shape: bf16[64,16], index: 0, kind: input, shape index: {}]   ;;  %s974_s1 = inlined_call_operand.vmem [shape: bf16[64,128], index: 1, kind: input, shape index: {}]   ;;  %s975_s2 = inlined_call_operand.vmem [shape: f32[16,128], index: 2, kind: output, shape index: {0}]   ;;  %s976_s3 = inlined_call_operand.vmem [shape: f32[128,128], index: 3, kind: output, shape index: {1}]  }
   0x1   :  { %v704_v0 = vld [vmem:[%s973_s0] sm:$0xff]   ;;  %657 = vmatprep.subr.bf16.mxu0 %v776_v1  ;;  %665 = vmatprep.mubr.msk.bf16.mxu0 %vm777_vm0, %v776_v1  ;;  %v706_v3 = vld [vmem:[%s973_s0 + $0x8] sm:$0xff]   ;;  %v708_v5 = vld [vmem:[%s973_s0 + $0x10] sm:$0xff]  }
   0x2   :  { %v705_v2 = vld [vmem:[%s974_s1] sm:$0xff]   ;;  %78 = vxpose.xlu0.c.b16.start [1/4] (short) (narrow) %v704_v0, 16  ;;  %v707_v4 = vld [vmem:[%s974_s1 + $0x8] sm:$0xff]   ;;  %v709_v6 = vld [vmem:[%s974_s1 + $0x10] sm:$0xff]  }
   0x3   :  { %183 = vxpose.xlu1.c.b16.start [1/4] (short) %v705_v2, 128  ;;  %v711_v7 = vld [vmem:[%s974_s1 + $0x18] sm:$0xff]  }
   0x4   :  { %658 = vmatpush3.bf16.msra.mxu0 %v711_v7  ;;  %693 = vmatprep.subr.bf16.mxu1 %v711_v7  ;;  %v710_v8 = vld [vmem:[%s973_s0 + $0x18] sm:$0xff]  }
   0x5   :  { %659 = vmatprep.subr.bf16.mxu0 %v776_v1  ;;  %697 = vmatpush3.bf16.msra.mxu1 %v711_v7 }
   0x6   :  { %79 = vxpose.xlu0.c.b16.cont [2/4] (short) (narrow) %v706_v3, 16  ;;  %694 = vmatprep.subr.bf16.mxu1 %v709_v6 }
   0x7   :  { %184 = vxpose.xlu1.c.b16.cont [2/4] (short) %v707_v4, 128 }
   0x8   :  { %660 = vmatpush3.bf16.msra.mxu0 %v709_v6 }
   0x9   :  { %661 = vmatprep.subr.bf16.mxu0 %v776_v1  ;;  %698 = vmatpush3.bf16.msra.mxu1 %v709_v6 }
   0xa   :  { %80 = vxpose.xlu0.c.b16.cont [3/4] (short) (narrow) %v708_v5, 16  ;;  %695 = vmatprep.subr.bf16.mxu1 %v707_v4 }
   0xb   :  { %185 = vxpose.xlu1.c.b16.cont [3/4] (short) %v709_v6, 128 }
   0xc   :  { %662 = vmatpush3.bf16.msra.mxu0 %v707_v4 }
   0xd   :  { %663 = vmatprep.subr.bf16.mxu0 %v776_v1  ;;  %699 = vmatpush3.bf16.msra.mxu1 %v707_v4 }
   0xe   :  { %81 = vxpose.xlu0.c.b16.end [4/4] (short) (narrow) %v710_v8, 16  ;;  %696 = vmatprep.subr.bf16.mxu1 %v705_v2 }
   0xf   :  { %186 = vxpose.xlu1.c.b16.end [4/4] (short) %v711_v7, 128 }
  0x10   :  { %664 = vmatpush3.bf16.msra.mxu0 %v705_v2 }
  0x11   :  { %669 = vmatprep.subr.bf16.mxu0 %v711_v7  ;;  %700 = vmatpush3.bf16.msra.mxu1 %v705_v2 }
  0x64   :  { %v86_v9 = vpop.trf.xlu0 }
  0x65   :  { %666 = vmatmul.mubr.msk.bf16.vlgmr.msra.gmra.mxu0 %vm118_vm1, %v86_v9  ;;  %v191_v10 = vpop.trf.xlu1 }
  0x66   :  { %670 = vmatpush3.bf16.msra.mxu0 %v711_v7  ;;  %677 = vmatprep.mubr.msk.bf16.mxu0 %vm118_vm1, %v191_v10 }
  0x67   :  { %671 = vmatprep.subr.bf16.mxu0 %v709_v6 }
  0x69   :  { %v192_v11 = vpop.trf.xlu1 }
  0x6a   :  { %672 = vmatpush3.bf16.msra.mxu0 %v709_v6 }
  0x6b   :  { %673 = vmatprep.subr.bf16.mxu0 %v707_v4 }
  0x6d   :  { %v193_v12 = vpop.trf.xlu1 }
  0x6e   :  { %674 = vmatpush3.bf16.msra.mxu0 %v707_v4  ;;  %681 = vmatprep.mubr.msk.bf16.mxu1 %vm118_vm1, %v193_v12 }
  0x6f   :  { %675 = vmatprep.subr.bf16.mxu0 %v705_v2 }
  0x71   :  { %v194_v13 = vpop.trf.xlu1 }
  0x72   :  { %676 = vmatpush3.bf16.msra.mxu0 %v705_v2  ;;  %682 = vmatmul.mubr.msk.bf16.vlgmr.msra.gmra.mxu1 %vm118_vm1, %v194_v13 }
  0x75   :  { %678 = vmatmul.mubr.msk.bf16.vlgmr.msra.gmra.mxu0 %vm118_vm1, %v192_v11  ;;  %v195_v14 = vpop.trf.xlu1 }
  0x76   :  { %685 = vmatprep.mubr.msk.bf16.mxu1 %vm118_vm1, %v195_v14 }
  0x79   :  { %v196_v15 = vpop.trf.xlu1 }
  0x7a   :  { %686 = vmatmul.mubr.msk.bf16.gmra.mxu1 %vm118_vm1, %v196_v15 }
  0x7d   :  { %v197_v16 = vpop.trf.xlu1 }
  0x7e   :  { %689 = vmatprep.mubr.msk.bf16.mxu1 %vm118_vm1, %v197_v16 }
  0x81   :  { %v198_v17 = vpop.trf.xlu1 }
  0x82   :  { %690 = vmatmul.mubr.msk.bf16.gmra.mxu1 %vm118_vm1, %v198_v17 }
 0x125   :  { %v156_v18 = vpop.f32.mrf.mxu0 }
 0x126   :  { %357 = vst [vmem:[%s975_s2] sm:$0xff] %v156_v18 }
 0x127   :  { %v667_v19 = vpop.f32.mrf.mxu0 }
 0x129   :  { %v159_v20 = vpop.f32.mrf.mxu0 }
 0x12a   :  { %358 = vst [vmem:[%s975_s2 + $0x8] sm:$0xff] %v159_v20 }
 0x12b   :  { %v668_v21 = vpop.f32.mrf.mxu0 }
 0x132   :  { %v683_v22 = vpop.f32.mrf.mxu1 }
 0x134   :  { %v273_v23 = vpop.f32.mrf.mxu1 }
 0x135   :  { %v679_v24 = vpop.f32.mrf.mxu0 }
 0x136   :  { %v684_v25 = vpop.f32.mrf.mxu1 }
 0x137   :  { %v257_v26 = vpop.f32.mrf.mxu0 }
 0x138   :  { %375 = vmax.xlane.f32.xlu0 %v257_v26  ;;  %v276_v27 = vpop.f32.mrf.mxu1 }
 0x139   :  { %v680_v28 = vpop.f32.mrf.mxu0 }
 0x13a   :  { %v687_v29 = vpop.f32.mrf.mxu1 }
 0x13b   :  { %v260_v30 = vpop.f32.mrf.mxu0 }
 0x13c   :  { %379 = vmax.xlane.f32.xlu0 %v679_v24  ;;  %377 = vmax.xlane.f32.xlu1 %v260_v30  ;;  %v289_v31 = vpop.f32.mrf.mxu1 }
 0x13e   :  { %v688_v32 = vpop.f32.mrf.mxu1 }
 0x140   :  { %381 = vmax.xlane.f32.xlu0 %v680_v28  ;;  %389 = vmax.xlane.f32.xlu1 %v684_v25  ;;  %v292_v33 = vpop.f32.mrf.mxu1 }
 0x142   :  { %v691_v34 = vpop.f32.mrf.mxu1 }
 0x144   :  { %383 = vmax.xlane.f32.xlu0 %v273_v23  ;;  %393 = vmax.xlane.f32.xlu1 %v292_v33  ;;  %v305_v35 = vpop.f32.mrf.mxu1 }
 0x146   :  { %v692_v36 = vpop.f32.mrf.mxu1 }
 0x148   :  { %385 = vmax.xlane.f32.xlu0 %v276_v27  ;;  %397 = vmax.xlane.f32.xlu1 %v688_v32  ;;  %v308_v37 = vpop.f32.mrf.mxu1 }
 0x14c   :  { %387 = vmax.xlane.f32.xlu0 %v683_v22  ;;  %401 = vmax.xlane.f32.xlu1 %v308_v37 }
 0x150   :  { %391 = vmax.xlane.f32.xlu0 %v289_v31  ;;  %405 = vmax.xlane.f32.xlu1 %v692_v36 }
 0x154   :  { %395 = vmax.xlane.f32.xlu0 %v687_v29 }
 0x158   :  { %399 = vmax.xlane.f32.xlu0 %v305_v35 }
 0x15c   :  { %403 = vmax.xlane.f32.xlu0 %v691_v34 }
 0x1c1   :  { %v376_v38 = vpop.xlane.xlu0 %375 }
 0x1c2   :  { %v407_v39 = vsub.f32 %v376_v38, %v257_v26 }
 0x1c4   :  { %423 = vmax.xlane.f32.xlu0 %v407_v39 }
 0x1c5   :  { %v380_v40 = vpop.xlane.xlu0 %379  ;;  %v378_v41 = vpop.xlane.xlu1 %377 }
 0x1c6   :  { %v409_v42 = vsub.f32 %v380_v40, %v679_v24  ;;  %v408_v43 = vsub.f32 %v378_v41, %v260_v30 }
 0x1c8   :  { %427 = vmax.xlane.f32.xlu0 %v409_v42  ;;  %425 = vmax.xlane.f32.xlu1 %v408_v43 }
 0x1c9   :  { %v382_v44 = vpop.xlane.xlu0 %381  ;;  %v390_v46 = vpop.xlane.xlu1 %389 }
 0x1ca   :  { %v410_v45 = vsub.f32 %v382_v44, %v680_v28  ;;  %v414_v53 = vsub.f32 %v390_v46, %v684_v25 }
 0x1cc   :  { %429 = vmax.xlane.f32.xlu1 %v410_v45 }
 0x1cd   :  { %v384_v47 = vpop.xlane.xlu0 %383  ;;  %v394_v49 = vpop.xlane.xlu1 %393 }
 0x1ce   :  { %v411_v48 = vsub.f32 %v384_v47, %v273_v23  ;;  %v416_v57 = vsub.f32 %v394_v49, %v292_v33 }
 0x1d0   :  { %431 = vmax.xlane.f32.xlu0 %v411_v48 }
 0x1d1   :  { %v386_v50 = vpop.xlane.xlu0 %385  ;;  %v398_v55 = vpop.xlane.xlu1 %397 }
 0x1d2   :  { %v412_v51 = vsub.f32 %v386_v50, %v276_v27  ;;  %v840_v61 = vsub.f32 %v398_v55, %v688_v32 }
 0x1d4   :  { %433 = vmax.xlane.f32.xlu1 %v412_v51 }
 0x1d5   :  { %v388_v52 = vpop.xlane.xlu0 %387  ;;  %v402_v59 = vpop.xlane.xlu1 %401 }
 0x1d6   :  { %v413_v54 = vsub.f32 %v388_v52, %v683_v22  ;;  %v846_v0 = vsub.f32 %v402_v59, %v308_v37 }
 0x1d8   :  { %435 = vmax.xlane.f32.xlu0 %v413_v54  ;;  %437 = vmax.xlane.f32.xlu1 %v414_v53 }
 0x1d9   :  { %v392_v56 = vpop.xlane.xlu0 %391  ;;  %v406_v2 = vpop.xlane.xlu1 %405 }
 0x1da   :  { %v837_v58 = vsub.f32 %v392_v56, %v289_v31  ;;  %v852_v4 = vsub.f32 %v406_v2, %v692_v36 }
 0x1dc   :  { %439 = vmax.xlane.f32.xlu0 %v837_v58  ;;  %441 = vmax.xlane.f32.xlu1 %v416_v57 }
 0x1dd   :  { %v396_v60 = vpop.xlane.xlu0 %395 }
 0x1de   :  { %v842_v62 = vsub.f32 %v396_v60, %v687_v29 }
 0x1e0   :  { %443 = vmax.xlane.f32.xlu0 %v842_v62  ;;  %445 = vmax.xlane.f32.xlu1 %v840_v61 }
 0x1e1   :  { %v400_v63 = vpop.xlane.xlu0 %399 }
 0x1e2   :  { %v848_v1 = vsub.f32 %v400_v63, %v305_v35 }
 0x1e4   :  { %447 = vmax.xlane.f32.xlu0 %v848_v1  ;;  %449 = vmax.xlane.f32.xlu1 %v846_v0 }
 0x1e5   :  { %v404_v3 = vpop.xlane.xlu0 %403 }
 0x1e6   :  { %v854_v5 = vsub.f32 %v404_v3, %v691_v34 }
 0x1e8   :  { %451 = vmax.xlane.f32.xlu0 %v854_v5  ;;  %453 = vmax.xlane.f32.xlu1 %v852_v4 }
 0x24d   :  { %v424_v6 = vpop.xlane.xlu0 %423 }
 0x24e   :  { %v455_v7 = vsub.f32 %v407_v39, %v424_v6 }
 0x250   :  { %v471_v14 = vmul.f32 1.442695, %v455_v7 }
 0x251   :  { %v428_v8 = vpop.xlane.xlu0 %427  ;;  %v426_v9 = vpop.xlane.xlu1 %425 }
 0x252   :  { %v457_v10 = vsub.f32 %v409_v42, %v428_v8  ;;  %v456_v11 = vsub.f32 %v408_v43, %v426_v9 }
 0x254   :  { %v475_v12 = vmul.f32 1.442695, %v457_v10  ;;  %v473_v13 = vmul.f32 1.442695, %v456_v11 }
 0x255   :  { %v430_v15 = vpop.xlane.xlu1 %429 }
 0x256   :  { %712 = vpow2.f32 %v475_v12  ;;  %v458_v16 = vsub.f32 %v410_v45, %v430_v15 }
 0x257   :  { %714 = vpow2.f32 %v473_v13 }
 0x258   :  { %v477_v17 = vmul.f32 1.442695, %v458_v16  ;;  %716 = vpow2.f32 %v471_v14 }
 0x259   :  { %v432_v18 = vpop.xlane.xlu0 %431 }
 0x25a   :  { %718 = vpow2.f32 %v477_v17  ;;  %v459_v19 = vsub.f32 %v411_v48, %v432_v18 }
 0x25c   :  { %v479_v20 = vmul.f32 1.442695, %v459_v19 }
 0x25d   :  { %v434_v21 = vpop.xlane.xlu1 %433 }
 0x25e   :  { %720 = vpow2.f32 %v479_v20  ;;  %v460_v22 = vsub.f32 %v412_v51, %v434_v21 }
 0x260   :  { %v481_v23 = vmul.f32 1.442695, %v460_v22 }
 0x261   :  { %v436_v24 = vpop.xlane.xlu0 %435  ;;  %v438_v25 = vpop.xlane.xlu1 %437 }
 0x262   :  { %722 = vpow2.f32 %v481_v23  ;;  %v461_v26 = vsub.f32 %v413_v54, %v436_v24  ;;  %v462_v27 = vsub.f32 %v414_v53, %v438_v25 }
 0x263   :  { %v858_v28 = vpop.eup %712 }
 0x264   :  { %v860_v29 = vpop.eup %714  ;;  %v483_v30 = vmul.f32 1.442695, %v461_v26  ;;  %v485_v31 = vmul.f32 1.442695, %v462_v27  ;;  %507 = vadd.xlane.f32.xlu0 %v858_v28 }
 0x265   :  { %505 = vadd.xlane.f32.xlu1 %v860_v29  ;;  %v440_v32 = vpop.xlane.xlu0 %439  ;;  %v442_v33 = vpop.xlane.xlu1 %441 }
 0x266   :  { %v864_v34 = vpop.eup %716  ;;  %724 = vpow2.f32 %v483_v30  ;;  %v464_v35 = vsub.f32 %v416_v57, %v442_v33  ;;  %v463_v40 = vsub.f32 %v837_v58, %v440_v32 }
 0x267   :  { %v866_v36 = vpop.eup %718  ;;  %726 = vpow2.f32 %v485_v31 }
 0x268   :  { %v489_v37 = vmul.f32 1.442695, %v464_v35  ;;  %503 = vadd.xlane.f32.xlu0 %v864_v34  ;;  %v487_v48 = vmul.f32 1.442695, %v463_v40 }
 0x269   :  { %509 = vadd.xlane.f32.xlu1 %v866_v36  ;;  %v444_v38 = vpop.xlane.xlu0 %443  ;;  %v446_v39 = vpop.xlane.xlu1 %445 }
 0x26a   :  { %v465_v41 = vsub.f32 %v842_v62, %v444_v38  ;;  %v466_v42 = vsub.f32 %v840_v61, %v446_v39  ;;  %728 = vpow2.f32 %v489_v37 }
 0x26b   :  { %v873_v43 = vpop.eup %720 }
 0x26c   :  { %v491_v44 = vmul.f32 1.442695, %v465_v41  ;;  %v493_v45 = vmul.f32 1.442695, %v466_v42  ;;  %511 = vadd.xlane.f32.xlu0 %v873_v43 }
 0x26d   :  { %v448_v46 = vpop.xlane.xlu0 %447  ;;  %v450_v47 = vpop.xlane.xlu1 %449 }
 0x26e   :  { %730 = vpow2.f32 %v491_v44  ;;  %v468_v49 = vsub.f32 %v846_v0, %v450_v47  ;;  %v467_v54 = vsub.f32 %v848_v1, %v448_v46 }
 0x26f   :  { %v877_v50 = vpop.eup %722  ;;  %732 = vpow2.f32 %v493_v45 }
 0x270   :  { %v497_v51 = vmul.f32 1.442695, %v468_v49  ;;  %513 = vadd.xlane.f32.xlu1 %v877_v50  ;;  %734 = vpow2.f32 %v487_v48  ;;  %v495_v61 = vmul.f32 1.442695, %v467_v54 }
 0x271   :  { %v452_v52 = vpop.xlane.xlu0 %451  ;;  %v454_v53 = vpop.xlane.xlu1 %453 }
 0x272   :  { %v469_v55 = vsub.f32 %v854_v5, %v452_v52  ;;  %v470_v56 = vsub.f32 %v852_v4, %v454_v53  ;;  %736 = vpow2.f32 %v497_v51 }
 0x273   :  { %v883_v57 = vpop.eup %724 }
 0x274   :  { %v885_v58 = vpop.eup %726  ;;  %v499_v59 = vmul.f32 1.442695, %v469_v55  ;;  %v501_v60 = vmul.f32 1.442695, %v470_v56  ;;  %515 = vadd.xlane.f32.xlu0 %v883_v57 }
 0x275   :  { %517 = vadd.xlane.f32.xlu1 %v885_v58 }
 0x276   :  { %738 = vpow2.f32 %v499_v59 }
 0x277   :  { %740 = vpow2.f32 %v501_v60  ;;  %v889_v62 = vpop.eup %728 }
 0x278   :  { %742 = vpow2.f32 %v495_v61 }
 0x279   :  { %521 = vadd.xlane.f32.xlu1 %v889_v62 }
 0x27b   :  { %v892_v63 = vpop.eup %730 }
 0x27c   :  { %v894_v0 = vpop.eup %732  ;;  %523 = vadd.xlane.f32.xlu0 %v892_v63 }
 0x27d   :  { %525 = vadd.xlane.f32.xlu1 %v894_v0  ;;  %v735_v1 = vpop.eup %734 }
 0x27f   :  { %v898_v2 = vpop.eup %736 }
 0x280   :  { %519 = vadd.xlane.f32.xlu0 %v735_v1 }
 0x281   :  { %529 = vadd.xlane.f32.xlu1 %v898_v2 }
 0x283   :  { %v901_v3 = vpop.eup %738 }
 0x284   :  { %v903_v4 = vpop.eup %740  ;;  %531 = vadd.xlane.f32.xlu0 %v901_v3 }
 0x285   :  { %533 = vadd.xlane.f32.xlu1 %v903_v4  ;;  %v907_v5 = vpop.eup %742 }
 0x288   :  { %527 = vadd.xlane.f32.xlu0 %v907_v5 }
 0x2ed   :  { %v508_v6 = vpop.xlane.xlu0 %507 }
 0x2ee   :  { %v506_v7 = vpop.xlane.xlu1 %505 }
 0x2f1   :  { %v504_v8 = vpop.xlane.xlu0 %503 }
 0x2f2   :  { %744 = vrcp.f32 %v504_v8  ;;  %v510_v9 = vpop.xlane.xlu1 %509 }
 0x2f3   :  { %746 = vrcp.f32 %v506_v7 }
 0x2f4   :  { %748 = vrcp.f32 %v508_v6 }
 0x2f5   :  { %750 = vrcp.f32 %v510_v9  ;;  %v512_v10 = vpop.xlane.xlu0 %511 }
 0x2f6   :  { %752 = vrcp.f32 %v512_v10 }
 0x2f9   :  { %v514_v14 = vpop.xlane.xlu1 %513 }
 0x2fa   :  { %754 = vrcp.f32 %v514_v14 }
 0x2fd   :  { %v516_v15 = vpop.xlane.xlu0 %515 }
 0x2fe   :  { %756 = vrcp.f32 %v516_v15  ;;  %v518_v21 = vpop.xlane.xlu1 %517 }
 0x2ff   :  { %v745_v11 = vpop.eup %744  ;;  %758 = vrcp.f32 %v518_v21 }
 0x300   :  { %v536_v12 = vmul.f32 %v745_v11, %v864_v34  ;;  %v747_v13 = vpop.eup %746 }
 0x301   :  { %v538_v16 = vmul.f32 %v747_v13, %v860_v29  ;;  %v749_v17 = vpop.eup %748 }
 0x302   :  { %567 = vxpose.xlu0.b32.start [1/16] %v536_v12, 128  ;;  %v540_v19 = vmul.f32 %v749_v17, %v858_v28  ;;  %v751_v20 = vpop.eup %750  ;;  %v522_v27 = vpop.xlane.xlu1 %521 }
 0x303   :  { %v542_v22 = vmul.f32 %v751_v20, %v866_v36  ;;  %v753_v23 = vpop.eup %752 }
 0x304   :  { %v544_v25 = vmul.f32 %v753_v23, %v873_v43 }
 0x305   :  { %v524_v18 = vpop.xlane.xlu0 %523 }
 0x306   :  { %568 = vxpose.xlu0.b32.cont [2/16] %v538_v16, 128  ;;  %v526_v33 = vpop.xlane.xlu1 %525 }
 0x307   :  { %v755_v26 = vpop.eup %754 }
 0x308   :  { %v546_v29 = vmul.f32 %v755_v26, %v877_v50 }
 0x309   :  { %v520_v24 = vpop.xlane.xlu0 %519 }
 0x30a   :  { %569 = vxpose.xlu0.b32.cont [3/16] %v540_v19, 128  ;;  %760 = vrcp.f32 %v520_v24  ;;  %v530_v39 = vpop.xlane.xlu1 %529 }
 0x30b   :  { %762 = vrcp.f32 %v522_v27  ;;  %v757_v30 = vpop.eup %756 }
 0x30c   :  { %764 = vrcp.f32 %v524_v18  ;;  %v548_v31 = vmul.f32 %v757_v30, %v883_v57  ;;  %v759_v32 = vpop.eup %758 }
 0x30d   :  { %v532_v28 = vpop.xlane.xlu0 %531  ;;  %766 = vrcp.f32 %v526_v33  ;;  %v550_v34 = vmul.f32 %v759_v32, %v885_v58 }
 0x30e   :  { %570 = vxpose.xlu0.b32.cont [4/16] %v542_v22, 128  ;;  %v534_v44 = vpop.xlane.xlu1 %533 }
 0x311   :  { %v528_v36 = vpop.xlane.xlu0 %527 }
 0x312   :  { %571 = vxpose.xlu0.b32.cont [5/16] %v544_v25, 128  ;;  %768 = vrcp.f32 %v528_v36 }
 0x313   :  { %770 = vrcp.f32 %v530_v39 }
 0x314   :  { %772 = vrcp.f32 %v532_v28 }
 0x315   :  { %774 = vrcp.f32 %v534_v44 }
 0x316   :  { %572 = vxpose.xlu0.b32.cont [6/16] %v546_v29, 128 }
 0x317   :  { %v761_v35 = vpop.eup %760 }
 0x318   :  { %v552_v37 = vmul.f32 %v761_v35, %v735_v1  ;;  %v763_v38 = vpop.eup %762 }
 0x319   :  { %v554_v40 = vmul.f32 %v763_v38, %v889_v62  ;;  %v765_v41 = vpop.eup %764 }
 0x31a   :  { %573 = vxpose.xlu0.b32.cont [7/16] %v548_v31, 128  ;;  %v556_v42 = vmul.f32 %v765_v41, %v892_v63  ;;  %v767_v43 = vpop.eup %766 }
 0x31b   :  { %v558_v45 = vmul.f32 %v767_v43, %v894_v0 }
 0x31e   :  { %574 = vxpose.xlu0.b32.cont [8/16] %v550_v34, 128 }
 0x31f   :  { %v769_v46 = vpop.eup %768 }
 0x320   :  { %v560_v47 = vmul.f32 %v769_v46, %v907_v5  ;;  %v771_v48 = vpop.eup %770 }
 0x321   :  { %v562_v49 = vmul.f32 %v771_v48, %v898_v2  ;;  %v773_v50 = vpop.eup %772 }
 0x322   :  { %575 = vxpose.xlu0.b32.cont [9/16] %v552_v37, 128  ;;  %v564_v51 = vmul.f32 %v773_v50, %v901_v3  ;;  %v775_v52 = vpop.eup %774 }
 0x323   :  { %v566_v53 = vmul.f32 %v775_v52, %v903_v4 }
 0x326   :  { %576 = vxpose.xlu0.b32.cont [10/16] %v554_v40, 128 }
 0x32a   :  { %577 = vxpose.xlu0.b32.cont [11/16] %v556_v42, 128 }
 0x32e   :  { %578 = vxpose.xlu0.b32.cont [12/16] %v558_v45, 128 }
 0x332   :  { %579 = vxpose.xlu0.b32.cont [13/16] %v560_v47, 128 }
 0x336   :  { %580 = vxpose.xlu0.b32.cont [14/16] %v562_v49, 128 }
 0x33a   :  { %581 = vxpose.xlu0.b32.cont [15/16] %v564_v51, 128 }
 0x33e   :  { %582 = vxpose.xlu0.b32.end [16/16] %v566_v53, 128 }
 0x37e   :  { %v583_v54 = vpop.trf.xlu0 }
 0x37f   :  { %599 = vst [vmem:[%s976_s3] sm:$0xff] %v583_v54 }
 0x382   :  { %v584_v55 = vpop.trf.xlu0 }
 0x383   :  { %600 = vst [vmem:[%s976_s3 + $0x8] sm:$0xff] %v584_v55 }
 0x386   :  { %v585_v56 = vpop.trf.xlu0 }
 0x387   :  { %601 = vst [vmem:[%s976_s3 + $0x10] sm:$0xff] %v585_v56 }
 0x38a   :  { %v586_v57 = vpop.trf.xlu0 }
 0x38b   :  { %602 = vst [vmem:[%s976_s3 + $0x18] sm:$0xff] %v586_v57 }
 0x38e   :  { %v587_v58 = vpop.trf.xlu0 }
 0x38f   :  { %603 = vst [vmem:[%s976_s3 + $0x20] sm:$0xff] %v587_v58 }
 0x392   :  { %v588_v59 = vpop.trf.xlu0 }
 0x393   :  { %604 = vst [vmem:[%s976_s3 + $0x28] sm:$0xff] %v588_v59 }
 0x396   :  { %v589_v60 = vpop.trf.xlu0 }
 0x397   :  { %605 = vst [vmem:[%s976_s3 + $0x30] sm:$0xff] %v589_v60 }
 0x39a   :  { %v590_v61 = vpop.trf.xlu0 }
 0x39b   :  { %606 = vst [vmem:[%s976_s3 + $0x38] sm:$0xff] %v590_v61 }
 0x39e   :  { %v591_v62 = vpop.trf.xlu0 }
 0x39f   :  { %607 = vst [vmem:[%s976_s3 + $0x40] sm:$0xff] %v591_v62 }
 0x3a2   :  { %v592_v63 = vpop.trf.xlu0 }
 0x3a3   :  { %608 = vst [vmem:[%s976_s3 + $0x48] sm:$0xff] %v592_v63 }
 0x3a6   :  { %v593_v0 = vpop.trf.xlu0 }
 0x3a7   :  { %609 = vst [vmem:[%s976_s3 + $0x50] sm:$0xff] %v593_v0 }
 0x3aa   :  { %v594_v1 = vpop.trf.xlu0 }
 0x3ab   :  { %610 = vst [vmem:[%s976_s3 + $0x58] sm:$0xff] %v594_v1 }
 0x3ae   :  { %v595_v2 = vpop.trf.xlu0 }
 0x3af   :  { %611 = vst [vmem:[%s976_s3 + $0x60] sm:$0xff] %v595_v2 }
 0x3b2   :  { %v596_v3 = vpop.trf.xlu0 }
 0x3b3   :  { %612 = vst [vmem:[%s976_s3 + $0x68] sm:$0xff] %v596_v3 }
 0x3b6   :  { %v597_v4 = vpop.trf.xlu0 }
 0x3b7   :  { %613 = vst [vmem:[%s976_s3 + $0x70] sm:$0xff] %v597_v4 }
 0x3ba   :  { %v598_v5 = vpop.trf.xlu0 }
 0x3bb   :  { %614 = vst [vmem:[%s976_s3 + $0x78] sm:$0xff] %v598_v5 }

// kernel: wfcg_forward.12
= control target key start
LH: loop header
LB: loop body
LE: loop exit
PB: predicated region body
PF: predicated region fallthrough
CT: control target
= control target key end

     0   :  { %v57_v5 = vlaneseq  ;;  %vm113_vm0 = vcmask 1046528   ;;  %vm190_vm1 = vcmask 1045504   ;;  %s1057_s0 = inlined_call_operand.vmem [shape: bf16[10,10,128], index: 0, kind: input, shape index: {}]   ;;  %s1058_s1 = inlined_call_operand.vmem [shape: f32[3,3,128], index: 1, kind: input, shape index: {}]   ;;  %s1059_s2 = inlined_call_operand.vmem [shape: f32[1,1,128], index: 2, kind: input, shape index: {}]   ;;  %s1060_s3 = inlined_call_operand.vmem [shape: bf16[8,8,128], index: 3, kind: output, shape index: {}]  }
   0x1   :  { %v14_v0 = vld [vmem:[%s1057_s0] ss:$8 sps:$4 sm:$0xff]   ;;  %v684_v1 = vld [vmem:[%s1057_s0 + $0x4] sm:$0x1]  ;;  %v17_v2 = vld [vmem:[%s1057_s0 + $0xc] sm:$0x1] }
   0x2   :  { %v18_v3 = vld [vmem:[%s1057_s0 + $0x10] ss:$8 sps:$4 sm:$0xff]   ;;  %v19_v4 = vld [vmem:[%s1057_s0 + $0x14] sm:$0x1]  ;;  %v21_v6 = vld [vmem:[%s1057_s0 + $0x1c] sm:$0x1]  ;;  %v713_v12 = vunpack.c.l.bf16 %v14_v0  ;;  %v1061_v13 = vunpack.c.l.bf16 %v684_v1  ;;  %v716_v14 = vunpack.c.h.bf16 %v14_v0  ;;  %v721_v16 = vunpack.c.l.bf16 %v17_v2 }
   0x3   :  { %v22_v7 = vld [vmem:[%s1057_s0 + $0x20] ss:$8 sps:$4 sm:$0xff]   ;;  %v23_v8 = vld [vmem:[%s1057_s0 + $0x24] sm:$0x1]  ;;  %v25_v9 = vld [vmem:[%s1057_s0 + $0x2c] sm:$0x1]  ;;  %v723_v17 = vunpack.c.l.bf16 %v18_v3  ;;  %v725_v18 = vunpack.c.l.bf16 %v19_v4  ;;  %v727_v19 = vunpack.c.h.bf16 %v18_v3  ;;  %v735_v22 = vunpack.c.l.bf16 %v21_v6 }
   0x4   :  { %v26_v10 = vld [vmem:[%s1057_s0 + $0x30] ss:$8 sps:$4 sm:$0xff]   ;;  %v27_v11 = vld [vmem:[%s1057_s0 + $0x34] sm:$0x1]  ;;  %v29_v15 = vld [vmem:[%s1057_s0 + $0x3c] sm:$0x1]  ;;  %v737_v23 = vunpack.c.l.bf16 %v22_v7  ;;  %v739_v24 = vunpack.c.l.bf16 %v23_v8  ;;  %v746_v27 = vunpack.c.h.bf16 %v22_v7  ;;  %v748_v28 = vunpack.c.l.bf16 %v25_v9 }
   0x5   :  { %v30_v20 = vld [vmem:[%s1057_s0 + $0x40] ss:$8 sps:$4 sm:$0xff]   ;;  %v31_v21 = vld [vmem:[%s1057_s0 + $0x44] sm:$0x1]  ;;  %v58_v25 = vshrl.u32 %v57_v5, 7  ;;  %v750_v29 = vunpack.c.l.bf16 %v26_v10  ;;  %v752_v30 = vunpack.c.l.bf16 %v27_v11  ;;  %v760_v33 = vunpack.c.h.bf16 %v26_v10 }
   0x6   :  { %v744_v26 = vld [vmem:[%s1057_s0 + $0x4c] sm:$0x1]  ;;  %v54_v31 = vld [vmem:[%s1058_s1] sm:$0x7]  ;;  %v55_v32 = vld [vmem:[%s1058_s1 + $0x4] sm:$0x7]  ;;  %v771_v38 = vunpack.c.l.bf16 %v29_v15  ;;  %v773_v39 = vunpack.c.l.bf16 %v30_v20  ;;  %v775_v40 = vunpack.c.l.bf16 %v31_v21  ;;  %v777_v41 = vunpack.c.h.bf16 %v30_v20 }
   0x7   :  { %1068 = vst [vmem:[#allocation2_spill] sm:$0xff] %v744_v26  ;;  %v765_v34 = vld [vmem:[%s1058_s1 + $0x8] sm:$0x7]  ;;  %v59_v35 = vsub.s32 0, %v58_v25  ;;  %v767_v36 = vsub.s32 1, %v58_v25  ;;  %v769_v37 = vsub.s32 2, %v58_v25 }
   0x8   :  { %1069 = vst [vmem:[#allocation3_spill] sm:$0xff] %v765_v34  ;;  %1071 = vst [vmem:[#allocation5_spill] sm:$0xff] %v777_v41 }
   0x9   :  { %1070 = vst [vmem:[#allocation4_spill] sm:$0xff] %v769_v37  ;;  %v60_v43 = vrot.slane %v54_v31, %v59_v35  ;;  %v80_v44 = vrot.slane %v54_v31, %v767_v36  ;;  %v782_v45 = vrot.slane %v54_v31, %v769_v37  ;;  %v784_v46 = vrot.slane %v55_v32, %v59_v35 }
   0xa   :  { %v787_v47 = vrot.slane %v55_v32, %v767_v36  ;;  %v790_v48 = vrot.slane %v55_v32, %v769_v37  ;;  %v793_v49 = vrot.slane %v765_v34, %v59_v35 }
   0xb   :  { %v61_v50 = vmul.f32 %v60_v43, %v713_v12  ;;  %v62_v51 = vmul.f32 %v60_v43, %v716_v14  ;;  %v63_v52 = vmul.f32 %v60_v43, %v723_v17  ;;  %v64_v53 = vmul.f32 %v60_v43, %v727_v19 }
   0xc   :  { %v65_v54 = vmul.f32 %v60_v43, %v737_v23  ;;  %v66_v55 = vmul.f32 %v60_v43, %v746_v27  ;;  %v67_v56 = vmul.f32 %v60_v43, %v750_v29  ;;  %v68_v57 = vmul.f32 %v60_v43, %v760_v33 }
   0xd   :  { %v81_v58 = vmul.f32 %v80_v44, %v713_v12  ;;  %v82_v59 = vmul.f32 %v80_v44, %v1061_v13  ;;  %v83_v60 = vmul.f32 %v80_v44, %v716_v14  ;;  %v84_v61 = vmul.f32 %v80_v44, %v721_v16 }
   0xe   :  { %v85_v62 = vmul.f32 %v80_v44, %v723_v17  ;;  %v86_v63 = vmul.f32 %v80_v44, %v725_v18  ;;  %v87_v0 = vmul.f32 %v80_v44, %v727_v19  ;;  %v88_v2 = vmul.f32 %v80_v44, %v735_v22 }
   0xf   :  { %v89_v3 = vmul.f32 %v80_v44, %v737_v23  ;;  %v90_v4 = vmul.f32 %v80_v44, %v739_v24  ;;  %v91_v5 = vmul.f32 %v80_v44, %v746_v27  ;;  %v92_v6 = vmul.f32 %v80_v44, %v748_v28 }
  0x10   :  { %v93_v7 = vmul.f32 %v80_v44, %v750_v29  ;;  %v94_v8 = vmul.f32 %v80_v44, %v752_v30  ;;  %v95_v9 = vmul.f32 %v80_v44, %v760_v33  ;;  %v96_v10 = vmul.f32 %v80_v44, %v771_v38 }
  0x11   :  { %v114_v11 = vrot.slane %v81_v58, 1  ;;  %v115_v15 = vrot.slane %v82_v59, 1  ;;  %v117_v20 = vrot.slane %v83_v60, 1  ;;  %v118_v21 = vrot.slane %v84_v61, 1 }
  0x12   :  { %v120_v25 = vrot.slane %v85_v62, 1  ;;  %v121_v31 = vrot.slane %v86_v63, 1  ;;  %v123_v32 = vrot.slane %v87_v0, 1  ;;  %v124_v35 = vrot.slane %v88_v2, 1 }
  0x13   :  { %v116_v43 = vsel %vm113_vm0, %v114_v11, %v115_v15  ;;  %v119_v42 = vsel %vm113_vm0, %v117_v20, %v118_v21  ;;  %v126_v13 = vrot.slane %v89_v3, 1  ;;  %v127_v37 = vrot.slane %v90_v4, 1 }
  0x14   :  { %v122_v26 = vsel %vm113_vm0, %v120_v25, %v121_v31  ;;  %v125_v41 = vsel %vm113_vm0, %v123_v32, %v124_v35  ;;  %v129_v34 = vrot.slane %v91_v5, 1  ;;  %v130_v44 = vrot.slane %v92_v6, 1 }
  0x15   :  { %v128_v58 = vsel %vm113_vm0, %v126_v13, %v127_v37  ;;  %v132_v59 = vrot.slane %v93_v7, 1  ;;  %v133_v60 = vrot.slane %v94_v8, 1  ;;  %v135_v61 = vrot.slane %v95_v9, 1 }
  0x16   :  { %v131_v62 = vsel %vm113_vm0, %v129_v34, %v130_v44  ;;  %v136_v63 = vrot.slane %v96_v10, 1  ;;  %v146_v0 = vadd.f32 %v116_v43, %v61_v50  ;;  %v147_v2 = vadd.f32 %v119_v42, %v62_v51 }
  0x17   :  { %v134_v3 = vsel %vm113_vm0, %v132_v59, %v133_v60  ;;  %v148_v4 = vadd.f32 %v122_v26, %v63_v52  ;;  %v149_v11 = vadd.f32 %v125_v41, %v64_v53  ;;  %v150_v15 = vadd.f32 %v128_v58, %v65_v54 }
  0x18   :  { %v137_v20 = vsel %vm113_vm0, %v135_v61, %v136_v63  ;;  %v151_v5 = vadd.f32 %v131_v62, %v66_v55  ;;  %v152_v6 = vadd.f32 %v134_v3, %v67_v56  ;;  %v158_v13 = vmul.f32 %v782_v45, %v713_v12 }
  0x19   :  { %v153_v37 = vadd.f32 %v137_v20, %v68_v57  ;;  %v1072_v7 = vunpack.c.l.bf16 %v684_v1  ;;  %v160_v42 = vmul.f32 %v782_v45, %v716_v14  ;;  %v161_v26 = vmul.f32 %v782_v45, %v721_v16 }
  0x1a   :  { %v162_v41 = vmul.f32 %v782_v45, %v723_v17  ;;  %v163_v50 = vmul.f32 %v782_v45, %v725_v18  ;;  %v164_v12 = vmul.f32 %v782_v45, %v727_v19  ;;  %v165_v1 = vmul.f32 %v782_v45, %v735_v22 }
  0x1b   :  { %v159_v34 = vmul.f32 %v782_v45, %v1072_v7  ;;  %v166_v51 = vmul.f32 %v782_v45, %v737_v23  ;;  %v167_v52 = vmul.f32 %v782_v45, %v739_v24  ;;  %v168_v53 = vmul.f32 %v782_v45, %v746_v27 }
  0x1c   :  { %v169_v54 = vmul.f32 %v782_v45, %v748_v28  ;;  %v170_v55 = vmul.f32 %v782_v45, %v750_v29  ;;  %v171_v56 = vmul.f32 %v782_v45, %v752_v30  ;;  %v172_v57 = vmul.f32 %v782_v45, %v760_v33 }
  0x1d   :  { %v173_v8 = vmul.f32 %v782_v45, %v771_v38  ;;  %v191_v9 = vrot.slane %v158_v13, 2  ;;  %v192_v10 = vrot.slane %v159_v34, 2  ;;  %v194_v21 = vrot.slane %v160_v42, 2 }
  0x1e   :  { %v195_v25 = vrot.slane %v161_v26, 2  ;;  %v197_v31 = vrot.slane %v162_v41, 2  ;;  %v198_v32 = vrot.slane %v163_v50, 2  ;;  %v200_v35 = vrot.slane %v164_v12, 2 }
  0x1f   :  { %v201_v43 = vrot.slane %v165_v1, 2  ;;  %v193_v44 = vsel %vm190_vm1, %v191_v9, %v192_v10  ;;  %v203_v59 = vrot.slane %v166_v51, 2  ;;  %v204_v60 = vrot.slane %v167_v52, 2 }
  0x20   :  { %v196_v58 = vsel %vm190_vm1, %v194_v21, %v195_v25  ;;  %v199_v61 = vsel %vm190_vm1, %v197_v31, %v198_v32  ;;  %v206_v63 = vrot.slane %v168_v53, 2  ;;  %v207_v45 = vrot.slane %v169_v54, 2 }
  0x21   :  { %v202_v62 = vsel %vm190_vm1, %v200_v35, %v201_v43  ;;  %v205_v3 = vsel %vm190_vm1, %v203_v59, %v204_v60  ;;  %v209_v20 = vrot.slane %v170_v55, 2  ;;  %v210_v13 = vrot.slane %v171_v56, 2 }
  0x22   :  { %v212_v7 = vrot.slane %v172_v57, 2  ;;  %v208_v34 = vsel %vm190_vm1, %v206_v63, %v207_v45  ;;  %v213_v42 = vrot.slane %v173_v8, 2  ;;  %v223_v26 = vadd.f32 %v193_v44, %v146_v0 }
  0x23   :  { %v224_v41 = vadd.f32 %v196_v58, %v147_v2  ;;  %v211_v50 = vsel %vm190_vm1, %v209_v20, %v210_v13  ;;  %v225_v12 = vadd.f32 %v199_v61, %v148_v4  ;;  %v226_v1 = vadd.f32 %v202_v62, %v149_v11 }
  0x24   :  { %v227_v51 = vadd.f32 %v205_v3, %v150_v15  ;;  %v214_v52 = vsel %vm190_vm1, %v212_v7, %v213_v42  ;;  %v228_v9 = vadd.f32 %v208_v34, %v151_v5  ;;  %v229_v53 = vadd.f32 %v211_v50, %v152_v6 }
  0x25   :  { %v235_v54 = vmul.f32 %v784_v46, %v716_v14  ;;  %v230_v55 = vadd.f32 %v214_v52, %v153_v37  ;;  %v236_v56 = vmul.f32 %v784_v46, %v723_v17  ;;  %v237_v0 = vmul.f32 %v784_v46, %v727_v19 }
  0x26   :  { %v238_v2 = vmul.f32 %v784_v46, %v737_v23  ;;  %v239_v4 = vmul.f32 %v784_v46, %v746_v27  ;;  %v240_v11 = vmul.f32 %v784_v46, %v750_v29  ;;  %v241_v15 = vmul.f32 %v784_v46, %v760_v33 }
  0x27   :  { %v242_v5 = vmul.f32 %v784_v46, %v773_v39  ;;  %v243_v6 = vadd.f32 %v235_v54, %v223_v26  ;;  %v244_v37 = vadd.f32 %v236_v56, %v224_v41  ;;  %v245_v57 = vadd.f32 %v237_v0, %v225_v12 }
  0x28   :  { %v246_v8 = vadd.f32 %v238_v2, %v226_v1  ;;  %v247_v10 = vadd.f32 %v239_v4, %v227_v51  ;;  %v248_v21 = vadd.f32 %v240_v11, %v228_v9  ;;  %v249_v25 = vadd.f32 %v241_v15, %v229_v53 }
  0x29   :  { %v250_v31 = vadd.f32 %v242_v5, %v230_v55  ;;  %v255_v32 = vmul.f32 %v787_v47, %v716_v14  ;;  %v256_v35 = vmul.f32 %v787_v47, %v721_v16  ;;  %v257_v43 = vmul.f32 %v787_v47, %v723_v17 }
  0x2a   :  { %v258_v46 = vmul.f32 %v787_v47, %v725_v18  ;;  %v259_v44 = vmul.f32 %v787_v47, %v727_v19  ;;  %v260_v58 = vmul.f32 %v787_v47, %v735_v22  ;;  %v261_v59 = vmul.f32 %v787_v47, %v737_v23 }
  0x2b   :  { %v262_v60 = vmul.f32 %v787_v47, %v739_v24  ;;  %v263_v61 = vmul.f32 %v787_v47, %v746_v27  ;;  %v264_v62 = vmul.f32 %v787_v47, %v748_v28  ;;  %v265_v63 = vmul.f32 %v787_v47, %v750_v29 }
  0x2c   :  { %v266_v45 = vmul.f32 %v787_v47, %v752_v30  ;;  %v267_v3 = vmul.f32 %v787_v47, %v760_v33  ;;  %v268_v20 = vmul.f32 %v787_v47, %v771_v38  ;;  %v269_v13 = vmul.f32 %v787_v47, %v773_v39 }
  0x2d   :  { %v270_v7 = vmul.f32 %v787_v47, %v775_v40  ;;  %v287_v34 = vrot.slane %v255_v32, 1  ;;  %v288_v42 = vrot.slane %v256_v35, 1  ;;  %v290_v26 = vrot.slane %v257_v43, 1 }
  0x2e   :  { %v291_v41 = vrot.slane %v258_v46, 1  ;;  %v293_v50 = vrot.slane %v259_v44, 1  ;;  %v294_v12 = vrot.slane %v260_v58, 1  ;;  %v296_v1 = vrot.slane %v261_v59, 1 }
  0x2f   :  { %v297_v51 = vrot.slane %v262_v60, 1  ;;  %v289_v52 = vsel %vm113_vm0, %v287_v34, %v288_v42  ;;  %v299_v53 = vrot.slane %v263_v61, 1  ;;  %v300_v54 = vrot.slane %v264_v62, 1 }
  0x30   :  { %v292_v9 = vsel %vm113_vm0, %v290_v26, %v291_v41  ;;  %v295_v55 = vsel %vm113_vm0, %v293_v50, %v294_v12  ;;  %v302_v0 = vrot.slane %v265_v63, 1  ;;  %v303_v47 = vrot.slane %v266_v45, 1 }
  0x31   :  { %v298_v56 = vsel %vm113_vm0, %v296_v1, %v297_v51  ;;  %v301_v2 = vsel %vm113_vm0, %v299_v53, %v300_v54  ;;  %v305_v4 = vrot.slane %v267_v3, 1  ;;  %v306_v11 = vrot.slane %v268_v20, 1 }
  0x32   :  { %v308_v15 = vrot.slane %v269_v13, 1  ;;  %v304_v5 = vsel %vm113_vm0, %v302_v0, %v303_v47  ;;  %v309_v32 = vrot.slane %v270_v7, 1  ;;  %v319_v35 = vadd.f32 %v289_v52, %v243_v6 }
  0x33   :  { %v320_v43 = vadd.f32 %v292_v9, %v244_v37  ;;  %v307_v46 = vsel %vm113_vm0, %v305_v4, %v306_v11  ;;  %v321_v44 = vadd.f32 %v295_v55, %v245_v57  ;;  %v322_v58 = vadd.f32 %v298_v56, %v246_v8 }
  0x34   :  { %v323_v59 = vadd.f32 %v301_v2, %v247_v10  ;;  %v310_v60 = vsel %vm113_vm0, %v308_v15, %v309_v32  ;;  %v324_v61 = vadd.f32 %v304_v5, %v248_v21  ;;  %v325_v62 = vadd.f32 %v307_v46, %v249_v25 }
  0x35   :  { %v331_v63 = vmul.f32 %v790_v48, %v716_v14  ;;  %v326_v45 = vadd.f32 %v310_v60, %v250_v31  ;;  %v332_v3 = vmul.f32 %v790_v48, %v721_v16  ;;  %v333_v6 = vmul.f32 %v790_v48, %v723_v17 }
  0x36   :  { %v334_v37 = vmul.f32 %v790_v48, %v725_v18  ;;  %v335_v57 = vmul.f32 %v790_v48, %v727_v19  ;;  %v336_v8 = vmul.f32 %v790_v48, %v735_v22  ;;  %v337_v10 = vmul.f32 %v790_v48, %v737_v23 }
  0x37   :  { %v338_v14 = vmul.f32 %v790_v48, %v739_v24  ;;  %v339_v16 = vmul.f32 %v790_v48, %v746_v27  ;;  %v340_v21 = vmul.f32 %v790_v48, %v748_v28  ;;  %v341_v25 = vmul.f32 %v790_v48, %v750_v29 }
  0x38   :  { %v342_v31 = vmul.f32 %v790_v48, %v752_v30  ;;  %v343_v20 = vmul.f32 %v790_v48, %v760_v33  ;;  %v344_v13 = vmul.f32 %v790_v48, %v771_v38  ;;  %v345_v7 = vmul.f32 %v790_v48, %v773_v39 }
  0x39   :  { %v346_v34 = vmul.f32 %v790_v48, %v775_v40  ;;  %v363_v42 = vrot.slane %v331_v63, 2  ;;  %v364_v26 = vrot.slane %v332_v3, 2  ;;  %v366_v41 = vrot.slane %v333_v6, 2 }
  0x3a   :  { %v367_v50 = vrot.slane %v334_v37, 2  ;;  %v369_v12 = vrot.slane %v335_v57, 2  ;;  %v370_v1 = vrot.slane %v336_v8, 2  ;;  %v372_v51 = vrot.slane %v337_v10, 2 }
  0x3b   :  { %v373_v52 = vrot.slane %v338_v14, 2  ;;  %v365_v9 = vsel %vm190_vm1, %v363_v42, %v364_v26  ;;  %v375_v54 = vrot.slane %v339_v16, 2  ;;  %v376_v55 = vrot.slane %v340_v21, 2 }
  0x3c   :  { %v368_v53 = vsel %vm190_vm1, %v366_v41, %v367_v50  ;;  %v371_v56 = vsel %vm190_vm1, %v369_v12, %v370_v1  ;;  %v378_v47 = vrot.slane %v341_v25, 2  ;;  %v379_v48 = vrot.slane %v342_v31, 2  ;;  %v1074_v25 = vld [vmem:[#allocation5_spill] sm:$0xff] }
  0x3d   :  { %v374_v0 = vsel %vm190_vm1, %v372_v51, %v373_v52  ;;  %v377_v2 = vsel %vm190_vm1, %v375_v54, %v376_v55  ;;  %v381_v4 = vrot.slane %v343_v20, 2  ;;  %v382_v11 = vrot.slane %v344_v13, 2 }
  0x3e   :  { %v384_v15 = vrot.slane %v345_v7, 2  ;;  %v380_v5 = vsel %vm190_vm1, %v378_v47, %v379_v48  ;;  %v385_v32 = vrot.slane %v346_v34, 2  ;;  %v395_v46 = vadd.f32 %v365_v9, %v319_v35  ;;  %v1075_v48 = vld [vmem:[#allocation2_spill] sm:$0xff] }
  0x3f   :  { %v396_v60 = vadd.f32 %v368_v53, %v320_v43  ;;  %v383_v63 = vsel %vm190_vm1, %v381_v4, %v382_v11  ;;  %v397_v3 = vadd.f32 %v371_v56, %v321_v44  ;;  %v398_v6 = vadd.f32 %v374_v0, %v322_v58  ;;  %v1073_v43 = vld [vmem:[#allocation3_spill] sm:$0xff] }
  0x40   :  { %v399_v37 = vadd.f32 %v377_v2, %v323_v59  ;;  %v386_v57 = vsel %vm190_vm1, %v384_v15, %v385_v32  ;;  %v400_v8 = vadd.f32 %v380_v5, %v324_v61  ;;  %v401_v10 = vadd.f32 %v383_v63, %v325_v62 }
  0x41   :  { %v407_v14 = vmul.f32 %v793_v49, %v723_v17  ;;  %v408_v16 = vmul.f32 %v793_v49, %v727_v19  ;;  %v409_v21 = vmul.f32 %v793_v49, %v737_v23  ;;  %v410_v35 = vmul.f32 %v793_v49, %v746_v27 }
  0x42   :  { %v426_v44 = vrot.slane %v1073_v43, %v767_v36  ;;  %v402_v58 = vadd.f32 %v386_v57, %v326_v45  ;;  %v411_v59 = vmul.f32 %v793_v49, %v750_v29  ;;  %v412_v61 = vmul.f32 %v793_v49, %v760_v33 }
  0x43   :  { %v413_v62 = vmul.f32 %v793_v49, %v773_v39  ;;  %v414_v31 = vmul.f32 %v793_v49, %v1074_v25  ;;  %v415_v20 = vadd.f32 %v407_v14, %v395_v46  ;;  %v416_v13 = vadd.f32 %v408_v16, %v396_v60 }
  0x44   :  { %v417_v7 = vadd.f32 %v409_v21, %v397_v3  ;;  %v418_v34 = vadd.f32 %v410_v35, %v398_v6  ;;  %v419_v42 = vadd.f32 %v411_v59, %v399_v37  ;;  %v420_v26 = vadd.f32 %v412_v61, %v400_v8 }
  0x45   :  { %v421_v36 = vadd.f32 %v413_v62, %v401_v10  ;;  %v427_v45 = vmul.f32 %v426_v44, %v723_v17  ;;  %v428_v41 = vmul.f32 %v426_v44, %v725_v18  ;;  %v429_v50 = vmul.f32 %v426_v44, %v727_v19 }
  0x46   :  { %v430_v12 = vmul.f32 %v426_v44, %v735_v22  ;;  %v431_v1 = vmul.f32 %v426_v44, %v737_v23  ;;  %v432_v51 = vmul.f32 %v426_v44, %v739_v24  ;;  %v433_v49 = vmul.f32 %v426_v44, %v746_v27 }
  0x47   :  { %v434_v52 = vmul.f32 %v426_v44, %v748_v28  ;;  %v435_v9 = vmul.f32 %v426_v44, %v750_v29  ;;  %v436_v53 = vmul.f32 %v426_v44, %v752_v30  ;;  %v437_v54 = vmul.f32 %v426_v44, %v760_v33 }
  0x48   :  { %v438_v55 = vmul.f32 %v426_v44, %v771_v38  ;;  %v439_v56 = vmul.f32 %v426_v44, %v773_v39  ;;  %v440_v0 = vmul.f32 %v426_v44, %v775_v40  ;;  %v441_v47 = vmul.f32 %v426_v44, %v1074_v25 }
  0x49   :  { %v1076_v2 = vunpack.c.l.bf16 %v1075_v48  ;;  %v459_v11 = vrot.slane %v427_v45, 1  ;;  %v460_v15 = vrot.slane %v428_v41, 1  ;;  %v462_v5 = vrot.slane %v429_v50, 1 }
  0x4a   :  { %v463_v32 = vrot.slane %v430_v12, 1  ;;  %v465_v46 = vrot.slane %v431_v1, 1  ;;  %v466_v60 = vrot.slane %v432_v51, 1  ;;  %v468_v63 = vrot.slane %v433_v49, 1  ;;  %v1077_v49 = vld [vmem:[#allocation4_spill] sm:$0xff] }
  0x4b   :  { %v442_v4 = vmul.f32 %v426_v44, %v1076_v2  ;;  %v469_v3 = vrot.slane %v434_v52, 1  ;;  %v422_v6 = vadd.f32 %v414_v31, %v402_v58  ;;  %v461_v37 = vsel %vm113_vm0, %v459_v11, %v460_v15 }
  0x4c   :  { %v471_v57 = vrot.slane %v435_v9, 1  ;;  %v472_v8 = vrot.slane %v436_v53, 1  ;;  %v464_v10 = vsel %vm113_vm0, %v462_v5, %v463_v32  ;;  %v467_v14 = vsel %vm113_vm0, %v465_v46, %v466_v60 }
  0x4d   :  { %v474_v16 = vrot.slane %v437_v54, 1  ;;  %v475_v21 = vrot.slane %v438_v55, 1  ;;  %v470_v35 = vsel %vm113_vm0, %v468_v63, %v469_v3  ;;  %v477_v44 = vrot.slane %v439_v56, 1 }
  0x4e   :  { %v478_v59 = vrot.slane %v440_v0, 1  ;;  %v480_v61 = vrot.slane %v441_v47, 1  ;;  %v473_v62 = vsel %vm113_vm0, %v471_v57, %v472_v8  ;;  %v481_v58 = vrot.slane %v442_v4, 1 }
  0x4f   :  { %v476_v45 = vsel %vm113_vm0, %v474_v16, %v475_v21  ;;  %v491_v41 = vadd.f32 %v461_v37, %v415_v20  ;;  %v492_v50 = vadd.f32 %v464_v10, %v416_v13  ;;  %v493_v1 = vadd.f32 %v467_v14, %v417_v7 }
  0x50   :  { %v479_v31 = vsel %vm113_vm0, %v477_v44, %v478_v59  ;;  %v482_v12 = vsel %vm113_vm0, %v480_v61, %v481_v58  ;;  %v494_v51 = vadd.f32 %v470_v35, %v418_v34  ;;  %v502_v52 = vrot.slane %v1073_v43, %v1077_v49 }
  0x51   :  { %v495_v9 = vadd.f32 %v473_v62, %v419_v42  ;;  %v496_v53 = vadd.f32 %v476_v45, %v420_v26  ;;  %v497_v54 = vadd.f32 %v479_v31, %v421_v36  ;;  %v498_v55 = vadd.f32 %v482_v12, %v422_v6  ;;  %v634_v6 = vld [vmem:[%s1059_s2] ss:$0 sm:$0xff] }
  0x52   :  { %v503_v56 = vmul.f32 %v502_v52, %v723_v17  ;;  %v504_v0 = vmul.f32 %v502_v52, %v725_v18  ;;  %v505_v47 = vmul.f32 %v502_v52, %v727_v19  ;;  %v506_v20 = vmul.f32 %v502_v52, %v735_v22 }
  0x53   :  { %v507_v13 = vmul.f32 %v502_v52, %v737_v23  ;;  %v508_v7 = vmul.f32 %v502_v52, %v739_v24  ;;  %v509_v34 = vmul.f32 %v502_v52, %v746_v27  ;;  %v510_v43 = vmul.f32 %v502_v52, %v748_v28 }
  0x54   :  { %v511_v42 = vmul.f32 %v502_v52, %v750_v29  ;;  %v512_v26 = vmul.f32 %v502_v52, %v752_v30  ;;  %v513_v17 = vmul.f32 %v502_v52, %v760_v33  ;;  %v514_v18 = vmul.f32 %v502_v52, %v771_v38 }
  0x55   :  { %v515_v19 = vmul.f32 %v502_v52, %v773_v39  ;;  %v516_v22 = vmul.f32 %v502_v52, %v775_v40  ;;  %v517_v23 = vmul.f32 %v502_v52, %v1074_v25  ;;  %v1078_v24 = vmov %v1076_v2 }
  0x56   :  { %v518_v36 = vmul.f32 %v502_v52, %v1078_v24  ;;  %v535_v27 = vrot.slane %v503_v56, 2  ;;  %v536_v2 = vrot.slane %v504_v0, 2  ;;  %v538_v28 = vrot.slane %v505_v47, 2 }
  0x57   :  { %v539_v4 = vrot.slane %v506_v20, 2  ;;  %v541_v29 = vrot.slane %v507_v13, 2  ;;  %v542_v11 = vrot.slane %v508_v7, 2  ;;  %v544_v30 = vrot.slane %v509_v34, 2 }
  0x58   :  { %v545_v15 = vrot.slane %v510_v43, 2  ;;  %v537_v33 = vsel %vm190_vm1, %v535_v27, %v536_v2  ;;  %v547_v39 = vrot.slane %v511_v42, 2  ;;  %v548_v5 = vrot.slane %v512_v26, 2 }
  0x59   :  { %v540_v38 = vsel %vm190_vm1, %v538_v28, %v539_v4  ;;  %v543_v40 = vsel %vm190_vm1, %v541_v29, %v542_v11  ;;  %v550_v48 = vrot.slane %v513_v17, 2  ;;  %v551_v32 = vrot.slane %v514_v18, 2 }
  0x5a   :  { %v546_v25 = vsel %vm190_vm1, %v544_v30, %v545_v15  ;;  %v549_v46 = vsel %vm190_vm1, %v547_v39, %v548_v5  ;;  %v553_v60 = vrot.slane %v515_v19, 2  ;;  %v554_v63 = vrot.slane %v516_v22, 2 }
  0x5b   :  { %v556_v3 = vrot.slane %v517_v23, 2  ;;  %v552_v37 = vsel %vm190_vm1, %v550_v48, %v551_v32  ;;  %v557_v57 = vrot.slane %v518_v36, 2  ;;  %v567_v8 = vadd.f32 %v537_v33, %v491_v41 }
  0x5c   :  { %v568_v10 = vadd.f32 %v540_v38, %v492_v50  ;;  %v555_v14 = vsel %vm190_vm1, %v553_v60, %v554_v63  ;;  %v569_v16 = vadd.f32 %v543_v40, %v493_v1  ;;  %v570_v21 = vadd.f32 %v546_v25, %v494_v51 }
  0x5d   :  { %v571_v35 = vadd.f32 %v549_v46, %v495_v9  ;;  %v558_v44 = vsel %vm190_vm1, %v556_v3, %v557_v57  ;;  %v572_v59 = vadd.f32 %v552_v37, %v496_v53  ;;  %v573_v61 = vadd.f32 %v555_v14, %v497_v54 }
  0x5e   :  { %v582_v62 = vadd.f32 %v634_v6, %v567_v8  ;;  %v574_v45 = vadd.f32 %v558_v44, %v498_v55  ;;  %v583_v58 = vadd.f32 %v634_v6, %v568_v10  ;;  %v584_v31 = vadd.f32 %v634_v6, %v569_v16 }
  0x5f   :  { %v585_v12 = vadd.f32 %v634_v6, %v570_v21  ;;  %v586_v49 = vadd.f32 %v634_v6, %v571_v35  ;;  %v587_v52 = vadd.f32 %v634_v6, %v572_v59  ;;  %v588_v56 = vadd.f32 %v634_v6, %v573_v61 }
  0x60   :  { %v589_v0 = vadd.f32 %v634_v6, %v574_v45  ;;  %vm590_vm2 = vcmp.gt.f32.partialorder %v582_v62, 0.0  ;;  %vm591_vm3 = vcmp.gt.f32.partialorder %v583_v58, 0.0  ;;  %vm592_vm4 = vcmp.gt.f32.partialorder %v584_v31, 0.0 }
  0x61   :  { %vm593_vm5 = vcmp.gt.f32.partialorder %v585_v12, 0.0  ;;  %vm594_vm6 = vcmp.gt.f32.partialorder %v586_v49, 0.0  ;;  %vm595_vm7 = vcmp.gt.f32.partialorder %v587_v52, 0.0  ;;  %v598_v41 = vmul.f32 0.01, %v582_v62 }
  0x62   :  { %vm596_vm8 = vcmp.gt.f32.partialorder %v588_v56, 0.0  ;;  %vm597_vm9 = vcmp.gt.f32.partialorder %v589_v0, 0.0  ;;  %v599_v50 = vmul.f32 0.01, %v583_v58  ;;  %v600_v1 = vmul.f32 0.01, %v584_v31 }
  0x63   :  { %v601_v51 = vmul.f32 0.01, %v585_v12  ;;  %v602_v9 = vmul.f32 0.01, %v586_v49  ;;  %v603_v53 = vmul.f32 0.01, %v587_v52  ;;  %v606_v54 = vsel %vm590_vm2, %v582_v62, %v598_v41 }
  0x64   :  { %v604_v55 = vmul.f32 0.01, %v588_v56  ;;  %v605_v47 = vmul.f32 0.01, %v589_v0  ;;  %v607_v20 = vsel %vm591_vm3, %v583_v58, %v599_v50  ;;  %v608_v13 = vsel %vm592_vm4, %v584_v31, %v600_v1 }
  0x65   :  { %v609_v7 = vsel %vm593_vm5, %v585_v12, %v601_v51  ;;  %v610_v34 = vsel %vm594_vm6, %v586_v49, %v602_v9  ;;  %v611_v43 = vsel %vm595_vm7, %v587_v52, %v603_v53  ;;  %v638_v42 = vpack.c.bf16 %v607_v20, %v606_v54 }
  0x66   :  { %v612_v26 = vsel %vm596_vm8, %v588_v56, %v604_v55  ;;  %v613_v17 = vsel %vm597_vm9, %v589_v0, %v605_v47  ;;  %v643_v18 = vpack.c.bf16 %v609_v7, %v608_v13  ;;  %v648_v19 = vpack.c.bf16 %v611_v43, %v610_v34 }
  0x67   :  { %639 = vst [vmem:[%s1060_s3] sm:$0xff] %v638_v42   ;;  %v653_v22 = vpack.c.bf16 %v613_v17, %v612_v26 }
  0x68   :  { %655 = vst [vmem:[%s1060_s3 + $0x8] sm:$0xff] %v643_v18   ;;  %656 = vst [vmem:[%s1060_s3 + $0x10] sm:$0xff] %v648_v19  }
  0x69   :  { %657 = vst [vmem:[%s1060_s3 + $0x18] sm:$0xff] %v653_v22  }

// kernel: wfcg_forward.13
= control target key start
LH: loop header
LB: loop body
LE: loop exit
PB: predicated region body
PF: predicated region fallthrough
CT: control target
= control target key end

     0   :  { %vm93_vm0 = vcmask 523264   ;;  %s809_s0 = inlined_call_operand.vmem [shape: bf16[64,128], index: 0, kind: input, shape index: {}]   ;;  %s810_s1 = inlined_call_operand.vmem [shape: f32[128,128], index: 1, kind: output, shape index: {}]  }
   0x1   :  { %v567_v0 = vld [vmem:[%s809_s0] sm:$0xff]   ;;  %v568_v1 = vld [vmem:[%s809_s0 + $0x8] sm:$0xff]   ;;  %v570_v2 = vld [vmem:[%s809_s0 + $0x18] sm:$0xff]  }
   0x2   :  { %77 = vxpose.xlu0.c.b16.start [1/4] (short) %v567_v0, 128  ;;  %v569_v3 = vld [vmem:[%s809_s0 + $0x10] sm:$0xff]   ;;  %534 = vmatprep.subr.bf16.mxu0 %v570_v2 }
   0x3   :  { %558 = vmatprep.subr.bf16.mxu1 %v570_v2  ;;  %535 = vmatpush3.bf16.msra.mxu0 %v570_v2 }
   0x4   :  { %536 = vmatprep.subr.bf16.mxu0 %v569_v3  ;;  %562 = vmatpush3.bf16.msra.mxu1 %v570_v2 }
   0x5   :  { %559 = vmatprep.subr.bf16.mxu1 %v569_v3 }
   0x6   :  { %78 = vxpose.xlu0.c.b16.cont [2/4] (short) %v568_v1, 128 }
   0x7   :  { %537 = vmatpush3.bf16.msra.mxu0 %v569_v3 }
   0x8   :  { %538 = vmatprep.subr.bf16.mxu0 %v568_v1  ;;  %563 = vmatpush3.bf16.msra.mxu1 %v569_v3 }
   0x9   :  { %560 = vmatprep.subr.bf16.mxu1 %v568_v1 }
   0xa   :  { %79 = vxpose.xlu0.c.b16.cont [3/4] (short) %v569_v3, 128 }
   0xb   :  { %539 = vmatpush3.bf16.msra.mxu0 %v568_v1 }
   0xc   :  { %540 = vmatprep.subr.bf16.mxu0 %v567_v0  ;;  %564 = vmatpush3.bf16.msra.mxu1 %v568_v1 }
   0xd   :  { %561 = vmatprep.subr.bf16.mxu1 %v567_v0 }
   0xe   :  { %80 = vxpose.xlu0.c.b16.end [4/4] (short) %v570_v2, 128 }
   0xf   :  { %541 = vmatpush3.bf16.msra.mxu0 %v567_v0 }
  0x10   :  { %565 = vmatpush3.bf16.msra.mxu1 %v567_v0 }
  0x64   :  { %v85_v4 = vpop.trf.xlu0 }
  0x65   :  { %542 = vmatprep.mubr.msk.bf16.mxu0 %vm93_vm0, %v85_v4 }
  0x68   :  { %v86_v5 = vpop.trf.xlu0 }
  0x69   :  { %543 = vmatmul.mubr.msk.bf16.vlgmr.msra.gmra.mxu0 %vm93_vm0, %v86_v5 }
  0x6c   :  { %v87_v6 = vpop.trf.xlu0 }
  0x6d   :  { %546 = vmatprep.mubr.msk.bf16.mxu0 %vm93_vm0, %v87_v6 }
  0x70   :  { %v88_v7 = vpop.trf.xlu0 }
  0x71   :  { %547 = vmatmul.mubr.msk.bf16.gmra.mxu0 %vm93_vm0, %v88_v7 }
  0x74   :  { %v89_v8 = vpop.trf.xlu0 }
  0x75   :  { %550 = vmatprep.mubr.msk.bf16.mxu1 %vm93_vm0, %v89_v8 }
  0x78   :  { %v90_v9 = vpop.trf.xlu0 }
  0x79   :  { %551 = vmatmul.mubr.msk.bf16.vlgmr.msra.gmra.mxu1 %vm93_vm0, %v90_v9 }
  0x7c   :  { %v91_v10 = vpop.trf.xlu0 }
  0x7d   :  { %554 = vmatprep.mubr.msk.bf16.mxu1 %vm93_vm0, %v91_v10 }
  0x80   :  { %v92_v11 = vpop.trf.xlu0 }
  0x81   :  { %555 = vmatmul.mubr.msk.bf16.gmra.mxu1 %vm93_vm0, %v92_v11 }
 0x129   :  { %v544_v12 = vpop.f32.mrf.mxu0 }
 0x12a   :  { %270 = vmax.xlane.f32.xlu1 %v544_v12 }
 0x12b   :  { %v152_v13 = vpop.f32.mrf.mxu0 }
 0x12d   :  { %v545_v14 = vpop.f32.mrf.mxu0 }
 0x12e   :  { %266 = vmax.xlane.f32.xlu1 %v152_v13 }
 0x12f   :  { %v155_v15 = vpop.f32.mrf.mxu0 }
 0x131   :  { %v548_v16 = vpop.f32.mrf.mxu0 }
 0x132   :  { %272 = vmax.xlane.f32.xlu1 %v545_v14 }
 0x133   :  { %v168_v17 = vpop.f32.mrf.mxu0 }
 0x134   :  { %274 = vmax.xlane.f32.xlu0 %v168_v17 }
 0x135   :  { %v549_v20 = vpop.f32.mrf.mxu0 }
 0x136   :  { %268 = vmax.xlane.f32.xlu1 %v155_v15 }
 0x137   :  { %v171_v23 = vpop.f32.mrf.mxu0 }
 0x139   :  { %v552_v18 = vpop.f32.mrf.mxu1 }
 0x13a   :  { %278 = vmax.xlane.f32.xlu1 %v548_v16 }
 0x13b   :  { %v184_v19 = vpop.f32.mrf.mxu1 }
 0x13d   :  { %v553_v21 = vpop.f32.mrf.mxu1 }
 0x13e   :  { %280 = vmax.xlane.f32.xlu1 %v549_v20 }
 0x13f   :  { %v187_v22 = vpop.f32.mrf.mxu1 }
 0x141   :  { %v556_v24 = vpop.f32.mrf.mxu1 }
 0x142   :  { %276 = vmax.xlane.f32.xlu1 %v171_v23 }
 0x143   :  { %v200_v25 = vpop.f32.mrf.mxu1 }
 0x145   :  { %v557_v26 = vpop.f32.mrf.mxu1 }
 0x146   :  { %286 = vmax.xlane.f32.xlu1 %v552_v18 }
 0x147   :  { %v203_v27 = vpop.f32.mrf.mxu1 }
 0x148   :  { %292 = vmax.xlane.f32.xlu0 %v203_v27 }
 0x14a   :  { %282 = vmax.xlane.f32.xlu1 %v184_v19 }
 0x14c   :  { %296 = vmax.xlane.f32.xlu0 %v557_v26 }
 0x14e   :  { %284 = vmax.xlane.f32.xlu1 %v187_v22 }
 0x152   :  { %288 = vmax.xlane.f32.xlu1 %v553_v21 }
 0x156   :  { %290 = vmax.xlane.f32.xlu1 %v200_v25 }
 0x15a   :  { %294 = vmax.xlane.f32.xlu1 %v556_v24 }
 0x1b3   :  { %v271_v28 = vpop.xlane.xlu1 %270 }
 0x1b4   :  { %v300_v32 = vsub.f32 %v271_v28, %v544_v12 }
 0x1b7   :  { %v267_v29 = vpop.xlane.xlu1 %266 }
 0x1b8   :  { %v298_v30 = vsub.f32 %v267_v29, %v152_v13 }
 0x1ba   :  { %314 = vmax.xlane.f32.xlu1 %v298_v30 }
 0x1bb   :  { %v273_v31 = vpop.xlane.xlu1 %272 }
 0x1bc   :  { %v301_v38 = vsub.f32 %v273_v31, %v545_v14 }
 0x1bd   :  { %v275_v33 = vpop.xlane.xlu0 %274 }
 0x1be   :  { %318 = vmax.xlane.f32.xlu1 %v300_v32  ;;  %v302_v35 = vsub.f32 %v275_v33, %v168_v17 }
 0x1bf   :  { %v269_v34 = vpop.xlane.xlu1 %268 }
 0x1c0   :  { %v299_v36 = vsub.f32 %v269_v34, %v155_v15 }
 0x1c2   :  { %316 = vmax.xlane.f32.xlu0 %v299_v36  ;;  %322 = vmax.xlane.f32.xlu1 %v302_v35 }
 0x1c3   :  { %v279_v37 = vpop.xlane.xlu1 %278 }
 0x1c4   :  { %v304_v39 = vsub.f32 %v279_v37, %v548_v16 }
 0x1c6   :  { %320 = vmax.xlane.f32.xlu0 %v301_v38  ;;  %326 = vmax.xlane.f32.xlu1 %v304_v39 }
 0x1c7   :  { %v281_v40 = vpop.xlane.xlu1 %280 }
 0x1c8   :  { %v305_v44 = vsub.f32 %v281_v40, %v549_v20 }
 0x1cb   :  { %v277_v41 = vpop.xlane.xlu1 %276 }
 0x1cc   :  { %v303_v42 = vsub.f32 %v277_v41, %v171_v23 }
 0x1ce   :  { %324 = vmax.xlane.f32.xlu0 %v303_v42 }
 0x1cf   :  { %v287_v43 = vpop.xlane.xlu1 %286 }
 0x1d0   :  { %v668_v48 = vsub.f32 %v287_v43, %v552_v18 }
 0x1d1   :  { %v293_v50 = vpop.xlane.xlu0 %292 }
 0x1d2   :  { %328 = vmax.xlane.f32.xlu0 %v305_v44  ;;  %v677_v54 = vsub.f32 %v293_v50, %v203_v27 }
 0x1d3   :  { %v283_v45 = vpop.xlane.xlu1 %282 }
 0x1d4   :  { %v665_v46 = vsub.f32 %v283_v45, %v184_v19 }
 0x1d5   :  { %v297_v56 = vpop.xlane.xlu0 %296 }
 0x1d6   :  { %330 = vmax.xlane.f32.xlu1 %v665_v46  ;;  %v683_v58 = vsub.f32 %v297_v56, %v557_v26 }
 0x1d7   :  { %v285_v47 = vpop.xlane.xlu1 %284 }
 0x1d8   :  { %v670_v49 = vsub.f32 %v285_v47, %v187_v22 }
 0x1da   :  { %334 = vmax.xlane.f32.xlu1 %v668_v48  ;;  %332 = vmax.xlane.f32.xlu0 %v670_v49 }
 0x1db   :  { %v289_v51 = vpop.xlane.xlu1 %288 }
 0x1dc   :  { %v674_v52 = vsub.f32 %v289_v51, %v553_v21 }
 0x1de   :  { %336 = vmax.xlane.f32.xlu0 %v674_v52 }
 0x1df   :  { %v291_v53 = vpop.xlane.xlu1 %290 }
 0x1e0   :  { %v679_v55 = vsub.f32 %v291_v53, %v200_v25 }
 0x1e2   :  { %340 = vmax.xlane.f32.xlu0 %v677_v54  ;;  %338 = vmax.xlane.f32.xlu1 %v679_v55 }
 0x1e3   :  { %v295_v57 = vpop.xlane.xlu1 %294 }
 0x1e4   :  { %v685_v59 = vsub.f32 %v295_v57, %v556_v24 }
 0x1e6   :  { %344 = vmax.xlane.f32.xlu0 %v683_v58  ;;  %342 = vmax.xlane.f32.xlu1 %v685_v59 }
 0x243   :  { %v315_v60 = vpop.xlane.xlu1 %314 }
 0x244   :  { %v346_v61 = vsub.f32 %v298_v30, %v315_v60 }
 0x246   :  { %v362_v1 = vmul.f32 1.442695, %v346_v61 }
 0x247   :  { %v319_v62 = vpop.xlane.xlu1 %318 }
 0x248   :  { %v348_v63 = vsub.f32 %v300_v32, %v319_v62 }
 0x24a   :  { %v366_v0 = vmul.f32 1.442695, %v348_v63 }
 0x24b   :  { %v317_v2 = vpop.xlane.xlu0 %316  ;;  %v323_v3 = vpop.xlane.xlu1 %322 }
 0x24c   :  { %571 = vpow2.f32 %v366_v0  ;;  %v347_v4 = vsub.f32 %v299_v36, %v317_v2  ;;  %v350_v10 = vsub.f32 %v302_v35, %v323_v3 }
 0x24d   :  { %573 = vpow2.f32 %v362_v1 }
 0x24e   :  { %v364_v5 = vmul.f32 1.442695, %v347_v4  ;;  %v370_v13 = vmul.f32 1.442695, %v350_v10 }
 0x24f   :  { %v321_v6 = vpop.xlane.xlu0 %320  ;;  %v327_v7 = vpop.xlane.xlu1 %326 }
 0x250   :  { %575 = vpow2.f32 %v364_v5  ;;  %v349_v8 = vsub.f32 %v301_v38, %v321_v6  ;;  %v352_v9 = vsub.f32 %v304_v39, %v327_v7 }
 0x252   :  { %v368_v11 = vmul.f32 1.442695, %v349_v8  ;;  %v374_v12 = vmul.f32 1.442695, %v352_v9 }
 0x254   :  { %577 = vpow2.f32 %v368_v11 }
 0x255   :  { %579 = vpow2.f32 %v374_v12 }
 0x256   :  { %581 = vpow2.f32 %v370_v13 }
 0x257   :  { %v325_v14 = vpop.xlane.xlu0 %324 }
 0x258   :  { %v351_v15 = vsub.f32 %v303_v42, %v325_v14 }
 0x259   :  { %v689_v16 = vpop.eup %571 }
 0x25a   :  { %v372_v17 = vmul.f32 1.442695, %v351_v15  ;;  %398 = vadd.xlane.f32.xlu1 %v689_v16  ;;  %v692_v19 = vpop.eup %573 }
 0x25b   :  { %v329_v18 = vpop.xlane.xlu0 %328 }
 0x25c   :  { %583 = vpow2.f32 %v372_v17  ;;  %v353_v20 = vsub.f32 %v305_v44, %v329_v18 }
 0x25d   :  { %v694_v21 = vpop.eup %575 }
 0x25e   :  { %v376_v22 = vmul.f32 1.442695, %v353_v20  ;;  %396 = vadd.xlane.f32.xlu0 %v694_v21  ;;  %394 = vadd.xlane.f32.xlu1 %v692_v19 }
 0x25f   :  { %v331_v23 = vpop.xlane.xlu1 %330 }
 0x260   :  { %585 = vpow2.f32 %v376_v22  ;;  %v354_v30 = vsub.f32 %v665_v46, %v331_v23 }
 0x261   :  { %v698_v24 = vpop.eup %577 }
 0x262   :  { %v700_v25 = vpop.eup %579  ;;  %400 = vadd.xlane.f32.xlu0 %v698_v24  ;;  %v378_v37 = vmul.f32 1.442695, %v354_v30 }
 0x263   :  { %406 = vadd.xlane.f32.xlu1 %v700_v25  ;;  %v333_v26 = vpop.xlane.xlu0 %332  ;;  %v335_v27 = vpop.xlane.xlu1 %334 }
 0x264   :  { %v355_v28 = vsub.f32 %v670_v49, %v333_v26  ;;  %v356_v29 = vsub.f32 %v668_v48, %v335_v27  ;;  %v707_v31 = vpop.eup %581 }
 0x266   :  { %v380_v32 = vmul.f32 1.442695, %v355_v28  ;;  %v382_v33 = vmul.f32 1.442695, %v356_v29 }
 0x267   :  { %402 = vadd.xlane.f32.xlu1 %v707_v31  ;;  %v337_v34 = vpop.xlane.xlu0 %336 }
 0x268   :  { %587 = vpow2.f32 %v380_v32  ;;  %v357_v35 = vsub.f32 %v674_v52, %v337_v34 }
 0x269   :  { %v711_v36 = vpop.eup %583  ;;  %589 = vpow2.f32 %v382_v33 }
 0x26a   :  { %v384_v38 = vmul.f32 1.442695, %v357_v35  ;;  %404 = vadd.xlane.f32.xlu0 %v711_v36 }
 0x26b   :  { %v341_v39 = vpop.xlane.xlu0 %340  ;;  %v339_v40 = vpop.xlane.xlu1 %338 }
 0x26c   :  { %591 = vpow2.f32 %v384_v38  ;;  %v359_v41 = vsub.f32 %v677_v54, %v341_v39  ;;  %v358_v48 = vsub.f32 %v679_v55, %v339_v40 }
 0x26d   :  { %v715_v42 = vpop.eup %585  ;;  %593 = vpow2.f32 %v378_v37 }
 0x26e   :  { %v388_v43 = vmul.f32 1.442695, %v359_v41  ;;  %408 = vadd.xlane.f32.xlu0 %v715_v42  ;;  %v386_v52 = vmul.f32 1.442695, %v358_v48 }
 0x26f   :  { %v345_v44 = vpop.xlane.xlu0 %344  ;;  %v343_v45 = vpop.xlane.xlu1 %342 }
 0x270   :  { %595 = vpow2.f32 %v388_v43  ;;  %v361_v46 = vsub.f32 %v683_v58, %v345_v44  ;;  %v360_v47 = vsub.f32 %v685_v59, %v343_v45 }
 0x272   :  { %v392_v49 = vmul.f32 1.442695, %v361_v46  ;;  %v390_v50 = vmul.f32 1.442695, %v360_v47 }
 0x274   :  { %597 = vpow2.f32 %v392_v49 }
 0x275   :  { %v721_v51 = vpop.eup %587  ;;  %599 = vpow2.f32 %v390_v50 }
 0x276   :  { %v723_v53 = vpop.eup %589  ;;  %412 = vadd.xlane.f32.xlu0 %v721_v51  ;;  %601 = vpow2.f32 %v386_v52 }
 0x277   :  { %414 = vadd.xlane.f32.xlu1 %v723_v53 }
 0x279   :  { %v727_v54 = vpop.eup %591 }
 0x27a   :  { %v729_v56 = vpop.eup %593  ;;  %416 = vadd.xlane.f32.xlu0 %v727_v54 }
 0x27b   :  { %410 = vadd.xlane.f32.xlu1 %v729_v56 }
 0x27d   :  { %v733_v55 = vpop.eup %595 }
 0x27e   :  { %420 = vadd.xlane.f32.xlu0 %v733_v55 }
 0x281   :  { %v736_v57 = vpop.eup %597 }
 0x282   :  { %v738_v58 = vpop.eup %599  ;;  %424 = vadd.xlane.f32.xlu0 %v736_v57 }
 0x283   :  { %422 = vadd.xlane.f32.xlu1 %v738_v58  ;;  %v742_v59 = vpop.eup %601 }
 0x287   :  { %418 = vadd.xlane.f32.xlu1 %v742_v59 }
 0x2e3   :  { %v399_v60 = vpop.xlane.xlu1 %398 }
 0x2e7   :  { %v395_v61 = vpop.xlane.xlu1 %394  ;;  %v397_v62 = vpop.xlane.xlu0 %396 }
 0x2e8   :  { %603 = vrcp.f32 %v395_v61 }
 0x2e9   :  { %605 = vrcp.f32 %v397_v62 }
 0x2ea   :  { %607 = vrcp.f32 %v399_v60 }
 0x2eb   :  { %v401_v0 = vpop.xlane.xlu0 %400 }
 0x2ec   :  { %v407_v63 = vpop.xlane.xlu1 %406  ;;  %609 = vrcp.f32 %v401_v0 }
 0x2f0   :  { %v403_v1 = vpop.xlane.xlu1 %402 }
 0x2f1   :  { %611 = vrcp.f32 %v403_v1 }
 0x2f3   :  { %v405_v5 = vpop.xlane.xlu0 %404 }
 0x2f4   :  { %613 = vrcp.f32 %v405_v5 }
 0x2f5   :  { %v604_v2 = vpop.eup %603  ;;  %615 = vrcp.f32 %v407_v63 }
 0x2f6   :  { %v427_v3 = vmul.f32 %v604_v2, %v692_v19  ;;  %v606_v4 = vpop.eup %605 }
 0x2f7   :  { %v429_v6 = vmul.f32 %v606_v4, %v694_v21  ;;  %v608_v7 = vpop.eup %607  ;;  %v409_v10 = vpop.xlane.xlu0 %408 }
 0x2f8   :  { %458 = vxpose.xlu1.b32.start [1/16] %v427_v3, 128  ;;  %v431_v8 = vmul.f32 %v608_v7, %v689_v16  ;;  %617 = vrcp.f32 %v409_v10 }
 0x2f9   :  { %v610_v9 = vpop.eup %609 }
 0x2fa   :  { %v433_v12 = vmul.f32 %v610_v9, %v698_v24 }
 0x2fc   :  { %459 = vxpose.xlu1.b32.cont [2/16] %v429_v6, 128 }
 0x2fe   :  { %v612_v13 = vpop.eup %611 }
 0x2ff   :  { %v435_v15 = vmul.f32 %v612_v13, %v707_v31  ;;  %v413_v18 = vpop.xlane.xlu0 %412 }
 0x300   :  { %v415_v11 = vpop.xlane.xlu1 %414  ;;  %460 = vxpose.xlu1.b32.cont [3/16] %v431_v8, 128 }
 0x301   :  { %v614_v17 = vpop.eup %613 }
 0x302   :  { %v437_v19 = vmul.f32 %v614_v17, %v711_v36  ;;  %v616_v16 = vpop.eup %615 }
 0x303   :  { %v439_v21 = vmul.f32 %v616_v16, %v700_v25  ;;  %v417_v23 = vpop.xlane.xlu0 %416 }
 0x304   :  { %v411_v14 = vpop.xlane.xlu1 %410  ;;  %461 = vxpose.xlu1.b32.cont [4/16] %v433_v12, 128 }
 0x305   :  { %619 = vrcp.f32 %v411_v14  ;;  %v618_v22 = vpop.eup %617 }
 0x306   :  { %621 = vrcp.f32 %v413_v18  ;;  %v441_v24 = vmul.f32 %v618_v22, %v715_v42 }
 0x307   :  { %623 = vrcp.f32 %v415_v11  ;;  %v421_v30 = vpop.xlane.xlu0 %420 }
 0x308   :  { %462 = vxpose.xlu1.b32.cont [5/16] %v435_v15, 128  ;;  %625 = vrcp.f32 %v417_v23 }
 0x30b   :  { %v425_v34 = vpop.xlane.xlu0 %424 }
 0x30c   :  { %463 = vxpose.xlu1.b32.cont [6/16] %v437_v19, 128  ;;  %v423_v20 = vpop.xlane.xlu1 %422 }
 0x310   :  { %464 = vxpose.xlu1.b32.cont [7/16] %v439_v21, 128  ;;  %v419_v27 = vpop.xlane.xlu1 %418 }
 0x311   :  { %627 = vrcp.f32 %v419_v27 }
 0x312   :  { %v620_v26 = vpop.eup %619  ;;  %629 = vrcp.f32 %v421_v30 }
 0x313   :  { %v443_v28 = vmul.f32 %v620_v26, %v729_v56  ;;  %v622_v29 = vpop.eup %621  ;;  %631 = vrcp.f32 %v423_v20 }
 0x314   :  { %465 = vxpose.xlu1.b32.cont [8/16] %v441_v24, 128  ;;  %v445_v31 = vmul.f32 %v622_v29, %v721_v51  ;;  %v624_v32 = vpop.eup %623  ;;  %633 = vrcp.f32 %v425_v34 }
 0x315   :  { %v447_v25 = vmul.f32 %v624_v32, %v723_v53  ;;  %v626_v33 = vpop.eup %625 }
 0x316   :  { %v449_v35 = vmul.f32 %v626_v33, %v727_v54 }
 0x318   :  { %466 = vxpose.xlu1.b32.cont [9/16] %v443_v28, 128 }
 0x31c   :  { %467 = vxpose.xlu1.b32.cont [10/16] %v445_v31, 128 }
 0x31e   :  { %v628_v36 = vpop.eup %627 }
 0x31f   :  { %v451_v37 = vmul.f32 %v628_v36, %v742_v59  ;;  %v630_v38 = vpop.eup %629 }
 0x320   :  { %468 = vxpose.xlu1.b32.cont [11/16] %v447_v25, 128  ;;  %v453_v39 = vmul.f32 %v630_v38, %v733_v55  ;;  %v632_v40 = vpop.eup %631 }
 0x321   :  { %v455_v41 = vmul.f32 %v632_v40, %v738_v58  ;;  %v634_v42 = vpop.eup %633 }
 0x322   :  { %v457_v43 = vmul.f32 %v634_v42, %v736_v57 }
 0x324   :  { %469 = vxpose.xlu1.b32.cont [12/16] %v449_v35, 128 }
 0x328   :  { %470 = vxpose.xlu1.b32.cont [13/16] %v451_v37, 128 }
 0x32c   :  { %471 = vxpose.xlu1.b32.cont [14/16] %v453_v39, 128 }
 0x330   :  { %472 = vxpose.xlu1.b32.cont [15/16] %v455_v41, 128 }
 0x334   :  { %473 = vxpose.xlu1.b32.end [16/16] %v457_v43, 128 }
 0x374   :  { %v474_v44 = vpop.trf.xlu1 }
 0x375   :  { %490 = vst [vmem:[%s810_s1] sm:$0xff] %v474_v44 }
 0x378   :  { %v475_v45 = vpop.trf.xlu1 }
 0x379   :  { %491 = vst [vmem:[%s810_s1 + $0x8] sm:$0xff] %v475_v45 }
 0x37c   :  { %v476_v46 = vpop.trf.xlu1 }
 0x37d   :  { %492 = vst [vmem:[%s810_s1 + $0x10] sm:$0xff] %v476_v46 }
 0x380   :  { %v477_v47 = vpop.trf.xlu1 }
 0x381   :  { %493 = vst [vmem:[%s810_s1 + $0x18] sm:$0xff] %v477_v47 }
 0x384   :  { %v478_v48 = vpop.trf.xlu1 }
 0x385   :  { %494 = vst [vmem:[%s810_s1 + $0x20] sm:$0xff] %v478_v48 }
 0x388   :  { %v479_v49 = vpop.trf.xlu1 }
 0x389   :  { %495 = vst [vmem:[%s810_s1 + $0x28] sm:$0xff] %v479_v49 }
 0x38c   :  { %v480_v50 = vpop.trf.xlu1 }
 0x38d   :  { %496 = vst [vmem:[%s810_s1 + $0x30] sm:$0xff] %v480_v50 }
 0x390   :  { %v481_v51 = vpop.trf.xlu1 }
 0x391   :  { %497 = vst [vmem:[%s810_s1 + $0x38] sm:$0xff] %v481_v51 }
 0x394   :  { %v482_v52 = vpop.trf.xlu1 }
 0x395   :  { %498 = vst [vmem:[%s810_s1 + $0x40] sm:$0xff] %v482_v52 }
 0x398   :  { %v483_v53 = vpop.trf.xlu1 }
 0x399   :  { %499 = vst [vmem:[%s810_s1 + $0x48] sm:$0xff] %v483_v53 }
 0x39c   :  { %v484_v54 = vpop.trf.xlu1 }
 0x39d   :  { %500 = vst [vmem:[%s810_s1 + $0x50] sm:$0xff] %v484_v54 }
 0x3a0   :  { %v485_v56 = vpop.trf.xlu1 }
 0x3a1   :  { %501 = vst [vmem:[%s810_s1 + $0x58] sm:$0xff] %v485_v56 }
 0x3a4   :  { %v486_v55 = vpop.trf.xlu1 }
 0x3a5   :  { %502 = vst [vmem:[%s810_s1 + $0x60] sm:$0xff] %v486_v55 }
 0x3a8   :  { %v487_v57 = vpop.trf.xlu1 }
 0x3a9   :  { %503 = vst [vmem:[%s810_s1 + $0x68] sm:$0xff] %v487_v57 }
 0x3ac   :  { %v488_v58 = vpop.trf.xlu1 }
 0x3ad   :  { %504 = vst [vmem:[%s810_s1 + $0x70] sm:$0xff] %v488_v58 }
 0x3b0   :  { %v489_v59 = vpop.trf.xlu1 }
 0x3b1   :  { %505 = vst [vmem:[%s810_s1 + $0x78] sm:$0xff] %v489_v59 }

// kernel: wfcg_forward.14
= control target key start
LH: loop header
LB: loop body
LE: loop exit
PB: predicated region body
PF: predicated region fallthrough
CT: control target
= control target key end

     0   :  { %vm405_vm1 = vcmask 519168   ;;  %s684_s2 = inlined_call_operand.vmem [shape: bf16[128,128], index: 2, kind: input, shape index: {}]   ;;  %s685_s1 = inlined_call_operand.vmem [shape: bf16[64,128], index: 1, kind: input, shape index: {}]   ;;  %s686_s3 = inlined_call_operand.vmem [shape: bf16[128,64], index: 3, kind: input, shape index: {}]   ;;  %s687_s0 = inlined_call_operand.<no memory space> [shape: f32[1], index: 0, kind: input, shape index: {}]   ;;  %s688_s4 = inlined_call_operand.vmem [shape: f32[1,64], index: 4, kind: input, shape index: {}]   ;;  %s689_s5 = inlined_call_operand.vmem [shape: bf16[64,64], index: 5, kind: output, shape index: {}]  }
   0x1   :  { %v527_v0 = vld [vmem:[%s684_s2 + $0x38] sm:$0xff]   ;;  %v528_v1 = vld [vmem:[%s684_s2 + $0x30] sm:$0xff]   ;;  %v529_v2 = vld [vmem:[%s684_s2 + $0x28] sm:$0xff]   ;;  %v192_v22 = vstv %s687_s0 }
   0x2   :  { %479 = vmatprep.subr.bf16.mxu0 %v527_v0  ;;  %v530_v3 = vld [vmem:[%s684_s2 + $0x20] sm:$0xff]   ;;  %v539_v5 = vld [vmem:[%s686_s3 + $0x38] sm:$0xff]   ;;  %v540_v6 = vld [vmem:[%s686_s3 + $0x30] sm:$0xff]  }
   0x3   :  { %480 = vmatpush3.bf16.msra.mxu0 %v527_v0  ;;  %v596_v4 = vld [vmem:[%s685_s1] sm:$0xff]   ;;  %v531_v7 = vld [vmem:[%s684_s2 + $0x18] sm:$0xff]   ;;  %503 = vmatprep.subr.bf16.mxu1 %v539_v5  ;;  %v541_v8 = vld [vmem:[%s686_s3 + $0x28] sm:$0xff]  }
   0x4   :  { %481 = vmatprep.subr.bf16.mxu0 %v528_v1  ;;  %495 = vmatprep.mubr.bf16.mxu0 %v596_v4  ;;  %v532_v9 = vld [vmem:[%s684_s2 + $0x10] sm:$0xff]   ;;  %v542_v10 = vld [vmem:[%s686_s3 + $0x20] sm:$0xff]   ;;  %v533_v11 = vld [vmem:[%s684_s2 + $0x8] sm:$0xff]   ;;  %v183_v25 = vunpack.c.l.bf16 %v596_v4  ;;  %v184_v26 = vunpack.c.h.bf16 %v596_v4 }
   0x5   :  { %504 = vmatpush3.bf16.msra.mxu1 %v539_v5  ;;  %v543_v12 = vld [vmem:[%s686_s3 + $0x18] sm:$0xff]   ;;  %v534_v13 = vld [vmem:[%s684_s2] sm:$0xff]   ;;  %v24_v14 = vld [vmem:[%s685_s1 + $0x8] sm:$0xff]  }
   0x6   :  { %505 = vmatprep.subr.bf16.mxu1 %v540_v6  ;;  %v26_v15 = vld [vmem:[%s685_s1 + $0x10] sm:$0xff]   ;;  %v28_v16 = vld [vmem:[%s685_s1 + $0x18] sm:$0xff]   ;;  %v545_v18 = vld [vmem:[%s686_s3 + $0x8] sm:$0xff]   ;;  %v186_v24 = vunpack.c.h.bf16 %v24_v14  ;;  %v185_v29 = vunpack.c.l.bf16 %v24_v14 }
   0x7   :  { %482 = vmatpush3.bf16.msra.mxu0 %v528_v1  ;;  %v544_v17 = vld [vmem:[%s686_s3 + $0x10] sm:$0xff]   ;;  %v546_v19 = vld [vmem:[%s686_s3] sm:$0xff]   ;;  %v190_v41 = vunpack.c.h.bf16 %v28_v16  ;;  %v187_v43 = vunpack.c.l.bf16 %v26_v15  ;;  %v188_v46 = vunpack.c.h.bf16 %v26_v15  ;;  %v189_v47 = vunpack.c.l.bf16 %v28_v16 }
   0x8   :  { %483 = vmatprep.subr.bf16.mxu0 %v529_v2  ;;  %v430_v57 = vld [vmem:[%s688_s4] ss:$0 sm:$0xff] }
   0x9   :  { %506 = vmatpush3.bf16.msra.mxu1 %v540_v6 }
   0xa   :  { %507 = vmatprep.subr.bf16.mxu1 %v541_v8 }
   0xb   :  { %484 = vmatpush3.bf16.msra.mxu0 %v529_v2 }
   0xc   :  { %485 = vmatprep.subr.bf16.mxu0 %v530_v3 }
   0xd   :  { %508 = vmatpush3.bf16.msra.mxu1 %v541_v8 }
   0xe   :  { %509 = vmatprep.subr.bf16.mxu1 %v542_v10 }
   0xf   :  { %486 = vmatpush3.bf16.msra.mxu0 %v530_v3 }
  0x10   :  { %487 = vmatprep.subr.bf16.mxu0 %v531_v7 }
  0x11   :  { %510 = vmatpush3.bf16.msra.mxu1 %v542_v10 }
  0x12   :  { %511 = vmatprep.subr.bf16.mxu1 %v543_v12 }
  0x13   :  { %488 = vmatpush3.bf16.msra.mxu0 %v531_v7 }
  0x14   :  { %489 = vmatprep.subr.bf16.mxu0 %v532_v9 }
  0x15   :  { %512 = vmatpush3.bf16.msra.mxu1 %v543_v12 }
  0x16   :  { %513 = vmatprep.subr.bf16.mxu1 %v544_v17 }
  0x17   :  { %490 = vmatpush3.bf16.msra.mxu0 %v532_v9 }
  0x18   :  { %491 = vmatprep.subr.bf16.mxu0 %v533_v11 }
  0x19   :  { %514 = vmatpush3.bf16.msra.mxu1 %v544_v17 }
  0x1a   :  { %515 = vmatprep.subr.bf16.mxu1 %v545_v18 }
  0x1b   :  { %492 = vmatpush3.bf16.msra.mxu0 %v533_v11 }
  0x1c   :  { %493 = vmatprep.subr.bf16.mxu0 %v534_v13 }
  0x1d   :  { %516 = vmatpush3.bf16.msra.mxu1 %v545_v18 }
  0x1e   :  { %517 = vmatprep.subr.bf16.mxu1 %v546_v19 }
  0x1f   :  { %494 = vmatpush3.bf16.msra.mxu0 %v534_v13 }
  0x21   :  { %518 = vmatpush3.bf16.msra.mxu1 %v546_v19 }
  0x22   :  { %496 = vmatmul.mubr.bf16.vlgmr.msra.gmra.mxu0 %v24_v14 }
  0x23   :  { %499 = vmatprep.mubr.bf16.mxu0 %v26_v15 }
  0x2a   :  { %500 = vmatmul.mubr.bf16.gmra.mxu0 %v28_v16 }
  0xe2   :  { %v497_v20 = vpop.f32.mrf.mxu0 }
  0xe3   :  { %v195_v30 = vmul.f32 %v497_v20, %v192_v22 }
  0xe4   :  { %v152_v21 = vpop.f32.mrf.mxu0 }
  0xe5   :  { %v193_v27 = vmul.f32 %v192_v22, %v152_v21  ;;  %v203_v37 = vadd.f32 %v195_v30, %v185_v29 }
  0xe6   :  { %v498_v23 = vpop.f32.mrf.mxu0 }
  0xe7   :  { %v196_v28 = vmul.f32 %v498_v23, %v192_v22  ;;  %v201_v35 = vadd.f32 %v193_v27, %v183_v25 }
  0xe8   :  { %v155_v31 = vpop.f32.mrf.mxu0 }
  0xe9   :  { %v194_v32 = vmul.f32 %v192_v22, %v155_v31  ;;  %v204_v33 = vadd.f32 %v196_v28, %v186_v24 }
  0xea   :  { %v501_v34 = vpop.f32.mrf.mxu0 }
  0xeb   :  { %v202_v36 = vadd.f32 %v194_v32, %v184_v26  ;;  %v210_v42 = vpack.c.bf16 %v204_v33, %v203_v37  ;;  %v199_v48 = vmul.f32 %v501_v34, %v192_v22 }
  0xec   :  { %v168_v38 = vpop.f32.mrf.mxu0 }
  0xed   :  { %v209_v39 = vpack.c.bf16 %v202_v36, %v201_v35  ;;  %v197_v44 = vmul.f32 %v192_v22, %v168_v38  ;;  %v207_v54 = vadd.f32 %v199_v48, %v189_v47 }
  0xee   :  { %v502_v40 = vpop.f32.mrf.mxu0 }
  0xef   :  { %v200_v45 = vmul.f32 %v502_v40, %v192_v22  ;;  %519 = vmatprep.mubr.bf16.mxu1 %v209_v39  ;;  %v205_v52 = vadd.f32 %v197_v44, %v187_v43 }
  0xf0   :  { %v171_v49 = vpop.f32.mrf.mxu0  ;;  %520 = vmatmul.mubr.bf16.vlgmr.msra.gmra.mxu1 %v210_v42 }
  0xf1   :  { %v198_v50 = vmul.f32 %v192_v22, %v171_v49  ;;  %v208_v51 = vadd.f32 %v200_v45, %v190_v41 }
  0xf3   :  { %v206_v53 = vadd.f32 %v198_v50, %v188_v46  ;;  %v212_v56 = vpack.c.bf16 %v208_v51, %v207_v54 }
  0xf5   :  { %v211_v55 = vpack.c.bf16 %v206_v53, %v205_v52 }
  0xf7   :  { %523 = vmatprep.mubr.bf16.mxu1 %v211_v55 }
  0xf8   :  { %524 = vmatmul.mubr.bf16.gmra.mxu1 %v212_v56 }
 0x1b0   :  { %v521_v58 = vpop.f32.mrf.mxu1 }
 0x1b1   :  { %v327_v59 = vadd.f32 %v521_v58, %v430_v57 }
 0x1b2   :  { %v318_v60 = vpop.f32.mrf.mxu1 }
 0x1b3   :  { %vm351_vm0 = vcmp.gt.f32.partialorder %v327_v59, 0.0  ;;  %v359_v61 = vmul.f32 0.01, %v327_v59  ;;  %v319_v62 = vadd.f32 %v430_v57, %v318_v60 }
 0x1b4   :  { %v522_v63 = vpop.f32.mrf.mxu1 }
 0x1b5   :  { %v367_v0 = vsel %vm351_vm0, %v327_v59, %v359_v61  ;;  %vm349_vm2 = vcmp.gt.f32.partialorder %v319_v62, 0.0  ;;  %v357_v1 = vmul.f32 0.01, %v319_v62  ;;  %v330_v2 = vadd.f32 %v522_v63, %v430_v57 }
 0x1b6   :  { %v449_v3 = vpack.c.bf16 %v367_v0, %v367_v0  ;;  %v321_v4 = vpop.f32.mrf.mxu1 }
 0x1b7   :  { %v365_v5 = vsel %vm349_vm2, %v319_v62, %v357_v1  ;;  %vm352_vm3 = vcmp.gt.f32.partialorder %v330_v2, 0.0  ;;  %v360_v6 = vmul.f32 0.01, %v330_v2  ;;  %v322_v7 = vadd.f32 %v430_v57, %v321_v4 }
 0x1b8   :  { %408 = vst.msk [vmem:[%s689_s5 + $0x8] sm:$0xf] %vm405_vm1, %v449_v3  ;;  %v447_v8 = vpack.c.bf16 %v365_v5, %v365_v5  ;;  %v525_v9 = vpop.f32.mrf.mxu1 }
 0x1b9   :  { %v368_v10 = vsel %vm352_vm3, %v330_v2, %v360_v6  ;;  %vm350_vm4 = vcmp.gt.f32.partialorder %v322_v7, 0.0  ;;  %v358_v11 = vmul.f32 0.01, %v322_v7  ;;  %v343_v12 = vadd.f32 %v525_v9, %v430_v57 }
 0x1ba   :  { %406 = vst.msk [vmem:[%s689_s5] sm:$0xf] %vm405_vm1, %v447_v8  ;;  %v450_v13 = vpack.c.bf16 %v368_v10, %v368_v10  ;;  %v334_v14 = vpop.f32.mrf.mxu1 }
 0x1bb   :  { %v366_v15 = vsel %vm350_vm4, %v322_v7, %v358_v11  ;;  %vm355_vm5 = vcmp.gt.f32.partialorder %v343_v12, 0.0  ;;  %v363_v16 = vmul.f32 0.01, %v343_v12  ;;  %v335_v17 = vadd.f32 %v430_v57, %v334_v14 }
 0x1bc   :  { %409 = vst.msk [vmem:[%s689_s5 + $0xc] sm:$0xf] %vm405_vm1, %v450_v13  ;;  %v448_v18 = vpack.c.bf16 %v366_v15, %v366_v15  ;;  %v526_v19 = vpop.f32.mrf.mxu1 }
 0x1bd   :  { %v371_v20 = vsel %vm355_vm5, %v343_v12, %v363_v16  ;;  %vm353_vm6 = vcmp.gt.f32.partialorder %v335_v17, 0.0  ;;  %v361_v21 = vmul.f32 0.01, %v335_v17  ;;  %v346_v22 = vadd.f32 %v526_v19, %v430_v57 }
 0x1be   :  { %407 = vst.msk [vmem:[%s689_s5 + $0x4] sm:$0xf] %vm405_vm1, %v448_v18  ;;  %v453_v23 = vpack.c.bf16 %v371_v20, %v371_v20  ;;  %v337_v24 = vpop.f32.mrf.mxu1 }
 0x1bf   :  { %v369_v25 = vsel %vm353_vm6, %v335_v17, %v361_v21  ;;  %vm356_vm7 = vcmp.gt.f32.partialorder %v346_v22, 0.0  ;;  %v364_v26 = vmul.f32 0.01, %v346_v22  ;;  %v338_v27 = vadd.f32 %v430_v57, %v337_v24 }
 0x1c0   :  { %412 = vst.msk [vmem:[%s689_s5 + $0x18] sm:$0xf] %vm405_vm1, %v453_v23  ;;  %v451_v28 = vpack.c.bf16 %v369_v25, %v369_v25 }
 0x1c1   :  { %v372_v29 = vsel %vm356_vm7, %v346_v22, %v364_v26  ;;  %vm354_vm8 = vcmp.gt.f32.partialorder %v338_v27, 0.0  ;;  %v362_v30 = vmul.f32 0.01, %v338_v27 }
 0x1c2   :  { %410 = vst.msk [vmem:[%s689_s5 + $0x10] sm:$0xf] %vm405_vm1, %v451_v28  ;;  %v454_v31 = vpack.c.bf16 %v372_v29, %v372_v29 }
 0x1c3   :  { %v370_v32 = vsel %vm354_vm8, %v338_v27, %v362_v30 }
 0x1c4   :  { %413 = vst.msk [vmem:[%s689_s5 + $0x1c] sm:$0xf] %vm405_vm1, %v454_v31  ;;  %v452_v33 = vpack.c.bf16 %v370_v32, %v370_v32 }
 0x1c6   :  { %411 = vst.msk [vmem:[%s689_s5 + $0x14] sm:$0xf] %vm405_vm1, %v452_v33 }

// kernel: wfcg_forward.17
= control target key start
LH: loop header
LB: loop body
LE: loop exit
PB: predicated region body
PF: predicated region fallthrough
CT: control target
= control target key end

     0   :  { %vm67_vm0 = vcmask 130048   ;;  %vm252_vm6 = vcmask 523264   ;;  %s649_s1 = inlined_call_operand.vmem [shape: bf16[16,64], index: 1, kind: input, shape index: {}]   ;;  %s650_s0 = inlined_call_operand.vmem [shape: bf16[64,16], index: 0, kind: input, shape index: {}]   ;;  %s651_s4 = inlined_call_operand.vmem [shape: bf16[64,128], index: 4, kind: input, shape index: {}]   ;;  %s652_s3 = inlined_call_operand.vmem [shape: f32[1,64], index: 3, kind: input, shape index: {}]   ;;  %s653_s2 = inlined_call_operand.vmem [shape: bf16[64,64], index: 2, kind: input, shape index: {}]   ;;  %s654_s5 = inlined_call_operand.vmem [shape: f32[1,128], index: 5, kind: input, shape index: {}]   ;;  %s655_s6 = inlined_call_operand.vmem [shape: f32[64,128], index: 6, kind: output, shape index: {}]  }
   0x1   :  { %v499_v0 = vld [vmem:[%s649_s1] sm:$0xff]   ;;  %v501_v2 = vld [vmem:[%s650_s0 + $0x8] sm:$0xff]   ;;  %v502_v3 = vld [vmem:[%s650_s0 + $0x10] sm:$0xff]  }
   0x2   :  { %v500_v1 = vld [vmem:[%s650_s0] sm:$0xff]   ;;  %465 = vmatprep.subr.bf16.mxu0 %v499_v0  ;;  %v503_v4 = vld [vmem:[%s650_s0 + $0x18] sm:$0xff]   ;;  %v505_v6 = vld [vmem:[%s651_s4 + $0x10] sm:$0xff]  }
   0x3   :  { %466 = vmatpush3.bf16.msra.mxu0 %v499_v0  ;;  %467 = vmatprep.mubr.msk.bf16.mxu0 %vm67_vm0, %v500_v1  ;;  %v504_v5 = vld [vmem:[%s651_s4 + $0x18] sm:$0xff]   ;;  %v506_v7 = vld [vmem:[%s651_s4 + $0x8] sm:$0xff]   ;;  %v507_v8 = vld [vmem:[%s651_s4] sm:$0xff]  }
   0x4   :  { %475 = vmatprep.subr.bf16.mxu0 %v504_v5  ;;  %491 = vmatprep.subr.bf16.mxu1 %v504_v5  ;;  %v414_v9 = vld [vmem:[%s652_s3] ss:$0 sm:$0xff]  ;;  %v449_v10 = vld [vmem:[%s653_s2 + $0x8] sm:$0xff]   ;;  %v451_v31 = vld [vmem:[%s653_s2 + $0x18] sm:$0xff]  }
   0x5   :  { %495 = vmatpush3.bf16.msra.mxu1 %v504_v5  ;;  %v434_v11 = vld [vmem:[%s653_s2] sm:$0xff]   ;;  %v439_v14 = vunpack.c.l.bf16 %v449_v10  ;;  %v440_v20 = vunpack.c.h.bf16 %v449_v10  ;;  %v450_v35 = vld [vmem:[%s653_s2 + $0x10] sm:$0xff]   ;;  %v447_v42 = vunpack.c.l.bf16 %v451_v31  ;;  %v448_v46 = vunpack.c.h.bf16 %v451_v31 }
   0x6   :  { %468 = vmatmul.mubr.msk.bf16.vlgmr.msra.gmra.mxu0 %vm67_vm0, %v501_v2  ;;  %492 = vmatprep.subr.bf16.mxu1 %v505_v6  ;;  %v435_v16 = vunpack.c.l.bf16 %v434_v11  ;;  %v436_v21 = vunpack.c.h.bf16 %v434_v11  ;;  %v443_v47 = vunpack.c.l.bf16 %v450_v35  ;;  %v444_v58 = vunpack.c.h.bf16 %v450_v35 }
   0x7   :  { %471 = vmatprep.mubr.msk.bf16.mxu0 %vm67_vm0, %v502_v3  ;;  %476 = vmatpush3.bf16.msra.mxu0 %v504_v5  ;;  %v187_v25 = vmul.f32 0.05, %v439_v14  ;;  %v188_v32 = vmul.f32 0.05, %v440_v20  ;;  %v192_v63 = vmul.f32 0.05, %v448_v46 }
   0x8   :  { %477 = vmatprep.subr.bf16.mxu0 %v505_v6  ;;  %v185_v26 = vmul.f32 0.05, %v435_v16  ;;  %v186_v33 = vmul.f32 0.05, %v436_v21  ;;  %v189_v1 = vmul.f32 0.05, %v443_v47 }
   0x9   :  { %496 = vmatpush3.bf16.msra.mxu1 %v505_v6 }
   0xa   :  { %493 = vmatprep.subr.bf16.mxu1 %v506_v7 }
   0xb   :  { %478 = vmatpush3.bf16.msra.mxu0 %v505_v6 }
   0xc   :  { %479 = vmatprep.subr.bf16.mxu0 %v506_v7 }
   0xd   :  { %497 = vmatpush3.bf16.msra.mxu1 %v506_v7 }
   0xe   :  { %472 = vmatmul.mubr.msk.bf16.gmra.mxu0 %vm67_vm0, %v503_v4  ;;  %494 = vmatprep.subr.bf16.mxu1 %v507_v8 }
   0xf   :  { %480 = vmatpush3.bf16.msra.mxu0 %v506_v7  ;;  %v190_v7 = vmul.f32 0.05, %v444_v58 }
  0x10   :  { %481 = vmatprep.subr.bf16.mxu0 %v507_v8 }
  0x11   :  { %498 = vmatpush3.bf16.msra.mxu1 %v507_v8 }
  0x13   :  { %482 = vmatpush3.bf16.msra.mxu0 %v507_v8  ;;  %v191_v8 = vmul.f32 0.05, %v447_v42 }
  0xc6   :  { %v469_v12 = vpop.f32.mrf.mxu0 }
  0xc7   :  { %v123_v13 = vadd.f32 %v469_v12, %v414_v9 }
  0xc8   :  { %v114_v15 = vpop.f32.mrf.mxu0 }
  0xc9   :  { %vm147_vm1 = vcmp.gt.f32.partialorder %v123_v13, 0.0  ;;  %v155_v17 = vmul.f32 0.01, %v123_v13  ;;  %v115_v18 = vadd.f32 %v414_v9, %v114_v15 }
  0xca   :  { %v470_v19 = vpop.f32.mrf.mxu0 }
  0xcb   :  { %vm145_vm2 = vcmp.gt.f32.partialorder %v115_v18, 0.0  ;;  %v153_v22 = vmul.f32 0.01, %v115_v18  ;;  %v126_v23 = vadd.f32 %v470_v19, %v414_v9  ;;  %v163_v24 = vsel %vm147_vm1, %v123_v13, %v155_v17 }
  0xcc   :  { %v117_v27 = vpop.f32.mrf.mxu0  ;;  %v195_v39 = vmul.f32 0.95, %v163_v24 }
  0xcd   :  { %v161_v28 = vsel %vm145_vm2, %v115_v18, %v153_v22  ;;  %vm148_vm3 = vcmp.gt.f32.partialorder %v126_v23, 0.0  ;;  %v156_v29 = vmul.f32 0.01, %v126_v23  ;;  %v118_v30 = vadd.f32 %v414_v9, %v117_v27  ;;  %v424_v18 = vld [vmem:[%s654_s5] ss:$0 sm:$0xff] }
  0xce   :  { %v473_v34 = vpop.f32.mrf.mxu0  ;;  %v193_v40 = vmul.f32 0.95, %v161_v28  ;;  %v203_v54 = vadd.f32 %v195_v39, %v187_v25 }
  0xcf   :  { %v164_v36 = vsel %vm148_vm3, %v126_v23, %v156_v29  ;;  %vm146_vm4 = vcmp.gt.f32.partialorder %v118_v30, 0.0  ;;  %v154_v37 = vmul.f32 0.01, %v118_v30  ;;  %v139_v38 = vadd.f32 %v473_v34, %v414_v9 }
  0xd0   :  { %v196_v41 = vmul.f32 0.95, %v164_v36  ;;  %v130_v43 = vpop.f32.mrf.mxu0  ;;  %v201_v55 = vadd.f32 %v193_v40, %v185_v26 }
  0xd1   :  { %v162_v44 = vsel %vm146_vm4, %v118_v30, %v154_v37  ;;  %v131_v45 = vadd.f32 %v414_v9, %v130_v43  ;;  %vm151_vm5 = vcmp.gt.f32.partialorder %v139_v38, 0.0  ;;  %v159_v49 = vmul.f32 0.01, %v139_v38 }
  0xd2   :  { %v194_v48 = vmul.f32 0.95, %v162_v44  ;;  %v474_v50 = vpop.f32.mrf.mxu0  ;;  %v204_v51 = vadd.f32 %v196_v41, %v188_v32 }
  0xd3   :  { %vm149_vm7 = vcmp.gt.f32.partialorder %v131_v45, 0.0  ;;  %v157_v52 = vmul.f32 0.01, %v131_v45  ;;  %v142_v53 = vadd.f32 %v474_v50, %v414_v9  ;;  %v167_v62 = vsel %vm151_vm5, %v139_v38, %v159_v49 }
  0xd4   :  { %v202_v56 = vadd.f32 %v194_v48, %v186_v33  ;;  %v133_v57 = vpop.f32.mrf.mxu0  ;;  %v210_v2 = vpack.c.bf16 %v204_v51, %v203_v54  ;;  %v199_v10 = vmul.f32 0.95, %v167_v62 }
  0xd5   :  { %v165_v59 = vsel %vm149_vm7, %v131_v45, %v157_v52  ;;  %vm152_vm8 = vcmp.gt.f32.partialorder %v142_v53, 0.0  ;;  %v160_v60 = vmul.f32 0.01, %v142_v53  ;;  %v134_v61 = vadd.f32 %v414_v9, %v133_v57 }
  0xd6   :  { %v209_v0 = vpack.c.bf16 %v202_v56, %v201_v55  ;;  %v197_v5 = vmul.f32 0.95, %v165_v59  ;;  %v207_v15 = vadd.f32 %v199_v10, %v191_v8 }
  0xd7   :  { %v168_v3 = vsel %vm152_vm8, %v142_v53, %v160_v60  ;;  %vm150_vm9 = vcmp.gt.f32.partialorder %v134_v61, 0.0  ;;  %v158_v4 = vmul.f32 0.01, %v134_v61 }
  0xd8   :  { %v200_v6 = vmul.f32 0.95, %v168_v3  ;;  %483 = vmatprep.mubr.msk.bf16.mxu0 %vm252_vm6, %v209_v0  ;;  %v205_v13 = vadd.f32 %v197_v5, %v189_v1 }
  0xd9   :  { %v166_v11 = vsel %vm150_vm9, %v134_v61, %v158_v4  ;;  %484 = vmatmul.mubr.msk.bf16.vlgmr.msra.gmra.mxu0 %vm252_vm6, %v210_v2 }
  0xda   :  { %v198_v9 = vmul.f32 0.95, %v166_v11  ;;  %v208_v12 = vadd.f32 %v200_v6, %v192_v63 }
  0xdc   :  { %v206_v14 = vadd.f32 %v198_v9, %v190_v7  ;;  %v212_v17 = vpack.c.bf16 %v208_v12, %v207_v15 }
  0xde   :  { %v211_v16 = vpack.c.bf16 %v206_v14, %v205_v13 }
  0xe0   :  { %487 = vmatprep.mubr.msk.bf16.mxu1 %vm252_vm6, %v211_v16 }
  0xe1   :  { %488 = vmatmul.mubr.msk.bf16.vlgmr.msra.gmra.mxu1 %vm252_vm6, %v212_v17 }
 0x199   :  { %v485_v19 = vpop.f32.mrf.mxu0 }
 0x19a   :  { %v308_v20 = vadd.f32 %v485_v19, %v424_v18 }
 0x19b   :  { %v299_v21 = vpop.f32.mrf.mxu0 }
 0x19c   :  { %v300_v22 = vadd.f32 %v424_v18, %v299_v21  ;;  %334 = vmax.xlane.f32.xlu1 %v308_v20 }
 0x19d   :  { %v486_v23 = vpop.f32.mrf.mxu0 }
 0x19e   :  { %v311_v24 = vadd.f32 %v486_v23, %v424_v18  ;;  %330 = vmax.xlane.f32.xlu0 %v300_v22 }
 0x19f   :  { %v302_v25 = vpop.f32.mrf.mxu0 }
 0x1a0   :  { %v303_v26 = vadd.f32 %v424_v18, %v302_v25  ;;  %336 = vmax.xlane.f32.xlu1 %v311_v24 }
 0x1a1   :  { %v489_v27 = vpop.f32.mrf.mxu1 }
 0x1a2   :  { %332 = vmax.xlane.f32.xlu0 %v303_v26  ;;  %v324_v32 = vadd.f32 %v489_v27, %v424_v18 }
 0x1a3   :  { %v315_v28 = vpop.f32.mrf.mxu1 }
 0x1a4   :  { %v316_v29 = vadd.f32 %v424_v18, %v315_v28 }
 0x1a5   :  { %v490_v30 = vpop.f32.mrf.mxu1 }
 0x1a6   :  { %338 = vmax.xlane.f32.xlu0 %v316_v29  ;;  %v327_v34 = vadd.f32 %v490_v30, %v424_v18 }
 0x1a7   :  { %v318_v31 = vpop.f32.mrf.mxu1 }
 0x1a8   :  { %v319_v33 = vadd.f32 %v424_v18, %v318_v31 }
 0x1aa   :  { %340 = vmax.xlane.f32.xlu1 %v319_v33  ;;  %342 = vmax.xlane.f32.xlu0 %v324_v32 }
 0x1ae   :  { %344 = vmax.xlane.f32.xlu1 %v327_v34 }
 0x225   :  { %v335_v35 = vpop.xlane.xlu1 %334 }
 0x226   :  { %v348_v36 = vsub.f32 %v308_v20, %v335_v35 }
 0x227   :  { %v331_v37 = vpop.xlane.xlu0 %330 }
 0x228   :  { %v358_v38 = vmul.f32 1.442695, %v348_v36  ;;  %v346_v39 = vsub.f32 %v300_v22, %v331_v37 }
 0x229   :  { %v337_v40 = vpop.xlane.xlu1 %336 }
 0x22a   :  { %508 = vpow2.f32 %v358_v38  ;;  %v354_v41 = vmul.f32 1.442695, %v346_v39  ;;  %v349_v42 = vsub.f32 %v311_v24, %v337_v40 }
 0x22b   :  { %v333_v43 = vpop.xlane.xlu0 %332 }
 0x22c   :  { %v360_v44 = vmul.f32 1.442695, %v349_v42  ;;  %v347_v45 = vsub.f32 %v303_v26, %v333_v43  ;;  %510 = vpow2.f32 %v354_v41 }
 0x22e   :  { %512 = vpow2.f32 %v360_v44  ;;  %v356_v46 = vmul.f32 1.442695, %v347_v45 }
 0x22f   :  { %v339_v47 = vpop.xlane.xlu0 %338 }
 0x230   :  { %v350_v48 = vsub.f32 %v316_v29, %v339_v47  ;;  %514 = vpow2.f32 %v356_v46 }
 0x232   :  { %v362_v49 = vmul.f32 1.442695, %v350_v48 }
 0x233   :  { %v341_v50 = vpop.xlane.xlu1 %340  ;;  %v343_v51 = vpop.xlane.xlu0 %342 }
 0x234   :  { %516 = vpow2.f32 %v362_v49  ;;  %v351_v52 = vsub.f32 %v319_v33, %v341_v50  ;;  %v352_v53 = vsub.f32 %v324_v32, %v343_v51 }
 0x236   :  { %v364_v54 = vmul.f32 1.442695, %v351_v52  ;;  %v366_v55 = vmul.f32 1.442695, %v352_v53 }
 0x237   :  { %v509_v56 = vpop.eup %508  ;;  %v345_v57 = vpop.xlane.xlu1 %344 }
 0x238   :  { %518 = vpow2.f32 %v364_v54  ;;  %v353_v58 = vsub.f32 %v327_v34, %v345_v57  ;;  %374 = vadd.xlane.f32.xlu0 %v509_v56 }
 0x239   :  { %520 = vpow2.f32 %v366_v55  ;;  %v511_v59 = vpop.eup %510 }
 0x23a   :  { %v368_v60 = vmul.f32 1.442695, %v353_v58 }
 0x23b   :  { %v513_v61 = vpop.eup %512 }
 0x23c   :  { %522 = vpow2.f32 %v368_v60  ;;  %376 = vadd.xlane.f32.xlu1 %v513_v61  ;;  %370 = vadd.xlane.f32.xlu0 %v511_v59 }
 0x23d   :  { %v515_v62 = vpop.eup %514 }
 0x240   :  { %372 = vadd.xlane.f32.xlu1 %v515_v62 }
 0x241   :  { %v517_v63 = vpop.eup %516 }
 0x242   :  { %378 = vadd.xlane.f32.xlu0 %v517_v63 }
 0x245   :  { %v519_v0 = vpop.eup %518 }
 0x246   :  { %v521_v1 = vpop.eup %520  ;;  %380 = vadd.xlane.f32.xlu1 %v519_v0 }
 0x247   :  { %382 = vadd.xlane.f32.xlu0 %v521_v1 }
 0x249   :  { %v523_v2 = vpop.eup %522 }
 0x24a   :  { %384 = vadd.xlane.f32.xlu1 %v523_v2 }
 0x2c1   :  { %v375_v3 = vpop.xlane.xlu0 %374 }
 0x2c2   :  { %524 = vrcp.f32 %v375_v3 }
 0x2c5   :  { %v377_v4 = vpop.xlane.xlu1 %376  ;;  %v371_v5 = vpop.xlane.xlu0 %370 }
 0x2c6   :  { %526 = vrcp.f32 %v377_v4 }
 0x2c7   :  { %528 = vrcp.f32 %v371_v5 }
 0x2c9   :  { %v373_v6 = vpop.xlane.xlu1 %372 }
 0x2ca   :  { %530 = vrcp.f32 %v373_v6 }
 0x2cb   :  { %v379_v7 = vpop.xlane.xlu0 %378 }
 0x2cc   :  { %532 = vrcp.f32 %v379_v7 }
 0x2cf   :  { %v525_v8 = vpop.eup %524  ;;  %v381_v10 = vpop.xlane.xlu1 %380 }
 0x2d0   :  { %v391_v11 = vmul.f32 %v525_v8, %v509_v56  ;;  %534 = vrcp.f32 %v381_v10  ;;  %v383_v9 = vpop.xlane.xlu0 %382 }
 0x2d1   :  { %536 = vrcp.f32 %v383_v9 }
 0x2d2   :  { %404 = vst [vmem:[%s655_s6 + $0x10] sm:$0xff] %v391_v11 }
 0x2d3   :  { %v527_v12 = vpop.eup %526  ;;  %v385_v13 = vpop.xlane.xlu1 %384 }
 0x2d4   :  { %v529_v14 = vpop.eup %528  ;;  %v393_v15 = vmul.f32 %v527_v12, %v513_v61  ;;  %538 = vrcp.f32 %v385_v13 }
 0x2d5   :  { %v387_v16 = vmul.f32 %v529_v14, %v511_v59 }
 0x2d6   :  { %405 = vst [vmem:[%s655_s6 + $0x18] sm:$0xff] %v393_v15 }
 0x2d7   :  { %v531_v17 = vpop.eup %530  ;;  %402 = vst [vmem:[%s655_s6] sm:$0xff] %v387_v16 }
 0x2d8   :  { %v389_v18 = vmul.f32 %v531_v17, %v515_v62 }
 0x2d9   :  { %v533_v19 = vpop.eup %532 }
 0x2da   :  { %403 = vst [vmem:[%s655_s6 + $0x8] sm:$0xff] %v389_v18  ;;  %v395_v20 = vmul.f32 %v533_v19, %v517_v63 }
 0x2dc   :  { %406 = vst [vmem:[%s655_s6 + $0x20] sm:$0xff] %v395_v20 }
 0x2dd   :  { %v535_v21 = vpop.eup %534 }
 0x2de   :  { %v537_v22 = vpop.eup %536  ;;  %v397_v23 = vmul.f32 %v535_v21, %v519_v0 }
 0x2df   :  { %v399_v24 = vmul.f32 %v537_v22, %v521_v1 }
 0x2e0   :  { %407 = vst [vmem:[%s655_s6 + $0x28] sm:$0xff] %v397_v23 }
 0x2e1   :  { %v539_v25 = vpop.eup %538  ;;  %408 = vst [vmem:[%s655_s6 + $0x30] sm:$0xff] %v399_v24 }
 0x2e2   :  { %v401_v26 = vmul.f32 %v539_v25, %v523_v2 }
 0x2e4   :  { %409 = vst [vmem:[%s655_s6 + $0x38] sm:$0xff] %v401_v26 }

// kernel: wfcg_forward.15
= control target key start
LH: loop header
LB: loop body
LE: loop exit
PB: predicated region body
PF: predicated region fallthrough
CT: control target
= control target key end

     0   :  { %v67_v11 = vlaneseq  ;;  %vm123_vm0 = vcmask 1046528   ;;  %vm200_vm1 = vcmask 1045504   ;;  %vm277_vm2 = vcmask 1044480   ;;  %s2824_s0 = inlined_call_operand.vmem [shape: bf16[12,12,64], index: 0, kind: input, shape index: {}]   ;;  %s2825_s1 = inlined_call_operand.vmem [shape: f32[5,5,64], index: 1, kind: input, shape index: {}]   ;;  %s2826_s2 = inlined_call_operand.vmem [shape: f32[1,1,64], index: 2, kind: input, shape index: {}]   ;;  %s2827_s3 = inlined_call_operand.vmem [shape: bf16[8,8,64], index: 3, kind: output, shape index: {}]  }
   0x1   :  { %v14_v0 = vld [vmem:[%s2824_s0] ss:$8 sps:$4 sm:$0xff]   ;;  %v15_v1 = vld [vmem:[%s2824_s0 + $0x4] sm:$0x3]  ;;  %v17_v2 = vld [vmem:[%s2824_s0 + $0xc] sm:$0x3] }
   0x2   :  { %v18_v3 = vld [vmem:[%s2824_s0 + $0x10] ss:$8 sps:$4 sm:$0xff]   ;;  %v19_v4 = vld [vmem:[%s2824_s0 + $0x14] sm:$0x3]  ;;  %v21_v5 = vld [vmem:[%s2824_s0 + $0x1c] sm:$0x3]  ;;  %v1802_v10 = vunpack.c.l.bf16 %v14_v0  ;;  %v1810_v14 = vunpack.c.l.bf16 %v15_v1  ;;  %v1812_v15 = vunpack.c.h.bf16 %v14_v0  ;;  %v1814_v16 = vunpack.c.l.bf16 %v17_v2 }
   0x3   :  { %v22_v6 = vld [vmem:[%s2824_s0 + $0x20] ss:$8 sps:$4 sm:$0xff]   ;;  %v23_v7 = vld [vmem:[%s2824_s0 + $0x24] sm:$0x3]  ;;  %v25_v8 = vld [vmem:[%s2824_s0 + $0x2c] sm:$0x3]  ;;  %v1816_v17 = vunpack.c.l.bf16 %v18_v3  ;;  %v1827_v21 = vunpack.c.l.bf16 %v19_v4  ;;  %v1829_v22 = vunpack.c.h.bf16 %v18_v3  ;;  %v1831_v23 = vunpack.c.l.bf16 %v21_v5 }
   0x4   :  { %v26_v9 = vld [vmem:[%s2824_s0 + $0x30] ss:$8 sps:$4 sm:$0xff]   ;;  %v27_v12 = vld [vmem:[%s2824_s0 + $0x34] sm:$0x3]  ;;  %v29_v13 = vld [vmem:[%s2824_s0 + $0x3c] sm:$0x3]  ;;  %v1833_v24 = vunpack.c.l.bf16 %v22_v6  ;;  %v1835_v25 = vunpack.c.l.bf16 %v23_v7  ;;  %v1837_v26 = vunpack.c.h.bf16 %v22_v6  ;;  %v1839_v27 = vunpack.c.l.bf16 %v25_v8 }
   0x5   :  { %v30_v18 = vld [vmem:[%s2824_s0 + $0x40] ss:$8 sps:$4 sm:$0xff]   ;;  %v31_v19 = vld [vmem:[%s2824_s0 + $0x44] sm:$0x3]  ;;  %v33_v20 = vld [vmem:[%s2824_s0 + $0x4c] sm:$0x3]  ;;  %v1841_v28 = vunpack.c.l.bf16 %v26_v9  ;;  %v1849_v31 = vunpack.c.l.bf16 %v27_v12  ;;  %v1851_v32 = vunpack.c.h.bf16 %v26_v9  ;;  %v1853_v33 = vunpack.c.l.bf16 %v29_v13 }
   0x6   :  { %v34_v29 = vld [vmem:[%s2824_s0 + $0x50] ss:$8 sps:$4 sm:$0xff]   ;;  %v35_v30 = vld [vmem:[%s2824_s0 + $0x54] sm:$0x3]  ;;  %v68_v34 = vshrl.u32 %v67_v11, 7  ;;  %v1855_v35 = vunpack.c.l.bf16 %v30_v18  ;;  %v1857_v36 = vunpack.c.l.bf16 %v31_v19  ;;  %v1859_v37 = vunpack.c.h.bf16 %v30_v18 }
   0x7   :  { %v1861_v38 = vunpack.c.l.bf16 %v33_v20  ;;  %v62_v39 = vld [vmem:[%s2825_s1] sm:$0x1f]  ;;  %v1869_v40 = vld [vmem:[%s2825_s1 + $0x8] sm:$0x1f]  ;;  %v1879_v45 = vunpack.c.l.bf16 %v34_v29  ;;  %v1881_v46 = vunpack.c.l.bf16 %v35_v30  ;;  %v1883_v47 = vunpack.c.h.bf16 %v34_v29 }
   0x8   :  { %2848 = vst [vmem:[#allocation2_spill] sm:$0xff] %v1859_v37  ;;  %2850 = vst [vmem:[#allocation4_spill] sm:$0xff] %v1869_v40  ;;  %v1871_v41 = vsub.s32 0, %v68_v34  ;;  %v1873_v42 = vsub.s32 1, %v68_v34  ;;  %v1875_v43 = vsub.s32 2, %v68_v34  ;;  %v1877_v44 = vsub.s32 3, %v68_v34 }
   0x9   :  { %2849 = vst [vmem:[#allocation3_spill] sm:$0xff] %v1861_v38  ;;  %2855 = vst [vmem:[#allocation9_spill] sm:$0xff] %v1879_v45  ;;  %v1885_v48 = vsub.s32 4, %v68_v34  ;;  %vm354_vm3 = vcmask 1043456   ;;  %vm1738_vm4 = vcmask 519168  }
   0xa   :  { %2851 = vst [vmem:[#allocation5_spill] sm:$0xff] %v1871_v41  ;;  %2852 = vst [vmem:[#allocation6_spill] sm:$0xff] %v1873_v42  ;;  %v70_v49 = vrot.slane %v62_v39, %v1871_v41  ;;  %v90_v50 = vrot.slane %v62_v39, %v1873_v42  ;;  %v1890_v51 = vrot.slane %v62_v39, %v1875_v43 }
   0xb   :  { %2853 = vst [vmem:[#allocation7_spill] sm:$0xff] %v1875_v43  ;;  %2854 = vst [vmem:[#allocation8_spill] sm:$0xff] %v1877_v44  ;;  %v1893_v52 = vrot.slane %v62_v39, %v1877_v44  ;;  %v1896_v53 = vrot.slane %v62_v39, %v1885_v48  ;;  %v1900_v54 = vrot.slane %v1869_v40, %v1871_v41 }
   0xc   :  { %2856 = vst [vmem:[#allocation10_spill] sm:$0xff] %v1881_v46  ;;  %2857 = vst [vmem:[#allocation11_spill] sm:$0xff] %v1883_v47  ;;  %v1904_v55 = vrot.slane %v1869_v40, %v1873_v42  ;;  %v1908_v56 = vrot.slane %v1869_v40, %v1875_v43  ;;  %v71_v57 = vmul.f32 %v70_v49, %v1802_v10 }
   0xd   :  { %2858 = vst [vmem:[#allocation12_spill] sm:$0xff] %v1885_v48  ;;  %v72_v58 = vmul.f32 %v70_v49, %v1812_v15  ;;  %v73_v59 = vmul.f32 %v70_v49, %v1816_v17  ;;  %v74_v60 = vmul.f32 %v70_v49, %v1829_v22  ;;  %v75_v61 = vmul.f32 %v70_v49, %v1833_v24 }
   0xe   :  { %v76_v62 = vmul.f32 %v70_v49, %v1837_v26  ;;  %v77_v63 = vmul.f32 %v70_v49, %v1841_v28  ;;  %v78_v0 = vmul.f32 %v70_v49, %v1851_v32  ;;  %v91_v1 = vmul.f32 %v90_v50, %v1802_v10 }
   0xf   :  { %v92_v2 = vmul.f32 %v90_v50, %v1810_v14  ;;  %v93_v3 = vmul.f32 %v90_v50, %v1812_v15  ;;  %v94_v4 = vmul.f32 %v90_v50, %v1814_v16  ;;  %v95_v5 = vmul.f32 %v90_v50, %v1816_v17 }
  0x10   :  { %v96_v6 = vmul.f32 %v90_v50, %v1827_v21  ;;  %v97_v7 = vmul.f32 %v90_v50, %v1829_v22  ;;  %v98_v8 = vmul.f32 %v90_v50, %v1831_v23  ;;  %v99_v9 = vmul.f32 %v90_v50, %v1833_v24 }
  0x11   :  { %v100_v11 = vmul.f32 %v90_v50, %v1835_v25  ;;  %v101_v12 = vmul.f32 %v90_v50, %v1837_v26  ;;  %v102_v13 = vmul.f32 %v90_v50, %v1839_v27  ;;  %v103_v18 = vmul.f32 %v90_v50, %v1841_v28 }
  0x12   :  { %v104_v19 = vmul.f32 %v90_v50, %v1849_v31  ;;  %v105_v20 = vmul.f32 %v90_v50, %v1851_v32  ;;  %v106_v29 = vmul.f32 %v90_v50, %v1853_v33  ;;  %v124_v30 = vrot.slane %v91_v1, 1 }
  0x13   :  { %v125_v34 = vrot.slane %v92_v2, 1  ;;  %v127_v39 = vrot.slane %v93_v3, 1  ;;  %v128_v49 = vrot.slane %v94_v4, 1  ;;  %v130_v47 = vrot.slane %v95_v5, 1 }
  0x14   :  { %v131_v46 = vrot.slane %v96_v6, 1  ;;  %v133_v45 = vrot.slane %v97_v7, 1  ;;  %v134_v43 = vrot.slane %v98_v8, 1  ;;  %v136_v42 = vrot.slane %v99_v9, 1 }
  0x15   :  { %v126_v38 = vsel %vm123_vm0, %v124_v30, %v125_v34  ;;  %v129_v37 = vsel %vm123_vm0, %v127_v39, %v128_v49  ;;  %v137_v41 = vrot.slane %v100_v11, 1  ;;  %v139_v44 = vrot.slane %v101_v12, 1 }
  0x16   :  { %v132_v48 = vsel %vm123_vm0, %v130_v47, %v131_v46  ;;  %v135_v40 = vsel %vm123_vm0, %v133_v45, %v134_v43  ;;  %v140_v50 = vrot.slane %v102_v13, 1  ;;  %v142_v2 = vrot.slane %v103_v18, 1 }
  0x17   :  { %v138_v1 = vsel %vm123_vm0, %v136_v42, %v137_v41  ;;  %v143_v3 = vrot.slane %v104_v19, 1  ;;  %v145_v4 = vrot.slane %v105_v20, 1  ;;  %v146_v6 = vrot.slane %v106_v29, 1 }
  0x18   :  { %v141_v5 = vsel %vm123_vm0, %v139_v44, %v140_v50  ;;  %v156_v7 = vadd.f32 %v126_v38, %v71_v57  ;;  %v157_v8 = vadd.f32 %v129_v37, %v72_v58  ;;  %v158_v11 = vadd.f32 %v132_v48, %v73_v59 }
  0x19   :  { %v144_v9 = vsel %vm123_vm0, %v142_v2, %v143_v3  ;;  %v159_v30 = vadd.f32 %v135_v40, %v74_v60  ;;  %v160_v46 = vadd.f32 %v138_v1, %v75_v61  ;;  %v147_v43 = vsel %vm123_vm0, %v145_v4, %v146_v6 }
  0x1a   :  { %v161_v45 = vadd.f32 %v141_v5, %v76_v62  ;;  %v162_v47 = vadd.f32 %v144_v9, %v77_v63  ;;  %v168_v41 = vmul.f32 %v1890_v51, %v1802_v10  ;;  %v163_v42 = vadd.f32 %v147_v43, %v78_v0 }
  0x1b   :  { %v169_v12 = vmul.f32 %v1890_v51, %v1810_v14  ;;  %v170_v38 = vmul.f32 %v1890_v51, %v1812_v15  ;;  %v171_v37 = vmul.f32 %v1890_v51, %v1814_v16  ;;  %v172_v40 = vmul.f32 %v1890_v51, %v1816_v17 }
  0x1c   :  { %v173_v44 = vmul.f32 %v1890_v51, %v1827_v21  ;;  %v174_v48 = vmul.f32 %v1890_v51, %v1829_v22  ;;  %v175_v57 = vmul.f32 %v1890_v51, %v1831_v23  ;;  %v176_v58 = vmul.f32 %v1890_v51, %v1833_v24 }
  0x1d   :  { %v177_v59 = vmul.f32 %v1890_v51, %v1835_v25  ;;  %v178_v60 = vmul.f32 %v1890_v51, %v1837_v26  ;;  %v179_v61 = vmul.f32 %v1890_v51, %v1839_v27  ;;  %v180_v62 = vmul.f32 %v1890_v51, %v1841_v28 }
  0x1e   :  { %v181_v63 = vmul.f32 %v1890_v51, %v1849_v31  ;;  %v182_v0 = vmul.f32 %v1890_v51, %v1851_v32  ;;  %v183_v13 = vmul.f32 %v1890_v51, %v1853_v33  ;;  %v201_v18 = vrot.slane %v168_v41, 2 }
  0x1f   :  { %v202_v19 = vrot.slane %v169_v12, 2  ;;  %v204_v20 = vrot.slane %v170_v38, 2  ;;  %v205_v29 = vrot.slane %v171_v37, 2  ;;  %v207_v34 = vrot.slane %v172_v40, 2 }
  0x20   :  { %v208_v39 = vrot.slane %v173_v44, 2  ;;  %v210_v49 = vrot.slane %v174_v48, 2  ;;  %v211_v50 = vrot.slane %v175_v57, 2  ;;  %v213_v3 = vrot.slane %v176_v58, 2 }
  0x21   :  { %v203_v1 = vsel %vm200_vm1, %v201_v18, %v202_v19  ;;  %v206_v2 = vsel %vm200_vm1, %v204_v20, %v205_v29  ;;  %v214_v4 = vrot.slane %v177_v59, 2  ;;  %v216_v9 = vrot.slane %v178_v60, 2 }
  0x22   :  { %v209_v5 = vsel %vm200_vm1, %v207_v34, %v208_v39  ;;  %v212_v6 = vsel %vm200_vm1, %v210_v49, %v211_v50  ;;  %v217_v51 = vrot.slane %v179_v61, 2  ;;  %v219_v41 = vrot.slane %v180_v62, 2 }
  0x23   :  { %v215_v43 = vsel %vm200_vm1, %v213_v3, %v214_v4  ;;  %v220_v12 = vrot.slane %v181_v63, 2  ;;  %v222_v38 = vrot.slane %v182_v0, 2  ;;  %v223_v40 = vrot.slane %v183_v13, 2 }
  0x24   :  { %v218_v37 = vsel %vm200_vm1, %v216_v9, %v217_v51  ;;  %v233_v44 = vadd.f32 %v203_v1, %v156_v7  ;;  %v234_v48 = vadd.f32 %v206_v2, %v157_v8  ;;  %v235_v58 = vadd.f32 %v209_v5, %v158_v11 }
  0x25   :  { %v221_v57 = vsel %vm200_vm1, %v219_v41, %v220_v12  ;;  %v236_v59 = vadd.f32 %v212_v6, %v159_v30  ;;  %v237_v18 = vadd.f32 %v215_v43, %v160_v46  ;;  %v224_v19 = vsel %vm200_vm1, %v222_v38, %v223_v40 }
  0x26   :  { %v238_v60 = vadd.f32 %v218_v37, %v161_v45  ;;  %v239_v61 = vadd.f32 %v221_v57, %v162_v47  ;;  %v245_v20 = vmul.f32 %v1893_v52, %v1802_v10  ;;  %v240_v62 = vadd.f32 %v224_v19, %v163_v42 }
  0x27   :  { %v246_v63 = vmul.f32 %v1893_v52, %v1810_v14  ;;  %v247_v7 = vmul.f32 %v1893_v52, %v1812_v15  ;;  %v248_v8 = vmul.f32 %v1893_v52, %v1814_v16  ;;  %v249_v11 = vmul.f32 %v1893_v52, %v1816_v17 }
  0x28   :  { %v250_v30 = vmul.f32 %v1893_v52, %v1827_v21  ;;  %v251_v46 = vmul.f32 %v1893_v52, %v1829_v22  ;;  %v252_v45 = vmul.f32 %v1893_v52, %v1831_v23  ;;  %v253_v47 = vmul.f32 %v1893_v52, %v1833_v24 }
  0x29   :  { %v254_v42 = vmul.f32 %v1893_v52, %v1835_v25  ;;  %v255_v0 = vmul.f32 %v1893_v52, %v1837_v26  ;;  %v256_v13 = vmul.f32 %v1893_v52, %v1839_v27  ;;  %v257_v29 = vmul.f32 %v1893_v52, %v1841_v28 }
  0x2a   :  { %v258_v34 = vmul.f32 %v1893_v52, %v1849_v31  ;;  %v259_v39 = vmul.f32 %v1893_v52, %v1851_v32  ;;  %v260_v49 = vmul.f32 %v1893_v52, %v1853_v33  ;;  %v278_v50 = vrot.slane %v245_v20, 3 }
  0x2b   :  { %v279_v1 = vrot.slane %v246_v63, 3  ;;  %v281_v2 = vrot.slane %v247_v7, 3  ;;  %v282_v3 = vrot.slane %v248_v8, 3  ;;  %v284_v4 = vrot.slane %v249_v11, 3 }
  0x2c   :  { %v285_v5 = vrot.slane %v250_v30, 3  ;;  %v287_v6 = vrot.slane %v251_v46, 3  ;;  %v288_v9 = vrot.slane %v252_v45, 3  ;;  %v290_v41 = vrot.slane %v253_v47, 3 }
  0x2d   :  { %v280_v51 = vsel %vm277_vm2, %v278_v50, %v279_v1  ;;  %v283_v43 = vsel %vm277_vm2, %v281_v2, %v282_v3  ;;  %v291_v12 = vrot.slane %v254_v42, 3  ;;  %v293_v40 = vrot.slane %v255_v0, 3 }
  0x2e   :  { %v286_v38 = vsel %vm277_vm2, %v284_v4, %v285_v5  ;;  %v289_v37 = vsel %vm277_vm2, %v287_v6, %v288_v9  ;;  %v294_v52 = vrot.slane %v256_v13, 3  ;;  %v296_v19 = vrot.slane %v257_v29, 3 }
  0x2f   :  { %v292_v57 = vsel %vm277_vm2, %v290_v41, %v291_v12  ;;  %v297_v20 = vrot.slane %v258_v34, 3  ;;  %v299_v63 = vrot.slane %v259_v39, 3  ;;  %v300_v8 = vrot.slane %v260_v49, 3 }
  0x30   :  { %v295_v7 = vsel %vm277_vm2, %v293_v40, %v294_v52  ;;  %v310_v11 = vadd.f32 %v280_v51, %v233_v44  ;;  %v311_v30 = vadd.f32 %v283_v43, %v234_v48  ;;  %v312_v45 = vadd.f32 %v286_v38, %v235_v58 }
  0x31   :  { %v298_v46 = vsel %vm277_vm2, %v296_v19, %v297_v20  ;;  %v313_v47 = vadd.f32 %v289_v37, %v236_v59  ;;  %v314_v42 = vadd.f32 %v292_v57, %v237_v18  ;;  %v301_v50 = vsel %vm277_vm2, %v299_v63, %v300_v8 }
  0x32   :  { %v315_v0 = vadd.f32 %v295_v7, %v238_v60  ;;  %v316_v13 = vadd.f32 %v298_v46, %v239_v61  ;;  %v322_v1 = vmul.f32 %v1896_v53, %v1802_v10  ;;  %v317_v29 = vadd.f32 %v301_v50, %v240_v62 }
  0x33   :  { %v323_v34 = vmul.f32 %v1896_v53, %v1810_v14  ;;  %v324_v44 = vmul.f32 %v1896_v53, %v1812_v15  ;;  %v325_v48 = vmul.f32 %v1896_v53, %v1814_v16  ;;  %v326_v58 = vmul.f32 %v1896_v53, %v1816_v17 }
  0x34   :  { %v327_v59 = vmul.f32 %v1896_v53, %v1827_v21  ;;  %v328_v18 = vmul.f32 %v1896_v53, %v1829_v22  ;;  %v329_v10 = vmul.f32 %v1896_v53, %v1831_v23  ;;  %v330_v14 = vmul.f32 %v1896_v53, %v1833_v24 }
  0x35   :  { %v331_v60 = vmul.f32 %v1896_v53, %v1835_v25  ;;  %v332_v61 = vmul.f32 %v1896_v53, %v1837_v26  ;;  %v333_v62 = vmul.f32 %v1896_v53, %v1839_v27  ;;  %v334_v39 = vmul.f32 %v1896_v53, %v1841_v28 }
  0x36   :  { %v335_v49 = vmul.f32 %v1896_v53, %v1849_v31  ;;  %v336_v2 = vmul.f32 %v1896_v53, %v1851_v32  ;;  %v337_v3 = vmul.f32 %v1896_v53, %v1853_v33  ;;  %v355_v4 = vrot.slane %v322_v1, 4 }
  0x37   :  { %v356_v5 = vrot.slane %v323_v34, 4  ;;  %v358_v6 = vrot.slane %v324_v44, 4  ;;  %v359_v9 = vrot.slane %v325_v48, 4  ;;  %v361_v51 = vrot.slane %v326_v58, 4 }
  0x38   :  { %v362_v43 = vrot.slane %v327_v59, 4  ;;  %v364_v41 = vrot.slane %v328_v18, 4  ;;  %v365_v12 = vrot.slane %v329_v10, 4  ;;  %v367_v40 = vrot.slane %v330_v14, 4 }
  0x39   :  { %v357_v38 = vsel %vm354_vm3, %v355_v4, %v356_v5  ;;  %v360_v37 = vsel %vm354_vm3, %v358_v6, %v359_v9  ;;  %v368_v52 = vrot.slane %v331_v60, 4  ;;  %v370_v20 = vrot.slane %v332_v61, 4 }
  0x3a   :  { %v363_v57 = vsel %vm354_vm3, %v361_v51, %v362_v43  ;;  %v366_v19 = vsel %vm354_vm3, %v364_v41, %v365_v12  ;;  %v371_v53 = vrot.slane %v333_v62, 4  ;;  %v373_v7 = vrot.slane %v334_v39, 4 }
  0x3b   :  { %v369_v63 = vsel %vm354_vm3, %v367_v40, %v368_v52  ;;  %v374_v8 = vrot.slane %v335_v49, 4  ;;  %v376_v46 = vrot.slane %v336_v2, 4  ;;  %v377_v1 = vrot.slane %v337_v3, 4 }
  0x3c   :  { %v372_v50 = vsel %vm354_vm3, %v370_v20, %v371_v53  ;;  %v387_v34 = vadd.f32 %v357_v38, %v310_v11  ;;  %v388_v44 = vadd.f32 %v360_v37, %v311_v30  ;;  %v389_v58 = vadd.f32 %v363_v57, %v312_v45 }
  0x3d   :  { %v375_v48 = vsel %vm354_vm3, %v373_v7, %v374_v8  ;;  %v390_v59 = vadd.f32 %v366_v19, %v313_v47  ;;  %v391_v18 = vadd.f32 %v369_v63, %v314_v42  ;;  %v378_v10 = vsel %vm354_vm3, %v376_v46, %v377_v1 }
  0x3e   :  { %v392_v14 = vadd.f32 %v372_v50, %v315_v0  ;;  %v393_v60 = vadd.f32 %v375_v48, %v316_v13  ;;  %v399_v61 = vmul.f32 %v1900_v54, %v1812_v15  ;;  %v394_v62 = vadd.f32 %v378_v10, %v317_v29 }
  0x3f   :  { %v400_v39 = vmul.f32 %v1900_v54, %v1816_v17  ;;  %v401_v11 = vmul.f32 %v1900_v54, %v1829_v22  ;;  %v402_v30 = vmul.f32 %v1900_v54, %v1833_v24  ;;  %v403_v45 = vmul.f32 %v1900_v54, %v1837_v26 }
  0x40   :  { %v404_v47 = vmul.f32 %v1900_v54, %v1841_v28  ;;  %v405_v42 = vmul.f32 %v1900_v54, %v1851_v32  ;;  %v406_v0 = vmul.f32 %v1900_v54, %v1855_v35  ;;  %v407_v13 = vadd.f32 %v399_v61, %v387_v34 }
  0x41   :  { %v408_v29 = vadd.f32 %v400_v39, %v388_v44  ;;  %v409_v49 = vadd.f32 %v401_v11, %v389_v58  ;;  %v410_v2 = vadd.f32 %v402_v30, %v390_v59  ;;  %v411_v3 = vadd.f32 %v403_v45, %v391_v18 }
  0x42   :  { %v412_v4 = vadd.f32 %v404_v47, %v392_v14  ;;  %v413_v5 = vadd.f32 %v405_v42, %v393_v60  ;;  %v414_v6 = vadd.f32 %v406_v0, %v394_v62  ;;  %v419_v9 = vmul.f32 %v1904_v55, %v1812_v15 }
  0x43   :  { %v420_v51 = vmul.f32 %v1904_v55, %v1814_v16  ;;  %v421_v43 = vmul.f32 %v1904_v55, %v1816_v17  ;;  %v422_v54 = vmul.f32 %v1904_v55, %v1827_v21  ;;  %v423_v41 = vmul.f32 %v1904_v55, %v1829_v22 }
  0x44   :  { %v424_v12 = vmul.f32 %v1904_v55, %v1831_v23  ;;  %v425_v38 = vmul.f32 %v1904_v55, %v1833_v24  ;;  %v426_v37 = vmul.f32 %v1904_v55, %v1835_v25  ;;  %v427_v40 = vmul.f32 %v1904_v55, %v1837_v26 }
  0x45   :  { %v428_v52 = vmul.f32 %v1904_v55, %v1839_v27  ;;  %v429_v57 = vmul.f32 %v1904_v55, %v1841_v28  ;;  %v430_v19 = vmul.f32 %v1904_v55, %v1849_v31  ;;  %v431_v20 = vmul.f32 %v1904_v55, %v1851_v32 }
  0x46   :  { %v432_v53 = vmul.f32 %v1904_v55, %v1853_v33  ;;  %v433_v63 = vmul.f32 %v1904_v55, %v1855_v35  ;;  %v434_v7 = vmul.f32 %v1904_v55, %v1857_v36  ;;  %v451_v8 = vrot.slane %v419_v9, 1 }
  0x47   :  { %v452_v46 = vrot.slane %v420_v51, 1  ;;  %v454_v50 = vrot.slane %v421_v43, 1  ;;  %v455_v1 = vrot.slane %v422_v54, 1  ;;  %v457_v34 = vrot.slane %v423_v41, 1 }
  0x48   :  { %v458_v44 = vrot.slane %v424_v12, 1  ;;  %v460_v48 = vrot.slane %v425_v38, 1  ;;  %v461_v58 = vrot.slane %v426_v37, 1  ;;  %v463_v10 = vrot.slane %v427_v40, 1 }
  0x49   :  { %v453_v59 = vsel %vm123_vm0, %v451_v8, %v452_v46  ;;  %v456_v18 = vsel %vm123_vm0, %v454_v50, %v455_v1  ;;  %v464_v14 = vrot.slane %v428_v52, 1  ;;  %v466_v62 = vrot.slane %v429_v57, 1 }
  0x4a   :  { %v459_v60 = vsel %vm123_vm0, %v457_v34, %v458_v44  ;;  %v462_v61 = vsel %vm123_vm0, %v460_v48, %v461_v58  ;;  %v467_v55 = vrot.slane %v430_v19, 1  ;;  %v469_v11 = vrot.slane %v431_v20, 1 }
  0x4b   :  { %v465_v39 = vsel %vm123_vm0, %v463_v10, %v464_v14  ;;  %v470_v30 = vrot.slane %v432_v53, 1  ;;  %v472_v45 = vrot.slane %v433_v63, 1  ;;  %v473_v42 = vrot.slane %v434_v7, 1 }
  0x4c   :  { %v468_v47 = vsel %vm123_vm0, %v466_v62, %v467_v55  ;;  %v483_v0 = vadd.f32 %v453_v59, %v407_v13  ;;  %v484_v9 = vadd.f32 %v456_v18, %v408_v29  ;;  %v485_v43 = vadd.f32 %v459_v60, %v409_v49 }
  0x4d   :  { %v471_v51 = vsel %vm123_vm0, %v469_v11, %v470_v30  ;;  %v486_v54 = vadd.f32 %v462_v61, %v410_v2  ;;  %v487_v41 = vadd.f32 %v465_v39, %v411_v3  ;;  %v474_v12 = vsel %vm123_vm0, %v472_v45, %v473_v42 }
  0x4e   :  { %v488_v38 = vadd.f32 %v468_v47, %v412_v4  ;;  %v489_v37 = vadd.f32 %v471_v51, %v413_v5  ;;  %v495_v40 = vmul.f32 %v1908_v56, %v1812_v15  ;;  %v490_v52 = vadd.f32 %v474_v12, %v414_v6  ;;  %v2158_v47 = vld [vmem:[%s2825_s1 + $0x10] sm:$0x1f] }
  0x4f   :  { %v496_v57 = vmul.f32 %v1908_v56, %v1814_v16  ;;  %v497_v13 = vmul.f32 %v1908_v56, %v1816_v17  ;;  %v498_v29 = vmul.f32 %v1908_v56, %v1827_v21  ;;  %v499_v49 = vmul.f32 %v1908_v56, %v1829_v22 }
  0x50   :  { %v500_v2 = vmul.f32 %v1908_v56, %v1831_v23  ;;  %v501_v3 = vmul.f32 %v1908_v56, %v1833_v24  ;;  %v502_v4 = vmul.f32 %v1908_v56, %v1835_v25  ;;  %v503_v5 = vmul.f32 %v1908_v56, %v1837_v26 }
  0x51   :  { %v504_v6 = vmul.f32 %v1908_v56, %v1839_v27  ;;  %v505_v19 = vmul.f32 %v1908_v56, %v1841_v28  ;;  %v506_v20 = vmul.f32 %v1908_v56, %v1849_v31  ;;  %v507_v53 = vmul.f32 %v1908_v56, %v1851_v32 }
  0x52   :  { %v508_v63 = vmul.f32 %v1908_v56, %v1853_v33  ;;  %v509_v7 = vmul.f32 %v1908_v56, %v1855_v35  ;;  %v510_v8 = vmul.f32 %v1908_v56, %v1857_v36  ;;  %v527_v46 = vrot.slane %v495_v40, 2 }
  0x53   :  { %v528_v50 = vrot.slane %v496_v57, 2  ;;  %v530_v1 = vrot.slane %v497_v13, 2  ;;  %v531_v34 = vrot.slane %v498_v29, 2  ;;  %v533_v44 = vrot.slane %v499_v49, 2 }
  0x54   :  { %v534_v48 = vrot.slane %v500_v2, 2  ;;  %v536_v58 = vrot.slane %v501_v3, 2  ;;  %v537_v59 = vrot.slane %v502_v4, 2  ;;  %v539_v14 = vrot.slane %v503_v5, 2  ;;  %v2859_v5 = vld [vmem:[#allocation8_spill] sm:$0xff] }
  0x55   :  { %v529_v18 = vsel %vm200_vm1, %v527_v46, %v528_v50  ;;  %v532_v10 = vsel %vm200_vm1, %v530_v1, %v531_v34  ;;  %v540_v60 = vrot.slane %v504_v6, 2  ;;  %v542_v55 = vrot.slane %v505_v19, 2  ;;  %v2860_v6 = vld [vmem:[#allocation4_spill] sm:$0xff] }
  0x56   :  { %v535_v61 = vsel %vm200_vm1, %v533_v44, %v534_v48  ;;  %v538_v62 = vsel %vm200_vm1, %v536_v58, %v537_v59  ;;  %v543_v56 = vrot.slane %v506_v20, 2  ;;  %v545_v11 = vrot.slane %v507_v53, 2  ;;  %v2861_v53 = vld [vmem:[#allocation12_spill] sm:$0xff] }
  0x57   :  { %v541_v39 = vsel %vm200_vm1, %v539_v14, %v540_v60  ;;  %v546_v30 = vrot.slane %v508_v63, 2  ;;  %v548_v45 = vrot.slane %v509_v7, 2  ;;  %v549_v51 = vrot.slane %v510_v8, 2  ;;  %v2862_v7 = vld [vmem:[#allocation5_spill] sm:$0xff] }
  0x58   :  { %v544_v42 = vsel %vm200_vm1, %v542_v55, %v543_v56  ;;  %v559_v12 = vadd.f32 %v529_v18, %v483_v0  ;;  %v560_v40 = vadd.f32 %v532_v10, %v484_v9  ;;  %v561_v13 = vadd.f32 %v535_v61, %v485_v43  ;;  %v2863_v9 = vld [vmem:[#allocation6_spill] sm:$0xff] }
  0x59   :  { %v547_v57 = vsel %vm200_vm1, %v545_v11, %v546_v30  ;;  %v562_v29 = vadd.f32 %v538_v62, %v486_v54  ;;  %v563_v49 = vadd.f32 %v541_v39, %v487_v41  ;;  %v550_v2 = vsel %vm200_vm1, %v548_v45, %v549_v51 }
  0x5a   :  { %v564_v3 = vadd.f32 %v544_v42, %v488_v38  ;;  %v565_v4 = vadd.f32 %v547_v57, %v489_v37  ;;  %v570_v19 = vrot.slane %v2860_v6, %v2859_v5  ;;  %v566_v20 = vadd.f32 %v550_v2, %v490_v52 }
  0x5b   :  { %v2167_v63 = vrot.slane %v2860_v6, %v2861_v53  ;;  %v2171_v0 = vrot.slane %v2158_v47, %v2862_v7  ;;  %v2175_v43 = vrot.slane %v2158_v47, %v2863_v9 }
  0x5c   :  { %v571_v54 = vmul.f32 %v570_v19, %v1812_v15  ;;  %v572_v41 = vmul.f32 %v570_v19, %v1814_v16  ;;  %v573_v38 = vmul.f32 %v570_v19, %v1816_v17  ;;  %v574_v37 = vmul.f32 %v570_v19, %v1827_v21 }
  0x5d   :  { %v575_v52 = vmul.f32 %v570_v19, %v1829_v22  ;;  %v576_v8 = vmul.f32 %v570_v19, %v1831_v23  ;;  %v577_v46 = vmul.f32 %v570_v19, %v1833_v24  ;;  %v578_v50 = vmul.f32 %v570_v19, %v1835_v25 }
  0x5e   :  { %v579_v1 = vmul.f32 %v570_v19, %v1837_v26  ;;  %v580_v34 = vmul.f32 %v570_v19, %v1839_v27  ;;  %v581_v44 = vmul.f32 %v570_v19, %v1841_v28  ;;  %v582_v48 = vmul.f32 %v570_v19, %v1849_v31 }
  0x5f   :  { %v583_v58 = vmul.f32 %v570_v19, %v1851_v32  ;;  %v584_v59 = vmul.f32 %v570_v19, %v1853_v33  ;;  %v585_v18 = vmul.f32 %v570_v19, %v1855_v35  ;;  %v586_v10 = vmul.f32 %v570_v19, %v1857_v36 }
  0x60   :  { %v603_v14 = vrot.slane %v571_v54, 3  ;;  %v604_v60 = vrot.slane %v572_v41, 3  ;;  %v606_v61 = vrot.slane %v573_v38, 3  ;;  %v607_v62 = vrot.slane %v574_v37, 3 }
  0x61   :  { %v609_v55 = vrot.slane %v575_v52, 3  ;;  %v610_v56 = vrot.slane %v576_v8, 3  ;;  %v612_v39 = vrot.slane %v577_v46, 3  ;;  %v613_v11 = vrot.slane %v578_v50, 3 }
  0x62   :  { %v605_v30 = vsel %vm277_vm2, %v603_v14, %v604_v60  ;;  %v608_v45 = vsel %vm277_vm2, %v606_v61, %v607_v62  ;;  %v615_v42 = vrot.slane %v579_v1, 3  ;;  %v616_v51 = vrot.slane %v580_v34, 3 }
  0x63   :  { %v611_v57 = vsel %vm277_vm2, %v609_v55, %v610_v56  ;;  %v614_v2 = vsel %vm277_vm2, %v612_v39, %v613_v11  ;;  %v618_v6 = vrot.slane %v581_v44, 3  ;;  %v619_v19 = vrot.slane %v582_v48, 3 }
  0x64   :  { %v617_v54 = vsel %vm277_vm2, %v615_v42, %v616_v51  ;;  %v621_v41 = vrot.slane %v583_v58, 3  ;;  %v622_v38 = vrot.slane %v584_v59, 3  ;;  %v624_v37 = vrot.slane %v585_v18, 3 }
  0x65   :  { %v620_v52 = vsel %vm277_vm2, %v618_v6, %v619_v19  ;;  %v625_v8 = vrot.slane %v586_v10, 3  ;;  %v635_v46 = vadd.f32 %v605_v30, %v559_v12  ;;  %v636_v50 = vadd.f32 %v608_v45, %v560_v40 }
  0x66   :  { %v623_v14 = vsel %vm277_vm2, %v621_v41, %v622_v38  ;;  %v637_v1 = vadd.f32 %v611_v57, %v561_v13  ;;  %v638_v34 = vadd.f32 %v614_v2, %v562_v29  ;;  %v639_v60 = vadd.f32 %v617_v54, %v563_v49 }
  0x67   :  { %v626_v61 = vsel %vm277_vm2, %v624_v37, %v625_v8  ;;  %v640_v62 = vadd.f32 %v620_v52, %v564_v3  ;;  %v641_v44 = vadd.f32 %v623_v14, %v565_v4  ;;  %v647_v48 = vmul.f32 %v2167_v63, %v1812_v15 }
  0x68   :  { %v642_v58 = vadd.f32 %v626_v61, %v566_v20  ;;  %v648_v59 = vmul.f32 %v2167_v63, %v1814_v16  ;;  %v649_v12 = vmul.f32 %v2167_v63, %v1816_v17  ;;  %v650_v40 = vmul.f32 %v2167_v63, %v1827_v21 }
  0x69   :  { %v651_v13 = vmul.f32 %v2167_v63, %v1829_v22  ;;  %v652_v29 = vmul.f32 %v2167_v63, %v1831_v23  ;;  %v653_v49 = vmul.f32 %v2167_v63, %v1833_v24  ;;  %v654_v15 = vmul.f32 %v2167_v63, %v1835_v25 }
  0x6a   :  { %v655_v16 = vmul.f32 %v2167_v63, %v1837_v26  ;;  %v656_v3 = vmul.f32 %v2167_v63, %v1839_v27  ;;  %v657_v4 = vmul.f32 %v2167_v63, %v1841_v28  ;;  %v658_v20 = vmul.f32 %v2167_v63, %v1849_v31 }
  0x6b   :  { %v659_v18 = vmul.f32 %v2167_v63, %v1851_v32  ;;  %v660_v10 = vmul.f32 %v2167_v63, %v1853_v33  ;;  %v661_v55 = vmul.f32 %v2167_v63, %v1855_v35  ;;  %v662_v56 = vmul.f32 %v2167_v63, %v1857_v36 }
  0x6c   :  { %v679_v39 = vrot.slane %v647_v48, 4  ;;  %v680_v11 = vrot.slane %v648_v59, 4  ;;  %v682_v30 = vrot.slane %v649_v12, 4  ;;  %v683_v45 = vrot.slane %v650_v40, 4 }
  0x6d   :  { %v685_v42 = vrot.slane %v651_v13, 4  ;;  %v686_v51 = vrot.slane %v652_v29, 4  ;;  %v688_v57 = vrot.slane %v653_v49, 4  ;;  %v689_v2 = vrot.slane %v654_v15, 4 }
  0x6e   :  { %v681_v6 = vsel %vm354_vm3, %v679_v39, %v680_v11  ;;  %v684_v19 = vsel %vm354_vm3, %v682_v30, %v683_v45  ;;  %v691_v54 = vrot.slane %v655_v16, 4  ;;  %v692_v41 = vrot.slane %v656_v3, 4 }
  0x6f   :  { %v687_v38 = vsel %vm354_vm3, %v685_v42, %v686_v51  ;;  %v690_v37 = vsel %vm354_vm3, %v688_v57, %v689_v2  ;;  %v694_v52 = vrot.slane %v657_v4, 4  ;;  %v695_v63 = vrot.slane %v658_v20, 4 }
  0x70   :  { %v693_v8 = vsel %vm354_vm3, %v691_v54, %v692_v41  ;;  %v697_v14 = vrot.slane %v659_v18, 4  ;;  %v698_v61 = vrot.slane %v660_v10, 4  ;;  %v700_v48 = vrot.slane %v661_v55, 4 }
  0x71   :  { %v696_v59 = vsel %vm354_vm3, %v694_v52, %v695_v63  ;;  %v701_v12 = vrot.slane %v662_v56, 4  ;;  %v711_v40 = vadd.f32 %v681_v6, %v635_v46  ;;  %v712_v13 = vadd.f32 %v684_v19, %v636_v50 }
  0x72   :  { %v699_v29 = vsel %vm354_vm3, %v697_v14, %v698_v61  ;;  %v713_v49 = vadd.f32 %v687_v38, %v637_v1  ;;  %v714_v15 = vadd.f32 %v690_v37, %v638_v34  ;;  %v715_v16 = vadd.f32 %v693_v8, %v639_v60 }
  0x73   :  { %v702_v3 = vsel %vm354_vm3, %v700_v48, %v701_v12  ;;  %v716_v39 = vadd.f32 %v696_v59, %v640_v62  ;;  %v717_v4 = vadd.f32 %v699_v29, %v641_v44  ;;  %v723_v20 = vmul.f32 %v2171_v0, %v1816_v17  ;;  %v2864_v62 = vld [vmem:[#allocation2_spill] sm:$0xff]  ;;  %v2865_v59 = vld [vmem:[#allocation3_spill] sm:$0xff] }
  0x74   :  { %v718_v18 = vadd.f32 %v702_v3, %v642_v58  ;;  %v724_v10 = vmul.f32 %v2171_v0, %v1829_v22  ;;  %v725_v46 = vmul.f32 %v2171_v0, %v1833_v24  ;;  %v726_v50 = vmul.f32 %v2171_v0, %v1837_v26 }
  0x75   :  { %v727_v1 = vmul.f32 %v2171_v0, %v1841_v28  ;;  %v728_v34 = vmul.f32 %v2171_v0, %v1851_v32  ;;  %v729_v60 = vmul.f32 %v2171_v0, %v1855_v35  ;;  %v730_v44 = vmul.f32 %v2171_v0, %v2864_v62 }
  0x76   :  { %v731_v58 = vadd.f32 %v723_v20, %v711_v40  ;;  %v732_v55 = vadd.f32 %v724_v10, %v712_v13  ;;  %v733_v56 = vadd.f32 %v725_v46, %v713_v49  ;;  %v734_v11 = vadd.f32 %v726_v50, %v714_v15 }
  0x77   :  { %v735_v30 = vadd.f32 %v727_v1, %v715_v16  ;;  %v736_v45 = vadd.f32 %v728_v34, %v716_v39  ;;  %v737_v42 = vadd.f32 %v729_v60, %v717_v4  ;;  %v738_v51 = vadd.f32 %v730_v44, %v718_v18 }
  0x78   :  { %v743_v57 = vmul.f32 %v2175_v43, %v1816_v17  ;;  %v744_v2 = vmul.f32 %v2175_v43, %v1827_v21  ;;  %v745_v6 = vmul.f32 %v2175_v43, %v1829_v22  ;;  %v746_v0 = vmul.f32 %v2175_v43, %v1831_v23 }
  0x79   :  { %v747_v19 = vmul.f32 %v2175_v43, %v1833_v24  ;;  %v748_v54 = vmul.f32 %v2175_v43, %v1835_v25  ;;  %v749_v41 = vmul.f32 %v2175_v43, %v1837_v26  ;;  %v750_v38 = vmul.f32 %v2175_v43, %v1839_v27 }
  0x7a   :  { %v751_v37 = vmul.f32 %v2175_v43, %v1841_v28  ;;  %v752_v52 = vmul.f32 %v2175_v43, %v1849_v31  ;;  %v753_v63 = vmul.f32 %v2175_v43, %v1851_v32  ;;  %v754_v8 = vmul.f32 %v2175_v43, %v1853_v33 }
  0x7b   :  { %v755_v14 = vmul.f32 %v2175_v43, %v1855_v35  ;;  %v756_v61 = vmul.f32 %v2175_v43, %v1857_v36  ;;  %v757_v48 = vmul.f32 %v2175_v43, %v2864_v62  ;;  %v758_v12 = vmul.f32 %v2175_v43, %v2865_v59 }
  0x7c   :  { %v775_v40 = vrot.slane %v743_v57, 1  ;;  %v776_v13 = vrot.slane %v744_v2, 1  ;;  %v778_v29 = vrot.slane %v745_v6, 1  ;;  %v779_v49 = vrot.slane %v746_v0, 1  ;;  %v2297_v2 = vld [vmem:[%s2825_s1 + $0x18] sm:$0x1f] }
  0x7d   :  { %v781_v15 = vrot.slane %v747_v19, 1  ;;  %v782_v16 = vrot.slane %v748_v54, 1  ;;  %v784_v3 = vrot.slane %v749_v41, 1  ;;  %v785_v39 = vrot.slane %v750_v38, 1 }
  0x7e   :  { %v777_v4 = vsel %vm123_vm0, %v775_v40, %v776_v13  ;;  %v780_v20 = vsel %vm123_vm0, %v778_v29, %v779_v49  ;;  %v787_v18 = vrot.slane %v751_v37, 1  ;;  %v788_v10 = vrot.slane %v752_v52, 1 }
  0x7f   :  { %v783_v46 = vsel %vm123_vm0, %v781_v15, %v782_v16  ;;  %v786_v50 = vsel %vm123_vm0, %v784_v3, %v785_v39  ;;  %v790_v1 = vrot.slane %v753_v63, 1  ;;  %v791_v43 = vrot.slane %v754_v8, 1 }
  0x80   :  { %v789_v34 = vsel %vm123_vm0, %v787_v18, %v788_v10  ;;  %v793_v60 = vrot.slane %v755_v14, 1  ;;  %v794_v44 = vrot.slane %v756_v61, 1  ;;  %v796_v57 = vrot.slane %v757_v48, 1  ;;  %v2866_v61 = vld [vmem:[#allocation7_spill] sm:$0xff] }
  0x81   :  { %v792_v6 = vsel %vm123_vm0, %v790_v1, %v791_v43  ;;  %v797_v0 = vrot.slane %v758_v12, 1  ;;  %v807_v19 = vadd.f32 %v777_v4, %v731_v58  ;;  %v808_v54 = vadd.f32 %v780_v20, %v732_v55 }
  0x82   :  { %v795_v41 = vsel %vm123_vm0, %v793_v60, %v794_v44  ;;  %v809_v38 = vadd.f32 %v783_v46, %v733_v56  ;;  %v810_v37 = vadd.f32 %v786_v50, %v734_v11  ;;  %v811_v52 = vadd.f32 %v789_v34, %v735_v30 }
  0x83   :  { %v798_v63 = vsel %vm123_vm0, %v796_v57, %v797_v0  ;;  %v812_v8 = vadd.f32 %v792_v6, %v736_v45  ;;  %v813_v14 = vadd.f32 %v795_v41, %v737_v42  ;;  %v818_v48 = vrot.slane %v2158_v47, %v2866_v61 }
  0x84   :  { %v814_v40 = vadd.f32 %v798_v63, %v738_v51  ;;  %v2306_v13 = vrot.slane %v2158_v47, %v2859_v5  ;;  %v2310_v58 = vrot.slane %v2158_v47, %v2861_v53  ;;  %v2314_v55 = vrot.slane %v2297_v2, %v2862_v7 }
  0x85   :  { %v819_v56 = vmul.f32 %v818_v48, %v1816_v17  ;;  %v820_v11 = vmul.f32 %v818_v48, %v1827_v21  ;;  %v821_v30 = vmul.f32 %v818_v48, %v1829_v22  ;;  %v822_v45 = vmul.f32 %v818_v48, %v1831_v23 }
  0x86   :  { %v823_v42 = vmul.f32 %v818_v48, %v1833_v24  ;;  %v824_v51 = vmul.f32 %v818_v48, %v1835_v25  ;;  %v825_v12 = vmul.f32 %v818_v48, %v1837_v26  ;;  %v826_v47 = vmul.f32 %v818_v48, %v1839_v27 }
  0x87   :  { %v827_v29 = vmul.f32 %v818_v48, %v1841_v28  ;;  %v828_v49 = vmul.f32 %v818_v48, %v1849_v31  ;;  %v829_v15 = vmul.f32 %v818_v48, %v1851_v32  ;;  %v830_v16 = vmul.f32 %v818_v48, %v1853_v33 }
  0x88   :  { %v831_v3 = vmul.f32 %v818_v48, %v1855_v35  ;;  %v832_v39 = vmul.f32 %v818_v48, %v1857_v36  ;;  %v833_v4 = vmul.f32 %v818_v48, %v2864_v62  ;;  %v834_v20 = vmul.f32 %v818_v48, %v2865_v59 }
  0x89   :  { %v851_v18 = vrot.slane %v819_v56, 2  ;;  %v852_v10 = vrot.slane %v820_v11, 2  ;;  %v854_v46 = vrot.slane %v821_v30, 2  ;;  %v855_v50 = vrot.slane %v822_v45, 2 }
  0x8a   :  { %v857_v1 = vrot.slane %v823_v42, 2  ;;  %v858_v43 = vrot.slane %v824_v51, 2  ;;  %v860_v34 = vrot.slane %v825_v12, 2  ;;  %v861_v60 = vrot.slane %v826_v47, 2 }
  0x8b   :  { %v853_v44 = vsel %vm200_vm1, %v851_v18, %v852_v10  ;;  %v856_v57 = vsel %vm200_vm1, %v854_v46, %v855_v50  ;;  %v863_v6 = vrot.slane %v827_v29, 2  ;;  %v864_v0 = vrot.slane %v828_v49, 2 }
  0x8c   :  { %v859_v41 = vsel %vm200_vm1, %v857_v1, %v858_v43  ;;  %v862_v63 = vsel %vm200_vm1, %v860_v34, %v861_v60  ;;  %v866_v7 = vrot.slane %v829_v15, 2  ;;  %v867_v48 = vrot.slane %v830_v16, 2 }
  0x8d   :  { %v865_v56 = vsel %vm200_vm1, %v863_v6, %v864_v0  ;;  %v869_v11 = vrot.slane %v831_v3, 2  ;;  %v870_v30 = vrot.slane %v832_v39, 2  ;;  %v872_v45 = vrot.slane %v833_v4, 2 }
  0x8e   :  { %v868_v42 = vsel %vm200_vm1, %v866_v7, %v867_v48  ;;  %v873_v51 = vrot.slane %v834_v20, 2  ;;  %v883_v12 = vadd.f32 %v853_v44, %v807_v19  ;;  %v884_v47 = vadd.f32 %v856_v57, %v808_v54 }
  0x8f   :  { %v871_v18 = vsel %vm200_vm1, %v869_v11, %v870_v30  ;;  %v885_v29 = vadd.f32 %v859_v41, %v809_v38  ;;  %v886_v49 = vadd.f32 %v862_v63, %v810_v37  ;;  %v887_v10 = vadd.f32 %v865_v56, %v811_v52 }
  0x90   :  { %v874_v46 = vsel %vm200_vm1, %v872_v45, %v873_v51  ;;  %v888_v50 = vadd.f32 %v868_v42, %v812_v8  ;;  %v889_v15 = vadd.f32 %v871_v18, %v813_v14  ;;  %v895_v16 = vmul.f32 %v2306_v13, %v1816_v17 }
  0x91   :  { %v890_v3 = vadd.f32 %v874_v46, %v814_v40  ;;  %v896_v39 = vmul.f32 %v2306_v13, %v1827_v21  ;;  %v897_v7 = vmul.f32 %v2306_v13, %v1829_v22  ;;  %v898_v19 = vmul.f32 %v2306_v13, %v1831_v23 }
  0x92   :  { %v899_v54 = vmul.f32 %v2306_v13, %v1833_v24  ;;  %v900_v38 = vmul.f32 %v2306_v13, %v1835_v25  ;;  %v901_v37 = vmul.f32 %v2306_v13, %v1837_v26  ;;  %v902_v52 = vmul.f32 %v2306_v13, %v1839_v27 }
  0x93   :  { %v903_v8 = vmul.f32 %v2306_v13, %v1841_v28  ;;  %v904_v14 = vmul.f32 %v2306_v13, %v1849_v31  ;;  %v905_v40 = vmul.f32 %v2306_v13, %v1851_v32  ;;  %v906_v4 = vmul.f32 %v2306_v13, %v1853_v33 }
  0x94   :  { %v907_v20 = vmul.f32 %v2306_v13, %v1855_v35  ;;  %v908_v1 = vmul.f32 %v2306_v13, %v1857_v36  ;;  %v909_v43 = vmul.f32 %v2306_v13, %v2864_v62  ;;  %v910_v34 = vmul.f32 %v2306_v13, %v2865_v59 }
  0x95   :  { %v927_v60 = vrot.slane %v895_v16, 3  ;;  %v928_v44 = vrot.slane %v896_v39, 3  ;;  %v930_v57 = vrot.slane %v897_v7, 3  ;;  %v931_v6 = vrot.slane %v898_v19, 3 }
  0x96   :  { %v933_v0 = vrot.slane %v899_v54, 3  ;;  %v934_v41 = vrot.slane %v900_v38, 3  ;;  %v936_v63 = vrot.slane %v901_v37, 3  ;;  %v937_v48 = vrot.slane %v902_v52, 3 }
  0x97   :  { %v929_v56 = vsel %vm277_vm2, %v927_v60, %v928_v44  ;;  %v932_v11 = vsel %vm277_vm2, %v930_v57, %v931_v6  ;;  %v939_v30 = vrot.slane %v903_v8, 3  ;;  %v940_v45 = vrot.slane %v904_v14, 3 }
  0x98   :  { %v935_v42 = vsel %vm277_vm2, %v933_v0, %v934_v41  ;;  %v938_v51 = vsel %vm277_vm2, %v936_v63, %v937_v48  ;;  %v942_v18 = vrot.slane %v905_v40, 3  ;;  %v943_v13 = vrot.slane %v906_v4, 3 }
  0x99   :  { %v941_v46 = vsel %vm277_vm2, %v939_v30, %v940_v45  ;;  %v945_v16 = vrot.slane %v907_v20, 3  ;;  %v946_v39 = vrot.slane %v908_v1, 3  ;;  %v948_v7 = vrot.slane %v909_v43, 3 }
  0x9a   :  { %v944_v19 = vsel %vm277_vm2, %v942_v18, %v943_v13  ;;  %v949_v54 = vrot.slane %v910_v34, 3  ;;  %v959_v38 = vadd.f32 %v929_v56, %v883_v12  ;;  %v960_v37 = vadd.f32 %v932_v11, %v884_v47 }
  0x9b   :  { %v947_v52 = vsel %vm277_vm2, %v945_v16, %v946_v39  ;;  %v961_v8 = vadd.f32 %v935_v42, %v885_v29  ;;  %v962_v14 = vadd.f32 %v938_v51, %v886_v49  ;;  %v963_v60 = vadd.f32 %v941_v46, %v887_v10 }
  0x9c   :  { %v950_v44 = vsel %vm277_vm2, %v948_v7, %v949_v54  ;;  %v964_v57 = vadd.f32 %v944_v19, %v888_v50  ;;  %v965_v40 = vadd.f32 %v947_v52, %v889_v15  ;;  %v971_v4 = vmul.f32 %v2310_v58, %v1816_v17 }
  0x9d   :  { %v966_v20 = vadd.f32 %v950_v44, %v890_v3  ;;  %v972_v1 = vmul.f32 %v2310_v58, %v1827_v21  ;;  %v973_v12 = vmul.f32 %v2310_v58, %v1829_v22  ;;  %v974_v47 = vmul.f32 %v2310_v58, %v1831_v23 }
  0x9e   :  { %v975_v29 = vmul.f32 %v2310_v58, %v1833_v24  ;;  %v976_v49 = vmul.f32 %v2310_v58, %v1835_v25  ;;  %v977_v10 = vmul.f32 %v2310_v58, %v1837_v26  ;;  %v978_v17 = vmul.f32 %v2310_v58, %v1839_v27 }
  0x9f   :  { %v979_v21 = vmul.f32 %v2310_v58, %v1841_v28  ;;  %v980_v50 = vmul.f32 %v2310_v58, %v1849_v31  ;;  %v981_v15 = vmul.f32 %v2310_v58, %v1851_v32  ;;  %v982_v3 = vmul.f32 %v2310_v58, %v1853_v33 }
  0xa0   :  { %v983_v43 = vmul.f32 %v2310_v58, %v1855_v35  ;;  %v984_v34 = vmul.f32 %v2310_v58, %v1857_v36  ;;  %v985_v6 = vmul.f32 %v2310_v58, %v2864_v62  ;;  %v986_v0 = vmul.f32 %v2310_v58, %v2865_v59 }
  0xa1   :  { %v1003_v41 = vrot.slane %v971_v4, 4  ;;  %v1004_v63 = vrot.slane %v972_v1, 4  ;;  %v1006_v48 = vrot.slane %v973_v12, 4  ;;  %v1007_v56 = vrot.slane %v974_v47, 4 }
  0xa2   :  { %v1009_v11 = vrot.slane %v975_v29, 4  ;;  %v1010_v30 = vrot.slane %v976_v49, 4  ;;  %v1012_v45 = vrot.slane %v977_v10, 4  ;;  %v1013_v42 = vrot.slane %v978_v17, 4 }
  0xa3   :  { %v1005_v51 = vsel %vm354_vm3, %v1003_v41, %v1004_v63  ;;  %v1008_v18 = vsel %vm354_vm3, %v1006_v48, %v1007_v56  ;;  %v1015_v13 = vrot.slane %v979_v21, 4  ;;  %v1016_v46 = vrot.slane %v980_v50, 4  ;;  %v37_v21 = vld [vmem:[%s2824_s0 + $0x5c] sm:$0x3] }
  0xa4   :  { %v1011_v16 = vsel %vm354_vm3, %v1009_v11, %v1010_v30  ;;  %v1014_v39 = vsel %vm354_vm3, %v1012_v45, %v1013_v42  ;;  %v1018_v7 = vrot.slane %v981_v15, 4  ;;  %v1019_v58 = vrot.slane %v982_v3, 4 }
  0xa5   :  { %v1017_v19 = vsel %vm354_vm3, %v1015_v13, %v1016_v46  ;;  %v1021_v54 = vrot.slane %v983_v43, 4  ;;  %v1022_v52 = vrot.slane %v984_v34, 4  ;;  %v1024_v44 = vrot.slane %v985_v6, 4  ;;  %v2868_v46 = vld [vmem:[#allocation5_spill] sm:$0xff] }
  0xa6   :  { %v1020_v4 = vsel %vm354_vm3, %v1018_v7, %v1019_v58  ;;  %v1025_v1 = vrot.slane %v986_v0, 4  ;;  %v1035_v12 = vadd.f32 %v1005_v51, %v959_v38  ;;  %v1036_v47 = vadd.f32 %v1008_v18, %v960_v37  ;;  %v2444_v0 = vld [vmem:[%s2825_s1 + $0x20] sm:$0x1f] }
  0xa7   :  { %v1023_v29 = vsel %vm354_vm3, %v1021_v54, %v1022_v52  ;;  %v1037_v49 = vadd.f32 %v1011_v16, %v961_v8  ;;  %v1038_v10 = vadd.f32 %v1014_v39, %v962_v14  ;;  %v1039_v17 = vadd.f32 %v1017_v19, %v963_v60 }
  0xa8   :  { %v1026_v50 = vsel %vm354_vm3, %v1024_v44, %v1025_v1  ;;  %v1040_v15 = vadd.f32 %v1020_v4, %v964_v57  ;;  %v1041_v3 = vadd.f32 %v1023_v29, %v965_v40  ;;  %v1047_v43 = vmul.f32 %v2314_v55, %v1829_v22  ;;  %v2867_v40 = vld [vmem:[#allocation9_spill] sm:$0xff] }
  0xa9   :  { %v1042_v34 = vadd.f32 %v1026_v50, %v966_v20  ;;  %v1048_v38 = vmul.f32 %v2314_v55, %v1833_v24  ;;  %v1049_v37 = vmul.f32 %v2314_v55, %v1837_v26  ;;  %v1050_v8 = vmul.f32 %v2314_v55, %v1841_v28 }
  0xaa   :  { %v1051_v14 = vmul.f32 %v2314_v55, %v1851_v32  ;;  %v1052_v60 = vmul.f32 %v2314_v55, %v1855_v35  ;;  %v1053_v57 = vmul.f32 %v2314_v55, %v2864_v62  ;;  %v1054_v20 = vmul.f32 %v2314_v55, %v2867_v40 }
  0xab   :  { %v2439_v6 = vunpack.c.l.bf16 %v37_v21  ;;  %v1055_v41 = vadd.f32 %v1047_v43, %v1035_v12  ;;  %v1056_v63 = vadd.f32 %v1048_v38, %v1036_v47  ;;  %v1057_v48 = vadd.f32 %v1049_v37, %v1037_v49 }
  0xac   :  { %v1058_v56 = vadd.f32 %v1050_v8, %v1038_v10  ;;  %v1059_v11 = vadd.f32 %v1051_v14, %v1039_v17  ;;  %v1060_v30 = vadd.f32 %v1052_v60, %v1040_v15  ;;  %v1061_v45 = vadd.f32 %v1053_v57, %v1041_v3  ;;  %v2870_v17 = vld [vmem:[#allocation10_spill] sm:$0xff] }
  0xad   :  { %v1062_v42 = vadd.f32 %v1054_v20, %v1042_v34  ;;  %v1066_v51 = vrot.slane %v2297_v2, %v2863_v9  ;;  %v2450_v55 = vrot.slane %v2297_v2, %v2866_v61  ;;  %v2454_v18 = vrot.slane %v2297_v2, %v2859_v5 }
  0xae   :  { %v2458_v13 = vrot.slane %v2297_v2, %v2861_v53  ;;  %v2462_v16 = vrot.slane %v2444_v0, %v2868_v46  ;;  %v2466_v39 = vrot.slane %v2444_v0, %v2863_v9  ;;  %v2470_v7 = vrot.slane %v2444_v0, %v2866_v61 }
  0xaf   :  { %v1067_v58 = vmul.f32 %v1066_v51, %v1829_v22  ;;  %v1068_v19 = vmul.f32 %v1066_v51, %v1831_v23  ;;  %v1069_v54 = vmul.f32 %v1066_v51, %v1833_v24  ;;  %v1070_v2 = vmul.f32 %v1066_v51, %v1835_v25 }
  0xb0   :  { %2869 = vst [vmem:[#allocation8_spill] sm:$0xff] %v2470_v7  ;;  %v1071_v52 = vmul.f32 %v1066_v51, %v1837_v26  ;;  %v1072_v44 = vmul.f32 %v1066_v51, %v1839_v27  ;;  %v1073_v4 = vmul.f32 %v1066_v51, %v1841_v28  ;;  %v1074_v9 = vmul.f32 %v1066_v51, %v1849_v31 }
  0xb1   :  { %v1075_v1 = vmul.f32 %v1066_v51, %v1851_v32  ;;  %v1076_v61 = vmul.f32 %v1066_v51, %v1853_v33  ;;  %v1077_v12 = vmul.f32 %v1066_v51, %v1855_v35  ;;  %v1078_v47 = vmul.f32 %v1066_v51, %v1857_v36 }
  0xb2   :  { %v1079_v29 = vmul.f32 %v1066_v51, %v2864_v62  ;;  %v1080_v49 = vmul.f32 %v1066_v51, %v2865_v59  ;;  %v1081_v10 = vmul.f32 %v1066_v51, %v2867_v40  ;;  %v1082_v21 = vmul.f32 %v1066_v51, %v2870_v17 }
  0xb3   :  { %v1099_v50 = vrot.slane %v1067_v58, 1  ;;  %v1100_v15 = vrot.slane %v1068_v19, 1  ;;  %v1102_v3 = vrot.slane %v1069_v54, 1  ;;  %v1103_v43 = vrot.slane %v1070_v2, 1 }
  0xb4   :  { %v1105_v34 = vrot.slane %v1071_v52, 1  ;;  %v1106_v38 = vrot.slane %v1072_v44, 1  ;;  %v1108_v37 = vrot.slane %v1073_v4, 1  ;;  %v1109_v8 = vrot.slane %v1074_v9, 1 }
  0xb5   :  { %v1101_v14 = vsel %vm123_vm0, %v1099_v50, %v1100_v15  ;;  %v1104_v60 = vsel %vm123_vm0, %v1102_v3, %v1103_v43  ;;  %v1111_v57 = vrot.slane %v1075_v1, 1  ;;  %v1112_v20 = vrot.slane %v1076_v61, 1 }
  0xb6   :  { %v1107_v46 = vsel %vm123_vm0, %v1105_v34, %v1106_v38  ;;  %v1110_v53 = vsel %vm123_vm0, %v1108_v37, %v1109_v8  ;;  %v1114_v7 = vrot.slane %v1077_v12, 1  ;;  %v1115_v51 = vrot.slane %v1078_v47, 1 }
  0xb7   :  { %v1113_v58 = vsel %vm123_vm0, %v1111_v57, %v1112_v20  ;;  %v1117_v19 = vrot.slane %v1079_v29, 1  ;;  %v1118_v54 = vrot.slane %v1080_v49, 1  ;;  %v1120_v2 = vrot.slane %v1081_v10, 1 }
  0xb8   :  { %v1116_v52 = vsel %vm123_vm0, %v1114_v7, %v1115_v51  ;;  %v1121_v44 = vrot.slane %v1082_v21, 1  ;;  %v1131_v4 = vadd.f32 %v1101_v14, %v1055_v41  ;;  %v1132_v9 = vadd.f32 %v1104_v60, %v1056_v63 }
  0xb9   :  { %v1119_v50 = vsel %vm123_vm0, %v1117_v19, %v1118_v54  ;;  %v1133_v1 = vadd.f32 %v1107_v46, %v1057_v48  ;;  %v1134_v61 = vadd.f32 %v1110_v53, %v1058_v56  ;;  %v1135_v15 = vadd.f32 %v1113_v58, %v1059_v11 }
  0xba   :  { %v1122_v3 = vsel %vm123_vm0, %v1120_v2, %v1121_v44  ;;  %v1136_v43 = vadd.f32 %v1116_v52, %v1060_v30  ;;  %v1137_v12 = vadd.f32 %v1119_v50, %v1061_v45  ;;  %v1143_v47 = vmul.f32 %v2450_v55, %v1829_v22 }
  0xbb   :  { %v1138_v29 = vadd.f32 %v1122_v3, %v1062_v42  ;;  %v1144_v49 = vmul.f32 %v2450_v55, %v1831_v23  ;;  %v1145_v41 = vmul.f32 %v2450_v55, %v1833_v24  ;;  %v1146_v63 = vmul.f32 %v2450_v55, %v1835_v25 }
  0xbc   :  { %v1147_v53 = vmul.f32 %v2450_v55, %v1837_v26  ;;  %v1148_v48 = vmul.f32 %v2450_v55, %v1839_v27  ;;  %v1149_v56 = vmul.f32 %v2450_v55, %v1841_v28  ;;  %v1150_v11 = vmul.f32 %v2450_v55, %v1849_v31 }
  0xbd   :  { %v1151_v30 = vmul.f32 %v2450_v55, %v1851_v32  ;;  %v1152_v45 = vmul.f32 %v2450_v55, %v1853_v33  ;;  %v1153_v42 = vmul.f32 %v2450_v55, %v1855_v35  ;;  %v1154_v7 = vmul.f32 %v2450_v55, %v1857_v36 }
  0xbe   :  { %v1155_v10 = vmul.f32 %v2450_v55, %v2864_v62  ;;  %v1156_v21 = vmul.f32 %v2450_v55, %v2865_v59  ;;  %v1157_v34 = vmul.f32 %v2450_v55, %v2867_v40  ;;  %v1158_v38 = vmul.f32 %v2450_v55, %v2870_v17 }
  0xbf   :  { %v1175_v37 = vrot.slane %v1143_v47, 2  ;;  %v1176_v8 = vrot.slane %v1144_v49, 2  ;;  %v1178_v14 = vrot.slane %v1145_v41, 2  ;;  %v1179_v60 = vrot.slane %v1146_v63, 2 }
  0xc0   :  { %v1181_v57 = vrot.slane %v1147_v53, 2  ;;  %v1182_v20 = vrot.slane %v1148_v48, 2  ;;  %v1184_v46 = vrot.slane %v1149_v56, 2  ;;  %v1185_v51 = vrot.slane %v1150_v11, 2 }
  0xc1   :  { %v1177_v58 = vsel %vm200_vm1, %v1175_v37, %v1176_v8  ;;  %v1180_v19 = vsel %vm200_vm1, %v1178_v14, %v1179_v60  ;;  %v1187_v54 = vrot.slane %v1151_v30, 2  ;;  %v1188_v2 = vrot.slane %v1152_v45, 2 }
  0xc2   :  { %v1183_v52 = vsel %vm200_vm1, %v1181_v57, %v1182_v20  ;;  %v1186_v44 = vsel %vm200_vm1, %v1184_v46, %v1185_v51  ;;  %v1190_v50 = vrot.slane %v1153_v42, 2  ;;  %v1191_v55 = vrot.slane %v1154_v7, 2 }
  0xc3   :  { %v1189_v3 = vsel %vm200_vm1, %v1187_v54, %v1188_v2  ;;  %v1193_v47 = vrot.slane %v1155_v10, 2  ;;  %v1194_v49 = vrot.slane %v1156_v21, 2  ;;  %v1196_v41 = vrot.slane %v1157_v34, 2 }
  0xc4   :  { %v1192_v63 = vsel %vm200_vm1, %v1190_v50, %v1191_v55  ;;  %v1197_v53 = vrot.slane %v1158_v38, 2  ;;  %v1207_v48 = vadd.f32 %v1177_v58, %v1131_v4  ;;  %v1208_v56 = vadd.f32 %v1180_v19, %v1132_v9 }
  0xc5   :  { %v1195_v11 = vsel %vm200_vm1, %v1193_v47, %v1194_v49  ;;  %v1209_v30 = vadd.f32 %v1183_v52, %v1133_v1  ;;  %v1210_v45 = vadd.f32 %v1186_v44, %v1134_v61  ;;  %v1211_v37 = vadd.f32 %v1189_v3, %v1135_v15 }
  0xc6   :  { %v1198_v8 = vsel %vm200_vm1, %v1196_v41, %v1197_v53  ;;  %v1212_v14 = vadd.f32 %v1192_v63, %v1136_v43  ;;  %v1213_v42 = vadd.f32 %v1195_v11, %v1137_v12  ;;  %v1219_v7 = vmul.f32 %v2454_v18, %v1829_v22 }
  0xc7   :  { %v1214_v10 = vadd.f32 %v1198_v8, %v1138_v29  ;;  %v1220_v21 = vmul.f32 %v2454_v18, %v1831_v23  ;;  %v1221_v4 = vmul.f32 %v2454_v18, %v1833_v24  ;;  %v1222_v9 = vmul.f32 %v2454_v18, %v1835_v25 }
  0xc8   :  { %v1223_v1 = vmul.f32 %v2454_v18, %v1837_v26  ;;  %v1224_v61 = vmul.f32 %v2454_v18, %v1839_v27  ;;  %v1225_v15 = vmul.f32 %v2454_v18, %v1841_v28  ;;  %v1226_v43 = vmul.f32 %v2454_v18, %v1849_v31 }
  0xc9   :  { %v1227_v12 = vmul.f32 %v2454_v18, %v1851_v32  ;;  %v1228_v29 = vmul.f32 %v2454_v18, %v1853_v33  ;;  %v1229_v34 = vmul.f32 %v2454_v18, %v1855_v35  ;;  %v1230_v38 = vmul.f32 %v2454_v18, %v1857_v36 }
  0xca   :  { %v1231_v60 = vmul.f32 %v2454_v18, %v2864_v62  ;;  %v1232_v57 = vmul.f32 %v2454_v18, %v2865_v59  ;;  %v1233_v20 = vmul.f32 %v2454_v18, %v2867_v40  ;;  %v1234_v46 = vmul.f32 %v2454_v18, %v2870_v17 }
  0xcb   :  { %v1251_v51 = vrot.slane %v1219_v7, 3  ;;  %v1252_v58 = vrot.slane %v1220_v21, 3  ;;  %v1254_v19 = vrot.slane %v1221_v4, 3  ;;  %v1255_v54 = vrot.slane %v1222_v9, 3 }
  0xcc   :  { %v1257_v2 = vrot.slane %v1223_v1, 3  ;;  %v1258_v52 = vrot.slane %v1224_v61, 3  ;;  %v1260_v44 = vrot.slane %v1225_v15, 3  ;;  %v1261_v50 = vrot.slane %v1226_v43, 3 }
  0xcd   :  { %v1253_v55 = vsel %vm277_vm2, %v1251_v51, %v1252_v58  ;;  %v1256_v3 = vsel %vm277_vm2, %v1254_v19, %v1255_v54  ;;  %v1263_v47 = vrot.slane %v1227_v12, 3  ;;  %v1264_v49 = vrot.slane %v1228_v29, 3 }
  0xce   :  { %v1259_v41 = vsel %vm277_vm2, %v1257_v2, %v1258_v52  ;;  %v1262_v63 = vsel %vm277_vm2, %v1260_v44, %v1261_v50  ;;  %v1266_v53 = vrot.slane %v1229_v34, 3  ;;  %v1267_v18 = vrot.slane %v1230_v38, 3 }
  0xcf   :  { %v1265_v11 = vsel %vm277_vm2, %v1263_v47, %v1264_v49  ;;  %v1269_v8 = vrot.slane %v1231_v60, 3  ;;  %v1270_v7 = vrot.slane %v1232_v57, 3  ;;  %v1272_v21 = vrot.slane %v1233_v20, 3 }
  0xd0   :  { %v1268_v4 = vsel %vm277_vm2, %v1266_v53, %v1267_v18  ;;  %v1273_v9 = vrot.slane %v1234_v46, 3  ;;  %v1283_v1 = vadd.f32 %v1253_v55, %v1207_v48  ;;  %v1284_v61 = vadd.f32 %v1256_v3, %v1208_v56 }
  0xd1   :  { %v1271_v15 = vsel %vm277_vm2, %v1269_v8, %v1270_v7  ;;  %v1285_v43 = vadd.f32 %v1259_v41, %v1209_v30  ;;  %v1286_v12 = vadd.f32 %v1262_v63, %v1210_v45  ;;  %v1287_v29 = vadd.f32 %v1265_v11, %v1211_v37 }
  0xd2   :  { %v1274_v51 = vsel %vm277_vm2, %v1272_v21, %v1273_v9  ;;  %v1288_v58 = vadd.f32 %v1268_v4, %v1212_v14  ;;  %v1289_v34 = vadd.f32 %v1271_v15, %v1213_v42  ;;  %v1295_v38 = vmul.f32 %v2458_v13, %v1829_v22 }
  0xd3   :  { %v1290_v60 = vadd.f32 %v1274_v51, %v1214_v10  ;;  %v1296_v57 = vmul.f32 %v2458_v13, %v1831_v23  ;;  %v1297_v48 = vmul.f32 %v2458_v13, %v1833_v24  ;;  %v1298_v56 = vmul.f32 %v2458_v13, %v1835_v25 }
  0xd4   :  { %v1299_v30 = vmul.f32 %v2458_v13, %v1837_v26  ;;  %v1300_v45 = vmul.f32 %v2458_v13, %v1839_v27  ;;  %v1301_v37 = vmul.f32 %v2458_v13, %v1841_v28  ;;  %v1302_v22 = vmul.f32 %v2458_v13, %v1849_v31 }
  0xd5   :  { %v1303_v23 = vmul.f32 %v2458_v13, %v1851_v32  ;;  %v1304_v14 = vmul.f32 %v2458_v13, %v1853_v33  ;;  %v1305_v42 = vmul.f32 %v2458_v13, %v1855_v35  ;;  %v1306_v10 = vmul.f32 %v2458_v13, %v1857_v36 }
  0xd6   :  { %v1307_v20 = vmul.f32 %v2458_v13, %v2864_v62  ;;  %v1308_v46 = vmul.f32 %v2458_v13, %v2865_v59  ;;  %v1309_v19 = vmul.f32 %v2458_v13, %v2867_v40  ;;  %v1310_v54 = vmul.f32 %v2458_v13, %v2870_v17 }
  0xd7   :  { %v1327_v2 = vrot.slane %v1295_v38, 4  ;;  %v1328_v52 = vrot.slane %v1296_v57, 4  ;;  %v1330_v44 = vrot.slane %v1297_v48, 4  ;;  %v1331_v50 = vrot.slane %v1298_v56, 4 }
  0xd8   :  { %v1333_v55 = vrot.slane %v1299_v30, 4  ;;  %v1334_v3 = vrot.slane %v1300_v45, 4  ;;  %v1336_v47 = vrot.slane %v1301_v37, 4  ;;  %v1337_v49 = vrot.slane %v1302_v22, 4 }
  0xd9   :  { %v1329_v41 = vsel %vm354_vm3, %v1327_v2, %v1328_v52  ;;  %v1332_v63 = vsel %vm354_vm3, %v1330_v44, %v1331_v50  ;;  %v1339_v53 = vrot.slane %v1303_v23, 4  ;;  %v1340_v18 = vrot.slane %v1304_v14, 4 }
  0xda   :  { %v1335_v11 = vsel %vm354_vm3, %v1333_v55, %v1334_v3  ;;  %v1338_v8 = vsel %vm354_vm3, %v1336_v47, %v1337_v49  ;;  %v1342_v7 = vrot.slane %v1305_v42, 4  ;;  %v1343_v13 = vrot.slane %v1306_v10, 4 }
  0xdb   :  { %v1341_v21 = vsel %vm354_vm3, %v1339_v53, %v1340_v18  ;;  %v1345_v4 = vrot.slane %v1307_v20, 4  ;;  %v1346_v9 = vrot.slane %v1308_v46, 4  ;;  %v1348_v15 = vrot.slane %v1309_v19, 4 }
  0xdc   :  { %v1344_v51 = vsel %vm354_vm3, %v1342_v7, %v1343_v13  ;;  %v1349_v38 = vrot.slane %v1310_v54, 4  ;;  %v1359_v57 = vadd.f32 %v1329_v41, %v1283_v1  ;;  %v1360_v48 = vadd.f32 %v1332_v63, %v1284_v61 }
  0xdd   :  { %v1347_v56 = vsel %vm354_vm3, %v1345_v4, %v1346_v9  ;;  %v1361_v30 = vadd.f32 %v1335_v11, %v1285_v43  ;;  %v1362_v45 = vadd.f32 %v1338_v8, %v1286_v12  ;;  %v1363_v37 = vadd.f32 %v1341_v21, %v1287_v29 }
  0xde   :  { %v1350_v22 = vsel %vm354_vm3, %v1348_v15, %v1349_v38  ;;  %v1364_v23 = vadd.f32 %v1344_v51, %v1288_v58  ;;  %v1365_v14 = vadd.f32 %v1347_v56, %v1289_v34  ;;  %v1371_v42 = vmul.f32 %v2462_v16, %v1833_v24  ;;  %v2871_v34 = vld [vmem:[#allocation11_spill] sm:$0xff] }
  0xdf   :  { %v1372_v10 = vmul.f32 %v2462_v16, %v1837_v26  ;;  %v1373_v20 = vmul.f32 %v2462_v16, %v1841_v28  ;;  %v1374_v1 = vmul.f32 %v2462_v16, %v1851_v32  ;;  %v2626_v61 = vrot.slane %v2444_v0, %v2859_v5 }
  0xe0   :  { %v1366_v43 = vadd.f32 %v1350_v22, %v1290_v60  ;;  %v1375_v12 = vmul.f32 %v2462_v16, %v1855_v35  ;;  %v1376_v29 = vmul.f32 %v2462_v16, %v2864_v62  ;;  %v1377_v58 = vmul.f32 %v2462_v16, %v2867_v40 }
  0xe1   :  { %v1378_v46 = vmul.f32 %v2462_v16, %v2871_v34  ;;  %v1379_v19 = vadd.f32 %v1371_v42, %v1359_v57  ;;  %v1380_v54 = vadd.f32 %v1372_v10, %v1360_v48  ;;  %v1381_v2 = vadd.f32 %v1373_v20, %v1361_v30 }
  0xe2   :  { %v1382_v52 = vadd.f32 %v1374_v1, %v1362_v45  ;;  %v1383_v44 = vadd.f32 %v1375_v12, %v1363_v37  ;;  %v1384_v5 = vadd.f32 %v1376_v29, %v1364_v23  ;;  %v1385_v50 = vadd.f32 %v1377_v58, %v1365_v14 }
  0xe3   :  { %v1391_v60 = vmul.f32 %v2466_v39, %v1833_v24  ;;  %v1392_v55 = vmul.f32 %v2466_v39, %v1835_v25  ;;  %v1393_v3 = vmul.f32 %v2466_v39, %v1837_v26  ;;  %v1394_v47 = vmul.f32 %v2466_v39, %v1839_v27 }
  0xe4   :  { %v1395_v16 = vmul.f32 %v2466_v39, %v1841_v28  ;;  %v1396_v49 = vmul.f32 %v2466_v39, %v1849_v31  ;;  %v1397_v41 = vmul.f32 %v2466_v39, %v1851_v32  ;;  %v1398_v63 = vmul.f32 %v2466_v39, %v1853_v33 }
  0xe5   :  { %v1399_v53 = vmul.f32 %v2466_v39, %v1855_v35  ;;  %v1400_v18 = vmul.f32 %v2466_v39, %v1857_v36  ;;  %v1401_v11 = vmul.f32 %v2466_v39, %v2864_v62  ;;  %v1402_v8 = vmul.f32 %v2466_v39, %v2865_v59 }
  0xe6   :  { %v1403_v7 = vmul.f32 %v2466_v39, %v2867_v40  ;;  %v1404_v13 = vmul.f32 %v2466_v39, %v2870_v17  ;;  %v1405_v21 = vmul.f32 %v2466_v39, %v2871_v34  ;;  %v1406_v4 = vmul.f32 %v2466_v39, %v2439_v6 }
  0xe7   :  { %v1423_v9 = vrot.slane %v1391_v60, 1  ;;  %v1424_v15 = vrot.slane %v1392_v55, 1  ;;  %v1426_v51 = vrot.slane %v1393_v3, 1  ;;  %v1427_v38 = vrot.slane %v1394_v47, 1 }
  0xe8   :  { %v1429_v57 = vrot.slane %v1395_v16, 1  ;;  %v1430_v48 = vrot.slane %v1396_v49, 1  ;;  %v1432_v56 = vrot.slane %v1397_v41, 1  ;;  %v1433_v30 = vrot.slane %v1398_v63, 1 }
  0xe9   :  { %v1425_v45 = vsel %vm123_vm0, %v1423_v9, %v1424_v15  ;;  %v1428_v37 = vsel %vm123_vm0, %v1426_v51, %v1427_v38  ;;  %v1435_v22 = vrot.slane %v1399_v53, 1  ;;  %v1436_v23 = vrot.slane %v1400_v18, 1 }
  0xea   :  { %v1431_v14 = vsel %vm123_vm0, %v1429_v57, %v1430_v48  ;;  %v1434_v42 = vsel %vm123_vm0, %v1432_v56, %v1433_v30  ;;  %v1438_v10 = vrot.slane %v1401_v11, 1  ;;  %v1439_v39 = vrot.slane %v1402_v8, 1  ;;  %v2872_v8 = vld [vmem:[#allocation8_spill] sm:$0xff] }
  0xeb   :  { %v1437_v20 = vsel %vm123_vm0, %v1435_v22, %v1436_v23  ;;  %v1441_v1 = vrot.slane %v1403_v7, 1  ;;  %v1442_v12 = vrot.slane %v1404_v13, 1  ;;  %v1444_v29 = vrot.slane %v1405_v21, 1 }
  0xec   :  { %v1386_v58 = vadd.f32 %v1378_v46, %v1366_v43  ;;  %v1440_v60 = vsel %vm123_vm0, %v1438_v10, %v1439_v39  ;;  %v1445_v55 = vrot.slane %v1406_v4, 1  ;;  %v1455_v3 = vadd.f32 %v1425_v45, %v1379_v19 }
  0xed   :  { %v1443_v47 = vsel %vm123_vm0, %v1441_v1, %v1442_v12  ;;  %v1456_v16 = vadd.f32 %v1428_v37, %v1380_v54  ;;  %v1457_v49 = vadd.f32 %v1431_v14, %v1381_v2  ;;  %v1458_v41 = vadd.f32 %v1434_v42, %v1382_v52 }
  0xee   :  { %v1446_v63 = vsel %vm123_vm0, %v1444_v29, %v1445_v55  ;;  %v1459_v53 = vadd.f32 %v1437_v20, %v1383_v44  ;;  %v1460_v18 = vadd.f32 %v1440_v60, %v1384_v5  ;;  %v1461_v11 = vadd.f32 %v1443_v47, %v1385_v50 }
  0xef   :  { %v1467_v7 = vmul.f32 %v2872_v8, %v1833_v24  ;;  %v1468_v43 = vmul.f32 %v2872_v8, %v1835_v25  ;;  %v1469_v46 = vmul.f32 %v2872_v8, %v1837_v26  ;;  %v1470_v19 = vmul.f32 %v2872_v8, %v1839_v27 }
  0xf0   :  { %v1471_v54 = vmul.f32 %v2872_v8, %v1841_v28  ;;  %v1472_v2 = vmul.f32 %v2872_v8, %v1849_v31  ;;  %v1473_v52 = vmul.f32 %v2872_v8, %v1851_v32  ;;  %v1474_v44 = vmul.f32 %v2872_v8, %v1853_v33 }
  0xf1   :  { %v1475_v5 = vmul.f32 %v2872_v8, %v1855_v35  ;;  %v1476_v50 = vmul.f32 %v2872_v8, %v1857_v36  ;;  %v1477_v13 = vmul.f32 %v2872_v8, %v2864_v62  ;;  %v1478_v21 = vmul.f32 %v2872_v8, %v2865_v59 }
  0xf2   :  { %v1479_v4 = vmul.f32 %v2872_v8, %v2867_v40  ;;  %v1480_v9 = vmul.f32 %v2872_v8, %v2870_v17  ;;  %v1481_v15 = vmul.f32 %v2872_v8, %v2871_v34  ;;  %v1482_v51 = vmul.f32 %v2872_v8, %v2439_v6 }
  0xf3   :  { %v1499_v38 = vrot.slane %v1467_v7, 2  ;;  %v1500_v57 = vrot.slane %v1468_v43, 2  ;;  %v1502_v48 = vrot.slane %v1469_v46, 2  ;;  %v1503_v56 = vrot.slane %v1470_v19, 2 }
  0xf4   :  { %v1505_v30 = vrot.slane %v1471_v54, 2  ;;  %v1506_v45 = vrot.slane %v1472_v2, 2  ;;  %v1508_v37 = vrot.slane %v1473_v52, 2  ;;  %v1509_v22 = vrot.slane %v1474_v44, 2 }
  0xf5   :  { %v1501_v23 = vsel %vm200_vm1, %v1499_v38, %v1500_v57  ;;  %v1504_v14 = vsel %vm200_vm1, %v1502_v48, %v1503_v56  ;;  %v1511_v42 = vrot.slane %v1475_v5, 2  ;;  %v1512_v10 = vrot.slane %v1476_v50, 2 }
  0xf6   :  { %v1507_v39 = vsel %vm200_vm1, %v1505_v30, %v1506_v45  ;;  %v1510_v20 = vsel %vm200_vm1, %v1508_v37, %v1509_v22  ;;  %v1514_v1 = vrot.slane %v1477_v13, 2  ;;  %v1515_v12 = vrot.slane %v1478_v21, 2 }
  0xf7   :  { %v1513_v29 = vsel %vm200_vm1, %v1511_v42, %v1512_v10  ;;  %v1517_v60 = vrot.slane %v1479_v4, 2  ;;  %v1518_v55 = vrot.slane %v1480_v9, 2  ;;  %v1520_v47 = vrot.slane %v1481_v15, 2 }
  0xf8   :  { %v1462_v8 = vadd.f32 %v1446_v63, %v1386_v58  ;;  %v1516_v7 = vsel %vm200_vm1, %v1514_v1, %v1515_v12  ;;  %v1521_v43 = vrot.slane %v1482_v51, 2  ;;  %v1531_v46 = vadd.f32 %v1501_v23, %v1455_v3 }
  0xf9   :  { %v1519_v19 = vsel %vm200_vm1, %v1517_v60, %v1518_v55  ;;  %v1532_v54 = vadd.f32 %v1504_v14, %v1456_v16  ;;  %v1533_v2 = vadd.f32 %v1507_v39, %v1457_v49  ;;  %v1534_v52 = vadd.f32 %v1510_v20, %v1458_v41 }
  0xfa   :  { %v1522_v44 = vsel %vm200_vm1, %v1520_v47, %v1521_v43  ;;  %v1535_v5 = vadd.f32 %v1513_v29, %v1459_v53  ;;  %v1536_v50 = vadd.f32 %v1516_v7, %v1460_v18  ;;  %v1537_v13 = vadd.f32 %v1519_v19, %v1461_v11 }
  0xfb   :  { %v1543_v21 = vmul.f32 %v2626_v61, %v1833_v24  ;;  %v1544_v58 = vmul.f32 %v2626_v61, %v1835_v25  ;;  %v1545_v63 = vmul.f32 %v2626_v61, %v1837_v26  ;;  %v1546_v3 = vmul.f32 %v2626_v61, %v1839_v27 }
  0xfc   :  { %v1547_v16 = vmul.f32 %v2626_v61, %v1841_v28  ;;  %v1548_v49 = vmul.f32 %v2626_v61, %v1849_v31  ;;  %v1549_v41 = vmul.f32 %v2626_v61, %v1851_v32  ;;  %v1550_v53 = vmul.f32 %v2626_v61, %v1853_v33 }
  0xfd   :  { %v1551_v18 = vmul.f32 %v2626_v61, %v1855_v35  ;;  %v1552_v11 = vmul.f32 %v2626_v61, %v1857_v36  ;;  %v1553_v4 = vmul.f32 %v2626_v61, %v2864_v62  ;;  %v1554_v9 = vmul.f32 %v2626_v61, %v2865_v59 }
  0xfe   :  { %v1555_v15 = vmul.f32 %v2626_v61, %v2867_v40  ;;  %v1556_v51 = vmul.f32 %v2626_v61, %v2870_v17  ;;  %v1557_v38 = vmul.f32 %v2626_v61, %v2871_v34  ;;  %v1558_v57 = vmul.f32 %v2626_v61, %v2439_v6 }
  0xff   :  { %v1575_v48 = vrot.slane %v1543_v21, 3  ;;  %v1576_v56 = vrot.slane %v1544_v58, 3  ;;  %v1578_v30 = vrot.slane %v1545_v63, 3  ;;  %v1579_v45 = vrot.slane %v1546_v3, 3 }
 0x100   :  { %v1581_v37 = vrot.slane %v1547_v16, 3  ;;  %v1582_v22 = vrot.slane %v1548_v49, 3  ;;  %v1584_v23 = vrot.slane %v1549_v41, 3  ;;  %v1585_v14 = vrot.slane %v1550_v53, 3  ;;  %v2873_v49 = vld [vmem:[#allocation12_spill] sm:$0xff] }
 0x101   :  { %v1538_v42 = vadd.f32 %v1522_v44, %v1462_v8  ;;  %v1577_v10 = vsel %vm277_vm2, %v1575_v48, %v1576_v56  ;;  %v1587_v39 = vrot.slane %v1551_v18, 3  ;;  %v1588_v20 = vrot.slane %v1552_v11, 3 }
 0x102   :  { %v1580_v1 = vsel %vm277_vm2, %v1578_v30, %v1579_v45  ;;  %v1583_v12 = vsel %vm277_vm2, %v1581_v37, %v1582_v22  ;;  %v1590_v29 = vrot.slane %v1553_v4, 3  ;;  %v1591_v60 = vrot.slane %v1554_v9, 3 }
 0x103   :  { %v1586_v61 = vsel %vm277_vm2, %v1584_v23, %v1585_v14  ;;  %v1593_v55 = vrot.slane %v1555_v15, 3  ;;  %v1594_v47 = vrot.slane %v1556_v51, 3  ;;  %v1596_v7 = vrot.slane %v1557_v38, 3  ;;  %v1751_v14 = vld [vmem:[%s2826_s2] ss:$0 sm:$0xff] }
 0x104   :  { %v1589_v43 = vsel %vm277_vm2, %v1587_v39, %v1588_v20  ;;  %v1592_v19 = vsel %vm277_vm2, %v1590_v29, %v1591_v60  ;;  %v1597_v8 = vrot.slane %v1558_v57, 3  ;;  %v1607_v21 = vadd.f32 %v1577_v10, %v1531_v46 }
 0x105   :  { %v1595_v44 = vsel %vm277_vm2, %v1593_v55, %v1594_v47  ;;  %v1608_v58 = vadd.f32 %v1580_v1, %v1532_v54  ;;  %v1609_v3 = vadd.f32 %v1583_v12, %v1533_v2  ;;  %v1610_v16 = vadd.f32 %v1586_v61, %v1534_v52 }
 0x106   :  { %v1598_v63 = vsel %vm277_vm2, %v1596_v7, %v1597_v8  ;;  %v1618_v41 = vrot.slane %v2444_v0, %v2873_v49  ;;  %v1611_v53 = vadd.f32 %v1589_v43, %v1535_v5  ;;  %v1612_v18 = vadd.f32 %v1592_v19, %v1536_v50 }
 0x107   :  { %v1613_v11 = vadd.f32 %v1595_v44, %v1537_v13  ;;  %v1614_v4 = vadd.f32 %v1598_v63, %v1538_v42 }
 0x108   :  { %v1619_v9 = vmul.f32 %v1618_v41, %v1833_v24  ;;  %v1620_v15 = vmul.f32 %v1618_v41, %v1835_v25  ;;  %v1621_v51 = vmul.f32 %v1618_v41, %v1837_v26  ;;  %v1622_v46 = vmul.f32 %v1618_v41, %v1839_v27 }
 0x109   :  { %v1623_v54 = vmul.f32 %v1618_v41, %v1841_v28  ;;  %v1624_v2 = vmul.f32 %v1618_v41, %v1849_v31  ;;  %v1625_v52 = vmul.f32 %v1618_v41, %v1851_v32  ;;  %v1626_v0 = vmul.f32 %v1618_v41, %v1853_v33 }
 0x10a   :  { %v1627_v5 = vmul.f32 %v1618_v41, %v1855_v35  ;;  %v1628_v50 = vmul.f32 %v1618_v41, %v1857_v36  ;;  %v1629_v24 = vmul.f32 %v1618_v41, %v2864_v62  ;;  %v1630_v25 = vmul.f32 %v1618_v41, %v2865_v59 }
 0x10b   :  { %v1631_v26 = vmul.f32 %v1618_v41, %v2867_v40  ;;  %v1632_v27 = vmul.f32 %v1618_v41, %v2870_v17  ;;  %v1633_v28 = vmul.f32 %v1618_v41, %v2871_v34  ;;  %v1634_v31 = vmul.f32 %v1618_v41, %v2439_v6 }
 0x10c   :  { %v1651_v13 = vrot.slane %v1619_v9, 4  ;;  %v1652_v32 = vrot.slane %v1620_v15, 4  ;;  %v1654_v38 = vrot.slane %v1621_v51, 4  ;;  %v1655_v33 = vrot.slane %v1622_v46, 4 }
 0x10d   :  { %v1657_v57 = vrot.slane %v1623_v54, 4  ;;  %v1658_v35 = vrot.slane %v1624_v2, 4  ;;  %v1660_v48 = vrot.slane %v1625_v52, 4  ;;  %v1661_v36 = vrot.slane %v1626_v0, 4 }
 0x10e   :  { %v1653_v62 = vsel %vm354_vm3, %v1651_v13, %v1652_v32  ;;  %v1656_v59 = vsel %vm354_vm3, %v1654_v38, %v1655_v33  ;;  %v1663_v56 = vrot.slane %v1627_v5, 4  ;;  %v1664_v40 = vrot.slane %v1628_v50, 4 }
 0x10f   :  { %v1659_v17 = vsel %vm354_vm3, %v1657_v57, %v1658_v35  ;;  %v1662_v34 = vsel %vm354_vm3, %v1660_v48, %v1661_v36  ;;  %v1666_v30 = vrot.slane %v1629_v24, 4  ;;  %v1667_v6 = vrot.slane %v1630_v25, 4 }
 0x110   :  { %v1665_v45 = vsel %vm354_vm3, %v1663_v56, %v1664_v40  ;;  %v1669_v37 = vrot.slane %v1631_v26, 4  ;;  %v1670_v22 = vrot.slane %v1632_v27, 4  ;;  %v1672_v23 = vrot.slane %v1633_v28, 4 }
 0x111   :  { %v1668_v42 = vsel %vm354_vm3, %v1666_v30, %v1667_v6  ;;  %v1673_v10 = vrot.slane %v1634_v31, 4  ;;  %v1683_v39 = vadd.f32 %v1653_v62, %v1607_v21  ;;  %v1684_v20 = vadd.f32 %v1656_v59, %v1608_v58 }
 0x112   :  { %v1671_v1 = vsel %vm354_vm3, %v1669_v37, %v1670_v22  ;;  %v1685_v12 = vadd.f32 %v1659_v17, %v1609_v3  ;;  %v1686_v29 = vadd.f32 %v1662_v34, %v1610_v16  ;;  %v1687_v60 = vadd.f32 %v1665_v45, %v1611_v53 }
 0x113   :  { %v1674_v61 = vsel %vm354_vm3, %v1672_v23, %v1673_v10  ;;  %v1688_v55 = vadd.f32 %v1668_v42, %v1612_v18  ;;  %v1689_v47 = vadd.f32 %v1671_v1, %v1613_v11  ;;  %v1698_v7 = vadd.f32 %v1751_v14, %v1683_v39 }
 0x114   :  { %v1690_v43 = vadd.f32 %v1674_v61, %v1614_v4  ;;  %v1699_v19 = vadd.f32 %v1751_v14, %v1684_v20  ;;  %v1700_v8 = vadd.f32 %v1751_v14, %v1685_v12  ;;  %v1701_v44 = vadd.f32 %v1751_v14, %v1686_v29 }
 0x115   :  { %v1702_v63 = vadd.f32 %v1751_v14, %v1687_v60  ;;  %v1703_v49 = vadd.f32 %v1751_v14, %v1688_v55  ;;  %v1704_v41 = vadd.f32 %v1751_v14, %v1689_v47  ;;  %vm1706_vm5 = vcmp.gt.f32.partialorder %v1698_v7, 0.0 }
 0x116   :  { %v1705_v21 = vadd.f32 %v1751_v14, %v1690_v43  ;;  %vm1707_vm6 = vcmp.gt.f32.partialorder %v1699_v19, 0.0  ;;  %vm1708_vm7 = vcmp.gt.f32.partialorder %v1700_v8, 0.0  ;;  %vm1709_vm8 = vcmp.gt.f32.partialorder %v1701_v44, 0.0 }
 0x117   :  { %vm1710_vm9 = vcmp.gt.f32.partialorder %v1702_v63, 0.0  ;;  %vm1711_vm10 = vcmp.gt.f32.partialorder %v1703_v49, 0.0  ;;  %v1714_v58 = vmul.f32 0.01, %v1698_v7  ;;  %vm1712_vm11 = vcmp.gt.f32.partialorder %v1704_v41, 0.0 }
 0x118   :  { %vm1713_vm12 = vcmp.gt.f32.partialorder %v1705_v21, 0.0  ;;  %v1715_v3 = vmul.f32 0.01, %v1699_v19  ;;  %v1716_v16 = vmul.f32 0.01, %v1700_v8 }
 0x119   :  { %v1717_v53 = vmul.f32 0.01, %v1701_v44  ;;  %v1718_v18 = vmul.f32 0.01, %v1702_v63  ;;  %v1719_v11 = vmul.f32 0.01, %v1703_v49  ;;  %v1722_v4 = vsel %vm1706_vm5, %v1698_v7, %v1714_v58 }
 0x11a   :  { %v1720_v9 = vmul.f32 0.01, %v1704_v41  ;;  %v1721_v15 = vmul.f32 0.01, %v1705_v21  ;;  %v1723_v51 = vsel %vm1707_vm6, %v1699_v19, %v1715_v3  ;;  %v1724_v46 = vsel %vm1708_vm7, %v1700_v8, %v1716_v16 }
 0x11b   :  { %v1725_v54 = vsel %vm1709_vm8, %v1701_v44, %v1717_v53  ;;  %v1726_v2 = vsel %vm1710_vm9, %v1702_v63, %v1718_v18  ;;  %v1727_v52 = vsel %vm1711_vm10, %v1703_v49, %v1719_v11  ;;  %v1730_v0 = vpack.c.bf16 %v1722_v4, %v1722_v4 }
 0x11c   :  { %v1728_v5 = vsel %vm1712_vm11, %v1704_v41, %v1720_v9  ;;  %v1729_v50 = vsel %vm1713_vm12, %v1705_v21, %v1721_v15  ;;  %v1731_v24 = vpack.c.bf16 %v1723_v51, %v1723_v51  ;;  %v1732_v25 = vpack.c.bf16 %v1724_v46, %v1724_v46 }
 0x11d   :  { %v1733_v26 = vpack.c.bf16 %v1725_v54, %v1725_v54  ;;  %v1734_v27 = vpack.c.bf16 %v1726_v2, %v1726_v2  ;;  %v1735_v28 = vpack.c.bf16 %v1727_v52, %v1727_v52  ;;  %v1736_v31 = vpack.c.bf16 %v1728_v5, %v1728_v5  ;;  %1739 = vst.msk [vmem:[%s2827_s3] sm:$0xf] %vm1738_vm4, %v1730_v0 }
 0x11e   :  { %v1737_v13 = vpack.c.bf16 %v1729_v50, %v1729_v50  ;;  %1740 = vst.msk [vmem:[%s2827_s3 + $0x4] sm:$0xf] %vm1738_vm4, %v1731_v24  ;;  %1741 = vst.msk [vmem:[%s2827_s3 + $0x8] sm:$0xf] %vm1738_vm4, %v1732_v25 }
 0x11f   :  { %1742 = vst.msk [vmem:[%s2827_s3 + $0xc] sm:$0xf] %vm1738_vm4, %v1733_v26  ;;  %1743 = vst.msk [vmem:[%s2827_s3 + $0x10] sm:$0xf] %vm1738_vm4, %v1734_v27 }
 0x120   :  { %1744 = vst.msk [vmem:[%s2827_s3 + $0x14] sm:$0xf] %vm1738_vm4, %v1735_v28  ;;  %1745 = vst.msk [vmem:[%s2827_s3 + $0x18] sm:$0xf] %vm1738_vm4, %v1736_v31 }
 0x121   :  { %1746 = vst.msk [vmem:[%s2827_s3 + $0x1c] sm:$0xf] %vm1738_vm4, %v1737_v13 }

// kernel: wfcg_forward.16
= control target key start
LH: loop header
LB: loop body
LE: loop exit
PB: predicated region body
PF: predicated region fallthrough
CT: control target
= control target key end

     0   :  { %vm170_vm0 = vcmask 1045504   ;;  %vm163_vm1 = vcmask 244736   ;;  %v2919_v28 = vmov 0   ;;  %v369_v33 = vlaneseq  ;;  %s2921_s12 = smov 98   ;;  %s2922_s21 = smov 68   ;;  %s3415_s1 = inlined_call_operand.vmem [shape: f32[128,120], index: 1, kind: input, shape index: {}]   ;;  %s3416_s0 = inlined_call_operand.vmem [shape: f32[16,128], index: 0, kind: input, shape index: {}]   ;;  %s3417_s3 = inlined_call_operand.vmem [shape: f32[30,4], index: 3, kind: input, shape index: {}]   ;;  %s3418_s2 = inlined_call_operand.vmem [shape: f32[30,4], index: 2, kind: input, shape index: {}]   ;;  %s3419_s4 = inlined_call_operand.vmem [shape: f32[16,16], index: 4, kind: input, shape index: {}]   ;;  %s3420_s5 = inlined_call_operand.vmem [shape: f32[120,64], index: 5, kind: input, shape index: {}]   ;;  %s3421_s6 = inlined_call_operand.vmem [shape: f32[128,1], index: 6, kind: input, shape index: {}]   ;;  %s3422_s7 = inlined_call_operand.vmem [shape: f32[64,64], index: 7, kind: input, shape index: {}]   ;;  %s3423_s8 = inlined_call_operand.vmem [shape: bf16[16,64], index: 8, kind: output, shape index: {}]  }
   0x1   :  { %v48_v0 = vld [vmem:[%s3415_s1 + $0x78] sm:$0xff]  ;;  %v47_v1 = vld [vmem:[%s3415_s1 + $0x70] sm:$0xff]  ;;  %v46_v2 = vld [vmem:[%s3415_s1 + $0x68] sm:$0xff]  ;;  %2857 = vset.pattern.permute.xlu0 %v2919_v28  ;;  %vm385_vm4 = vcmask 130048   ;;  %s2923_s22 = smov 126   ;;  %vm865_vm11 = vcmask 1041408  }
   0x2   :  { %2590 = vmatprep.subr.mxu0 %v48_v0  ;;  %v45_v3 = vld [vmem:[%s3415_s1 + $0x60] sm:$0xff]  ;;  %v44_v5 = vld [vmem:[%s3415_s1 + $0x58] sm:$0xff]  ;;  %v2997_v7 = vld [vmem:[%s3417_s3 + $0x10] sm:$0xff]  ;;  %v370_v34 = vshrl.u32 %v369_v33, 7  ;;  %s2925_s30 = smov 125  }
   0x3   :  { %2591 = vmatpush3.msra.mxu0 %v48_v0  ;;  %v29_v4 = vld [vmem:[%s3416_s0] sm:$0xff]  ;;  %v2992_v6 = vld [vmem:[%s3417_s3 + $0x18] sm:$0x3f]  ;;  %v43_v8 = vld [vmem:[%s3415_s1 + $0x50] sm:$0xff] }
   0x4   :  { %2592 = vmatprep.subr.mxu0 %v47_v1  ;;  %2622 = vmatprep.mubr.f32.mxu0 %v29_v4  ;;  %v3009_v9 = vld [vmem:[%s3417_s3 + $0x8] sm:$0xff]  ;;  %v3019_v11 = vld [vmem:[%s3417_s3] sm:$0xff]  ;;  %v40_v13 = vld [vmem:[%s3415_s1 + $0x38] sm:$0xff]  ;;  %v3101_v35 = vsub.s32 0, %v370_v34 }
   0x5   :  { %2593 = vmatpush3.msra.mxu0 %v47_v1  ;;  %2636 = vmatprep.subr.msk.mxu1 %vm170_vm0, %v2992_v6  ;;  %v42_v10 = vld [vmem:[%s3415_s1 + $0x48] sm:$0xff]  ;;  %v41_v12 = vld [vmem:[%s3415_s1 + $0x40] sm:$0xff]  ;;  %v39_v14 = vld [vmem:[%s3415_s1 + $0x30] sm:$0xff] }
   0x6   :  { %2594 = vmatprep.subr.mxu0 %v46_v2  ;;  %2637 = vmatpush3.msk.msra.mxu1 %vm170_vm0, %v2992_v6  ;;  %v38_v15 = vld [vmem:[%s3415_s1 + $0x28] sm:$0xff]  ;;  %v37_v16 = vld [vmem:[%s3415_s1 + $0x20] sm:$0xff]  ;;  %v36_v17 = vld [vmem:[%s3415_s1 + $0x18] sm:$0xff] }
   0x7   :  { %2595 = vmatpush3.msra.mxu0 %v46_v2  ;;  %2638 = vmatprep.subr.mxu1 %v2997_v7  ;;  %v35_v18 = vld [vmem:[%s3415_s1 + $0x10] sm:$0xff]  ;;  %v34_v19 = vld [vmem:[%s3415_s1 + $0x8] sm:$0xff]  ;;  %v33_v20 = vld [vmem:[%s3415_s1] sm:$0xff]  ;;  %s2924_s1 = smov 38  }
   0x8   :  { %2596 = vmatprep.subr.mxu0 %v45_v3  ;;  %2639 = vmatpush3.msra.mxu1 %v2997_v7  ;;  %v30_v21 = vld [vmem:[%s3416_s0 + $0x8] sm:$0xff]  ;;  %v3058_v22 = vld [vmem:[%s3418_s2 + $0x18] sm:$0x3f]  ;;  %v3063_v23 = vld [vmem:[%s3418_s2 + $0x10] sm:$0xff] }
   0x9   :  { %2597 = vmatpush3.msra.mxu0 %v45_v3  ;;  %2640 = vmatprep.subr.mxu1 %v3009_v9  ;;  %v3074_v24 = vld [vmem:[%s3418_s2 + $0x8] sm:$0xff]  ;;  %v3081_v25 = vld [vmem:[%s3418_s2] sm:$0xff] }
   0xa   :  { %2598 = vmatprep.subr.mxu0 %v44_v5  ;;  %2641 = vmatpush3.msra.mxu1 %v3009_v9  ;;  %v3107_v39 = vld [vmem:[%s3419_s4] sm:$0xff]  ;;  %v3112_v42 = vld [vmem:[%s3419_s4 + $0x8] sm:$0xff]  ;;  %s2920_s4 = smov 127  }
   0xb   :  { %2599 = vmatpush3.msra.mxu0 %v44_v5  ;;  %2642 = vmatprep.subr.mxu1 %v3019_v11  ;;  %vm381_vm3 = vcmp.gt.f32.partialorder %v3107_v39, 0.0  ;;  %vm382_vm6 = vcmp.gt.f32.partialorder %v3112_v42, 0.0 }
   0xc   :  { %2600 = vmatprep.subr.mxu0 %v43_v8  ;;  %2643 = vmatpush3.msra.mxu1 %v3019_v11 }
   0xd   :  { %2601 = vmatpush3.msra.mxu0 %v43_v8 }
   0xe   :  { %2602 = vmatprep.subr.mxu0 %v42_v10 }
   0xf   :  { %2603 = vmatpush3.msra.mxu0 %v42_v10 }
  0x10   :  { %2604 = vmatprep.subr.mxu0 %v41_v12 }
  0x11   :  { %2605 = vmatpush3.msra.mxu0 %v41_v12 }
  0x12   :  { %2606 = vmatprep.subr.mxu0 %v40_v13 }
  0x13   :  { %2607 = vmatpush3.msra.mxu0 %v40_v13 }
  0x14   :  { %2608 = vmatprep.subr.mxu0 %v39_v14 }
  0x15   :  { %2609 = vmatpush3.msra.mxu0 %v39_v14 }
  0x16   :  { %2610 = vmatprep.subr.mxu0 %v38_v15 }
  0x17   :  { %2611 = vmatpush3.msra.mxu0 %v38_v15 }
  0x18   :  { %2612 = vmatprep.subr.mxu0 %v37_v16 }
  0x19   :  { %2613 = vmatpush3.msra.mxu0 %v37_v16 }
  0x1a   :  { %2614 = vmatprep.subr.mxu0 %v36_v17 }
  0x1b   :  { %2615 = vmatpush3.msra.mxu0 %v36_v17 }
  0x1c   :  { %2616 = vmatprep.subr.mxu0 %v35_v18 }
  0x1d   :  { %2617 = vmatpush3.msra.mxu0 %v35_v18  ;;  %v3155_v18 = vld [vmem:[%s3420_s5 + $0x18] sm:$0xff] }
  0x1e   :  { %2618 = vmatprep.subr.mxu0 %v34_v19 }
  0x1f   :  { %2619 = vmatpush3.msra.mxu0 %v34_v19  ;;  %v134_v19 = vld [vmem:[%s3420_s5 + $0x10] sm:$0xff] }
  0x20   :  { %2620 = vmatprep.subr.mxu0 %v33_v20 }
  0x21   :  { %2621 = vmatpush3.msra.mxu0 %v33_v20  ;;  %v133_v20 = vld [vmem:[%s3420_s5 + $0x8] sm:$0xff] }
  0x22   :  { %2623 = vmatmul.mubr.f32.vlgmr.msra.gmra.mxu0 %v30_v21  ;;  %2625 = vmatprep.subr.msk.mxu0 %vm170_vm0, %v3058_v22  ;;  %v132_v21 = vld [vmem:[%s3420_s5] sm:$0xff] }
  0x23   :  { %2626 = vmatpush3.msk.msra.mxu0 %vm170_vm0, %v3058_v22 }
  0x24   :  { %2627 = vmatprep.subr.mxu0 %v3063_v23 }
  0x25   :  { %2628 = vmatpush3.msra.mxu0 %v3063_v23 }
  0x26   :  { %2629 = vmatprep.subr.mxu0 %v3074_v24 }
  0x27   :  { %2630 = vmatpush3.msra.mxu0 %v3074_v24 }
  0x28   :  { %2631 = vmatprep.subr.mxu0 %v3081_v25 }
  0x29   :  { %2632 = vmatpush3.msra.mxu0 %v3081_v25 }
  0xe2   :  { %v3085_v26 = vpop.f32.mrf.mxu0 }
  0xe3   :  { %2647 = vmatprep.subr.mxu1 %v3085_v26 }
  0xe4   :  { %v3088_v27 = vpop.f32.mrf.mxu0 }
  0xe5   :  { %2633 = vmatprep.mubr.msk.f32.mxu0 %vm163_vm1, %v3088_v27  ;;  %2644 = vmatprep.mubr.msk.f32.mxu1 %vm163_vm1, %v3088_v27 }
  0xe6   :  { %2634 = vmatmul.mubr.msk.f32.vlgmr.msra.gmra.mxu0 %vm163_vm1, %v3085_v26  ;;  %2645 = vmatmul.mubr.msk.f32.vlgmr.msra.gmra.mxu1 %vm163_vm1, %v3085_v26 }
  0xe7   :  { %2648 = vmatpush3.msra.mxu1 %v3085_v26 }
  0xe8   :  { %2649 = vmatprep.subr.mxu1 %v3088_v27 }
  0xe9   :  { %2650 = vmatpush3.msra.mxu1 %v3088_v27 }
 0x1a6   :  { %v2635_v29 = vpop.f32.mrf.mxu0  ;;  %v2646_v30 = vpop.f32.mrf.mxu1 }
 0x1a8   :  { %v240_v31 = vpop.f32.mrf.mxu0  ;;  %v318_v32 = vpop.f32.mrf.mxu1 }
 0x1a9   :  { %327 = vxpose.xlu1.b32.start [1/2] (short) (narrow) %v318_v32, 8  ;;  %361 = vperm.xlu0 %2857, %v240_v31  }
 0x1ad   :  { %328 = vxpose.xlu1.b32.end [2/2] (short) (narrow) %v2646_v30, 8  ;;  %366 = vperm.xlu0 %2857, %v2635_v29  }
 0x1cb   :  { %2858 = vset.pattern.permute.xlu1 %v2919_v28 }
 0x224   :  { %v362_v36 = vpop.permute.xlu0 %361 }
 0x225   :  { %v343_v37 = vpop.trf.xlu1 }
 0x226   :  { %v372_v38 = vrot.slane %v343_v37, %v3101_v35 }
 0x228   :  { %v373_v40 = vadd.f32 %v372_v38, %v362_v36  ;;  %v367_v41 = vpop.permute.xlu0 %366 }
 0x229   :  { %v374_v43 = vadd.f32 %v372_v38, %v367_v41 }
 0x22a   :  { %vm375_vm2 = vcmp.gt.f32.partialorder %v373_v40, 0.0  ;;  %v377_v44 = vmul.f32 0.2, %v373_v40 }
 0x22b   :  { %v378_v45 = vmul.f32 0.2, %v374_v43  ;;  %vm376_vm5 = vcmp.gt.f32.partialorder %v374_v43, 0.0 }
 0x22c   :  { %v379_v46 = vsel %vm375_vm2, %v373_v40, %v377_v44  ;;  %vm1403_vm2 = vcmask 1043456  }
 0x22d   :  { %v383_v47 = vsel %vm381_vm3, %v379_v46, -9e+15  ;;  %v380_v48 = vsel %vm376_vm5, %v374_v43, %v378_v45 }
 0x22e   :  { %v386_v49 = vsel %vm385_vm4, %v383_v47, -inf  ;;  %v384_v50 = vsel %vm382_vm6, %v380_v48, -9e+15 }
 0x22f   :  { %387 = vmax.xlane.f32.xlu0 %v386_v49  ;;  %v389_v51 = vsel %vm385_vm4, %v384_v50, -inf }
 0x230   :  { %390 = vmax.xlane.f32.xlu1 %v389_v51 }
 0x241   :  { %510 = vrot.lane.b32.xlu1 %v3063_v23, %s2920_s4 }
 0x245   :  { %508 = vrot.lane.b32.xlu1 %v3074_v24, %s2920_s4 }
 0x249   :  { %506 = vrot.lane.b32.xlu1 %v3081_v25, %s2920_s4 }
 0x24d   :  { %501 = vrot.lane.b32.xlu1 %v3085_v26, %s2921_s12 }
 0x251   :  { %605 = vrot.lane.b32.xlu1 %v2997_v7, %s2920_s4 }
 0x255   :  { %601 = vrot.lane.b32.xlu1 %v3019_v11, %s2920_s4 }
 0x2b8   :  { %v388_v52 = vpop.xlane.xlu0 %387 }
 0x2b9   :  { %v392_v53 = vsub.f32 %v383_v47, %v388_v52  ;;  %v391_v54 = vpop.xlane.xlu1 %390 }
 0x2ba   :  { %v393_v55 = vsub.f32 %v384_v50, %v391_v54 }
 0x2bb   :  { %v394_v56 = vmul.f32 1.442695, %v392_v53 }
 0x2bc   :  { %v396_v57 = vmul.f32 1.442695, %v393_v55 }
 0x2bd   :  { %v511_v58 = vpop.permute.xlu1 %510 }
 0x2be   :  { %2859 = vpow2.f32 %v396_v57 }
 0x2bf   :  { %2861 = vpow2.f32 %v394_v56 }
 0x2c1   :  { %v509_v59 = vpop.permute.xlu1 %508 }
 0x2c5   :  { %v507_v60 = vpop.permute.xlu1 %506 }
 0x2c9   :  { %v502_v61 = vpop.permute.xlu1 %501 }
 0x2ca   :  { %2676 = vmatprep.subr.mxu0 %v502_v61 }
 0x2cb   :  { %v2860_v62 = vpop.eup %2859  ;;  %2677 = vmatpush3.msra.mxu0 %v502_v61 }
 0x2cc   :  { %v401_v63 = vsel %vm385_vm4, %v2860_v62, 0.0  ;;  %v2862_v0 = vpop.eup %2861 }
 0x2cd   :  { %402 = vadd.xlane.f32.xlu0 %v401_v63  ;;  %v398_v1 = vsel %vm385_vm4, %v2862_v0, 0.0  ;;  %v606_v15 = vpop.permute.xlu1 %605 }
 0x2d1   :  { %399 = vadd.xlane.f32.xlu0 %v398_v1  ;;  %v602_v17 = vpop.permute.xlu1 %601 }
 0x2e7   :  { %512 = vrot.lane.b32.xlu0 %v3058_v22, %s2920_s4 }
 0x2eb   :  { %499 = vrot.lane.b32.xlu0 %v3088_v27, %s2921_s12 }
 0x2ef   :  { %607 = vrot.lane.b32.xlu0 %v2992_v6, %s2920_s4 }
 0x2f3   :  { %603 = vrot.lane.b32.xlu0 %v3009_v9, %s2920_s4 }
 0x356   :  { %v403_v2 = vpop.xlane.xlu0 %402 }
 0x357   :  { %2863 = vrcp.f32 %v403_v2 }
 0x35a   :  { %v400_v3 = vpop.xlane.xlu0 %399 }
 0x35b   :  { %2865 = vrcp.f32 %v400_v3 }
 0x35e   :  { %v513_v4 = vpop.permute.xlu0 %512 }
 0x35f   :  { %2654 = vmatprep.subr.msk.mxu1 %vm170_vm0, %v513_v4 }
 0x362   :  { %v500_v5 = vpop.permute.xlu0 %499 }
 0x363   :  { %2678 = vmatprep.subr.mxu0 %v500_v5 }
 0x364   :  { %2679 = vmatpush3.msra.mxu0 %v500_v5  ;;  %v2864_v8 = vpop.eup %2863 }
 0x365   :  { %v407_v13 = vmul.f32 %v2864_v8, %v2860_v62  ;;  %v138_v8 = vld [vmem:[%s3420_s5 + $0x30] sm:$0xff] }
 0x366   :  { %v608_v14 = vpop.permute.xlu0 %607 }
 0x368   :  { %v2866_v10 = vpop.eup %2865 }
 0x369   :  { %v405_v12 = vmul.f32 %v2866_v10, %v2862_v0  ;;  %v3197_v10 = vld [vmem:[%s3420_s5 + $0x38] sm:$0xff] }
 0x36a   :  { %v604_v16 = vpop.permute.xlu0 %603 }
 0x36b   :  { %2651 = vmatprep.mubr.msk.f32.mxu1 %vm385_vm4, %v405_v12  ;;  %v137_v12 = vld [vmem:[%s3420_s5 + $0x28] sm:$0xff] }
 0x36c   :  { %2652 = vmatmul.mubr.msk.f32.vlgmr.msra.gmra.mxu1 %vm385_vm4, %v407_v13  ;;  %v871_v13 = vrot.slane %v138_v8, 6 }
 0x36d   :  { %2655 = vmatpush3.msk.msra.mxu1 %vm170_vm0, %v513_v4  ;;  %2662 = vmatprep.mubr.msk.f32.mxu1 %vm163_vm1, %v500_v5 }
 0x36e   :  { %2656 = vmatprep.subr.mxu1 %v511_v58 }
 0x36f   :  { %2657 = vmatpush3.msra.mxu1 %v511_v58 }
 0x370   :  { %2658 = vmatprep.subr.mxu1 %v509_v59 }
 0x371   :  { %2659 = vmatpush3.msra.mxu1 %v509_v59 }
 0x372   :  { %2660 = vmatprep.subr.mxu1 %v507_v60 }
 0x373   :  { %2661 = vmatpush3.msra.mxu1 %v507_v60 }
 0x374   :  { %2663 = vmatmul.mubr.msk.f32.vlgmr.msra.gmra.mxu1 %vm163_vm1, %v502_v61  ;;  %2665 = vmatprep.subr.msk.mxu1 %vm170_vm0, %v608_v14 }
 0x375   :  { %2666 = vmatpush3.msk.msra.mxu1 %vm170_vm0, %v608_v14  ;;  %2673 = vmatprep.mubr.msk.f32.mxu1 %vm163_vm1, %v500_v5  ;;  %v866_v5 = vrot.slane %v3155_v18, 6  ;;  %v873_v14 = vrot.slane %v3197_v10, 6 }
 0x376   :  { %2667 = vmatprep.subr.mxu1 %v606_v15 }
 0x377   :  { %2668 = vmatpush3.msra.mxu1 %v606_v15  ;;  %v869_v15 = vrot.slane %v137_v12, 6 }
 0x378   :  { %2669 = vmatprep.subr.mxu1 %v604_v16 }
 0x379   :  { %2670 = vmatpush3.msra.mxu1 %v604_v16  ;;  %v136_v16 = vld [vmem:[%s3420_s5 + $0x20] sm:$0xff] }
 0x37a   :  { %2671 = vmatprep.subr.mxu1 %v602_v17 }
 0x37b   :  { %2672 = vmatpush3.msra.mxu1 %v602_v17  ;;  %v867_v17 = vrot.slane %v136_v16, 6 }
 0x37c   :  { %2674 = vmatmul.mubr.msk.f32.vlgmr.msra.gmra.mxu1 %vm163_vm1, %v502_v61  ;;  %2694 = vmatprep.subr.msk.mxu1 %vm170_vm0, %v3155_v18 }
 0x37d   :  { %2695 = vmatpush3.msk.msra.mxu1 %vm170_vm0, %v3155_v18  ;;  %v874_v18 = vsel %vm865_vm11, %v871_v13, %v873_v14 }
 0x37e   :  { %2696 = vmatprep.subr.mxu1 %v134_v19  ;;  %2683 = vmatprep.subr.msk.mxu0 %vm170_vm0, %v874_v18 }
 0x37f   :  { %2697 = vmatpush3.msra.mxu1 %v134_v19  ;;  %v872_v19 = vsel %vm865_vm11, %v869_v15, %v871_v13 }
 0x380   :  { %2698 = vmatprep.subr.mxu1 %v133_v20 }
 0x381   :  { %2699 = vmatpush3.msra.mxu1 %v133_v20  ;;  %v868_v20 = vsel %vm865_vm11, %v866_v5, %v867_v17 }
 0x382   :  { %2700 = vmatprep.subr.mxu1 %v132_v21 }
 0x383   :  { %2701 = vmatpush3.msra.mxu1 %v132_v21 }
 0x42c   :  { %v2653_v28 = vpop.f32.mrf.mxu1 }
 0x42d   :  { %v493_v29 = vmul.f32 1.442695, %v2653_v28  ;;  %vm490_vm8 = vcmp.gt.f32.partialorder %v2653_v28, 0.0 }
 0x42e   :  { %v480_v30 = vpop.f32.mrf.mxu1 }
 0x42f   :  { %2867 = vpow2.f32 %v493_v29  ;;  %v491_v31 = vmul.f32 1.442695, %v480_v30  ;;  %vm489_vm7 = vcmp.gt.f32.partialorder %v480_v30, 0.0 }
 0x431   :  { %2869 = vpow2.f32 %v491_v31 }
 0x434   :  { %v2664_v32 = vpop.f32.mrf.mxu1 }
 0x435   :  { %728 = vperm.xlu1 %2858, %v2664_v32  }
 0x436   :  { %v589_v33 = vpop.f32.mrf.mxu1 }
 0x437   :  { %723 = vperm.xlu0 %2857, %v589_v33  }
 0x43c   :  { %v2868_v34 = vpop.eup %2867  ;;  %v2675_v43 = vpop.f32.mrf.mxu1 }
 0x43d   :  { %v2393_v37 = vadd.f32 -1.0, %v2868_v34 }
 0x43e   :  { %v2870_v36 = vpop.eup %2869  ;;  %v680_v44 = vpop.f32.mrf.mxu1 }
 0x43f   :  { %v2392_v38 = vadd.f32 -1.0, %v2870_v36  ;;  %v498_v41 = vsel %vm490_vm8, %v2653_v28, %v2393_v37 }
 0x441   :  { %v497_v40 = vsel %vm489_vm7, %v480_v30, %v2392_v38  ;;  %v870_v38 = vsel %vm865_vm11, %v867_v17, %v869_v15 }
 0x442   :  { %2702 = vmatprep.mubr.msk.f32.mxu1 %vm163_vm1, %v497_v40 }
 0x443   :  { %2703 = vmatmul.mubr.msk.f32.vlgmr.msra.gmra.mxu1 %vm163_vm1, %v498_v41 }
 0x455   :  { %689 = vxpose.xlu0.b32.start [1/2] (short) (narrow) %v680_v44, 8 }
 0x459   :  { %690 = vxpose.xlu0.b32.end [2/2] (short) (narrow) %v2675_v43, 8 }
 0x4b0   :  { %v729_v48 = vpop.permute.xlu1 %728 }
 0x4b2   :  { %v724_v45 = vpop.permute.xlu0 %723 }
 0x4d1   :  { %v705_v46 = vpop.trf.xlu0 }
 0x4d2   :  { %v734_v47 = vrot.slane %v705_v46, %v3101_v35 }
 0x4d4   :  { %v735_v49 = vadd.f32 %v734_v47, %v724_v45  ;;  %v736_v50 = vadd.f32 %v734_v47, %v729_v48 }
 0x4d6   :  { %vm738_vm9 = vcmp.gt.f32.partialorder %v736_v50, 0.0  ;;  %v740_v51 = vmul.f32 0.2, %v736_v50  ;;  %vm737_vm10 = vcmp.gt.f32.partialorder %v735_v49, 0.0  ;;  %v739_v52 = vmul.f32 0.2, %v735_v49 }
 0x4d8   :  { %v742_v53 = vsel %vm738_vm9, %v736_v50, %v740_v51  ;;  %v741_v54 = vsel %vm737_vm10, %v735_v49, %v739_v52 }
 0x4d9   :  { %v744_v55 = vsel %vm382_vm6, %v742_v53, -9e+15  ;;  %v743_v56 = vsel %vm381_vm3, %v741_v54, -9e+15 }
 0x4da   :  { %v748_v57 = vsel %vm385_vm4, %v744_v55, -inf  ;;  %v745_v58 = vsel %vm385_vm4, %v743_v56, -inf }
 0x4db   :  { %749 = vmax.xlane.f32.xlu0 %v748_v57  ;;  %746 = vmax.xlane.f32.xlu1 %v745_v58 }
 0x4f1   :  { %1046 = vrot.lane.b32.xlu0 %v3085_v26, %s2922_s21 }
 0x503   :  { %v3220_v52 = vpop.f32.mrf.mxu1 }
 0x564   :  { %v750_v59 = vpop.xlane.xlu0 %749  ;;  %v747_v60 = vpop.xlane.xlu1 %746 }
 0x565   :  { %v752_v61 = vsub.f32 %v744_v55, %v750_v59  ;;  %v751_v62 = vsub.f32 %v743_v56, %v747_v60  ;;  %v3222_v56 = vpop.f32.mrf.mxu1 }
 0x567   :  { %v753_v63 = vmul.f32 1.442695, %v751_v62  ;;  %v755_v0 = vmul.f32 1.442695, %v752_v61 }
 0x568   :  { %v1047_v46 = vpop.permute.xlu0 %1046 }
 0x569   :  { %2871 = vpow2.f32 %v753_v63 }
 0x56a   :  { %2873 = vpow2.f32 %v755_v0 }
 0x576   :  { %v2872_v1 = vpop.eup %2871 }
 0x577   :  { %v757_v2 = vsel %vm385_vm4, %v2872_v1, 0.0  ;;  %v2874_v3 = vpop.eup %2873 }
 0x578   :  { %758 = vadd.xlane.f32.xlu1 %v757_v2  ;;  %v760_v4 = vsel %vm385_vm4, %v2874_v3, 0.0 }
 0x57c   :  { %761 = vadd.xlane.f32.xlu1 %v760_v4 }
 0x58d   :  { %1054 = vrot.lane.b32.xlu1 %v3058_v22, %s2923_s22 }
 0x591   :  { %1052 = vrot.lane.b32.xlu1 %v3063_v23, %s2923_s22 }
 0x595   :  { %1050 = vrot.lane.b32.xlu1 %v3074_v24, %s2923_s22 }
 0x599   :  { %1048 = vrot.lane.b32.xlu1 %v3081_v25, %s2923_s22 }
 0x59d   :  { %1044 = vrot.lane.b32.xlu1 %v3088_v27, %s2922_s21 }
 0x5a1   :  { %1146 = vrot.lane.b32.xlu1 %v2992_v6, %s2923_s22 }
 0x5a5   :  { %1144 = vrot.lane.b32.xlu1 %v2997_v7, %s2923_s22 }
 0x5a9   :  { %1142 = vrot.lane.b32.xlu1 %v3009_v9, %s2923_s22 }
 0x5ad   :  { %1140 = vrot.lane.b32.xlu1 %v3019_v11, %s2923_s22 }
 0x601   :  { %v759_v21 = vpop.xlane.xlu1 %758 }
 0x602   :  { %2875 = vrcp.f32 %v759_v21 }
 0x605   :  { %v762_v28 = vpop.xlane.xlu1 %761 }
 0x606   :  { %2877 = vrcp.f32 %v762_v28 }
 0x609   :  { %v1055_v29 = vpop.permute.xlu1 %1054 }
 0x60d   :  { %v1053_v30 = vpop.permute.xlu1 %1052 }
 0x60f   :  { %v2876_v31 = vpop.eup %2875 }
 0x610   :  { %v764_v32 = vmul.f32 %v2876_v31, %v2872_v1 }
 0x611   :  { %v1051_v33 = vpop.permute.xlu1 %1050 }
 0x612   :  { %2680 = vmatprep.mubr.msk.f32.mxu0 %vm385_vm4, %v764_v32 }
 0x613   :  { %v2878_v34 = vpop.eup %2877 }
 0x614   :  { %v766_v36 = vmul.f32 %v2878_v34, %v2874_v3 }
 0x615   :  { %v1049_v37 = vpop.permute.xlu1 %1048 }
 0x616   :  { %2681 = vmatmul.mubr.msk.f32.vlgmr.msra.gmra.mxu0 %vm385_vm4, %v766_v36 }
 0x617   :  { %2684 = vmatpush3.msk.msra.mxu0 %vm170_vm0, %v874_v18 }
 0x618   :  { %2685 = vmatprep.subr.mxu0 %v872_v19 }
 0x619   :  { %v1045_v40 = vpop.permute.xlu1 %1044  ;;  %2686 = vmatpush3.msra.mxu0 %v872_v19 }
 0x61a   :  { %2724 = vmatprep.mubr.msk.f32.mxu1 %vm163_vm1, %v1045_v40  ;;  %2687 = vmatprep.subr.mxu0 %v870_v38 }
 0x61b   :  { %2688 = vmatpush3.msra.mxu0 %v870_v38 }
 0x61c   :  { %2689 = vmatprep.subr.mxu0 %v868_v20 }
 0x61d   :  { %v1147_v41 = vpop.permute.xlu1 %1146  ;;  %2690 = vmatpush3.msra.mxu0 %v868_v20 }
 0x61e   :  { %2716 = vmatprep.subr.msk.mxu1 %vm170_vm0, %v1147_v41  ;;  %2705 = vmatprep.subr.msk.mxu0 %vm170_vm0, %v1055_v29 }
 0x61f   :  { %2717 = vmatpush3.msk.msra.mxu1 %vm170_vm0, %v1147_v41  ;;  %v3264_v41 = vld [vmem:[%s3420_s5 + $0x58] sm:$0xff] }
 0x621   :  { %v1145_v43 = vpop.permute.xlu1 %1144 }
 0x622   :  { %2718 = vmatprep.subr.mxu1 %v1145_v43 }
 0x623   :  { %2719 = vmatpush3.msra.mxu1 %v1145_v43 }
 0x625   :  { %v1143_v44 = vpop.permute.xlu1 %1142 }
 0x626   :  { %2720 = vmatprep.subr.mxu1 %v1143_v44 }
 0x627   :  { %2721 = vmatpush3.msra.mxu1 %v1143_v44  ;;  %v1411_v44 = vrot.slane %v3264_v41, 4 }
 0x629   :  { %v1141_v45 = vpop.permute.xlu1 %1140 }
 0x62a   :  { %2722 = vmatprep.subr.mxu1 %v1141_v45 }
 0x62b   :  { %2723 = vmatpush3.msra.mxu1 %v1141_v45  ;;  %v141_v45 = vld [vmem:[%s3420_s5 + $0x48] sm:$0xff] }
 0x62c   :  { %2725 = vmatmul.mubr.msk.f32.vlgmr.msra.gmra.mxu1 %vm163_vm1, %v1047_v46 }
 0x6d6   :  { %v2682_v47 = vpop.f32.mrf.mxu0 }
 0x6d7   :  { %v854_v48 = vmul.f32 1.442695, %v2682_v47  ;;  %vm851_vm13 = vcmp.gt.f32.partialorder %v2682_v47, 0.0 }
 0x6d8   :  { %v841_v49 = vpop.f32.mrf.mxu0 }
 0x6d9   :  { %2879 = vpow2.f32 %v854_v48  ;;  %v852_v50 = vmul.f32 1.442695, %v841_v49  ;;  %vm850_vm12 = vcmp.gt.f32.partialorder %v841_v49, 0.0  ;;  %v140_v48 = vld [vmem:[%s3420_s5 + $0x40] sm:$0xff] }
 0x6db   :  { %2881 = vpow2.f32 %v852_v50  ;;  %v1405_v50 = vrot.slane %v140_v48, 4  ;;  %v146_v48 = vld [vmem:[%s3420_s5 + $0x70] sm:$0xff] }
 0x6e6   :  { %v2880_v51 = vpop.eup %2879 }
 0x6e7   :  { %v2403_v54 = vadd.f32 -1.0, %v2880_v51 }
 0x6e8   :  { %v2882_v53 = vpop.eup %2881 }
 0x6e9   :  { %v2402_v55 = vadd.f32 -1.0, %v2882_v53  ;;  %v859_v58 = vsel %vm851_vm13, %v2682_v47, %v2403_v54  ;;  %v1407_v47 = vrot.slane %v141_v45, 4  ;;  %v1404_v53 = vrot.slane %v3197_v10, 4 }
 0x6eb   :  { %v858_v57 = vsel %vm850_vm12, %v841_v49, %v2402_v55  ;;  %v1408_v51 = vsel %vm1403_vm2, %v1405_v50, %v1407_v47  ;;  %v1406_v54 = vsel %vm1403_vm2, %v1404_v53, %v1405_v50  ;;  %v145_v50 = vld [vmem:[%s3420_s5 + $0x68] sm:$0xff]  ;;  %v144_v53 = vld [vmem:[%s3420_s5 + $0x60] sm:$0xff] }
 0x6ec   :  { %2691 = vmatprep.mubr.msk.f32.mxu0 %vm163_vm1, %v858_v57  ;;  %v2726_v59 = vpop.f32.mrf.mxu1 }
 0x6ed   :  { %2692 = vmatmul.mubr.msk.f32.vlgmr.msra.gmra.mxu0 %vm163_vm1, %v859_v58 }
 0x6ee   :  { %2706 = vmatpush3.msk.msra.mxu0 %vm170_vm0, %v1055_v29  ;;  %2713 = vmatprep.mubr.msk.f32.mxu0 %vm163_vm1, %v1045_v40  ;;  %v1219_v60 = vpop.f32.mrf.mxu1 }
 0x6ef   :  { %2707 = vmatprep.subr.mxu0 %v1053_v30  ;;  %1228 = vxpose.xlu0.b32.start [1/2] (short) (narrow) %v1219_v60, 8 }
 0x6f0   :  { %2708 = vmatpush3.msra.mxu0 %v1053_v30 }
 0x6f1   :  { %2709 = vmatprep.subr.mxu0 %v1051_v33 }
 0x6f2   :  { %2710 = vmatpush3.msra.mxu0 %v1051_v33 }
 0x6f3   :  { %2711 = vmatprep.subr.mxu0 %v1049_v37  ;;  %1229 = vxpose.xlu0.b32.end [2/2] (short) (narrow) %v2726_v59, 8 }
 0x6f4   :  { %2712 = vmatpush3.msra.mxu0 %v1049_v37 }
 0x6f5   :  { %2714 = vmatmul.mubr.msk.f32.vlgmr.msra.gmra.mxu0 %vm163_vm1, %v1047_v46  ;;  %2727 = vmatprep.subr.mxu0 %v1047_v46 }
 0x6f6   :  { %2728 = vmatpush3.msra.mxu0 %v1047_v46 }
 0x6f7   :  { %2729 = vmatprep.subr.mxu0 %v1045_v40 }
 0x6f8   :  { %2730 = vmatpush3.msra.mxu0 %v1045_v40  ;;  %v142_v40 = vld [vmem:[%s3420_s5 + $0x50] sm:$0xff] }
 0x6f9   :  { %v1409_v43 = vrot.slane %v142_v40, 4 }
 0x6fb   :  { %v1412_v46 = vsel %vm1403_vm2, %v1409_v43, %v1411_v44  ;;  %v1410_v49 = vsel %vm1403_vm2, %v1407_v47, %v1409_v43 }
 0x6fc   :  { %2734 = vmatprep.subr.msk.mxu1 %vm170_vm0, %v1412_v46 }
 0x6fd   :  { %2735 = vmatpush3.msk.msra.mxu1 %vm170_vm0, %v1412_v46 }
 0x6fe   :  { %2736 = vmatprep.subr.mxu1 %v1410_v49 }
 0x6ff   :  { %2737 = vmatpush3.msra.mxu1 %v1410_v49  ;;  %v1864_v49 = vrot.slane %v146_v48, 2 }
 0x700   :  { %2738 = vmatprep.subr.mxu1 %v1408_v51 }
 0x701   :  { %2739 = vmatpush3.msra.mxu1 %v1408_v51  ;;  %v1862_v51 = vrot.slane %v145_v50, 2 }
 0x702   :  { %2740 = vmatprep.subr.mxu1 %v1406_v54 }
 0x703   :  { %2741 = vmatpush3.msra.mxu1 %v1406_v54  ;;  %v1865_v54 = vsel %vm170_vm0, %v1862_v51, %v1864_v49 }
 0x76b   :  { %v1244_v1 = vpop.trf.xlu0 }
 0x76c   :  { %v1273_v2 = vrot.slane %v1244_v1, %v3101_v35 }
 0x7ad   :  { %v3229_v61 = vpop.f32.mrf.mxu0 }
 0x7af   :  { %v3231_v62 = vpop.f32.mrf.mxu0 }
 0x7b5   :  { %v2715_v63 = vpop.f32.mrf.mxu0 }
 0x7b7   :  { %v1131_v0 = vpop.f32.mrf.mxu0 }
 0x7b8   :  { %1262 = vperm.xlu1 %2858, %v1131_v0  }
 0x7bc   :  { %1267 = vperm.xlu1 %2858, %v2715_v63  }
 0x833   :  { %v1263_v3 = vpop.permute.xlu1 %1262 }
 0x834   :  { %v1274_v4 = vadd.f32 %v1273_v2, %v1263_v3 }
 0x836   :  { %v1278_v5 = vmul.f32 0.2, %v1274_v4  ;;  %vm1276_vm14 = vcmp.gt.f32.partialorder %v1274_v4, 0.0 }
 0x837   :  { %v1268_v8 = vpop.permute.xlu1 %1267 }
 0x838   :  { %v1275_v12 = vadd.f32 %v1273_v2, %v1268_v8  ;;  %v1280_v13 = vsel %vm1276_vm14, %v1274_v4, %v1278_v5 }
 0x839   :  { %v1282_v14 = vsel %vm381_vm3, %v1280_v13, -9e+15 }
 0x83a   :  { %v1279_v15 = vmul.f32 0.2, %v1275_v12  ;;  %v1284_v16 = vsel %vm385_vm4, %v1282_v14, -inf  ;;  %vm1277_vm15 = vcmp.gt.f32.partialorder %v1275_v12, 0.0 }
 0x83b   :  { %1285 = vmax.xlane.f32.xlu1 %v1284_v16  ;;  %v1036_v16 = vadd.f32 %v3222_v56, %v3231_v62 }
 0x83c   :  { %v1281_v17 = vsel %vm1277_vm15, %v1275_v12, %v1279_v15 }
 0x83d   :  { %v1283_v18 = vsel %vm382_vm6, %v1281_v17, -9e+15 }
 0x83e   :  { %v1287_v19 = vsel %vm385_vm4, %v1283_v18, -inf }
 0x83f   :  { %1288 = vmax.xlane.f32.xlu0 %v1287_v19 }
 0x855   :  { %1503 = vrot.lane.b32.xlu0 %v3085_v26, %s2924_s1 }
 0x8c4   :  { %v1286_v20 = vpop.xlane.xlu1 %1285 }
 0x8c5   :  { %v1290_v21 = vsub.f32 %v1282_v14, %v1286_v20  ;;  %v1041_v14 = vadd.f32 %v3220_v52, %v3229_v61 }
 0x8c7   :  { %v1292_v28 = vmul.f32 1.442695, %v1290_v21 }
 0x8c8   :  { %v1289_v29 = vpop.xlane.xlu0 %1288 }
 0x8c9   :  { %2883 = vpow2.f32 %v1292_v28  ;;  %v1291_v30 = vsub.f32 %v1283_v18, %v1289_v29 }
 0x8cb   :  { %v1294_v31 = vmul.f32 1.442695, %v1291_v30 }
 0x8cd   :  { %2885 = vpow2.f32 %v1294_v31 }
 0x8d6   :  { %v2884_v32 = vpop.eup %2883 }
 0x8d7   :  { %v1296_v33 = vsel %vm385_vm4, %v2884_v32, 0.0 }
 0x8d8   :  { %1297 = vadd.xlane.f32.xlu1 %v1296_v33 }
 0x8da   :  { %v2886_v34 = vpop.eup %2885 }
 0x8db   :  { %v1299_v36 = vsel %vm385_vm4, %v2886_v34, 0.0 }
 0x8dc   :  { %1300 = vadd.xlane.f32.xlu1 %v1299_v36 }
 0x8ed   :  { %1511 = vrot.lane.b32.xlu1 %v3058_v22, %s2925_s30 }
 0x8f1   :  { %1509 = vrot.lane.b32.xlu1 %v3063_v23, %s2925_s30 }
 0x8f5   :  { %1507 = vrot.lane.b32.xlu1 %v3074_v24, %s2925_s30 }
 0x8f9   :  { %1505 = vrot.lane.b32.xlu1 %v3081_v25, %s2925_s30 }
 0x8fd   :  { %1501 = vrot.lane.b32.xlu1 %v3088_v27, %s2924_s1 }
 0x901   :  { %1603 = vrot.lane.b32.xlu1 %v2992_v6, %s2925_s30 }
 0x905   :  { %1601 = vrot.lane.b32.xlu1 %v2997_v7, %s2925_s30 }
 0x909   :  { %1599 = vrot.lane.b32.xlu1 %v3009_v9, %s2925_s30 }
 0x90d   :  { %1597 = vrot.lane.b32.xlu1 %v3019_v11, %s2925_s30  ;;  %v1504_v11 = vpop.permute.xlu0 %1503 }
 0x961   :  { %v1298_v26 = vpop.xlane.xlu1 %1297 }
 0x962   :  { %2887 = vrcp.f32 %v1298_v26 }
 0x965   :  { %v1301_v37 = vpop.xlane.xlu1 %1300 }
 0x966   :  { %2889 = vrcp.f32 %v1301_v37 }
 0x969   :  { %v1512_v22 = vpop.permute.xlu1 %1511 }
 0x96a   :  { %2745 = vmatprep.subr.msk.mxu0 %vm170_vm0, %v1512_v22 }
 0x96d   :  { %v1510_v23 = vpop.permute.xlu1 %1509 }
 0x96f   :  { %v2888_v24 = vpop.eup %2887 }
 0x970   :  { %v1303_v25 = vmul.f32 %v2888_v24, %v2884_v32 }
 0x971   :  { %v1508_v38 = vpop.permute.xlu1 %1507 }
 0x972   :  { %2731 = vmatprep.mubr.msk.f32.mxu0 %vm385_vm4, %v1303_v25 }
 0x973   :  { %v2890_v6 = vpop.eup %2889 }
 0x974   :  { %v1305_v27 = vmul.f32 %v2890_v6, %v2886_v34 }
 0x975   :  { %v1506_v7 = vpop.permute.xlu1 %1505 }
 0x976   :  { %2732 = vmatmul.mubr.msk.f32.vlgmr.msra.gmra.mxu0 %vm385_vm4, %v1305_v27 }
 0x977   :  { %2746 = vmatpush3.msk.msra.mxu0 %vm170_vm0, %v1512_v22 }
 0x978   :  { %2747 = vmatprep.subr.mxu0 %v1510_v23 }
 0x979   :  { %2748 = vmatpush3.msra.mxu0 %v1510_v23  ;;  %v1502_v9 = vpop.permute.xlu1 %1501 }
 0x97a   :  { %2749 = vmatprep.subr.mxu0 %v1508_v38  ;;  %2753 = vmatprep.mubr.msk.f32.mxu0 %vm163_vm1, %v1502_v9 }
 0x97b   :  { %2750 = vmatpush3.msra.mxu0 %v1508_v38 }
 0x97c   :  { %2751 = vmatprep.subr.mxu0 %v1506_v7 }
 0x97d   :  { %2752 = vmatpush3.msra.mxu0 %v1506_v7  ;;  %v1604_v55 = vpop.permute.xlu1 %1603 }
 0x97e   :  { %2754 = vmatmul.mubr.msk.f32.vlgmr.msra.gmra.mxu0 %vm163_vm1, %v1504_v11  ;;  %2767 = vmatprep.subr.mxu0 %v1504_v11 }
 0x97f   :  { %2768 = vmatpush3.msra.mxu0 %v1504_v11  ;;  %2756 = vmatprep.subr.msk.mxu1 %vm170_vm0, %v1604_v55 }
 0x980   :  { %2769 = vmatprep.subr.mxu0 %v1502_v9 }
 0x981   :  { %2770 = vmatpush3.msra.mxu0 %v1502_v9  ;;  %v1602_v1 = vpop.permute.xlu1 %1601 }
 0x982   :  { %2774 = vmatprep.subr.msk.mxu0 %vm170_vm0, %v1864_v49 }
 0x985   :  { %v1600_v5 = vpop.permute.xlu1 %1599 }
 0x989   :  { %v1598_v13 = vpop.permute.xlu1 %1597 }
 0xa36   :  { %v2733_v57 = vpop.f32.mrf.mxu0 }
 0xa37   :  { %v1393_v58 = vmul.f32 1.442695, %v2733_v57  ;;  %vm1390_vm7 = vcmp.gt.f32.partialorder %v2733_v57, 0.0 }
 0xa38   :  { %v1380_v59 = vpop.f32.mrf.mxu0 }
 0xa39   :  { %2891 = vpow2.f32 %v1393_v58  ;;  %v1391_v60 = vmul.f32 1.442695, %v1380_v59  ;;  %vm1389_vm5 = vcmp.gt.f32.partialorder %v1380_v59, 0.0  ;;  %v1859_v58 = vrot.slane %v3264_v41, 2  ;;  %v152_v41 = vld [vmem:[%s3421_s6 + $0x28] sm:$0xff] }
 0xa3b   :  { %2893 = vpow2.f32 %v1391_v60  ;;  %v154_v60 = vld [vmem:[%s3421_s6 + $0x38] sm:$0xff] }
 0xa3e   :  { %v2755_v63 = vpop.f32.mrf.mxu0 }
 0xa40   :  { %v1588_v0 = vpop.f32.mrf.mxu0 }
 0xa41   :  { %1719 = vperm.xlu1 %2858, %v1588_v0   ;;  %v162_v0 = vld [vmem:[%s3421_s6 + $0x78] sm:$0xff] }
 0xa45   :  { %1724 = vperm.xlu1 %2858, %v2755_v63   ;;  %v153_v63 = vld [vmem:[%s3421_s6 + $0x30] sm:$0xff] }
 0xa46   :  { %v2892_v10 = vpop.eup %2891 }
 0xa47   :  { %v2419_v3 = vadd.f32 -1.0, %v2892_v10  ;;  %v150_v10 = vld [vmem:[%s3421_s6 + $0x18] sm:$0xff] }
 0xa48   :  { %v2894_v2 = vpop.eup %2893 }
 0xa49   :  { %v2418_v4 = vadd.f32 -1.0, %v2894_v2  ;;  %v1398_v12 = vsel %vm1390_vm7, %v2733_v57, %v2419_v3  ;;  %v149_v2 = vld [vmem:[%s3421_s6 + $0x10] sm:$0xff]  ;;  %v148_v3 = vld [vmem:[%s3421_s6 + $0x8] sm:$0xff] }
 0xa4b   :  { %v1397_v8 = vsel %vm1389_vm5, %v1380_v59, %v2418_v4 }
 0xa4c   :  { %2742 = vmatprep.mubr.msk.f32.mxu1 %vm163_vm1, %v1397_v8 }
 0xa4d   :  { %2743 = vmatmul.mubr.msk.f32.vlgmr.msra.gmra.mxu1 %vm163_vm1, %v1398_v12 }
 0xa4e   :  { %2757 = vmatpush3.msk.msra.mxu1 %vm170_vm0, %v1604_v55  ;;  %2764 = vmatprep.mubr.msk.f32.mxu1 %vm163_vm1, %v1502_v9  ;;  %v1860_v55 = vrot.slane %v144_v53, 2 }
 0xa4f   :  { %2758 = vmatprep.subr.mxu1 %v1602_v1 }
 0xa50   :  { %2759 = vmatpush3.msra.mxu1 %v1602_v1  ;;  %v1863_v57 = vsel %vm170_vm0, %v1860_v55, %v1862_v51  ;;  %v1861_v59 = vsel %vm170_vm0, %v1859_v58, %v1860_v55  ;;  %v151_v1 = vld [vmem:[%s3421_s6 + $0x20] sm:$0xff] }
 0xa51   :  { %2760 = vmatprep.subr.mxu1 %v1600_v5 }
 0xa52   :  { %2761 = vmatpush3.msra.mxu1 %v1600_v5 }
 0xa53   :  { %2762 = vmatprep.subr.mxu1 %v1598_v13 }
 0xa54   :  { %2763 = vmatpush3.msra.mxu1 %v1598_v13 }
 0xa55   :  { %2765 = vmatmul.mubr.msk.f32.vlgmr.msra.gmra.mxu1 %vm163_vm1, %v1504_v11  ;;  %2785 = vmatprep.subr.mxu1 %v154_v60 }
 0xa56   :  { %2786 = vmatpush3.msra.mxu1 %v154_v60  ;;  %v2287_v60 = vld [vmem:[%s3422_s7 + $0x38] sm:$0xff] }
 0xa57   :  { %2787 = vmatprep.subr.mxu1 %v153_v63 }
 0xa58   :  { %2788 = vmatpush3.msra.mxu1 %v153_v63  ;;  %v2286_v63 = vld [vmem:[%s3422_s7 + $0x30] sm:$0xff] }
 0xa59   :  { %2789 = vmatprep.subr.mxu1 %v152_v41 }
 0xa5a   :  { %2790 = vmatpush3.msra.mxu1 %v152_v41  ;;  %v2284_v41 = vld [vmem:[%s3422_s7 + $0x20] sm:$0xff] }
 0xa5b   :  { %2791 = vmatprep.subr.mxu1 %v151_v1 }
 0xa5c   :  { %2792 = vmatpush3.msra.mxu1 %v151_v1  ;;  %v2283_v1 = vld [vmem:[%s3422_s7 + $0x18] sm:$0xff] }
 0xa5d   :  { %2793 = vmatprep.subr.mxu1 %v150_v10 }
 0xa5e   :  { %2794 = vmatpush3.msra.mxu1 %v150_v10  ;;  %v2282_v10 = vld [vmem:[%s3422_s7 + $0x10] sm:$0xff] }
 0xa5f   :  { %2795 = vmatprep.subr.mxu1 %v149_v2 }
 0xa60   :  { %2796 = vmatpush3.msra.mxu1 %v149_v2  ;;  %v2281_v2 = vld [vmem:[%s3422_s7 + $0x8] sm:$0xff] }
 0xa61   :  { %2797 = vmatprep.subr.mxu1 %v148_v3 }
 0xa62   :  { %2798 = vmatpush3.msra.mxu1 %v148_v3  ;;  %v2280_v3 = vld [vmem:[%s3422_s7] sm:$0xff] }
 0xabc   :  { %v1720_v28 = vpop.permute.xlu1 %1719 }
 0xac0   :  { %v1725_v31 = vpop.permute.xlu1 %1724 }
 0xb0d   :  { %v2744_v15 = vpop.f32.mrf.mxu1 }
 0xb0e   :  { %v3286_v17 = vadd.f32 %v2744_v15, %v1041_v14 }
 0xb0f   :  { %v1490_v18 = vpop.f32.mrf.mxu1 }
 0xb10   :  { %v3288_v19 = vadd.f32 %v1490_v18, %v1036_v16 }
 0xb15   :  { %v2766_v20 = vpop.f32.mrf.mxu1 }
 0xb17   :  { %v1676_v21 = vpop.f32.mrf.mxu1 }
 0xb18   :  { %1685 = vxpose.xlu0.b32.start [1/2] (short) (narrow) %v1676_v21, 8  ;;  %v161_v21 = vld [vmem:[%s3421_s6 + $0x70] sm:$0xff] }
 0xb1c   :  { %1686 = vxpose.xlu0.b32.end [2/2] (short) (narrow) %v2766_v20, 8 }
 0xb94   :  { %v1701_v29 = vpop.trf.xlu0 }
 0xb95   :  { %v1730_v30 = vrot.slane %v1701_v29, %v3101_v35  ;;  %v159_v29 = vld [vmem:[%s3421_s6 + $0x60] sm:$0xff] }
 0xb97   :  { %v1731_v32 = vadd.f32 %v1730_v30, %v1720_v28  ;;  %v1732_v52 = vadd.f32 %v1730_v30, %v1725_v31  ;;  %v160_v28 = vld [vmem:[%s3421_s6 + $0x68] sm:$0xff]  ;;  %v158_v30 = vld [vmem:[%s3421_s6 + $0x58] sm:$0xff]  ;;  %v157_v31 = vld [vmem:[%s3421_s6 + $0x50] sm:$0xff] }
 0xb99   :  { %vm1733_vm8 = vcmp.gt.f32.partialorder %v1731_v32, 0.0  ;;  %v1735_v61 = vmul.f32 0.2, %v1731_v32  ;;  %vm1734_vm9 = vcmp.gt.f32.partialorder %v1732_v52, 0.0  ;;  %v1736_v56 = vmul.f32 0.2, %v1732_v52 }
 0xb9b   :  { %v1737_v62 = vsel %vm1733_vm8, %v1731_v32, %v1735_v61  ;;  %v1738_v33 = vsel %vm1734_vm9, %v1732_v52, %v1736_v56  ;;  %v147_v32 = vld [vmem:[%s3421_s6] sm:$0xff]  ;;  %v156_v52 = vld [vmem:[%s3421_s6 + $0x48] sm:$0xff] }
 0xb9c   :  { %v1739_v34 = vsel %vm381_vm3, %v1737_v62, -9e+15  ;;  %v1740_v36 = vsel %vm382_vm6, %v1738_v33, -9e+15  ;;  %2799 = vmatprep.subr.mxu1 %v147_v32  ;;  %v155_v61 = vld [vmem:[%s3421_s6 + $0x40] sm:$0xff] }
 0xb9d   :  { %v1741_v26 = vsel %vm385_vm4, %v1739_v34, -inf  ;;  %v1744_v37 = vsel %vm385_vm4, %v1740_v36, -inf  ;;  %2800 = vmatpush3.msra.mxu1 %v147_v32 }
 0xb9e   :  { %1742 = vmax.xlane.f32.xlu1 %v1741_v26  ;;  %1745 = vmax.xlane.f32.xlu0 %v1744_v37 }
 0xc27   :  { %v1746_v22 = vpop.xlane.xlu0 %1745  ;;  %v1743_v23 = vpop.xlane.xlu1 %1742 }
 0xc28   :  { %v1748_v24 = vsub.f32 %v1740_v36, %v1746_v22  ;;  %v1747_v25 = vsub.f32 %v1739_v34, %v1743_v23 }
 0xc2a   :  { %v1749_v38 = vmul.f32 1.442695, %v1747_v25  ;;  %v1751_v6 = vmul.f32 1.442695, %v1748_v24 }
 0xc2c   :  { %2895 = vpow2.f32 %v1749_v38 }
 0xc2d   :  { %2897 = vpow2.f32 %v1751_v6 }
 0xc39   :  { %v2896_v27 = vpop.eup %2895 }
 0xc3a   :  { %v1753_v7 = vsel %vm385_vm4, %v2896_v27, 0.0  ;;  %v2898_v9 = vpop.eup %2897 }
 0xc3b   :  { %1754 = vadd.xlane.f32.xlu1 %v1753_v7  ;;  %v1756_v11 = vsel %vm385_vm4, %v2898_v9, 0.0 }
 0xc3f   :  { %1757 = vadd.xlane.f32.xlu1 %v1756_v11 }
 0xcc4   :  { %v1755_v40 = vpop.xlane.xlu1 %1754 }
 0xcc5   :  { %2899 = vrcp.f32 %v1755_v40 }
 0xcc8   :  { %v1758_v43 = vpop.xlane.xlu1 %1757 }
 0xcc9   :  { %2901 = vrcp.f32 %v1758_v43 }
 0xcd2   :  { %v2900_v44 = vpop.eup %2899 }
 0xcd3   :  { %v1760_v45 = vmul.f32 %v2900_v44, %v2896_v27 }
 0xcd5   :  { %2771 = vmatprep.mubr.msk.f32.mxu0 %vm385_vm4, %v1760_v45 }
 0xcd6   :  { %v2902_v46 = vpop.eup %2901 }
 0xcd7   :  { %v1762_v47 = vmul.f32 %v2902_v46, %v2898_v9 }
 0xcd9   :  { %2772 = vmatmul.mubr.msk.f32.vlgmr.msra.gmra.mxu0 %vm385_vm4, %v1762_v47 }
 0xcda   :  { %2775 = vmatpush3.msk.msra.mxu0 %vm170_vm0, %v1864_v49 }
 0xcdb   :  { %2776 = vmatprep.subr.mxu0 %v1865_v54 }
 0xcdc   :  { %2777 = vmatpush3.msra.mxu0 %v1865_v54 }
 0xcdd   :  { %2778 = vmatprep.subr.mxu0 %v1863_v57 }
 0xcde   :  { %2779 = vmatpush3.msra.mxu0 %v1863_v57 }
 0xcdf   :  { %2780 = vmatprep.subr.mxu0 %v1861_v59 }
 0xce0   :  { %2781 = vmatpush3.msra.mxu0 %v1861_v59 }
 0xce1   :  { %2804 = vmatprep.subr.mxu0 %v162_v0 }
 0xd99   :  { %v2773_v4 = vpop.f32.mrf.mxu0 }
 0xd9a   :  { %v1850_v5 = vmul.f32 1.442695, %v2773_v4  ;;  %vm1847_vm10 = vcmp.gt.f32.partialorder %v2773_v4, 0.0 }
 0xd9b   :  { %v1837_v8 = vpop.f32.mrf.mxu0 }
 0xd9c   :  { %2903 = vpow2.f32 %v1850_v5  ;;  %v1848_v12 = vmul.f32 1.442695, %v1837_v8  ;;  %vm1846_vm0 = vcmp.gt.f32.partialorder %v1837_v8, 0.0 }
 0xd9e   :  { %2905 = vpow2.f32 %v1848_v12 }
 0xda9   :  { %v2904_v13 = vpop.eup %2903 }
 0xdaa   :  { %v2432_v15 = vadd.f32 -1.0, %v2904_v13 }
 0xdab   :  { %v2906_v14 = vpop.eup %2905 }
 0xdac   :  { %v2431_v16 = vadd.f32 -1.0, %v2906_v14  ;;  %v1855_v20 = vsel %vm1847_vm10, %v2773_v4, %v2432_v15 }
 0xdae   :  { %v1854_v18 = vsel %vm1846_vm0, %v1837_v8, %v2431_v16 }
 0xdaf   :  { %2782 = vmatprep.mubr.msk.f32.mxu0 %vm163_vm1, %v1854_v18 }
 0xdb0   :  { %2783 = vmatmul.mubr.msk.f32.vlgmr.msra.gmra.mxu0 %vm163_vm1, %v1855_v20  ;;  %vm1954_vm1 = vcmask 523264  }
 0xdb1   :  { %2805 = vmatpush3.msra.mxu0 %v162_v0  ;;  %v2285_v0 = vld [vmem:[%s3422_s7 + $0x28] sm:$0xff] }
 0xdb2   :  { %2806 = vmatprep.subr.mxu0 %v161_v21 }
 0xdb3   :  { %2807 = vmatpush3.msra.mxu0 %v161_v21 }
 0xdb4   :  { %2808 = vmatprep.subr.mxu0 %v160_v28 }
 0xdb5   :  { %2809 = vmatpush3.msra.mxu0 %v160_v28 }
 0xdb6   :  { %2810 = vmatprep.subr.mxu0 %v159_v29 }
 0xdb7   :  { %2811 = vmatpush3.msra.mxu0 %v159_v29 }
 0xdb8   :  { %2812 = vmatprep.subr.mxu0 %v158_v30 }
 0xdb9   :  { %2813 = vmatpush3.msra.mxu0 %v158_v30 }
 0xdba   :  { %2814 = vmatprep.subr.mxu0 %v157_v31 }
 0xdbb   :  { %2815 = vmatpush3.msra.mxu0 %v157_v31 }
 0xdbc   :  { %2816 = vmatprep.subr.mxu0 %v156_v52 }
 0xdbd   :  { %2817 = vmatpush3.msra.mxu0 %v156_v52 }
 0xdbe   :  { %2818 = vmatprep.subr.mxu0 %v155_v61 }
 0xdbf   :  { %2819 = vmatpush3.msra.mxu0 %v155_v61 }
 0xe70   :  { %v2784_v56 = vpop.f32.mrf.mxu0 }
 0xe71   :  { %v1953_v62 = vadd.f32 %v2784_v56, %v3286_v17 }
 0xe72   :  { %v1943_v33 = vpop.f32.mrf.mxu0 }
 0xe73   :  { %v1952_v34 = vadd.f32 %v1943_v33, %v3288_v19  ;;  %2823 = vmatprep.subr.mxu1 %v1953_v62 }
 0xe75   :  { %2801 = vmatprep.mubr.msk.f32.mxu1 %vm1954_vm1, %v1952_v34  ;;  %2820 = vmatprep.mubr.msk.f32.mxu0 %vm1954_vm1, %v1952_v34 }
 0xe76   :  { %2802 = vmatmul.mubr.msk.f32.vlgmr.msra.gmra.mxu1 %vm1954_vm1, %v1953_v62  ;;  %2821 = vmatmul.mubr.msk.f32.vlgmr.msra.gmra.mxu0 %vm1954_vm1, %v1953_v62 }
 0xe77   :  { %2824 = vmatpush3.msra.mxu1 %v1953_v62 }
 0xe78   :  { %2825 = vmatprep.subr.mxu1 %v1952_v34 }
 0xe79   :  { %2826 = vmatpush3.msra.mxu1 %v1952_v34 }
 0xe7a   :  { %2830 = vmatprep.subr.mxu1 %v2287_v60 }
 0xf36   :  { %v2803_v36 = vpop.f32.mrf.mxu1  ;;  %v2822_v17 = vpop.f32.mrf.mxu0 }
 0xf37   :  { %2150 = vperm.xlu1 %2858, %v2803_v36  }
 0xf38   :  { %v2027_v26 = vpop.f32.mrf.mxu1  ;;  %v2102_v37 = vpop.f32.mrf.mxu0 }
 0xf3b   :  { %2145 = vperm.xlu1 %2858, %v2027_v26  }
 0xf64   :  { %2111 = vxpose.xlu1.b32.start [1/2] (short) (narrow) %v2102_v37, 8 }
 0xf68   :  { %2112 = vxpose.xlu1.b32.end [2/2] (short) (narrow) %v2822_v17, 8 }
 0xfb2   :  { %v2151_v19 = vpop.permute.xlu1 %2150 }
 0xfb6   :  { %v2146_v22 = vpop.permute.xlu1 %2145 }
 0xfe0   :  { %v2127_v23 = vpop.trf.xlu1 }
 0xfe1   :  { %v2156_v24 = vrot.slane %v2127_v23, %v3101_v35 }
 0xfe3   :  { %v2157_v25 = vadd.f32 %v2156_v24, %v2146_v22  ;;  %v2158_v38 = vadd.f32 %v2156_v24, %v2151_v19 }
 0xfe5   :  { %vm2159_vm11 = vcmp.gt.f32.partialorder %v2157_v25, 0.0  ;;  %v2161_v6 = vmul.f32 0.2, %v2157_v25  ;;  %vm2160_vm12 = vcmp.gt.f32.partialorder %v2158_v38, 0.0  ;;  %v2162_v27 = vmul.f32 0.2, %v2158_v38 }
 0xfe7   :  { %v2163_v7 = vsel %vm2159_vm11, %v2157_v25, %v2161_v6  ;;  %v2164_v9 = vsel %vm2160_vm12, %v2158_v38, %v2162_v27 }
 0xfe8   :  { %v2165_v11 = vsel %vm381_vm3, %v2163_v7, -9e+15  ;;  %v2166_v43 = vsel %vm382_vm6, %v2164_v9, -9e+15  ;;  %vm2377_vm6 = vcmask 519168  }
 0xfe9   :  { %v2167_v40 = vsel %vm385_vm4, %v2165_v11, -inf  ;;  %v2170_v44 = vsel %vm385_vm4, %v2166_v43, -inf }
 0xfea   :  { %2168 = vmax.xlane.f32.xlu0 %v2167_v40 }
 0xfee   :  { %2171 = vmax.xlane.f32.xlu0 %v2170_v44 }
0x1073   :  { %v2169_v35 = vpop.xlane.xlu0 %2168 }
0x1074   :  { %v2173_v45 = vsub.f32 %v2165_v11, %v2169_v35 }
0x1076   :  { %v2175_v46 = vmul.f32 1.442695, %v2173_v45 }
0x1077   :  { %v2172_v47 = vpop.xlane.xlu0 %2171 }
0x1078   :  { %2907 = vpow2.f32 %v2175_v46  ;;  %v2174_v48 = vsub.f32 %v2166_v43, %v2172_v47 }
0x107a   :  { %v2177_v49 = vmul.f32 1.442695, %v2174_v48 }
0x107c   :  { %2909 = vpow2.f32 %v2177_v49 }
0x1085   :  { %v2908_v50 = vpop.eup %2907 }
0x1086   :  { %v2179_v39 = vsel %vm385_vm4, %v2908_v50, 0.0 }
0x1087   :  { %2180 = vadd.xlane.f32.xlu0 %v2179_v39 }
0x1089   :  { %v2910_v51 = vpop.eup %2909 }
0x108a   :  { %v2182_v53 = vsel %vm385_vm4, %v2910_v51, 0.0 }
0x108b   :  { %2183 = vadd.xlane.f32.xlu0 %v2182_v53 }
0x1110   :  { %v2181_v42 = vpop.xlane.xlu0 %2180 }
0x1111   :  { %2911 = vrcp.f32 %v2181_v42 }
0x1114   :  { %v2184_v54 = vpop.xlane.xlu0 %2183 }
0x1115   :  { %2913 = vrcp.f32 %v2184_v54 }
0x111e   :  { %v2912_v55 = vpop.eup %2911 }
0x111f   :  { %v2186_v57 = vmul.f32 %v2912_v55, %v2908_v50 }
0x1121   :  { %2827 = vmatprep.mubr.msk.f32.mxu1 %vm385_vm4, %v2186_v57 }
0x1122   :  { %v2914_v58 = vpop.eup %2913 }
0x1123   :  { %v2188_v59 = vmul.f32 %v2914_v58, %v2910_v51 }
0x1125   :  { %2828 = vmatmul.mubr.msk.f32.vlgmr.msra.gmra.mxu1 %vm385_vm4, %v2188_v59 }
0x1126   :  { %2831 = vmatpush3.msra.mxu1 %v2287_v60 }
0x1127   :  { %2832 = vmatprep.subr.mxu1 %v2286_v63 }
0x1128   :  { %2833 = vmatpush3.msra.mxu1 %v2286_v63 }
0x1129   :  { %2834 = vmatprep.subr.mxu1 %v2285_v0 }
0x112a   :  { %2835 = vmatpush3.msra.mxu1 %v2285_v0 }
0x112b   :  { %2836 = vmatprep.subr.mxu1 %v2284_v41 }
0x112c   :  { %2837 = vmatpush3.msra.mxu1 %v2284_v41 }
0x112d   :  { %2838 = vmatprep.subr.mxu1 %v2283_v1 }
0x112e   :  { %2839 = vmatpush3.msra.mxu1 %v2283_v1 }
0x112f   :  { %2840 = vmatprep.subr.mxu1 %v2282_v10 }
0x1130   :  { %2841 = vmatpush3.msra.mxu1 %v2282_v10 }
0x1131   :  { %2842 = vmatprep.subr.mxu1 %v2281_v2 }
0x1132   :  { %2843 = vmatpush3.msra.mxu1 %v2281_v2 }
0x1133   :  { %2844 = vmatprep.subr.mxu1 %v2280_v3 }
0x1134   :  { %2845 = vmatpush3.msra.mxu1 %v2280_v3 }
0x11e5   :  { %v2829_v4 = vpop.f32.mrf.mxu1 }
0x11e6   :  { %v2274_v5 = vmul.f32 1.442695, %v2829_v4  ;;  %vm2271_vm4 = vcmp.gt.f32.partialorder %v2829_v4, 0.0 }
0x11e7   :  { %v2261_v8 = vpop.f32.mrf.mxu1 }
0x11e8   :  { %2915 = vpow2.f32 %v2274_v5  ;;  %v2272_v12 = vmul.f32 1.442695, %v2261_v8  ;;  %vm2270_vm3 = vcmp.gt.f32.partialorder %v2261_v8, 0.0 }
0x11ea   :  { %2917 = vpow2.f32 %v2272_v12 }
0x11f5   :  { %v2916_v13 = vpop.eup %2915 }
0x11f6   :  { %v2443_v15 = vadd.f32 -1.0, %v2916_v13 }
0x11f7   :  { %v2918_v14 = vpop.eup %2917 }
0x11f8   :  { %v2442_v16 = vadd.f32 -1.0, %v2918_v14  ;;  %v2279_v20 = vsel %vm2271_vm4, %v2829_v4, %v2443_v15 }
0x11fa   :  { %v2278_v18 = vsel %vm2270_vm3, %v2261_v8, %v2442_v16 }
0x11fb   :  { %2846 = vmatprep.mubr.msk.f32.mxu1 %vm1954_vm1, %v2278_v18 }
0x11fc   :  { %2847 = vmatmul.mubr.msk.f32.vlgmr.msra.gmra.mxu1 %vm1954_vm1, %v2279_v20 }
0x12bc   :  { %v2848_v21 = vpop.f32.mrf.mxu1 }
0x12bd   :  { %v2449_v28 = vpack.c.bf16 %v2848_v21, %v2848_v21 }
0x12be   :  { %v2360_v29 = vpop.f32.mrf.mxu1 }
0x12bf   :  { %2379 = vst.msk [vmem:[%s3423_s8 + $0x4] sm:$0xf] %vm2377_vm6, %v2449_v28  ;;  %v2448_v30 = vpack.c.bf16 %v2360_v29, %v2360_v29 }
0x12c1   :  { %2378 = vst.msk [vmem:[%s3423_s8] sm:$0xf] %vm2377_vm6, %v2448_v30 }

</bundles_post_ra>
